<compile_context>
chip_gen: v7x
topology: tpu7x:2x2x1
jax: 0.10.0
libtpu: 0.0.40
codegen_flags: <defaults>
</compile_context>

<pallas_src>
import functools

import jax
import jax.numpy as jnp
from jax import lax
from jax.experimental import pallas as pl
from jax.experimental.pallas import tpu as pltpu

EPS = 1e-5
MXU_DTYPE = jnp.bfloat16        # matmul operand dtype for Cin>1 layers (f32 accum)
VMEM_LIMIT = 32 * 1024 * 1024   # safe scoped limit on v5e/v6e/v7x


def _round_up(x, m):
    return (x + m - 1) // m * m


# ---------------------------------------------------------------------------
# Fused per-layer kernel: conv(3x3, s2, p1) + bias + ReLU + BatchNorm2d
# ---------------------------------------------------------------------------
def _conv_bn_kernel(xph_ref, w_ref, b_ref, g_ref, bt_ref, out_ref, patch_ref,
                    *, N, Ho, Wo, Hph, Wph, Cin, Cout, P, P_pad):
    """xph_ref : [4, N*Hph*Wph, Cin]  2x2 phase-split spatially padded input,
                 phase p = (r%2)*2 + (s%2) of padded coords (r, s).
       w_ref   : [9*Cin, Cout]        rows ordered ((kh*3+kw)*Cin + ci).
       b/g/bt  : [1, Cout]            conv bias / BN gamma / BN beta (f32).
       out_ref : [P_pad, Cout]        normalized output, row = (n*Ho+ho)*Wo+wo.
       patch_ref: VMEM scratch [P_pad, 9*Cin] im2col patches (built in VMEM).
    """
    K = 9 * Cin

    if P_pad != P:
        patch_ref[...] = jnp.zeros_like(patch_ref)

    # In-VMEM im2col: every (tap, n, ho) is one contiguous [Wo, Cin] slab of
    # the phase-split input -> static 2D slices only (no strides, no reshape).
    for kh in range(3):
        for kw in range(3):
            tap = kh * 3 + kw
            phase = (kh % 2) * 2 + (kw % 2)
            dh, dw = kh // 2, kw // 2
            col = tap * Cin
            for n in range(N):
                for ho in range(Ho):
                    src = (n * Hph + ho + dh) * Wph + dw
                    dst = (n * Ho + ho) * Wo
                    patch_ref[dst:dst + Wo, col:col + Cin] = (
                        xph_ref[phase, src:src + Wo, :])

    # Convolution.
    if Cin == 1:
        # K = 9 would waste an MXU pass; 9 VPU broadcast-FMAs instead (f32).
        z = jnp.zeros((P_pad, Cout), jnp.float32)
        for k in range(K):
            z = z + patch_ref[:, k:k + 1] * w_ref[k:k + 1, :]
    else:
        # Single deep-K MXU matmul (bf16 operands, f32 accumulation).
        z = jnp.dot(patch_ref[...], w_ref[...],
                    preferred_element_type=jnp.float32)

    z = jnp.maximum(z + b_ref[...], 0.0)            # bias + ReLU, f32 epilogue

    # BatchNorm2d training-mode batch statistics over all N*Ho*Wo positions
    # (the whole batch is VMEM-resident, so stats + apply are fused here).
    if P_pad != P:
        rows = lax.broadcasted_iota(jnp.int32, (P_pad, 1), 0)
        valid = rows < P
        zs = jnp.where(valid, z, 0.0)
    else:
        zs = z
    mean = jnp.sum(zs, axis=0, keepdims=True) * (1.0 / P)
    centered = z - mean
    if P_pad != P:
        centered = jnp.where(valid, centered, 0.0)
    var = jnp.sum(centered * centered, axis=0, keepdims=True) * (1.0 / P)
    scale = g_ref[...] * lax.rsqrt(var + EPS)
    out_ref[...] = centered * scale + bt_ref[...]


# ---------------------------------------------------------------------------
# Per-layer JAX glue
# ---------------------------------------------------------------------------
def conv_bn_layer(x, w, b, gamma, beta):
    """x: [N, H, W, Cin] f32 NHWC.  w: [Cout, Cin, 3, 3] (PyTorch layout).
    Returns [N, Ho, Wo, Cout] f32."""
    N, H, W, Cin = x.shape
    Cout = w.shape[0]
    Ho = (H + 2 - 3) // 2 + 1
    Wo = (W + 2 - 3) // 2 + 1
    P = N * Ho * Wo
    P_pad = max(_round_up(P, 8), 8)
    K = 9 * Cin

    # Spatial pad(1) + 2x2 phase split (~1x input bytes; fuses with the
    # previous layer's tiny epilogue under jit).
    xp = jnp.pad(x, ((0, 0), (1, 1), (1, 1), (0, 0)))
    Hp, Wp = H + 2, W + 2
    Hpe, Wpe = _round_up(Hp, 2), _round_up(Wp, 2)
    xp = jnp.pad(xp, ((0, 0), (0, Hpe - Hp), (0, Wpe - Wp), (0, 0)))
    Hph, Wph = Hpe // 2, Wpe // 2
    xph = xp.reshape(N, Hph, 2, Wph, 2, Cin).transpose(2, 4, 0, 1, 3, 5)
    xph = xph.reshape(4, N * Hph * Wph, Cin)

    # Weights -> [9*Cin, Cout], row order (kh, kw, cin) matches the patches.
    wmat = jnp.transpose(w, (2, 3, 1, 0)).reshape(K, Cout)

    cdtype = jnp.float32 if Cin == 1 else MXU_DTYPE
    xph = xph.astype(cdtype)
    wmat = wmat.astype(cdtype)
    b2 = b.reshape(1, Cout).astype(jnp.float32)
    g2 = gamma.reshape(1, Cout).astype(jnp.float32)
    bt2 = beta.reshape(1, Cout).astype(jnp.float32)

    kernel = functools.partial(
        _conv_bn_kernel, N=N, Ho=Ho, Wo=Wo, Hph=Hph, Wph=Wph,
        Cin=Cin, Cout=Cout, P=P, P_pad=P_pad)

    out = pl.pallas_call(
        kernel,
        out_shape=jax.ShapeDtypeStruct((P_pad, Cout), jnp.float32),
        grid=(1,),
        in_specs=[
            pl.BlockSpec((4, N * Hph * Wph, Cin), lambda i: (0, 0, 0)),
            pl.BlockSpec((K, Cout), lambda i: (0, 0)),
            pl.BlockSpec((1, Cout), lambda i: (0, 0)),
            pl.BlockSpec((1, Cout), lambda i: (0, 0)),
            pl.BlockSpec((1, Cout), lambda i: (0, 0)),
        ],
        out_specs=pl.BlockSpec((P_pad, Cout), lambda i: (0, 0)),
        scratch_shapes=[pltpu.VMEM((P_pad, K), cdtype)],
        compiler_params=pltpu.CompilerParams(
            dimension_semantics=("arbitrary",),
            vmem_limit_bytes=VMEM_LIMIT),
    )(xph, wmat, b2, g2, bt2)

    return out[:P].reshape(N, Ho, Wo, Cout)


# ---------------------------------------------------------------------------
# Encoder
# ---------------------------------------------------------------------------
def make_params(key):
    """Deterministic parameter init matching the __init__ shapes."""
    ks = jax.random.split(key, 6)
    params = []
    dims = [(32, 1), (64, 32), (128, 64)]
    for i, (cout, cin) in enumerate(dims):
        fan_in = cin * 9
        w = jax.random.normal(ks[2 * i], (cout, cin, 3, 3), jnp.float32) / jnp.sqrt(fan_in)
        b = jax.random.normal(ks[2 * i + 1], (cout,), jnp.float32) * 0.1
        gamma = jnp.ones((cout,), jnp.float32)   # BatchNorm2d default weight
        beta = jnp.zeros((cout,), jnp.float32)   # BatchNorm2d default bias
        params.append((w, b, gamma, beta))
    return params


def encoder_forward(x_nchw, params):
    x = jnp.transpose(x_nchw, (0, 2, 3, 1))      # single flip to NHWC
    for (w, b, gamma, beta) in params:
        x = conv_bn_layer(x, w, b, gamma, beta)
    return jnp.transpose(x, (0, 3, 1, 2))        # back to NCHW like PyTorch


if __name__ == "__main__":
    key = jax.random.PRNGKey(0)
    k_x, k_p = jax.random.split(key)
    # NCHW input, 1 channel as required by Conv2d(1, 32, ...)
    x = jax.random.normal(k_x, (2, 1, 16, 16), jnp.float32)
    params = make_params(k_p)

    y = jax.jit(encoder_forward)(x, params)
    y = jax.block_until_ready(y)
    assert y.shape == (2, 128, 2, 2), y.shape
    assert jnp.isfinite(y).all()
    print("KERNEL_OK")
</pallas_src>

<mosaic_0001>
module attributes {stable_mosaic.version = 11 : i64} {
  func.func @_conv_bn_kernel(%arg0: i32, %arg1: memref<4x162x1xf32, #tpu.memory_space<vmem>>, %arg2: memref<9x32xf32, #tpu.memory_space<vmem>>, %arg3: memref<1x32xf32, #tpu.memory_space<vmem>>, %arg4: memref<1x32xf32, #tpu.memory_space<vmem>>, %arg5: memref<1x32xf32, #tpu.memory_space<vmem>>, %arg6: memref<128x32xf32, #tpu.memory_space<vmem>>, %arg7: memref<128x9xf32, #tpu.memory_space<vmem>>) attributes {dimension_semantics = [#tpu.dimension_semantics<arbitrary>], iteration_bounds = array<i64: 1>, scalar_prefetch = 0 : i64, scratch_operands = 1 : i64, tpu.core_type = #tpu.core_type<tc>, window_params = [{pipeline_mode = #tpu.pipeline_mode<synchronous>, transform_indices = @transform_0, window_bounds = array<i64: 4, 162, 1>}, {pipeline_mode = #tpu.pipeline_mode<synchronous>, transform_indices = @transform_1, window_bounds = array<i64: 9, 32>}, {pipeline_mode = #tpu.pipeline_mode<synchronous>, transform_indices = @transform_2, window_bounds = array<i64: 1, 32>}, {pipeline_mode = #tpu.pipeline_mode<synchronous>, transform_indices = @transform_3, window_bounds = array<i64: 1, 32>}, {pipeline_mode = #tpu.pipeline_mode<synchronous>, transform_indices = @transform_4, window_bounds = array<i64: 1, 32>}, {pipeline_mode = #tpu.pipeline_mode<synchronous>, transform_indices = @transform_5, window_bounds = array<i64: 128, 32>}]} {
    %c0 = arith.constant 0 : index
    %c0_0 = arith.constant 0 : index
    %c0_1 = arith.constant 0 : index
    %0 = vector.load %arg1[%c0, %c0_0, %c0_1] : memref<4x162x1xf32, #tpu.memory_space<vmem>>, vector<1x8x1xf32>
    %1 = vector.shape_cast %0 : vector<1x8x1xf32> to vector<8x1xf32>
    %c0_2 = arith.constant 0 : index
    %c0_3 = arith.constant 0 : index
    %2 = vector.load %arg7[%c0_2, %c0_3] : memref<128x9xf32, #tpu.memory_space<vmem>>, vector<8x1xf32>
    tpu.vector_store %arg7[%c0_2, %c0_3], %1 {strides = array<i32>} : memref<128x9xf32, #tpu.memory_space<vmem>>, vector<8x1xf32>,
    %c0_4 = arith.constant 0 : index
    %c9 = arith.constant 9 : index
    %c0_5 = arith.constant 0 : index
    %3 = vector.load %arg1[%c0_4, %c9, %c0_5] : memref<4x162x1xf32, #tpu.memory_space<vmem>>, vector<1x8x1xf32>
    %4 = vector.shape_cast %3 : vector<1x8x1xf32> to vector<8x1xf32>
    %c8 = arith.constant 8 : index
    %c0_6 = arith.constant 0 : index
    %5 = vector.load %arg7[%c8, %c0_6] : memref<128x9xf32, #tpu.memory_space<vmem>>, vector<8x1xf32>
    tpu.vector_store %arg7[%c8, %c0_6], %4 {strides = array<i32>} : memref<128x9xf32, #tpu.memory_space<vmem>>, vector<8x1xf32>,
    %c0_7 = arith.constant 0 : index
    %c18 = arith.constant 18 : index
    %c0_8 = arith.constant 0 : index
    %6 = vector.load %arg1[%c0_7, %c18, %c0_8] : memref<4x162x1xf32, #tpu.memory_space<vmem>>, vector<1x8x1xf32>
    %7 = vector.shape_cast %6 : vector<1x8x1xf32> to vector<8x1xf32>
    %c16 = arith.constant 16 : index
    %c0_9 = arith.constant 0 : index
    %8 = vector.load %arg7[%c16, %c0_9] : memref<128x9xf32, #tpu.memory_space<vmem>>, vector<8x1xf32>
    tpu.vector_store %arg7[%c16, %c0_9], %7 {strides = array<i32>} : memref<128x9xf32, #tpu.memory_space<vmem>>, vector<8x1xf32>,
    %c0_10 = arith.constant 0 : index
    %c27 = arith.constant 27 : index
    %c0_11 = arith.constant 0 : index
    %9 = vector.load %arg1[%c0_10, %c27, %c0_11] : memref<4x162x1xf32, #tpu.memory_space<vmem>>, vector<1x8x1xf32>
    %10 = vector.shape_cast %9 : vector<1x8x1xf32> to vector<8x1xf32>
    %c24 = arith.constant 24 : index
    %c0_12 = arith.constant 0 : index
    %11 = vector.load %arg7[%c24, %c0_12] : memref<128x9xf32, #tpu.memory_space<vmem>>, vector<8x1xf32>
    tpu.vector_store %arg7[%c24, %c0_12], %10 {strides = array<i32>} : memref<128x9xf32, #tpu.memory_space<vmem>>, vector<8x1xf32>,
    %c0_13 = arith.constant 0 : index
    %c36 = arith.constant 36 : index
    %c0_14 = arith.constant 0 : index
    %12 = vector.load %arg1[%c0_13, %c36, %c0_14] : memref<4x162x1xf32, #tpu.memory_space<vmem>>, vector<1x8x1xf32>
    %13 = vector.shape_cast %12 : vector<1x8x1xf32> to vector<8x1xf32>
    %c32 = arith.constant 32 : index
    %c0_15 = arith.constant 0 : index
    %14 = vector.load %arg7[%c32, %c0_15] : memref<128x9xf32, #tpu.memory_space<vmem>>, vector<8x1xf32>
    tpu.vector_store %arg7[%c32, %c0_15], %13 {strides = array<i32>} : memref<128x9xf32, #tpu.memory_space<vmem>>, vector<8x1xf32>,
    %c0_16 = arith.constant 0 : index
    %c45 = arith.constant 45 : index
    %c0_17 = arith.constant 0 : index
    %15 = vector.load %arg1[%c0_16, %c45, %c0_17] : memref<4x162x1xf32, #tpu.memory_space<vmem>>, vector<1x8x1xf32>
    %16 = vector.shape_cast %15 : vector<1x8x1xf32> to vector<8x1xf32>
    %c40 = arith.constant 40 : index
    %c0_18 = arith.constant 0 : index
    %17 = vector.load %arg7[%c40, %c0_18] : memref<128x9xf32, #tpu.memory_space<vmem>>, vector<8x1xf32>
    tpu.vector_store %arg7[%c40, %c0_18], %16 {strides = array<i32>} : memref<128x9xf32, #tpu.memory_space<vmem>>, vector<8x1xf32>,
    %c0_19 = arith.constant 0 : index
    %c54 = arith.constant 54 : index
    %c0_20 = arith.constant 0 : index
    %18 = vector.load %arg1[%c0_19, %c54, %c0_20] : memref<4x162x1xf32, #tpu.memory_space<vmem>>, vector<1x8x1xf32>
    %19 = vector.shape_cast %18 : vector<1x8x1xf32> to vector<8x1xf32>
    %c48 = arith.constant 48 : index
    %c0_21 = arith.constant 0 : index
    %20 = vector.load %arg7[%c48, %c0_21] : memref<128x9xf32, #tpu.memory_space<vmem>>, vector<8x1xf32>
    tpu.vector_store %arg7[%c48, %c0_21], %19 {strides = array<i32>} : memref<128x9xf32, #tpu.memory_space<vmem>>, vector<8x1xf32>,
    %c0_22 = arith.constant 0 : index
    %c63 = arith.constant 63 : index
    %c0_23 = arith.constant 0 : index
    %21 = vector.load %arg1[%c0_22, %c63, %c0_23] : memref<4x162x1xf32, #tpu.memory_space<vmem>>, vector<1x8x1xf32>
    %22 = vector.shape_cast %21 : vector<1x8x1xf32> to vector<8x1xf32>
    %c56 = arith.constant 56 : index
    %c0_24 = arith.constant 0 : index
    %23 = vector.load %arg7[%c56, %c0_24] : memref<128x9xf32, #tpu.memory_space<vmem>>, vector<8x1xf32>
    tpu.vector_store %arg7[%c56, %c0_24], %22 {strides = array<i32>} : memref<128x9xf32, #tpu.memory_space<vmem>>, vector<8x1xf32>,
    %c0_25 = arith.constant 0 : index
    %c81 = arith.constant 81 : index
    %c0_26 = arith.constant 0 : index
    %24 = vector.load %arg1[%c0_25, %c81, %c0_26] : memref<4x162x1xf32, #tpu.memory_space<vmem>>, vector<1x8x1xf32>
    %25 = vector.shape_cast %24 : vector<1x8x1xf32> to vector<8x1xf32>
    %c64 = arith.constant 64 : index
    %c0_27 = arith.constant 0 : index
    %26 = vector.load %arg7[%c64, %c0_27] : memref<128x9xf32, #tpu.memory_space<vmem>>, vector<8x1xf32>
    tpu.vector_store %arg7[%c64, %c0_27], %25 {strides = array<i32>} : memref<128x9xf32, #tpu.memory_space<vmem>>, vector<8x1xf32>,
    %c0_28 = arith.constant 0 : index
    %c90 = arith.constant 90 : index
    %c0_29 = arith.constant 0 : index
    %27 = vector.load %arg1[%c0_28, %c90, %c0_29] : memref<4x162x1xf32, #tpu.memory_space<vmem>>, vector<1x8x1xf32>
    %28 = vector.shape_cast %27 : vector<1x8x1xf32> to vector<8x1xf32>
    %c72 = arith.constant 72 : index
    %c0_30 = arith.constant 0 : index
    %29 = vector.load %arg7[%c72, %c0_30] : memref<128x9xf32, #tpu.memory_space<vmem>>, vector<8x1xf32>
    tpu.vector_store %arg7[%c72, %c0_30], %28 {strides = array<i32>} : memref<128x9xf32, #tpu.memory_space<vmem>>, vector<8x1xf32>,
    %c0_31 = arith.constant 0 : index
    %c99 = arith.constant 99 : index
    %c0_32 = arith.constant 0 : index
    %30 = vector.load %arg1[%c0_31, %c99, %c0_32] : memref<4x162x1xf32, #tpu.memory_space<vmem>>, vector<1x8x1xf32>
    %31 = vector.shape_cast %30 : vector<1x8x1xf32> to vector<8x1xf32>
    %c80 = arith.constant 80 : index
    %c0_33 = arith.constant 0 : index
    %32 = vector.load %arg7[%c80, %c0_33] : memref<128x9xf32, #tpu.memory_space<vmem>>, vector<8x1xf32>
    tpu.vector_store %arg7[%c80, %c0_33], %31 {strides = array<i32>} : memref<128x9xf32, #tpu.memory_space<vmem>>, vector<8x1xf32>,
    %c0_34 = arith.constant 0 : index
    %c108 = arith.constant 108 : index
    %c0_35 = arith.constant 0 : index
    %33 = vector.load %arg1[%c0_34, %c108, %c0_35] : memref<4x162x1xf32, #tpu.memory_space<vmem>>, vector<1x8x1xf32>
    %34 = vector.shape_cast %33 : vector<1x8x1xf32> to vector<8x1xf32>
    %c88 = arith.constant 88 : index
    %c0_36 = arith.constant 0 : index
    %35 = vector.load %arg7[%c88, %c0_36] : memref<128x9xf32, #tpu.memory_space<vmem>>, vector<8x1xf32>
    tpu.vector_store %arg7[%c88, %c0_36], %34 {strides = array<i32>} : memref<128x9xf32, #tpu.memory_space<vmem>>, vector<8x1xf32>,
    %c0_37 = arith.constant 0 : index
    %c117 = arith.constant 117 : index
    %c0_38 = arith.constant 0 : index
    %36 = vector.load %arg1[%c0_37, %c117, %c0_38] : memref<4x162x1xf32, #tpu.memory_space<vmem>>, vector<1x8x1xf32>
    %37 = vector.shape_cast %36 : vector<1x8x1xf32> to vector<8x1xf32>
    %c96 = arith.constant 96 : index
    %c0_39 = arith.constant 0 : index
    %38 = vector.load %arg7[%c96, %c0_39] : memref<128x9xf32, #tpu.memory_space<vmem>>, vector<8x1xf32>
    tpu.vector_store %arg7[%c96, %c0_39], %37 {strides = array<i32>} : memref<128x9xf32, #tpu.memory_space<vmem>>, vector<8x1xf32>,
    %c0_40 = arith.constant 0 : index
    %c126 = arith.constant 126 : index
    %c0_41 = arith.constant 0 : index
    %39 = vector.load %arg1[%c0_40, %c126, %c0_41] : memref<4x162x1xf32, #tpu.memory_space<vmem>>, vector<1x8x1xf32>
    %40 = vector.shape_cast %39 : vector<1x8x1xf32> to vector<8x1xf32>
    %c104 = arith.constant 104 : index
    %c0_42 = arith.constant 0 : index
    %41 = vector.load %arg7[%c104, %c0_42] : memref<128x9xf32, #tpu.memory_space<vmem>>, vector<8x1xf32>
    tpu.vector_store %arg7[%c104, %c0_42], %40 {strides = array<i32>} : memref<128x9xf32, #tpu.memory_space<vmem>>, vector<8x1xf32>,
    %c0_43 = arith.constant 0 : index
    %c135 = arith.constant 135 : index
    %c0_44 = arith.constant 0 : index
    %42 = vector.load %arg1[%c0_43, %c135, %c0_44] : memref<4x162x1xf32, #tpu.memory_space<vmem>>, vector<1x8x1xf32>
    %43 = vector.shape_cast %42 : vector<1x8x1xf32> to vector<8x1xf32>
    %c112 = arith.constant 112 : index
    %c0_45 = arith.constant 0 : index
    %44 = vector.load %arg7[%c112, %c0_45] : memref<128x9xf32, #tpu.memory_space<vmem>>, vector<8x1xf32>
    tpu.vector_store %arg7[%c112, %c0_45], %43 {strides = array<i32>} : memref<128x9xf32, #tpu.memory_space<vmem>>, vector<8x1xf32>,
    %c0_46 = arith.constant 0 : index
    %c144 = arith.constant 144 : index
    %c0_47 = arith.constant 0 : index
    %45 = vector.load %arg1[%c0_46, %c144, %c0_47] : memref<4x162x1xf32, #tpu.memory_space<vmem>>, vector<1x8x1xf32>
    %46 = vector.shape_cast %45 : vector<1x8x1xf32> to vector<8x1xf32>
    %c120 = arith.constant 120 : index
    %c0_48 = arith.constant 0 : index
    %47 = vector.load %arg7[%c120, %c0_48] : memref<128x9xf32, #tpu.memory_space<vmem>>, vector<8x1xf32>
    tpu.vector_store %arg7[%c120, %c0_48], %46 {strides = array<i32>} : memref<128x9xf32, #tpu.memory_space<vmem>>, vector<8x1xf32>,
    %c1 = arith.constant 1 : index
    %c0_49 = arith.constant 0 : index
    %c0_50 = arith.constant 0 : index
    %48 = vector.load %arg1[%c1, %c0_49, %c0_50] : memref<4x162x1xf32, #tpu.memory_space<vmem>>, vector<1x8x1xf32>
    %49 = vector.shape_cast %48 : vector<1x8x1xf32> to vector<8x1xf32>
    %c0_51 = arith.constant 0 : index
    %c1_52 = arith.constant 1 : index
    %50 = vector.load %arg7[%c0_51, %c1_52] : memref<128x9xf32, #tpu.memory_space<vmem>>, vector<8x1xf32>
    tpu.vector_store %arg7[%c0_51, %c1_52], %49 {strides = array<i32>} : memref<128x9xf32, #tpu.memory_space<vmem>>, vector<8x1xf32>,
    %c1_53 = arith.constant 1 : index
    %c9_54 = arith.constant 9 : index
    %c0_55 = arith.constant 0 : index
    %51 = vector.load %arg1[%c1_53, %c9_54, %c0_55] : memref<4x162x1xf32, #tpu.memory_space<vmem>>, vector<1x8x1xf32>
    %52 = vector.shape_cast %51 : vector<1x8x1xf32> to vector<8x1xf32>
    %c8_56 = arith.constant 8 : index
    %c1_57 = arith.constant 1 : index
    %53 = vector.load %arg7[%c8_56, %c1_57] : memref<128x9xf32, #tpu.memory_space<vmem>>, vector<8x1xf32>
    tpu.vector_store %arg7[%c8_56, %c1_57], %52 {strides = array<i32>} : memref<128x9xf32, #tpu.memory_space<vmem>>, vector<8x1xf32>,
    %c1_58 = arith.constant 1 : index
    %c18_59 = arith.constant 18 : index
    %c0_60 = arith.constant 0 : index
    %54 = vector.load %arg1[%c1_58, %c18_59, %c0_60] : memref<4x162x1xf32, #tpu.memory_space<vmem>>, vector<1x8x1xf32>
    %55 = vector.shape_cast %54 : vector<1x8x1xf32> to vector<8x1xf32>
    %c16_61 = arith.constant 16 : index
    %c1_62 = arith.constant 1 : index
    %56 = vector.load %arg7[%c16_61, %c1_62] : memref<128x9xf32, #tpu.memory_space<vmem>>, vector<8x1xf32>
    tpu.vector_store %arg7[%c16_61, %c1_62], %55 {strides = array<i32>} : memref<128x9xf32, #tpu.memory_space<vmem>>, vector<8x1xf32>,
    %c1_63 = arith.constant 1 : index
    %c27_64 = arith.constant 27 : index
    %c0_65 = arith.constant 0 : index
    %57 = vector.load %arg1[%c1_63, %c27_64, %c0_65] : memref<4x162x1xf32, #tpu.memory_space<vmem>>, vector<1x8x1xf32>
    %58 = vector.shape_cast %57 : vector<1x8x1xf32> to vector<8x1xf32>
    %c24_66 = arith.constant 24 : index
    %c1_67 = arith.constant 1 : index
    %59 = vector.load %arg7[%c24_66, %c1_67] : memref<128x9xf32, #tpu.memory_space<vmem>>, vector<8x1xf32>
    tpu.vector_store %arg7[%c24_66, %c1_67], %58 {strides = array<i32>} : memref<128x9xf32, #tpu.memory_space<vmem>>, vector<8x1xf32>,
    %c1_68 = arith.constant 1 : index
    %c36_69 = arith.constant 36 : index
    %c0_70 = arith.constant 0 : index
    %60 = vector.load %arg1[%c1_68, %c36_69, %c0_70] : memref<4x162x1xf32, #tpu.memory_space<vmem>>, vector<1x8x1xf32>
    %61 = vector.shape_cast %60 : vector<1x8x1xf32> to vector<8x1xf32>
    %c32_71 = arith.constant 32 : index
    %c1_72 = arith.constant 1 : index
    %62 = vector.load %arg7[%c32_71, %c1_72] : memref<128x9xf32, #tpu.memory_space<vmem>>, vector<8x1xf32>
    tpu.vector_store %arg7[%c32_71, %c1_72], %61 {strides = array<i32>} : memref<128x9xf32, #tpu.memory_space<vmem>>, vector<8x1xf32>,
    %c1_73 = arith.constant 1 : index
    %c45_74 = arith.constant 45 : index
    %c0_75 = arith.constant 0 : index
    %63 = vector.load %arg1[%c1_73, %c45_74, %c0_75] : memref<4x162x1xf32, #tpu.memory_space<vmem>>, vector<1x8x1xf32>
    %64 = vector.shape_cast %63 : vector<1x8x1xf32> to vector<8x1xf32>
    %c40_76 = arith.constant 40 : index
    %c1_77 = arith.constant 1 : index
    %65 = vector.load %arg7[%c40_76, %c1_77] : memref<128x9xf32, #tpu.memory_space<vmem>>, vector<8x1xf32>
    tpu.vector_store %arg7[%c40_76, %c1_77], %64 {strides = array<i32>} : memref<128x9xf32, #tpu.memory_space<vmem>>, vector<8x1xf32>,
    %c1_78 = arith.constant 1 : index
    %c54_79 = arith.constant 54 : index
    %c0_80 = arith.constant 0 : index
    %66 = vector.load %arg1[%c1_78, %c54_79, %c0_80] : memref<4x162x1xf32, #tpu.memory_space<vmem>>, vector<1x8x1xf32>
    %67 = vector.shape_cast %66 : vector<1x8x1xf32> to vector<8x1xf32>
    %c48_81 = arith.constant 48 : index
    %c1_82 = arith.constant 1 : index
    %68 = vector.load %arg7[%c48_81, %c1_82] : memref<128x9xf32, #tpu.memory_space<vmem>>, vector<8x1xf32>
    tpu.vector_store %arg7[%c48_81, %c1_82], %67 {strides = array<i32>} : memref<128x9xf32, #tpu.memory_space<vmem>>, vector<8x1xf32>,
    %c1_83 = arith.constant 1 : index
    %c63_84 = arith.constant 63 : index
    %c0_85 = arith.constant 0 : index
    %69 = vector.load %arg1[%c1_83, %c63_84, %c0_85] : memref<4x162x1xf32, #tpu.memory_space<vmem>>, vector<1x8x1xf32>
    %70 = vector.shape_cast %69 : vector<1x8x1xf32> to vector<8x1xf32>
    %c56_86 = arith.constant 56 : index
    %c1_87 = arith.constant 1 : index
    %71 = vector.load %arg7[%c56_86, %c1_87] : memref<128x9xf32, #tpu.memory_space<vmem>>, vector<8x1xf32>
    tpu.vector_store %arg7[%c56_86, %c1_87], %70 {strides = array<i32>} : memref<128x9xf32, #tpu.memory_space<vmem>>, vector<8x1xf32>,
    %c1_88 = arith.constant 1 : index
    %c81_89 = arith.constant 81 : index
    %c0_90 = arith.constant 0 : index
    %72 = vector.load %arg1[%c1_88, %c81_89, %c0_90] : memref<4x162x1xf32, #tpu.memory_space<vmem>>, vector<1x8x1xf32>
    %73 = vector.shape_cast %72 : vector<1x8x1xf32> to vector<8x1xf32>
    %c64_91 = arith.constant 64 : index
    %c1_92 = arith.constant 1 : index
    %74 = vector.load %arg7[%c64_91, %c1_92] : memref<128x9xf32, #tpu.memory_space<vmem>>, vector<8x1xf32>
    tpu.vector_store %arg7[%c64_91, %c1_92], %73 {strides = array<i32>} : memref<128x9xf32, #tpu.memory_space<vmem>>, vector<8x1xf32>,
    %c1_93 = arith.constant 1 : index
    %c90_94 = arith.constant 90 : index
    %c0_95 = arith.constant 0 : index
    %75 = vector.load %arg1[%c1_93, %c90_94, %c0_95] : memref<4x162x1xf32, #tpu.memory_space<vmem>>, vector<1x8x1xf32>
    %76 = vector.shape_cast %75 : vector<1x8x1xf32> to vector<8x1xf32>
    %c72_96 = arith.constant 72 : index
    %c1_97 = arith.constant 1 : index
    %77 = vector.load %arg7[%c72_96, %c1_97] : memref<128x9xf32, #tpu.memory_space<vmem>>, vector<8x1xf32>
    tpu.vector_store %arg7[%c72_96, %c1_97], %76 {strides = array<i32>} : memref<128x9xf32, #tpu.memory_space<vmem>>, vector<8x1xf32>,
    %c1_98 = arith.constant 1 : index
    %c99_99 = arith.constant 99 : index
    %c0_100 = arith.constant 0 : index
    %78 = vector.load %arg1[%c1_98, %c99_99, %c0_100] : memref<4x162x1xf32, #tpu.memory_space<vmem>>, vector<1x8x1xf32>
    %79 = vector.shape_cast %78 : vector<1x8x1xf32> to vector<8x1xf32>
    %c80_101 = arith.constant 80 : index
    %c1_102 = arith.constant 1 : index
    %80 = vector.load %arg7[%c80_101, %c1_102] : memref<128x9xf32, #tpu.memory_space<vmem>>, vector<8x1xf32>
    tpu.vector_store %arg7[%c80_101, %c1_102], %79 {strides = array<i32>} : memref<128x9xf32, #tpu.memory_space<vmem>>, vector<8x1xf32>,
    %c1_103 = arith.constant 1 : index
    %c108_104 = arith.constant 108 : index
    %c0_105 = arith.constant 0 : index
    %81 = vector.load %arg1[%c1_103, %c108_104, %c0_105] : memref<4x162x1xf32, #tpu.memory_space<vmem>>, vector<1x8x1xf32>
    %82 = vector.shape_cast %81 : vector<1x8x1xf32> to vector<8x1xf32>
    %c88_106 = arith.constant 88 : index
    %c1_107 = arith.constant 1 : index
    %83 = vector.load %arg7[%c88_106, %c1_107] : memref<128x9xf32, #tpu.memory_space<vmem>>, vector<8x1xf32>
    tpu.vector_store %arg7[%c88_106, %c1_107], %82 {strides = array<i32>} : memref<128x9xf32, #tpu.memory_space<vmem>>, vector<8x1xf32>,
    %c1_108 = arith.constant 1 : index
    %c117_109 = arith.constant 117 : index
    %c0_110 = arith.constant 0 : index
    %84 = vector.load %arg1[%c1_108, %c117_109, %c0_110] : memref<4x162x1xf32, #tpu.memory_space<vmem>>, vector<1x8x1xf32>
    %85 = vector.shape_cast %84 : vector<1x8x1xf32> to vector<8x1xf32>
    %c96_111 = arith.constant 96 : index
    %c1_112 = arith.constant 1 : index
    %86 = vector.load %arg7[%c96_111, %c1_112] : memref<128x9xf32, #tpu.memory_space<vmem>>, vector<8x1xf32>
    tpu.vector_store %arg7[%c96_111, %c1_112], %85 {strides = array<i32>} : memref<128x9xf32, #tpu.memory_space<vmem>>, vector<8x1xf32>,
    %c1_113 = arith.constant 1 : index
    %c126_114 = arith.constant 126 : index
    %c0_115 = arith.constant 0 : index
    %87 = vector.load %arg1[%c1_113, %c126_114, %c0_115] : memref<4x162x1xf32, #tpu.memory_space<vmem>>, vector<1x8x1xf32>
    %88 = vector.shape_cast %87 : vector<1x8x1xf32> to vector<8x1xf32>
    %c104_116 = arith.constant 104 : index
    %c1_117 = arith.constant 1 : index
    %89 = vector.load %arg7[%c104_116, %c1_117] : memref<128x9xf32, #tpu.memory_space<vmem>>, vector<8x1xf32>
    tpu.vector_store %arg7[%c104_116, %c1_117], %88 {strides = array<i32>} : memref<128x9xf32, #tpu.memory_space<vmem>>, vector<8x1xf32>,
    %c1_118 = arith.constant 1 : index
    %c135_119 = arith.constant 135 : index
    %c0_120 = arith.constant 0 : index
    %90 = vector.load %arg1[%c1_118, %c135_119, %c0_120] : memref<4x162x1xf32, #tpu.memory_space<vmem>>, vector<1x8x1xf32>
    %91 = vector.shape_cast %90 : vector<1x8x1xf32> to vector<8x1xf32>
    %c112_121 = arith.constant 112 : index
    %c1_122 = arith.constant 1 : index
    %92 = vector.load %arg7[%c112_121, %c1_122] : memref<128x9xf32, #tpu.memory_space<vmem>>, vector<8x1xf32>
    tpu.vector_store %arg7[%c112_121, %c1_122], %91 {strides = array<i32>} : memref<128x9xf32, #tpu.memory_space<vmem>>, vector<8x1xf32>,
    %c1_123 = arith.constant 1 : index
    %c144_124 = arith.constant 144 : index
    %c0_125 = arith.constant 0 : index
    %93 = vector.load %arg1[%c1_123, %c144_124, %c0_125] : memref<4x162x1xf32, #tpu.memory_space<vmem>>, vector<1x8x1xf32>
    %94 = vector.shape_cast %93 : vector<1x8x1xf32> to vector<8x1xf32>
    %c120_126 = arith.constant 120 : index
    %c1_127 = arith.constant 1 : index
    %95 = vector.load %arg7[%c120_126, %c1_127] : memref<128x9xf32, #tpu.memory_space<vmem>>, vector<8x1xf32>
    tpu.vector_store %arg7[%c120_126, %c1_127], %94 {strides = array<i32>} : memref<128x9xf32, #tpu.memory_space<vmem>>, vector<8x1xf32>,
    %c0_128 = arith.constant 0 : index
    %c1_129 = arith.constant 1 : index
    %c0_130 = arith.constant 0 : index
    %96 = vector.load %arg1[%c0_128, %c1_129, %c0_130] : memref<4x162x1xf32, #tpu.memory_space<vmem>>, vector<1x8x1xf32>
    %97 = vector.shape_cast %96 : vector<1x8x1xf32> to vector<8x1xf32>
    %c0_131 = arith.constant 0 : index
    %c2 = arith.constant 2 : index
    %98 = vector.load %arg7[%c0_131, %c2] : memref<128x9xf32, #tpu.memory_space<vmem>>, vector<8x1xf32>
    tpu.vector_store %arg7[%c0_131, %c2], %97 {strides = array<i32>} : memref<128x9xf32, #tpu.memory_space<vmem>>, vector<8x1xf32>,
    %c0_132 = arith.constant 0 : index
    %c10 = arith.constant 10 : index
    %c0_133 = arith.constant 0 : index
    %99 = vector.load %arg1[%c0_132, %c10, %c0_133] : memref<4x162x1xf32, #tpu.memory_space<vmem>>, vector<1x8x1xf32>
    %100 = vector.shape_cast %99 : vector<1x8x1xf32> to vector<8x1xf32>
    %c8_134 = arith.constant 8 : index
    %c2_135 = arith.constant 2 : index
    %101 = vector.load %arg7[%c8_134, %c2_135] : memref<128x9xf32, #tpu.memory_space<vmem>>, vector<8x1xf32>
    tpu.vector_store %arg7[%c8_134, %c2_135], %100 {strides = array<i32>} : memref<128x9xf32, #tpu.memory_space<vmem>>, vector<8x1xf32>,
    %c0_136 = arith.constant 0 : index
    %c19 = arith.constant 19 : index
    %c0_137 = arith.constant 0 : index
    %102 = vector.load %arg1[%c0_136, %c19, %c0_137] : memref<4x162x1xf32, #tpu.memory_space<vmem>>, vector<1x8x1xf32>
    %103 = vector.shape_cast %102 : vector<1x8x1xf32> to vector<8x1xf32>
    %c16_138 = arith.constant 16 : index
    %c2_139 = arith.constant 2 : index
    %104 = vector.load %arg7[%c16_138, %c2_139] : memref<128x9xf32, #tpu.memory_space<vmem>>, vector<8x1xf32>
    tpu.vector_store %arg7[%c16_138, %c2_139], %103 {strides = array<i32>} : memref<128x9xf32, #tpu.memory_space<vmem>>, vector<8x1xf32>,
    %c0_140 = arith.constant 0 : index
    %c28 = arith.constant 28 : index
    %c0_141 = arith.constant 0 : index
    %105 = vector.load %arg1[%c0_140, %c28, %c0_141] : memref<4x162x1xf32, #tpu.memory_space<vmem>>, vector<1x8x1xf32>
    %106 = vector.shape_cast %105 : vector<1x8x1xf32> to vector<8x1xf32>
    %c24_142 = arith.constant 24 : index
    %c2_143 = arith.constant 2 : index
    %107 = vector.load %arg7[%c24_142, %c2_143] : memref<128x9xf32, #tpu.memory_space<vmem>>, vector<8x1xf32>
    tpu.vector_store %arg7[%c24_142, %c2_143], %106 {strides = array<i32>} : memref<128x9xf32, #tpu.memory_space<vmem>>, vector<8x1xf32>,
    %c0_144 = arith.constant 0 : index
    %c37 = arith.constant 37 : index
    %c0_145 = arith.constant 0 : index
    %108 = vector.load %arg1[%c0_144, %c37, %c0_145] : memref<4x162x1xf32, #tpu.memory_space<vmem>>, vector<1x8x1xf32>
    %109 = vector.shape_cast %108 : vector<1x8x1xf32> to vector<8x1xf32>
    %c32_146 = arith.constant 32 : index
    %c2_147 = arith.constant 2 : index
    %110 = vector.load %arg7[%c32_146, %c2_147] : memref<128x9xf32, #tpu.memory_space<vmem>>, vector<8x1xf32>
    tpu.vector_store %arg7[%c32_146, %c2_147], %109 {strides = array<i32>} : memref<128x9xf32, #tpu.memory_space<vmem>>, vector<8x1xf32>,
    %c0_148 = arith.constant 0 : index
    %c46 = arith.constant 46 : index
    %c0_149 = arith.constant 0 : index
    %111 = vector.load %arg1[%c0_148, %c46, %c0_149] : memref<4x162x1xf32, #tpu.memory_space<vmem>>, vector<1x8x1xf32>
    %112 = vector.shape_cast %111 : vector<1x8x1xf32> to vector<8x1xf32>
    %c40_150 = arith.constant 40 : index
    %c2_151 = arith.constant 2 : index
    %113 = vector.load %arg7[%c40_150, %c2_151] : memref<128x9xf32, #tpu.memory_space<vmem>>, vector<8x1xf32>
    tpu.vector_store %arg7[%c40_150, %c2_151], %112 {strides = array<i32>} : memref<128x9xf32, #tpu.memory_space<vmem>>, vector<8x1xf32>,
    %c0_152 = arith.constant 0 : index
    %c55 = arith.constant 55 : index
    %c0_153 = arith.constant 0 : index
    %114 = vector.load %arg1[%c0_152, %c55, %c0_153] : memref<4x162x1xf32, #tpu.memory_space<vmem>>, vector<1x8x1xf32>
    %115 = vector.shape_cast %114 : vector<1x8x1xf32> to vector<8x1xf32>
    %c48_154 = arith.constant 48 : index
    %c2_155 = arith.constant 2 : index
    %116 = vector.load %arg7[%c48_154, %c2_155] : memref<128x9xf32, #tpu.memory_space<vmem>>, vector<8x1xf32>
    tpu.vector_store %arg7[%c48_154, %c2_155], %115 {strides = array<i32>} : memref<128x9xf32, #tpu.memory_space<vmem>>, vector<8x1xf32>,
    %c0_156 = arith.constant 0 : index
    %c64_157 = arith.constant 64 : index
    %c0_158 = arith.constant 0 : index
    %117 = vector.load %arg1[%c0_156, %c64_157, %c0_158] : memref<4x162x1xf32, #tpu.memory_space<vmem>>, vector<1x8x1xf32>
    %118 = vector.shape_cast %117 : vector<1x8x1xf32> to vector<8x1xf32>
    %c56_159 = arith.constant 56 : index
    %c2_160 = arith.constant 2 : index
    %119 = vector.load %arg7[%c56_159, %c2_160] : memref<128x9xf32, #tpu.memory_space<vmem>>, vector<8x1xf32>
    tpu.vector_store %arg7[%c56_159, %c2_160], %118 {strides = array<i32>} : memref<128x9xf32, #tpu.memory_space<vmem>>, vector<8x1xf32>,
    %c0_161 = arith.constant 0 : index
    %c82 = arith.constant 82 : index
    %c0_162 = arith.constant 0 : index
    %120 = vector.load %arg1[%c0_161, %c82, %c0_162] : memref<4x162x1xf32, #tpu.memory_space<vmem>>, vector<1x8x1xf32>
    %121 = vector.shape_cast %120 : vector<1x8x1xf32> to vector<8x1xf32>
    %c64_163 = arith.constant 64 : index
    %c2_164 = arith.constant 2 : index
    %122 = vector.load %arg7[%c64_163, %c2_164] : memref<128x9xf32, #tpu.memory_space<vmem>>, vector<8x1xf32>
    tpu.vector_store %arg7[%c64_163, %c2_164], %121 {strides = array<i32>} : memref<128x9xf32, #tpu.memory_space<vmem>>, vector<8x1xf32>,
    %c0_165 = arith.constant 0 : index
    %c91 = arith.constant 91 : index
    %c0_166 = arith.constant 0 : index
    %123 = vector.load %arg1[%c0_165, %c91, %c0_166] : memref<4x162x1xf32, #tpu.memory_space<vmem>>, vector<1x8x1xf32>
    %124 = vector.shape_cast %123 : vector<1x8x1xf32> to vector<8x1xf32>
    %c72_167 = arith.constant 72 : index
    %c2_168 = arith.constant 2 : index
    %125 = vector.load %arg7[%c72_167, %c2_168] : memref<128x9xf32, #tpu.memory_space<vmem>>, vector<8x1xf32>
    tpu.vector_store %arg7[%c72_167, %c2_168], %124 {strides = array<i32>} : memref<128x9xf32, #tpu.memory_space<vmem>>, vector<8x1xf32>,
    %c0_169 = arith.constant 0 : index
    %c100 = arith.constant 100 : index
    %c0_170 = arith.constant 0 : index
    %126 = vector.load %arg1[%c0_169, %c100, %c0_170] : memref<4x162x1xf32, #tpu.memory_space<vmem>>, vector<1x8x1xf32>
    %127 = vector.shape_cast %126 : vector<1x8x1xf32> to vector<8x1xf32>
    %c80_171 = arith.constant 80 : index
    %c2_172 = arith.constant 2 : index
    %128 = vector.load %arg7[%c80_171, %c2_172] : memref<128x9xf32, #tpu.memory_space<vmem>>, vector<8x1xf32>
    tpu.vector_store %arg7[%c80_171, %c2_172], %127 {strides = array<i32>} : memref<128x9xf32, #tpu.memory_space<vmem>>, vector<8x1xf32>,
    %c0_173 = arith.constant 0 : index
    %c109 = arith.constant 109 : index
    %c0_174 = arith.constant 0 : index
    %129 = vector.load %arg1[%c0_173, %c109, %c0_174] : memref<4x162x1xf32, #tpu.memory_space<vmem>>, vector<1x8x1xf32>
    %130 = vector.shape_cast %129 : vector<1x8x1xf32> to vector<8x1xf32>
    %c88_175 = arith.constant 88 : index
    %c2_176 = arith.constant 2 : index
    %131 = vector.load %arg7[%c88_175, %c2_176] : memref<128x9xf32, #tpu.memory_space<vmem>>, vector<8x1xf32>
    tpu.vector_store %arg7[%c88_175, %c2_176], %130 {strides = array<i32>} : memref<128x9xf32, #tpu.memory_space<vmem>>, vector<8x1xf32>,
    %c0_177 = arith.constant 0 : index
    %c118 = arith.constant 118 : index
    %c0_178 = arith.constant 0 : index
    %132 = vector.load %arg1[%c0_177, %c118, %c0_178] : memref<4x162x1xf32, #tpu.memory_space<vmem>>, vector<1x8x1xf32>
    %133 = vector.shape_cast %132 : vector<1x8x1xf32> to vector<8x1xf32>
    %c96_179 = arith.constant 96 : index
    %c2_180 = arith.constant 2 : index
    %134 = vector.load %arg7[%c96_179, %c2_180] : memref<128x9xf32, #tpu.memory_space<vmem>>, vector<8x1xf32>
    tpu.vector_store %arg7[%c96_179, %c2_180], %133 {strides = array<i32>} : memref<128x9xf32, #tpu.memory_space<vmem>>, vector<8x1xf32>,
    %c0_181 = arith.constant 0 : index
    %c127 = arith.constant 127 : index
    %c0_182 = arith.constant 0 : index
    %135 = vector.load %arg1[%c0_181, %c127, %c0_182] : memref<4x162x1xf32, #tpu.memory_space<vmem>>, vector<1x8x1xf32>
    %136 = vector.shape_cast %135 : vector<1x8x1xf32> to vector<8x1xf32>
    %c104_183 = arith.constant 104 : index
    %c2_184 = arith.constant 2 : index
    %137 = vector.load %arg7[%c104_183, %c2_184] : memref<128x9xf32, #tpu.memory_space<vmem>>, vector<8x1xf32>
    tpu.vector_store %arg7[%c104_183, %c2_184], %136 {strides = array<i32>} : memref<128x9xf32, #tpu.memory_space<vmem>>, vector<8x1xf32>,
    %c0_185 = arith.constant 0 : index
    %c136 = arith.constant 136 : index
    %c0_186 = arith.constant 0 : index
    %138 = vector.load %arg1[%c0_185, %c136, %c0_186] : memref<4x162x1xf32, #tpu.memory_space<vmem>>, vector<1x8x1xf32>
    %139 = vector.shape_cast %138 : vector<1x8x1xf32> to vector<8x1xf32>
    %c112_187 = arith.constant 112 : index
    %c2_188 = arith.constant 2 : index
    %140 = vector.load %arg7[%c112_187, %c2_188] : memref<128x9xf32, #tpu.memory_space<vmem>>, vector<8x1xf32>
    tpu.vector_store %arg7[%c112_187, %c2_188], %139 {strides = array<i32>} : memref<128x9xf32, #tpu.memory_space<vmem>>, vector<8x1xf32>,
    %c0_189 = arith.constant 0 : index
    %c145 = arith.constant 145 : index
    %c0_190 = arith.constant 0 : index
    %141 = vector.load %arg1[%c0_189, %c145, %c0_190] : memref<4x162x1xf32, #tpu.memory_space<vmem>>, vector<1x8x1xf32>
    %142 = vector.shape_cast %141 : vector<1x8x1xf32> to vector<8x1xf32>
    %c120_191 = arith.constant 120 : index
    %c2_192 = arith.constant 2 : index
    %143 = vector.load %arg7[%c120_191, %c2_192] : memref<128x9xf32, #tpu.memory_space<vmem>>, vector<8x1xf32>
    tpu.vector_store %arg7[%c120_191, %c2_192], %142 {strides = array<i32>} : memref<128x9xf32, #tpu.memory_space<vmem>>, vector<8x1xf32>,
    %c2_193 = arith.constant 2 : index
    %c0_194 = arith.constant 0 : index
    %c0_195 = arith.constant 0 : index
    %144 = vector.load %arg1[%c2_193, %c0_194, %c0_195] : memref<4x162x1xf32, #tpu.memory_space<vmem>>, vector<1x8x1xf32>
    %145 = vector.shape_cast %144 : vector<1x8x1xf32> to vector<8x1xf32>
    %c0_196 = arith.constant 0 : index
    %c3 = arith.constant 3 : index
    %146 = vector.load %arg7[%c0_196, %c3] : memref<128x9xf32, #tpu.memory_space<vmem>>, vector<8x1xf32>
    tpu.vector_store %arg7[%c0_196, %c3], %145 {strides = array<i32>} : memref<128x9xf32, #tpu.memory_space<vmem>>, vector<8x1xf32>,
    %c2_197 = arith.constant 2 : index
    %c9_198 = arith.constant 9 : index
    %c0_199 = arith.constant 0 : index
    %147 = vector.load %arg1[%c2_197, %c9_198, %c0_199] : memref<4x162x1xf32, #tpu.memory_space<vmem>>, vector<1x8x1xf32>
    %148 = vector.shape_cast %147 : vector<1x8x1xf32> to vector<8x1xf32>
    %c8_200 = arith.constant 8 : index
    %c3_201 = arith.constant 3 : index
    %149 = vector.load %arg7[%c8_200, %c3_201] : memref<128x9xf32, #tpu.memory_space<vmem>>, vector<8x1xf32>
    tpu.vector_store %arg7[%c8_200, %c3_201], %148 {strides = array<i32>} : memref<128x9xf32, #tpu.memory_space<vmem>>, vector<8x1xf32>,
    %c2_202 = arith.constant 2 : index
    %c18_203 = arith.constant 18 : index
    %c0_204 = arith.constant 0 : index
    %150 = vector.load %arg1[%c2_202, %c18_203, %c0_204] : memref<4x162x1xf32, #tpu.memory_space<vmem>>, vector<1x8x1xf32>
    %151 = vector.shape_cast %150 : vector<1x8x1xf32> to vector<8x1xf32>
    %c16_205 = arith.constant 16 : index
    %c3_206 = arith.constant 3 : index
    %152 = vector.load %arg7[%c16_205, %c3_206] : memref<128x9xf32, #tpu.memory_space<vmem>>, vector<8x1xf32>
    tpu.vector_store %arg7[%c16_205, %c3_206], %151 {strides = array<i32>} : memref<128x9xf32, #tpu.memory_space<vmem>>, vector<8x1xf32>,
    %c2_207 = arith.constant 2 : index
    %c27_208 = arith.constant 27 : index
    %c0_209 = arith.constant 0 : index
    %153 = vector.load %arg1[%c2_207, %c27_208, %c0_209] : memref<4x162x1xf32, #tpu.memory_space<vmem>>, vector<1x8x1xf32>
    %154 = vector.shape_cast %153 : vector<1x8x1xf32> to vector<8x1xf32>
    %c24_210 = arith.constant 24 : index
    %c3_211 = arith.constant 3 : index
    %155 = vector.load %arg7[%c24_210, %c3_211] : memref<128x9xf32, #tpu.memory_space<vmem>>, vector<8x1xf32>
    tpu.vector_store %arg7[%c24_210, %c3_211], %154 {strides = array<i32>} : memref<128x9xf32, #tpu.memory_space<vmem>>, vector<8x1xf32>,
    %c2_212 = arith.constant 2 : index
    %c36_213 = arith.constant 36 : index
    %c0_214 = arith.constant 0 : index
    %156 = vector.load %arg1[%c2_212, %c36_213, %c0_214] : memref<4x162x1xf32, #tpu.memory_space<vmem>>, vector<1x8x1xf32>
    %157 = vector.shape_cast %156 : vector<1x8x1xf32> to vector<8x1xf32>
    %c32_215 = arith.constant 32 : index
    %c3_216 = arith.constant 3 : index
    %158 = vector.load %arg7[%c32_215, %c3_216] : memref<128x9xf32, #tpu.memory_space<vmem>>, vector<8x1xf32>
    tpu.vector_store %arg7[%c32_215, %c3_216], %157 {strides = array<i32>} : memref<128x9xf32, #tpu.memory_space<vmem>>, vector<8x1xf32>,
    %c2_217 = arith.constant 2 : index
    %c45_218 = arith.constant 45 : index
    %c0_219 = arith.constant 0 : index
    %159 = vector.load %arg1[%c2_217, %c45_218, %c0_219] : memref<4x162x1xf32, #tpu.memory_space<vmem>>, vector<1x8x1xf32>
    %160 = vector.shape_cast %159 : vector<1x8x1xf32> to vector<8x1xf32>
    %c40_220 = arith.constant 40 : index
    %c3_221 = arith.constant 3 : index
    %161 = vector.load %arg7[%c40_220, %c3_221] : memref<128x9xf32, #tpu.memory_space<vmem>>, vector<8x1xf32>
    tpu.vector_store %arg7[%c40_220, %c3_221], %160 {strides = array<i32>} : memref<128x9xf32, #tpu.memory_space<vmem>>, vector<8x1xf32>,
    %c2_222 = arith.constant 2 : index
    %c54_223 = arith.constant 54 : index
    %c0_224 = arith.constant 0 : index
    %162 = vector.load %arg1[%c2_222, %c54_223, %c0_224] : memref<4x162x1xf32, #tpu.memory_space<vmem>>, vector<1x8x1xf32>
    %163 = vector.shape_cast %162 : vector<1x8x1xf32> to vector<8x1xf32>
    %c48_225 = arith.constant 48 : index
    %c3_226 = arith.constant 3 : index
    %164 = vector.load %arg7[%c48_225, %c3_226] : memref<128x9xf32, #tpu.memory_space<vmem>>, vector<8x1xf32>
    tpu.vector_store %arg7[%c48_225, %c3_226], %163 {strides = array<i32>} : memref<128x9xf32, #tpu.memory_space<vmem>>, vector<8x1xf32>,
    %c2_227 = arith.constant 2 : index
    %c63_228 = arith.constant 63 : index
    %c0_229 = arith.constant 0 : index
    %165 = vector.load %arg1[%c2_227, %c63_228, %c0_229] : memref<4x162x1xf32, #tpu.memory_space<vmem>>, vector<1x8x1xf32>
    %166 = vector.shape_cast %165 : vector<1x8x1xf32> to vector<8x1xf32>
    %c56_230 = arith.constant 56 : index
    %c3_231 = arith.constant 3 : index
    %167 = vector.load %arg7[%c56_230, %c3_231] : memref<128x9xf32, #tpu.memory_space<vmem>>, vector<8x1xf32>
    tpu.vector_store %arg7[%c56_230, %c3_231], %166 {strides = array<i32>} : memref<128x9xf32, #tpu.memory_space<vmem>>, vector<8x1xf32>,
    %c2_232 = arith.constant 2 : index
    %c81_233 = arith.constant 81 : index
    %c0_234 = arith.constant 0 : index
    %168 = vector.load %arg1[%c2_232, %c81_233, %c0_234] : memref<4x162x1xf32, #tpu.memory_space<vmem>>, vector<1x8x1xf32>
    %169 = vector.shape_cast %168 : vector<1x8x1xf32> to vector<8x1xf32>
    %c64_235 = arith.constant 64 : index
    %c3_236 = arith.constant 3 : index
    %170 = vector.load %arg7[%c64_235, %c3_236] : memref<128x9xf32, #tpu.memory_space<vmem>>, vector<8x1xf32>
    tpu.vector_store %arg7[%c64_235, %c3_236], %169 {strides = array<i32>} : memref<128x9xf32, #tpu.memory_space<vmem>>, vector<8x1xf32>,
    %c2_237 = arith.constant 2 : index
    %c90_238 = arith.constant 90 : index
    %c0_239 = arith.constant 0 : index
    %171 = vector.load %arg1[%c2_237, %c90_238, %c0_239] : memref<4x162x1xf32, #tpu.memory_space<vmem>>, vector<1x8x1xf32>
    %172 = vector.shape_cast %171 : vector<1x8x1xf32> to vector<8x1xf32>
    %c72_240 = arith.constant 72 : index
    %c3_241 = arith.constant 3 : index
    %173 = vector.load %arg7[%c72_240, %c3_241] : memref<128x9xf32, #tpu.memory_space<vmem>>, vector<8x1xf32>
    tpu.vector_store %arg7[%c72_240, %c3_241], %172 {strides = array<i32>} : memref<128x9xf32, #tpu.memory_space<vmem>>, vector<8x1xf32>,
    %c2_242 = arith.constant 2 : index
    %c99_243 = arith.constant 99 : index
    %c0_244 = arith.constant 0 : index
    %174 = vector.load %arg1[%c2_242, %c99_243, %c0_244] : memref<4x162x1xf32, #tpu.memory_space<vmem>>, vector<1x8x1xf32>
    %175 = vector.shape_cast %174 : vector<1x8x1xf32> to vector<8x1xf32>
    %c80_245 = arith.constant 80 : index
    %c3_246 = arith.constant 3 : index
    %176 = vector.load %arg7[%c80_245, %c3_246] : memref<128x9xf32, #tpu.memory_space<vmem>>, vector<8x1xf32>
    tpu.vector_store %arg7[%c80_245, %c3_246], %175 {strides = array<i32>} : memref<128x9xf32, #tpu.memory_space<vmem>>, vector<8x1xf32>,
    %c2_247 = arith.constant 2 : index
    %c108_248 = arith.constant 108 : index
    %c0_249 = arith.constant 0 : index
    %177 = vector.load %arg1[%c2_247, %c108_248, %c0_249] : memref<4x162x1xf32, #tpu.memory_space<vmem>>, vector<1x8x1xf32>
    %178 = vector.shape_cast %177 : vector<1x8x1xf32> to vector<8x1xf32>
    %c88_250 = arith.constant 88 : index
    %c3_251 = arith.constant 3 : index
    %179 = vector.load %arg7[%c88_250, %c3_251] : memref<128x9xf32, #tpu.memory_space<vmem>>, vector<8x1xf32>
    tpu.vector_store %arg7[%c88_250, %c3_251], %178 {strides = array<i32>} : memref<128x9xf32, #tpu.memory_space<vmem>>, vector<8x1xf32>,
    %c2_252 = arith.constant 2 : index
    %c117_253 = arith.constant 117 : index
    %c0_254 = arith.constant 0 : index
    %180 = vector.load %arg1[%c2_252, %c117_253, %c0_254] : memref<4x162x1xf32, #tpu.memory_space<vmem>>, vector<1x8x1xf32>
    %181 = vector.shape_cast %180 : vector<1x8x1xf32> to vector<8x1xf32>
    %c96_255 = arith.constant 96 : index
    %c3_256 = arith.constant 3 : index
    %182 = vector.load %arg7[%c96_255, %c3_256] : memref<128x9xf32, #tpu.memory_space<vmem>>, vector<8x1xf32>
    tpu.vector_store %arg7[%c96_255, %c3_256], %181 {strides = array<i32>} : memref<128x9xf32, #tpu.memory_space<vmem>>, vector<8x1xf32>,
    %c2_257 = arith.constant 2 : index
    %c126_258 = arith.constant 126 : index
    %c0_259 = arith.constant 0 : index
    %183 = vector.load %arg1[%c2_257, %c126_258, %c0_259] : memref<4x162x1xf32, #tpu.memory_space<vmem>>, vector<1x8x1xf32>
    %184 = vector.shape_cast %183 : vector<1x8x1xf32> to vector<8x1xf32>
    %c104_260 = arith.constant 104 : index
    %c3_261 = arith.constant 3 : index
    %185 = vector.load %arg7[%c104_260, %c3_261] : memref<128x9xf32, #tpu.memory_space<vmem>>, vector<8x1xf32>
    tpu.vector_store %arg7[%c104_260, %c3_261], %184 {strides = array<i32>} : memref<128x9xf32, #tpu.memory_space<vmem>>, vector<8x1xf32>,
    %c2_262 = arith.constant 2 : index
    %c135_263 = arith.constant 135 : index
    %c0_264 = arith.constant 0 : index
    %186 = vector.load %arg1[%c2_262, %c135_263, %c0_264] : memref<4x162x1xf32, #tpu.memory_space<vmem>>, vector<1x8x1xf32>
    %187 = vector.shape_cast %186 : vector<1x8x1xf32> to vector<8x1xf32>
    %c112_265 = arith.constant 112 : index
    %c3_266 = arith.constant 3 : index
    %188 = vector.load %arg7[%c112_265, %c3_266] : memref<128x9xf32, #tpu.memory_space<vmem>>, vector<8x1xf32>
    tpu.vector_store %arg7[%c112_265, %c3_266], %187 {strides = array<i32>} : memref<128x9xf32, #tpu.memory_space<vmem>>, vector<8x1xf32>,
    %c2_267 = arith.constant 2 : index
    %c144_268 = arith.constant 144 : index
    %c0_269 = arith.constant 0 : index
    %189 = vector.load %arg1[%c2_267, %c144_268, %c0_269] : memref<4x162x1xf32, #tpu.memory_space<vmem>>, vector<1x8x1xf32>
    %190 = vector.shape_cast %189 : vector<1x8x1xf32> to vector<8x1xf32>
    %c120_270 = arith.constant 120 : index
    %c3_271 = arith.constant 3 : index
    %191 = vector.load %arg7[%c120_270, %c3_271] : memref<128x9xf32, #tpu.memory_space<vmem>>, vector<8x1xf32>
    tpu.vector_store %arg7[%c120_270, %c3_271], %190 {strides = array<i32>} : memref<128x9xf32, #tpu.memory_space<vmem>>, vector<8x1xf32>,
    %c3_272 = arith.constant 3 : index
    %c0_273 = arith.constant 0 : index
    %c0_274 = arith.constant 0 : index
    %192 = vector.load %arg1[%c3_272, %c0_273, %c0_274] : memref<4x162x1xf32, #tpu.memory_space<vmem>>, vector<1x8x1xf32>
    %193 = vector.shape_cast %192 : vector<1x8x1xf32> to vector<8x1xf32>
    %c0_275 = arith.constant 0 : index
    %c4 = arith.constant 4 : index
    %194 = vector.load %arg7[%c0_275, %c4] : memref<128x9xf32, #tpu.memory_space<vmem>>, vector<8x1xf32>
    tpu.vector_store %arg7[%c0_275, %c4], %193 {strides = array<i32>} : memref<128x9xf32, #tpu.memory_space<vmem>>, vector<8x1xf32>,
    %c3_276 = arith.constant 3 : index
    %c9_277 = arith.constant 9 : index
    %c0_278 = arith.constant 0 : index
    %195 = vector.load %arg1[%c3_276, %c9_277, %c0_278] : memref<4x162x1xf32, #tpu.memory_space<vmem>>, vector<1x8x1xf32>
    %196 = vector.shape_cast %195 : vector<1x8x1xf32> to vector<8x1xf32>
    %c8_279 = arith.constant 8 : index
    %c4_280 = arith.constant 4 : index
    %197 = vector.load %arg7[%c8_279, %c4_280] : memref<128x9xf32, #tpu.memory_space<vmem>>, vector<8x1xf32>
    tpu.vector_store %arg7[%c8_279, %c4_280], %196 {strides = array<i32>} : memref<128x9xf32, #tpu.memory_space<vmem>>, vector<8x1xf32>,
    %c3_281 = arith.constant 3 : index
    %c18_282 = arith.constant 18 : index
    %c0_283 = arith.constant 0 : index
    %198 = vector.load %arg1[%c3_281, %c18_282, %c0_283] : memref<4x162x1xf32, #tpu.memory_space<vmem>>, vector<1x8x1xf32>
    %199 = vector.shape_cast %198 : vector<1x8x1xf32> to vector<8x1xf32>
    %c16_284 = arith.constant 16 : index
    %c4_285 = arith.constant 4 : index
    %200 = vector.load %arg7[%c16_284, %c4_285] : memref<128x9xf32, #tpu.memory_space<vmem>>, vector<8x1xf32>
    tpu.vector_store %arg7[%c16_284, %c4_285], %199 {strides = array<i32>} : memref<128x9xf32, #tpu.memory_space<vmem>>, vector<8x1xf32>,
    %c3_286 = arith.constant 3 : index
    %c27_287 = arith.constant 27 : index
    %c0_288 = arith.constant 0 : index
    %201 = vector.load %arg1[%c3_286, %c27_287, %c0_288] : memref<4x162x1xf32, #tpu.memory_space<vmem>>, vector<1x8x1xf32>
    %202 = vector.shape_cast %201 : vector<1x8x1xf32> to vector<8x1xf32>
    %c24_289 = arith.constant 24 : index
    %c4_290 = arith.constant 4 : index
    %203 = vector.load %arg7[%c24_289, %c4_290] : memref<128x9xf32, #tpu.memory_space<vmem>>, vector<8x1xf32>
    tpu.vector_store %arg7[%c24_289, %c4_290], %202 {strides = array<i32>} : memref<128x9xf32, #tpu.memory_space<vmem>>, vector<8x1xf32>,
    %c3_291 = arith.constant 3 : index
    %c36_292 = arith.constant 36 : index
    %c0_293 = arith.constant 0 : index
    %204 = vector.load %arg1[%c3_291, %c36_292, %c0_293] : memref<4x162x1xf32, #tpu.memory_space<vmem>>, vector<1x8x1xf32>
    %205 = vector.shape_cast %204 : vector<1x8x1xf32> to vector<8x1xf32>
    %c32_294 = arith.constant 32 : index
    %c4_295 = arith.constant 4 : index
    %206 = vector.load %arg7[%c32_294, %c4_295] : memref<128x9xf32, #tpu.memory_space<vmem>>, vector<8x1xf32>
    tpu.vector_store %arg7[%c32_294, %c4_295], %205 {strides = array<i32>} : memref<128x9xf32, #tpu.memory_space<vmem>>, vector<8x1xf32>,
    %c3_296 = arith.constant 3 : index
    %c45_297 = arith.constant 45 : index
    %c0_298 = arith.constant 0 : index
    %207 = vector.load %arg1[%c3_296, %c45_297, %c0_298] : memref<4x162x1xf32, #tpu.memory_space<vmem>>, vector<1x8x1xf32>
    %208 = vector.shape_cast %207 : vector<1x8x1xf32> to vector<8x1xf32>
    %c40_299 = arith.constant 40 : index
    %c4_300 = arith.constant 4 : index
    %209 = vector.load %arg7[%c40_299, %c4_300] : memref<128x9xf32, #tpu.memory_space<vmem>>, vector<8x1xf32>
    tpu.vector_store %arg7[%c40_299, %c4_300], %208 {strides = array<i32>} : memref<128x9xf32, #tpu.memory_space<vmem>>, vector<8x1xf32>,
    %c3_301 = arith.constant 3 : index
    %c54_302 = arith.constant 54 : index
    %c0_303 = arith.constant 0 : index
    %210 = vector.load %arg1[%c3_301, %c54_302, %c0_303] : memref<4x162x1xf32, #tpu.memory_space<vmem>>, vector<1x8x1xf32>
    %211 = vector.shape_cast %210 : vector<1x8x1xf32> to vector<8x1xf32>
    %c48_304 = arith.constant 48 : index
    %c4_305 = arith.constant 4 : index
    %212 = vector.load %arg7[%c48_304, %c4_305] : memref<128x9xf32, #tpu.memory_space<vmem>>, vector<8x1xf32>
    tpu.vector_store %arg7[%c48_304, %c4_305], %211 {strides = array<i32>} : memref<128x9xf32, #tpu.memory_space<vmem>>, vector<8x1xf32>,
    %c3_306 = arith.constant 3 : index
    %c63_307 = arith.constant 63 : index
    %c0_308 = arith.constant 0 : index
    %213 = vector.load %arg1[%c3_306, %c63_307, %c0_308] : memref<4x162x1xf32, #tpu.memory_space<vmem>>, vector<1x8x1xf32>
    %214 = vector.shape_cast %213 : vector<1x8x1xf32> to vector<8x1xf32>
    %c56_309 = arith.constant 56 : index
    %c4_310 = arith.constant 4 : index
    %215 = vector.load %arg7[%c56_309, %c4_310] : memref<128x9xf32, #tpu.memory_space<vmem>>, vector<8x1xf32>
    tpu.vector_store %arg7[%c56_309, %c4_310], %214 {strides = array<i32>} : memref<128x9xf32, #tpu.memory_space<vmem>>, vector<8x1xf32>,
    %c3_311 = arith.constant 3 : index
    %c81_312 = arith.constant 81 : index
    %c0_313 = arith.constant 0 : index
    %216 = vector.load %arg1[%c3_311, %c81_312, %c0_313] : memref<4x162x1xf32, #tpu.memory_space<vmem>>, vector<1x8x1xf32>
    %217 = vector.shape_cast %216 : vector<1x8x1xf32> to vector<8x1xf32>
    %c64_314 = arith.constant 64 : index
    %c4_315 = arith.constant 4 : index
    %218 = vector.load %arg7[%c64_314, %c4_315] : memref<128x9xf32, #tpu.memory_space<vmem>>, vector<8x1xf32>
    tpu.vector_store %arg7[%c64_314, %c4_315], %217 {strides = array<i32>} : memref<128x9xf32, #tpu.memory_space<vmem>>, vector<8x1xf32>,
    %c3_316 = arith.constant 3 : index
    %c90_317 = arith.constant 90 : index
    %c0_318 = arith.constant 0 : index
    %219 = vector.load %arg1[%c3_316, %c90_317, %c0_318] : memref<4x162x1xf32, #tpu.memory_space<vmem>>, vector<1x8x1xf32>
    %220 = vector.shape_cast %219 : vector<1x8x1xf32> to vector<8x1xf32>
    %c72_319 = arith.constant 72 : index
    %c4_320 = arith.constant 4 : index
    %221 = vector.load %arg7[%c72_319, %c4_320] : memref<128x9xf32, #tpu.memory_space<vmem>>, vector<8x1xf32>
    tpu.vector_store %arg7[%c72_319, %c4_320], %220 {strides = array<i32>} : memref<128x9xf32, #tpu.memory_space<vmem>>, vector<8x1xf32>,
    %c3_321 = arith.constant 3 : index
    %c99_322 = arith.constant 99 : index
    %c0_323 = arith.constant 0 : index
    %222 = vector.load %arg1[%c3_321, %c99_322, %c0_323] : memref<4x162x1xf32, #tpu.memory_space<vmem>>, vector<1x8x1xf32>
    %223 = vector.shape_cast %222 : vector<1x8x1xf32> to vector<8x1xf32>
    %c80_324 = arith.constant 80 : index
    %c4_325 = arith.constant 4 : index
    %224 = vector.load %arg7[%c80_324, %c4_325] : memref<128x9xf32, #tpu.memory_space<vmem>>, vector<8x1xf32>
    tpu.vector_store %arg7[%c80_324, %c4_325], %223 {strides = array<i32>} : memref<128x9xf32, #tpu.memory_space<vmem>>, vector<8x1xf32>,
    %c3_326 = arith.constant 3 : index
    %c108_327 = arith.constant 108 : index
    %c0_328 = arith.constant 0 : index
    %225 = vector.load %arg1[%c3_326, %c108_327, %c0_328] : memref<4x162x1xf32, #tpu.memory_space<vmem>>, vector<1x8x1xf32>
    %226 = vector.shape_cast %225 : vector<1x8x1xf32> to vector<8x1xf32>
    %c88_329 = arith.constant 88 : index
    %c4_330 = arith.constant 4 : index
    %227 = vector.load %arg7[%c88_329, %c4_330] : memref<128x9xf32, #tpu.memory_space<vmem>>, vector<8x1xf32>
    tpu.vector_store %arg7[%c88_329, %c4_330], %226 {strides = array<i32>} : memref<128x9xf32, #tpu.memory_space<vmem>>, vector<8x1xf32>,
    %c3_331 = arith.constant 3 : index
    %c117_332 = arith.constant 117 : index
    %c0_333 = arith.constant 0 : index
    %228 = vector.load %arg1[%c3_331, %c117_332, %c0_333] : memref<4x162x1xf32, #tpu.memory_space<vmem>>, vector<1x8x1xf32>
    %229 = vector.shape_cast %228 : vector<1x8x1xf32> to vector<8x1xf32>
    %c96_334 = arith.constant 96 : index
    %c4_335 = arith.constant 4 : index
    %230 = vector.load %arg7[%c96_334, %c4_335] : memref<128x9xf32, #tpu.memory_space<vmem>>, vector<8x1xf32>
    tpu.vector_store %arg7[%c96_334, %c4_335], %229 {strides = array<i32>} : memref<128x9xf32, #tpu.memory_space<vmem>>, vector<8x1xf32>,
    %c3_336 = arith.constant 3 : index
    %c126_337 = arith.constant 126 : index
    %c0_338 = arith.constant 0 : index
    %231 = vector.load %arg1[%c3_336, %c126_337, %c0_338] : memref<4x162x1xf32, #tpu.memory_space<vmem>>, vector<1x8x1xf32>
    %232 = vector.shape_cast %231 : vector<1x8x1xf32> to vector<8x1xf32>
    %c104_339 = arith.constant 104 : index
    %c4_340 = arith.constant 4 : index
    %233 = vector.load %arg7[%c104_339, %c4_340] : memref<128x9xf32, #tpu.memory_space<vmem>>, vector<8x1xf32>
    tpu.vector_store %arg7[%c104_339, %c4_340], %232 {strides = array<i32>} : memref<128x9xf32, #tpu.memory_space<vmem>>, vector<8x1xf32>,
    %c3_341 = arith.constant 3 : index
    %c135_342 = arith.constant 135 : index
    %c0_343 = arith.constant 0 : index
    %234 = vector.load %arg1[%c3_341, %c135_342, %c0_343] : memref<4x162x1xf32, #tpu.memory_space<vmem>>, vector<1x8x1xf32>
    %235 = vector.shape_cast %234 : vector<1x8x1xf32> to vector<8x1xf32>
    %c112_344 = arith.constant 112 : index
    %c4_345 = arith.constant 4 : index
    %236 = vector.load %arg7[%c112_344, %c4_345] : memref<128x9xf32, #tpu.memory_space<vmem>>, vector<8x1xf32>
    tpu.vector_store %arg7[%c112_344, %c4_345], %235 {strides = array<i32>} : memref<128x9xf32, #tpu.memory_space<vmem>>, vector<8x1xf32>,
    %c3_346 = arith.constant 3 : index
    %c144_347 = arith.constant 144 : index
    %c0_348 = arith.constant 0 : index
    %237 = vector.load %arg1[%c3_346, %c144_347, %c0_348] : memref<4x162x1xf32, #tpu.memory_space<vmem>>, vector<1x8x1xf32>
    %238 = vector.shape_cast %237 : vector<1x8x1xf32> to vector<8x1xf32>
    %c120_349 = arith.constant 120 : index
    %c4_350 = arith.constant 4 : index
    %239 = vector.load %arg7[%c120_349, %c4_350] : memref<128x9xf32, #tpu.memory_space<vmem>>, vector<8x1xf32>
    tpu.vector_store %arg7[%c120_349, %c4_350], %238 {strides = array<i32>} : memref<128x9xf32, #tpu.memory_space<vmem>>, vector<8x1xf32>,
    %c2_351 = arith.constant 2 : index
    %c1_352 = arith.constant 1 : index
    %c0_353 = arith.constant 0 : index
    %240 = vector.load %arg1[%c2_351, %c1_352, %c0_353] : memref<4x162x1xf32, #tpu.memory_space<vmem>>, vector<1x8x1xf32>
    %241 = vector.shape_cast %240 : vector<1x8x1xf32> to vector<8x1xf32>
    %c0_354 = arith.constant 0 : index
    %c5 = arith.constant 5 : index
    %242 = vector.load %arg7[%c0_354, %c5] : memref<128x9xf32, #tpu.memory_space<vmem>>, vector<8x1xf32>
    tpu.vector_store %arg7[%c0_354, %c5], %241 {strides = array<i32>} : memref<128x9xf32, #tpu.memory_space<vmem>>, vector<8x1xf32>,
    %c2_355 = arith.constant 2 : index
    %c10_356 = arith.constant 10 : index
    %c0_357 = arith.constant 0 : index
    %243 = vector.load %arg1[%c2_355, %c10_356, %c0_357] : memref<4x162x1xf32, #tpu.memory_space<vmem>>, vector<1x8x1xf32>
    %244 = vector.shape_cast %243 : vector<1x8x1xf32> to vector<8x1xf32>
    %c8_358 = arith.constant 8 : index
    %c5_359 = arith.constant 5 : index
    %245 = vector.load %arg7[%c8_358, %c5_359] : memref<128x9xf32, #tpu.memory_space<vmem>>, vector<8x1xf32>
    tpu.vector_store %arg7[%c8_358, %c5_359], %244 {strides = array<i32>} : memref<128x9xf32, #tpu.memory_space<vmem>>, vector<8x1xf32>,
    %c2_360 = arith.constant 2 : index
    %c19_361 = arith.constant 19 : index
    %c0_362 = arith.constant 0 : index
    %246 = vector.load %arg1[%c2_360, %c19_361, %c0_362] : memref<4x162x1xf32, #tpu.memory_space<vmem>>, vector<1x8x1xf32>
    %247 = vector.shape_cast %246 : vector<1x8x1xf32> to vector<8x1xf32>
    %c16_363 = arith.constant 16 : index
    %c5_364 = arith.constant 5 : index
    %248 = vector.load %arg7[%c16_363, %c5_364] : memref<128x9xf32, #tpu.memory_space<vmem>>, vector<8x1xf32>
    tpu.vector_store %arg7[%c16_363, %c5_364], %247 {strides = array<i32>} : memref<128x9xf32, #tpu.memory_space<vmem>>, vector<8x1xf32>,
    %c2_365 = arith.constant 2 : index
    %c28_366 = arith.constant 28 : index
    %c0_367 = arith.constant 0 : index
    %249 = vector.load %arg1[%c2_365, %c28_366, %c0_367] : memref<4x162x1xf32, #tpu.memory_space<vmem>>, vector<1x8x1xf32>
    %250 = vector.shape_cast %249 : vector<1x8x1xf32> to vector<8x1xf32>
    %c24_368 = arith.constant 24 : index
    %c5_369 = arith.constant 5 : index
    %251 = vector.load %arg7[%c24_368, %c5_369] : memref<128x9xf32, #tpu.memory_space<vmem>>, vector<8x1xf32>
    tpu.vector_store %arg7[%c24_368, %c5_369], %250 {strides = array<i32>} : memref<128x9xf32, #tpu.memory_space<vmem>>, vector<8x1xf32>,
    %c2_370 = arith.constant 2 : index
    %c37_371 = arith.constant 37 : index
    %c0_372 = arith.constant 0 : index
    %252 = vector.load %arg1[%c2_370, %c37_371, %c0_372] : memref<4x162x1xf32, #tpu.memory_space<vmem>>, vector<1x8x1xf32>
    %253 = vector.shape_cast %252 : vector<1x8x1xf32> to vector<8x1xf32>
    %c32_373 = arith.constant 32 : index
    %c5_374 = arith.constant 5 : index
    %254 = vector.load %arg7[%c32_373, %c5_374] : memref<128x9xf32, #tpu.memory_space<vmem>>, vector<8x1xf32>
    tpu.vector_store %arg7[%c32_373, %c5_374], %253 {strides = array<i32>} : memref<128x9xf32, #tpu.memory_space<vmem>>, vector<8x1xf32>,
    %c2_375 = arith.constant 2 : index
    %c46_376 = arith.constant 46 : index
    %c0_377 = arith.constant 0 : index
    %255 = vector.load %arg1[%c2_375, %c46_376, %c0_377] : memref<4x162x1xf32, #tpu.memory_space<vmem>>, vector<1x8x1xf32>
    %256 = vector.shape_cast %255 : vector<1x8x1xf32> to vector<8x1xf32>
    %c40_378 = arith.constant 40 : index
    %c5_379 = arith.constant 5 : index
    %257 = vector.load %arg7[%c40_378, %c5_379] : memref<128x9xf32, #tpu.memory_space<vmem>>, vector<8x1xf32>
    tpu.vector_store %arg7[%c40_378, %c5_379], %256 {strides = array<i32>} : memref<128x9xf32, #tpu.memory_space<vmem>>, vector<8x1xf32>,
    %c2_380 = arith.constant 2 : index
    %c55_381 = arith.constant 55 : index
    %c0_382 = arith.constant 0 : index
    %258 = vector.load %arg1[%c2_380, %c55_381, %c0_382] : memref<4x162x1xf32, #tpu.memory_space<vmem>>, vector<1x8x1xf32>
    %259 = vector.shape_cast %258 : vector<1x8x1xf32> to vector<8x1xf32>
    %c48_383 = arith.constant 48 : index
    %c5_384 = arith.constant 5 : index
    %260 = vector.load %arg7[%c48_383, %c5_384] : memref<128x9xf32, #tpu.memory_space<vmem>>, vector<8x1xf32>
    tpu.vector_store %arg7[%c48_383, %c5_384], %259 {strides = array<i32>} : memref<128x9xf32, #tpu.memory_space<vmem>>, vector<8x1xf32>,
    %c2_385 = arith.constant 2 : index
    %c64_386 = arith.constant 64 : index
    %c0_387 = arith.constant 0 : index
    %261 = vector.load %arg1[%c2_385, %c64_386, %c0_387] : memref<4x162x1xf32, #tpu.memory_space<vmem>>, vector<1x8x1xf32>
    %262 = vector.shape_cast %261 : vector<1x8x1xf32> to vector<8x1xf32>
    %c56_388 = arith.constant 56 : index
    %c5_389 = arith.constant 5 : index
    %263 = vector.load %arg7[%c56_388, %c5_389] : memref<128x9xf32, #tpu.memory_space<vmem>>, vector<8x1xf32>
    tpu.vector_store %arg7[%c56_388, %c5_389], %262 {strides = array<i32>} : memref<128x9xf32, #tpu.memory_space<vmem>>, vector<8x1xf32>,
    %c2_390 = arith.constant 2 : index
    %c82_391 = arith.constant 82 : index
    %c0_392 = arith.constant 0 : index
    %264 = vector.load %arg1[%c2_390, %c82_391, %c0_392] : memref<4x162x1xf32, #tpu.memory_space<vmem>>, vector<1x8x1xf32>
    %265 = vector.shape_cast %264 : vector<1x8x1xf32> to vector<8x1xf32>
    %c64_393 = arith.constant 64 : index
    %c5_394 = arith.constant 5 : index
    %266 = vector.load %arg7[%c64_393, %c5_394] : memref<128x9xf32, #tpu.memory_space<vmem>>, vector<8x1xf32>
    tpu.vector_store %arg7[%c64_393, %c5_394], %265 {strides = array<i32>} : memref<128x9xf32, #tpu.memory_space<vmem>>, vector<8x1xf32>,
    %c2_395 = arith.constant 2 : index
    %c91_396 = arith.constant 91 : index
    %c0_397 = arith.constant 0 : index
    %267 = vector.load %arg1[%c2_395, %c91_396, %c0_397] : memref<4x162x1xf32, #tpu.memory_space<vmem>>, vector<1x8x1xf32>
    %268 = vector.shape_cast %267 : vector<1x8x1xf32> to vector<8x1xf32>
    %c72_398 = arith.constant 72 : index
    %c5_399 = arith.constant 5 : index
    %269 = vector.load %arg7[%c72_398, %c5_399] : memref<128x9xf32, #tpu.memory_space<vmem>>, vector<8x1xf32>
    tpu.vector_store %arg7[%c72_398, %c5_399], %268 {strides = array<i32>} : memref<128x9xf32, #tpu.memory_space<vmem>>, vector<8x1xf32>,
    %c2_400 = arith.constant 2 : index
    %c100_401 = arith.constant 100 : index
    %c0_402 = arith.constant 0 : index
    %270 = vector.load %arg1[%c2_400, %c100_401, %c0_402] : memref<4x162x1xf32, #tpu.memory_space<vmem>>, vector<1x8x1xf32>
    %271 = vector.shape_cast %270 : vector<1x8x1xf32> to vector<8x1xf32>
    %c80_403 = arith.constant 80 : index
    %c5_404 = arith.constant 5 : index
    %272 = vector.load %arg7[%c80_403, %c5_404] : memref<128x9xf32, #tpu.memory_space<vmem>>, vector<8x1xf32>
    tpu.vector_store %arg7[%c80_403, %c5_404], %271 {strides = array<i32>} : memref<128x9xf32, #tpu.memory_space<vmem>>, vector<8x1xf32>,
    %c2_405 = arith.constant 2 : index
    %c109_406 = arith.constant 109 : index
    %c0_407 = arith.constant 0 : index
    %273 = vector.load %arg1[%c2_405, %c109_406, %c0_407] : memref<4x162x1xf32, #tpu.memory_space<vmem>>, vector<1x8x1xf32>
    %274 = vector.shape_cast %273 : vector<1x8x1xf32> to vector<8x1xf32>
    %c88_408 = arith.constant 88 : index
    %c5_409 = arith.constant 5 : index
    %275 = vector.load %arg7[%c88_408, %c5_409] : memref<128x9xf32, #tpu.memory_space<vmem>>, vector<8x1xf32>
    tpu.vector_store %arg7[%c88_408, %c5_409], %274 {strides = array<i32>} : memref<128x9xf32, #tpu.memory_space<vmem>>, vector<8x1xf32>,
    %c2_410 = arith.constant 2 : index
    %c118_411 = arith.constant 118 : index
    %c0_412 = arith.constant 0 : index
    %276 = vector.load %arg1[%c2_410, %c118_411, %c0_412] : memref<4x162x1xf32, #tpu.memory_space<vmem>>, vector<1x8x1xf32>
    %277 = vector.shape_cast %276 : vector<1x8x1xf32> to vector<8x1xf32>
    %c96_413 = arith.constant 96 : index
    %c5_414 = arith.constant 5 : index
    %278 = vector.load %arg7[%c96_413, %c5_414] : memref<128x9xf32, #tpu.memory_space<vmem>>, vector<8x1xf32>
    tpu.vector_store %arg7[%c96_413, %c5_414], %277 {strides = array<i32>} : memref<128x9xf32, #tpu.memory_space<vmem>>, vector<8x1xf32>,
    %c2_415 = arith.constant 2 : index
    %c127_416 = arith.constant 127 : index
    %c0_417 = arith.constant 0 : index
    %279 = vector.load %arg1[%c2_415, %c127_416, %c0_417] : memref<4x162x1xf32, #tpu.memory_space<vmem>>, vector<1x8x1xf32>
    %280 = vector.shape_cast %279 : vector<1x8x1xf32> to vector<8x1xf32>
    %c104_418 = arith.constant 104 : index
    %c5_419 = arith.constant 5 : index
    %281 = vector.load %arg7[%c104_418, %c5_419] : memref<128x9xf32, #tpu.memory_space<vmem>>, vector<8x1xf32>
    tpu.vector_store %arg7[%c104_418, %c5_419], %280 {strides = array<i32>} : memref<128x9xf32, #tpu.memory_space<vmem>>, vector<8x1xf32>,
    %c2_420 = arith.constant 2 : index
    %c136_421 = arith.constant 136 : index
    %c0_422 = arith.constant 0 : index
    %282 = vector.load %arg1[%c2_420, %c136_421, %c0_422] : memref<4x162x1xf32, #tpu.memory_space<vmem>>, vector<1x8x1xf32>
    %283 = vector.shape_cast %282 : vector<1x8x1xf32> to vector<8x1xf32>
    %c112_423 = arith.constant 112 : index
    %c5_424 = arith.constant 5 : index
    %284 = vector.load %arg7[%c112_423, %c5_424] : memref<128x9xf32, #tpu.memory_space<vmem>>, vector<8x1xf32>
    tpu.vector_store %arg7[%c112_423, %c5_424], %283 {strides = array<i32>} : memref<128x9xf32, #tpu.memory_space<vmem>>, vector<8x1xf32>,
    %c2_425 = arith.constant 2 : index
    %c145_426 = arith.constant 145 : index
    %c0_427 = arith.constant 0 : index
    %285 = vector.load %arg1[%c2_425, %c145_426, %c0_427] : memref<4x162x1xf32, #tpu.memory_space<vmem>>, vector<1x8x1xf32>
    %286 = vector.shape_cast %285 : vector<1x8x1xf32> to vector<8x1xf32>
    %c120_428 = arith.constant 120 : index
    %c5_429 = arith.constant 5 : index
    %287 = vector.load %arg7[%c120_428, %c5_429] : memref<128x9xf32, #tpu.memory_space<vmem>>, vector<8x1xf32>
    tpu.vector_store %arg7[%c120_428, %c5_429], %286 {strides = array<i32>} : memref<128x9xf32, #tpu.memory_space<vmem>>, vector<8x1xf32>,
    %c0_430 = arith.constant 0 : index
    %c9_431 = arith.constant 9 : index
    %c0_432 = arith.constant 0 : index
    %288 = vector.load %arg1[%c0_430, %c9_431, %c0_432] : memref<4x162x1xf32, #tpu.memory_space<vmem>>, vector<1x8x1xf32>
    %289 = vector.shape_cast %288 : vector<1x8x1xf32> to vector<8x1xf32>
    %c0_433 = arith.constant 0 : index
    %c6 = arith.constant 6 : index
    %290 = vector.load %arg7[%c0_433, %c6] : memref<128x9xf32, #tpu.memory_space<vmem>>, vector<8x1xf32>
    tpu.vector_store %arg7[%c0_433, %c6], %289 {strides = array<i32>} : memref<128x9xf32, #tpu.memory_space<vmem>>, vector<8x1xf32>,
    %c0_434 = arith.constant 0 : index
    %c18_435 = arith.constant 18 : index
    %c0_436 = arith.constant 0 : index
    %291 = vector.load %arg1[%c0_434, %c18_435, %c0_436] : memref<4x162x1xf32, #tpu.memory_space<vmem>>, vector<1x8x1xf32>
    %292 = vector.shape_cast %291 : vector<1x8x1xf32> to vector<8x1xf32>
    %c8_437 = arith.constant 8 : index
    %c6_438 = arith.constant 6 : index
    %293 = vector.load %arg7[%c8_437, %c6_438] : memref<128x9xf32, #tpu.memory_space<vmem>>, vector<8x1xf32>
    tpu.vector_store %arg7[%c8_437, %c6_438], %292 {strides = array<i32>} : memref<128x9xf32, #tpu.memory_space<vmem>>, vector<8x1xf32>,
    %c0_439 = arith.constant 0 : index
    %c27_440 = arith.constant 27 : index
    %c0_441 = arith.constant 0 : index
    %294 = vector.load %arg1[%c0_439, %c27_440, %c0_441] : memref<4x162x1xf32, #tpu.memory_space<vmem>>, vector<1x8x1xf32>
    %295 = vector.shape_cast %294 : vector<1x8x1xf32> to vector<8x1xf32>
    %c16_442 = arith.constant 16 : index
    %c6_443 = arith.constant 6 : index
    %296 = vector.load %arg7[%c16_442, %c6_443] : memref<128x9xf32, #tpu.memory_space<vmem>>, vector<8x1xf32>
    tpu.vector_store %arg7[%c16_442, %c6_443], %295 {strides = array<i32>} : memref<128x9xf32, #tpu.memory_space<vmem>>, vector<8x1xf32>,
    %c0_444 = arith.constant 0 : index
    %c36_445 = arith.constant 36 : index
    %c0_446 = arith.constant 0 : index
    %297 = vector.load %arg1[%c0_444, %c36_445, %c0_446] : memref<4x162x1xf32, #tpu.memory_space<vmem>>, vector<1x8x1xf32>
    %298 = vector.shape_cast %297 : vector<1x8x1xf32> to vector<8x1xf32>
    %c24_447 = arith.constant 24 : index
    %c6_448 = arith.constant 6 : index
    %299 = vector.load %arg7[%c24_447, %c6_448] : memref<128x9xf32, #tpu.memory_space<vmem>>, vector<8x1xf32>
    tpu.vector_store %arg7[%c24_447, %c6_448], %298 {strides = array<i32>} : memref<128x9xf32, #tpu.memory_space<vmem>>, vector<8x1xf32>,
    %c0_449 = arith.constant 0 : index
    %c45_450 = arith.constant 45 : index
    %c0_451 = arith.constant 0 : index
    %300 = vector.load %arg1[%c0_449, %c45_450, %c0_451] : memref<4x162x1xf32, #tpu.memory_space<vmem>>, vector<1x8x1xf32>
    %301 = vector.shape_cast %300 : vector<1x8x1xf32> to vector<8x1xf32>
    %c32_452 = arith.constant 32 : index
    %c6_453 = arith.constant 6 : index
    %302 = vector.load %arg7[%c32_452, %c6_453] : memref<128x9xf32, #tpu.memory_space<vmem>>, vector<8x1xf32>
    tpu.vector_store %arg7[%c32_452, %c6_453], %301 {strides = array<i32>} : memref<128x9xf32, #tpu.memory_space<vmem>>, vector<8x1xf32>,
    %c0_454 = arith.constant 0 : index
    %c54_455 = arith.constant 54 : index
    %c0_456 = arith.constant 0 : index
    %303 = vector.load %arg1[%c0_454, %c54_455, %c0_456] : memref<4x162x1xf32, #tpu.memory_space<vmem>>, vector<1x8x1xf32>
    %304 = vector.shape_cast %303 : vector<1x8x1xf32> to vector<8x1xf32>
    %c40_457 = arith.constant 40 : index
    %c6_458 = arith.constant 6 : index
    %305 = vector.load %arg7[%c40_457, %c6_458] : memref<128x9xf32, #tpu.memory_space<vmem>>, vector<8x1xf32>
    tpu.vector_store %arg7[%c40_457, %c6_458], %304 {strides = array<i32>} : memref<128x9xf32, #tpu.memory_space<vmem>>, vector<8x1xf32>,
    %c0_459 = arith.constant 0 : index
    %c63_460 = arith.constant 63 : index
    %c0_461 = arith.constant 0 : index
    %306 = vector.load %arg1[%c0_459, %c63_460, %c0_461] : memref<4x162x1xf32, #tpu.memory_space<vmem>>, vector<1x8x1xf32>
    %307 = vector.shape_cast %306 : vector<1x8x1xf32> to vector<8x1xf32>
    %c48_462 = arith.constant 48 : index
    %c6_463 = arith.constant 6 : index
    %308 = vector.load %arg7[%c48_462, %c6_463] : memref<128x9xf32, #tpu.memory_space<vmem>>, vector<8x1xf32>
    tpu.vector_store %arg7[%c48_462, %c6_463], %307 {strides = array<i32>} : memref<128x9xf32, #tpu.memory_space<vmem>>, vector<8x1xf32>,
    %c0_464 = arith.constant 0 : index
    %c72_465 = arith.constant 72 : index
    %c0_466 = arith.constant 0 : index
    %309 = vector.load %arg1[%c0_464, %c72_465, %c0_466] : memref<4x162x1xf32, #tpu.memory_space<vmem>>, vector<1x8x1xf32>
    %310 = vector.shape_cast %309 : vector<1x8x1xf32> to vector<8x1xf32>
    %c56_467 = arith.constant 56 : index
    %c6_468 = arith.constant 6 : index
    %311 = vector.load %arg7[%c56_467, %c6_468] : memref<128x9xf32, #tpu.memory_space<vmem>>, vector<8x1xf32>
    tpu.vector_store %arg7[%c56_467, %c6_468], %310 {strides = array<i32>} : memref<128x9xf32, #tpu.memory_space<vmem>>, vector<8x1xf32>,
    %c0_469 = arith.constant 0 : index
    %c90_470 = arith.constant 90 : index
    %c0_471 = arith.constant 0 : index
    %312 = vector.load %arg1[%c0_469, %c90_470, %c0_471] : memref<4x162x1xf32, #tpu.memory_space<vmem>>, vector<1x8x1xf32>
    %313 = vector.shape_cast %312 : vector<1x8x1xf32> to vector<8x1xf32>
    %c64_472 = arith.constant 64 : index
    %c6_473 = arith.constant 6 : index
    %314 = vector.load %arg7[%c64_472, %c6_473] : memref<128x9xf32, #tpu.memory_space<vmem>>, vector<8x1xf32>
    tpu.vector_store %arg7[%c64_472, %c6_473], %313 {strides = array<i32>} : memref<128x9xf32, #tpu.memory_space<vmem>>, vector<8x1xf32>,
    %c0_474 = arith.constant 0 : index
    %c99_475 = arith.constant 99 : index
    %c0_476 = arith.constant 0 : index
    %315 = vector.load %arg1[%c0_474, %c99_475, %c0_476] : memref<4x162x1xf32, #tpu.memory_space<vmem>>, vector<1x8x1xf32>
    %316 = vector.shape_cast %315 : vector<1x8x1xf32> to vector<8x1xf32>
    %c72_477 = arith.constant 72 : index
    %c6_478 = arith.constant 6 : index
    %317 = vector.load %arg7[%c72_477, %c6_478] : memref<128x9xf32, #tpu.memory_space<vmem>>, vector<8x1xf32>
    tpu.vector_store %arg7[%c72_477, %c6_478], %316 {strides = array<i32>} : memref<128x9xf32, #tpu.memory_space<vmem>>, vector<8x1xf32>,
    %c0_479 = arith.constant 0 : index
    %c108_480 = arith.constant 108 : index
    %c0_481 = arith.constant 0 : index
    %318 = vector.load %arg1[%c0_479, %c108_480, %c0_481] : memref<4x162x1xf32, #tpu.memory_space<vmem>>, vector<1x8x1xf32>
    %319 = vector.shape_cast %318 : vector<1x8x1xf32> to vector<8x1xf32>
    %c80_482 = arith.constant 80 : index
    %c6_483 = arith.constant 6 : index
    %320 = vector.load %arg7[%c80_482, %c6_483] : memref<128x9xf32, #tpu.memory_space<vmem>>, vector<8x1xf32>
    tpu.vector_store %arg7[%c80_482, %c6_483], %319 {strides = array<i32>} : memref<128x9xf32, #tpu.memory_space<vmem>>, vector<8x1xf32>,
    %c0_484 = arith.constant 0 : index
    %c117_485 = arith.constant 117 : index
    %c0_486 = arith.constant 0 : index
    %321 = vector.load %arg1[%c0_484, %c117_485, %c0_486] : memref<4x162x1xf32, #tpu.memory_space<vmem>>, vector<1x8x1xf32>
    %322 = vector.shape_cast %321 : vector<1x8x1xf32> to vector<8x1xf32>
    %c88_487 = arith.constant 88 : index
    %c6_488 = arith.constant 6 : index
    %323 = vector.load %arg7[%c88_487, %c6_488] : memref<128x9xf32, #tpu.memory_space<vmem>>, vector<8x1xf32>
    tpu.vector_store %arg7[%c88_487, %c6_488], %322 {strides = array<i32>} : memref<128x9xf32, #tpu.memory_space<vmem>>, vector<8x1xf32>,
    %c0_489 = arith.constant 0 : index
    %c126_490 = arith.constant 126 : index
    %c0_491 = arith.constant 0 : index
    %324 = vector.load %arg1[%c0_489, %c126_490, %c0_491] : memref<4x162x1xf32, #tpu.memory_space<vmem>>, vector<1x8x1xf32>
    %325 = vector.shape_cast %324 : vector<1x8x1xf32> to vector<8x1xf32>
    %c96_492 = arith.constant 96 : index
    %c6_493 = arith.constant 6 : index
    %326 = vector.load %arg7[%c96_492, %c6_493] : memref<128x9xf32, #tpu.memory_space<vmem>>, vector<8x1xf32>
    tpu.vector_store %arg7[%c96_492, %c6_493], %325 {strides = array<i32>} : memref<128x9xf32, #tpu.memory_space<vmem>>, vector<8x1xf32>,
    %c0_494 = arith.constant 0 : index
    %c135_495 = arith.constant 135 : index
    %c0_496 = arith.constant 0 : index
    %327 = vector.load %arg1[%c0_494, %c135_495, %c0_496] : memref<4x162x1xf32, #tpu.memory_space<vmem>>, vector<1x8x1xf32>
    %328 = vector.shape_cast %327 : vector<1x8x1xf32> to vector<8x1xf32>
    %c104_497 = arith.constant 104 : index
    %c6_498 = arith.constant 6 : index
    %329 = vector.load %arg7[%c104_497, %c6_498] : memref<128x9xf32, #tpu.memory_space<vmem>>, vector<8x1xf32>
    tpu.vector_store %arg7[%c104_497, %c6_498], %328 {strides = array<i32>} : memref<128x9xf32, #tpu.memory_space<vmem>>, vector<8x1xf32>,
    %c0_499 = arith.constant 0 : index
    %c144_500 = arith.constant 144 : index
    %c0_501 = arith.constant 0 : index
    %330 = vector.load %arg1[%c0_499, %c144_500, %c0_501] : memref<4x162x1xf32, #tpu.memory_space<vmem>>, vector<1x8x1xf32>
    %331 = vector.shape_cast %330 : vector<1x8x1xf32> to vector<8x1xf32>
    %c112_502 = arith.constant 112 : index
    %c6_503 = arith.constant 6 : index
    %332 = vector.load %arg7[%c112_502, %c6_503] : memref<128x9xf32, #tpu.memory_space<vmem>>, vector<8x1xf32>
    tpu.vector_store %arg7[%c112_502, %c6_503], %331 {strides = array<i32>} : memref<128x9xf32, #tpu.memory_space<vmem>>, vector<8x1xf32>,
    %c0_504 = arith.constant 0 : index
    %c153 = arith.constant 153 : index
    %c0_505 = arith.constant 0 : index
    %333 = vector.load %arg1[%c0_504, %c153, %c0_505] : memref<4x162x1xf32, #tpu.memory_space<vmem>>, vector<1x8x1xf32>
    %334 = vector.shape_cast %333 : vector<1x8x1xf32> to vector<8x1xf32>
    %c120_506 = arith.constant 120 : index
    %c6_507 = arith.constant 6 : index
    %335 = vector.load %arg7[%c120_506, %c6_507] : memref<128x9xf32, #tpu.memory_space<vmem>>, vector<8x1xf32>
    tpu.vector_store %arg7[%c120_506, %c6_507], %334 {strides = array<i32>} : memref<128x9xf32, #tpu.memory_space<vmem>>, vector<8x1xf32>,
    %c1_508 = arith.constant 1 : index
    %c9_509 = arith.constant 9 : index
    %c0_510 = arith.constant 0 : index
    %336 = vector.load %arg1[%c1_508, %c9_509, %c0_510] : memref<4x162x1xf32, #tpu.memory_space<vmem>>, vector<1x8x1xf32>
    %337 = vector.shape_cast %336 : vector<1x8x1xf32> to vector<8x1xf32>
    %c0_511 = arith.constant 0 : index
    %c7 = arith.constant 7 : index
    %338 = vector.load %arg7[%c0_511, %c7] : memref<128x9xf32, #tpu.memory_space<vmem>>, vector<8x1xf32>
    tpu.vector_store %arg7[%c0_511, %c7], %337 {strides = array<i32>} : memref<128x9xf32, #tpu.memory_space<vmem>>, vector<8x1xf32>,
    %c1_512 = arith.constant 1 : index
    %c18_513 = arith.constant 18 : index
    %c0_514 = arith.constant 0 : index
    %339 = vector.load %arg1[%c1_512, %c18_513, %c0_514] : memref<4x162x1xf32, #tpu.memory_space<vmem>>, vector<1x8x1xf32>
    %340 = vector.shape_cast %339 : vector<1x8x1xf32> to vector<8x1xf32>
    %c8_515 = arith.constant 8 : index
    %c7_516 = arith.constant 7 : index
    %341 = vector.load %arg7[%c8_515, %c7_516] : memref<128x9xf32, #tpu.memory_space<vmem>>, vector<8x1xf32>
    tpu.vector_store %arg7[%c8_515, %c7_516], %340 {strides = array<i32>} : memref<128x9xf32, #tpu.memory_space<vmem>>, vector<8x1xf32>,
    %c1_517 = arith.constant 1 : index
    %c27_518 = arith.constant 27 : index
    %c0_519 = arith.constant 0 : index
    %342 = vector.load %arg1[%c1_517, %c27_518, %c0_519] : memref<4x162x1xf32, #tpu.memory_space<vmem>>, vector<1x8x1xf32>
    %343 = vector.shape_cast %342 : vector<1x8x1xf32> to vector<8x1xf32>
    %c16_520 = arith.constant 16 : index
    %c7_521 = arith.constant 7 : index
    %344 = vector.load %arg7[%c16_520, %c7_521] : memref<128x9xf32, #tpu.memory_space<vmem>>, vector<8x1xf32>
    tpu.vector_store %arg7[%c16_520, %c7_521], %343 {strides = array<i32>} : memref<128x9xf32, #tpu.memory_space<vmem>>, vector<8x1xf32>,
    %c1_522 = arith.constant 1 : index
    %c36_523 = arith.constant 36 : index
    %c0_524 = arith.constant 0 : index
    %345 = vector.load %arg1[%c1_522, %c36_523, %c0_524] : memref<4x162x1xf32, #tpu.memory_space<vmem>>, vector<1x8x1xf32>
    %346 = vector.shape_cast %345 : vector<1x8x1xf32> to vector<8x1xf32>
    %c24_525 = arith.constant 24 : index
    %c7_526 = arith.constant 7 : index
    %347 = vector.load %arg7[%c24_525, %c7_526] : memref<128x9xf32, #tpu.memory_space<vmem>>, vector<8x1xf32>
    tpu.vector_store %arg7[%c24_525, %c7_526], %346 {strides = array<i32>} : memref<128x9xf32, #tpu.memory_space<vmem>>, vector<8x1xf32>,
    %c1_527 = arith.constant 1 : index
    %c45_528 = arith.constant 45 : index
    %c0_529 = arith.constant 0 : index
    %348 = vector.load %arg1[%c1_527, %c45_528, %c0_529] : memref<4x162x1xf32, #tpu.memory_space<vmem>>, vector<1x8x1xf32>
    %349 = vector.shape_cast %348 : vector<1x8x1xf32> to vector<8x1xf32>
    %c32_530 = arith.constant 32 : index
    %c7_531 = arith.constant 7 : index
    %350 = vector.load %arg7[%c32_530, %c7_531] : memref<128x9xf32, #tpu.memory_space<vmem>>, vector<8x1xf32>
    tpu.vector_store %arg7[%c32_530, %c7_531], %349 {strides = array<i32>} : memref<128x9xf32, #tpu.memory_space<vmem>>, vector<8x1xf32>,
    %c1_532 = arith.constant 1 : index
    %c54_533 = arith.constant 54 : index
    %c0_534 = arith.constant 0 : index
    %351 = vector.load %arg1[%c1_532, %c54_533, %c0_534] : memref<4x162x1xf32, #tpu.memory_space<vmem>>, vector<1x8x1xf32>
    %352 = vector.shape_cast %351 : vector<1x8x1xf32> to vector<8x1xf32>
    %c40_535 = arith.constant 40 : index
    %c7_536 = arith.constant 7 : index
    %353 = vector.load %arg7[%c40_535, %c7_536] : memref<128x9xf32, #tpu.memory_space<vmem>>, vector<8x1xf32>
    tpu.vector_store %arg7[%c40_535, %c7_536], %352 {strides = array<i32>} : memref<128x9xf32, #tpu.memory_space<vmem>>, vector<8x1xf32>,
    %c1_537 = arith.constant 1 : index
    %c63_538 = arith.constant 63 : index
    %c0_539 = arith.constant 0 : index
    %354 = vector.load %arg1[%c1_537, %c63_538, %c0_539] : memref<4x162x1xf32, #tpu.memory_space<vmem>>, vector<1x8x1xf32>
    %355 = vector.shape_cast %354 : vector<1x8x1xf32> to vector<8x1xf32>
    %c48_540 = arith.constant 48 : index
    %c7_541 = arith.constant 7 : index
    %356 = vector.load %arg7[%c48_540, %c7_541] : memref<128x9xf32, #tpu.memory_space<vmem>>, vector<8x1xf32>
    tpu.vector_store %arg7[%c48_540, %c7_541], %355 {strides = array<i32>} : memref<128x9xf32, #tpu.memory_space<vmem>>, vector<8x1xf32>,
    %c1_542 = arith.constant 1 : index
    %c72_543 = arith.constant 72 : index
    %c0_544 = arith.constant 0 : index
    %357 = vector.load %arg1[%c1_542, %c72_543, %c0_544] : memref<4x162x1xf32, #tpu.memory_space<vmem>>, vector<1x8x1xf32>
    %358 = vector.shape_cast %357 : vector<1x8x1xf32> to vector<8x1xf32>
    %c56_545 = arith.constant 56 : index
    %c7_546 = arith.constant 7 : index
    %359 = vector.load %arg7[%c56_545, %c7_546] : memref<128x9xf32, #tpu.memory_space<vmem>>, vector<8x1xf32>
    tpu.vector_store %arg7[%c56_545, %c7_546], %358 {strides = array<i32>} : memref<128x9xf32, #tpu.memory_space<vmem>>, vector<8x1xf32>,
    %c1_547 = arith.constant 1 : index
    %c90_548 = arith.constant 90 : index
    %c0_549 = arith.constant 0 : index
    %360 = vector.load %arg1[%c1_547, %c90_548, %c0_549] : memref<4x162x1xf32, #tpu.memory_space<vmem>>, vector<1x8x1xf32>
    %361 = vector.shape_cast %360 : vector<1x8x1xf32> to vector<8x1xf32>
    %c64_550 = arith.constant 64 : index
    %c7_551 = arith.constant 7 : index
    %362 = vector.load %arg7[%c64_550, %c7_551] : memref<128x9xf32, #tpu.memory_space<vmem>>, vector<8x1xf32>
    tpu.vector_store %arg7[%c64_550, %c7_551], %361 {strides = array<i32>} : memref<128x9xf32, #tpu.memory_space<vmem>>, vector<8x1xf32>,
    %c1_552 = arith.constant 1 : index
    %c99_553 = arith.constant 99 : index
    %c0_554 = arith.constant 0 : index
    %363 = vector.load %arg1[%c1_552, %c99_553, %c0_554] : memref<4x162x1xf32, #tpu.memory_space<vmem>>, vector<1x8x1xf32>
    %364 = vector.shape_cast %363 : vector<1x8x1xf32> to vector<8x1xf32>
    %c72_555 = arith.constant 72 : index
    %c7_556 = arith.constant 7 : index
    %365 = vector.load %arg7[%c72_555, %c7_556] : memref<128x9xf32, #tpu.memory_space<vmem>>, vector<8x1xf32>
    tpu.vector_store %arg7[%c72_555, %c7_556], %364 {strides = array<i32>} : memref<128x9xf32, #tpu.memory_space<vmem>>, vector<8x1xf32>,
    %c1_557 = arith.constant 1 : index
    %c108_558 = arith.constant 108 : index
    %c0_559 = arith.constant 0 : index
    %366 = vector.load %arg1[%c1_557, %c108_558, %c0_559] : memref<4x162x1xf32, #tpu.memory_space<vmem>>, vector<1x8x1xf32>
    %367 = vector.shape_cast %366 : vector<1x8x1xf32> to vector<8x1xf32>
    %c80_560 = arith.constant 80 : index
    %c7_561 = arith.constant 7 : index
    %368 = vector.load %arg7[%c80_560, %c7_561] : memref<128x9xf32, #tpu.memory_space<vmem>>, vector<8x1xf32>
    tpu.vector_store %arg7[%c80_560, %c7_561], %367 {strides = array<i32>} : memref<128x9xf32, #tpu.memory_space<vmem>>, vector<8x1xf32>,
    %c1_562 = arith.constant 1 : index
    %c117_563 = arith.constant 117 : index
    %c0_564 = arith.constant 0 : index
    %369 = vector.load %arg1[%c1_562, %c117_563, %c0_564] : memref<4x162x1xf32, #tpu.memory_space<vmem>>, vector<1x8x1xf32>
    %370 = vector.shape_cast %369 : vector<1x8x1xf32> to vector<8x1xf32>
    %c88_565 = arith.constant 88 : index
    %c7_566 = arith.constant 7 : index
    %371 = vector.load %arg7[%c88_565, %c7_566] : memref<128x9xf32, #tpu.memory_space<vmem>>, vector<8x1xf32>
    tpu.vector_store %arg7[%c88_565, %c7_566], %370 {strides = array<i32>} : memref<128x9xf32, #tpu.memory_space<vmem>>, vector<8x1xf32>,
    %c1_567 = arith.constant 1 : index
    %c126_568 = arith.constant 126 : index
    %c0_569 = arith.constant 0 : index
    %372 = vector.load %arg1[%c1_567, %c126_568, %c0_569] : memref<4x162x1xf32, #tpu.memory_space<vmem>>, vector<1x8x1xf32>
    %373 = vector.shape_cast %372 : vector<1x8x1xf32> to vector<8x1xf32>
    %c96_570 = arith.constant 96 : index
    %c7_571 = arith.constant 7 : index
    %374 = vector.load %arg7[%c96_570, %c7_571] : memref<128x9xf32, #tpu.memory_space<vmem>>, vector<8x1xf32>
    tpu.vector_store %arg7[%c96_570, %c7_571], %373 {strides = array<i32>} : memref<128x9xf32, #tpu.memory_space<vmem>>, vector<8x1xf32>,
    %c1_572 = arith.constant 1 : index
    %c135_573 = arith.constant 135 : index
    %c0_574 = arith.constant 0 : index
    %375 = vector.load %arg1[%c1_572, %c135_573, %c0_574] : memref<4x162x1xf32, #tpu.memory_space<vmem>>, vector<1x8x1xf32>
    %376 = vector.shape_cast %375 : vector<1x8x1xf32> to vector<8x1xf32>
    %c104_575 = arith.constant 104 : index
    %c7_576 = arith.constant 7 : index
    %377 = vector.load %arg7[%c104_575, %c7_576] : memref<128x9xf32, #tpu.memory_space<vmem>>, vector<8x1xf32>
    tpu.vector_store %arg7[%c104_575, %c7_576], %376 {strides = array<i32>} : memref<128x9xf32, #tpu.memory_space<vmem>>, vector<8x1xf32>,
    %c1_577 = arith.constant 1 : index
    %c144_578 = arith.constant 144 : index
    %c0_579 = arith.constant 0 : index
    %378 = vector.load %arg1[%c1_577, %c144_578, %c0_579] : memref<4x162x1xf32, #tpu.memory_space<vmem>>, vector<1x8x1xf32>
    %379 = vector.shape_cast %378 : vector<1x8x1xf32> to vector<8x1xf32>
    %c112_580 = arith.constant 112 : index
    %c7_581 = arith.constant 7 : index
    %380 = vector.load %arg7[%c112_580, %c7_581] : memref<128x9xf32, #tpu.memory_space<vmem>>, vector<8x1xf32>
    tpu.vector_store %arg7[%c112_580, %c7_581], %379 {strides = array<i32>} : memref<128x9xf32, #tpu.memory_space<vmem>>, vector<8x1xf32>,
    %c1_582 = arith.constant 1 : index
    %c153_583 = arith.constant 153 : index
    %c0_584 = arith.constant 0 : index
    %381 = vector.load %arg1[%c1_582, %c153_583, %c0_584] : memref<4x162x1xf32, #tpu.memory_space<vmem>>, vector<1x8x1xf32>
    %382 = vector.shape_cast %381 : vector<1x8x1xf32> to vector<8x1xf32>
    %c120_585 = arith.constant 120 : index
    %c7_586 = arith.constant 7 : index
    %383 = vector.load %arg7[%c120_585, %c7_586] : memref<128x9xf32, #tpu.memory_space<vmem>>, vector<8x1xf32>
    tpu.vector_store %arg7[%c120_585, %c7_586], %382 {strides = array<i32>} : memref<128x9xf32, #tpu.memory_space<vmem>>, vector<8x1xf32>,
    %c0_587 = arith.constant 0 : index
    %c10_588 = arith.constant 10 : index
    %c0_589 = arith.constant 0 : index
    %384 = vector.load %arg1[%c0_587, %c10_588, %c0_589] : memref<4x162x1xf32, #tpu.memory_space<vmem>>, vector<1x8x1xf32>
    %385 = vector.shape_cast %384 : vector<1x8x1xf32> to vector<8x1xf32>
    %c0_590 = arith.constant 0 : index
    %c8_591 = arith.constant 8 : index
    %386 = vector.load %arg7[%c0_590, %c8_591] : memref<128x9xf32, #tpu.memory_space<vmem>>, vector<8x1xf32>
    tpu.vector_store %arg7[%c0_590, %c8_591], %385 {strides = array<i32>} : memref<128x9xf32, #tpu.memory_space<vmem>>, vector<8x1xf32>,
    %c0_592 = arith.constant 0 : index
    %c19_593 = arith.constant 19 : index
    %c0_594 = arith.constant 0 : index
    %387 = vector.load %arg1[%c0_592, %c19_593, %c0_594] : memref<4x162x1xf32, #tpu.memory_space<vmem>>, vector<1x8x1xf32>
    %388 = vector.shape_cast %387 : vector<1x8x1xf32> to vector<8x1xf32>
    %c8_595 = arith.constant 8 : index
    %c8_596 = arith.constant 8 : index
    %389 = vector.load %arg7[%c8_595, %c8_596] : memref<128x9xf32, #tpu.memory_space<vmem>>, vector<8x1xf32>
    tpu.vector_store %arg7[%c8_595, %c8_596], %388 {strides = array<i32>} : memref<128x9xf32, #tpu.memory_space<vmem>>, vector<8x1xf32>,
    %c0_597 = arith.constant 0 : index
    %c28_598 = arith.constant 28 : index
    %c0_599 = arith.constant 0 : index
    %390 = vector.load %arg1[%c0_597, %c28_598, %c0_599] : memref<4x162x1xf32, #tpu.memory_space<vmem>>, vector<1x8x1xf32>
    %391 = vector.shape_cast %390 : vector<1x8x1xf32> to vector<8x1xf32>
    %c16_600 = arith.constant 16 : index
    %c8_601 = arith.constant 8 : index
    %392 = vector.load %arg7[%c16_600, %c8_601] : memref<128x9xf32, #tpu.memory_space<vmem>>, vector<8x1xf32>
    tpu.vector_store %arg7[%c16_600, %c8_601], %391 {strides = array<i32>} : memref<128x9xf32, #tpu.memory_space<vmem>>, vector<8x1xf32>,
    %c0_602 = arith.constant 0 : index
    %c37_603 = arith.constant 37 : index
    %c0_604 = arith.constant 0 : index
    %393 = vector.load %arg1[%c0_602, %c37_603, %c0_604] : memref<4x162x1xf32, #tpu.memory_space<vmem>>, vector<1x8x1xf32>
    %394 = vector.shape_cast %393 : vector<1x8x1xf32> to vector<8x1xf32>
    %c24_605 = arith.constant 24 : index
    %c8_606 = arith.constant 8 : index
    %395 = vector.load %arg7[%c24_605, %c8_606] : memref<128x9xf32, #tpu.memory_space<vmem>>, vector<8x1xf32>
    tpu.vector_store %arg7[%c24_605, %c8_606], %394 {strides = array<i32>} : memref<128x9xf32, #tpu.memory_space<vmem>>, vector<8x1xf32>,
    %c0_607 = arith.constant 0 : index
    %c46_608 = arith.constant 46 : index
    %c0_609 = arith.constant 0 : index
    %396 = vector.load %arg1[%c0_607, %c46_608, %c0_609] : memref<4x162x1xf32, #tpu.memory_space<vmem>>, vector<1x8x1xf32>
    %397 = vector.shape_cast %396 : vector<1x8x1xf32> to vector<8x1xf32>
    %c32_610 = arith.constant 32 : index
    %c8_611 = arith.constant 8 : index
    %398 = vector.load %arg7[%c32_610, %c8_611] : memref<128x9xf32, #tpu.memory_space<vmem>>, vector<8x1xf32>
    tpu.vector_store %arg7[%c32_610, %c8_611], %397 {strides = array<i32>} : memref<128x9xf32, #tpu.memory_space<vmem>>, vector<8x1xf32>,
    %c0_612 = arith.constant 0 : index
    %c55_613 = arith.constant 55 : index
    %c0_614 = arith.constant 0 : index
    %399 = vector.load %arg1[%c0_612, %c55_613, %c0_614] : memref<4x162x1xf32, #tpu.memory_space<vmem>>, vector<1x8x1xf32>
    %400 = vector.shape_cast %399 : vector<1x8x1xf32> to vector<8x1xf32>
    %c40_615 = arith.constant 40 : index
    %c8_616 = arith.constant 8 : index
    %401 = vector.load %arg7[%c40_615, %c8_616] : memref<128x9xf32, #tpu.memory_space<vmem>>, vector<8x1xf32>
    tpu.vector_store %arg7[%c40_615, %c8_616], %400 {strides = array<i32>} : memref<128x9xf32, #tpu.memory_space<vmem>>, vector<8x1xf32>,
    %c0_617 = arith.constant 0 : index
    %c64_618 = arith.constant 64 : index
    %c0_619 = arith.constant 0 : index
    %402 = vector.load %arg1[%c0_617, %c64_618, %c0_619] : memref<4x162x1xf32, #tpu.memory_space<vmem>>, vector<1x8x1xf32>
    %403 = vector.shape_cast %402 : vector<1x8x1xf32> to vector<8x1xf32>
    %c48_620 = arith.constant 48 : index
    %c8_621 = arith.constant 8 : index
    %404 = vector.load %arg7[%c48_620, %c8_621] : memref<128x9xf32, #tpu.memory_space<vmem>>, vector<8x1xf32>
    tpu.vector_store %arg7[%c48_620, %c8_621], %403 {strides = array<i32>} : memref<128x9xf32, #tpu.memory_space<vmem>>, vector<8x1xf32>,
    %c0_622 = arith.constant 0 : index
    %c73 = arith.constant 73 : index
    %c0_623 = arith.constant 0 : index
    %405 = vector.load %arg1[%c0_622, %c73, %c0_623] : memref<4x162x1xf32, #tpu.memory_space<vmem>>, vector<1x8x1xf32>
    %406 = vector.shape_cast %405 : vector<1x8x1xf32> to vector<8x1xf32>
    %c56_624 = arith.constant 56 : index
    %c8_625 = arith.constant 8 : index
    %407 = vector.load %arg7[%c56_624, %c8_625] : memref<128x9xf32, #tpu.memory_space<vmem>>, vector<8x1xf32>
    tpu.vector_store %arg7[%c56_624, %c8_625], %406 {strides = array<i32>} : memref<128x9xf32, #tpu.memory_space<vmem>>, vector<8x1xf32>,
    %c0_626 = arith.constant 0 : index
    %c91_627 = arith.constant 91 : index
    %c0_628 = arith.constant 0 : index
    %408 = vector.load %arg1[%c0_626, %c91_627, %c0_628] : memref<4x162x1xf32, #tpu.memory_space<vmem>>, vector<1x8x1xf32>
    %409 = vector.shape_cast %408 : vector<1x8x1xf32> to vector<8x1xf32>
    %c64_629 = arith.constant 64 : index
    %c8_630 = arith.constant 8 : index
    %410 = vector.load %arg7[%c64_629, %c8_630] : memref<128x9xf32, #tpu.memory_space<vmem>>, vector<8x1xf32>
    tpu.vector_store %arg7[%c64_629, %c8_630], %409 {strides = array<i32>} : memref<128x9xf32, #tpu.memory_space<vmem>>, vector<8x1xf32>,
    %c0_631 = arith.constant 0 : index
    %c100_632 = arith.constant 100 : index
    %c0_633 = arith.constant 0 : index
    %411 = vector.load %arg1[%c0_631, %c100_632, %c0_633] : memref<4x162x1xf32, #tpu.memory_space<vmem>>, vector<1x8x1xf32>
    %412 = vector.shape_cast %411 : vector<1x8x1xf32> to vector<8x1xf32>
    %c72_634 = arith.constant 72 : index
    %c8_635 = arith.constant 8 : index
    %413 = vector.load %arg7[%c72_634, %c8_635] : memref<128x9xf32, #tpu.memory_space<vmem>>, vector<8x1xf32>
    tpu.vector_store %arg7[%c72_634, %c8_635], %412 {strides = array<i32>} : memref<128x9xf32, #tpu.memory_space<vmem>>, vector<8x1xf32>,
    %c0_636 = arith.constant 0 : index
    %c109_637 = arith.constant 109 : index
    %c0_638 = arith.constant 0 : index
    %414 = vector.load %arg1[%c0_636, %c109_637, %c0_638] : memref<4x162x1xf32, #tpu.memory_space<vmem>>, vector<1x8x1xf32>
    %415 = vector.shape_cast %414 : vector<1x8x1xf32> to vector<8x1xf32>
    %c80_639 = arith.constant 80 : index
    %c8_640 = arith.constant 8 : index
    %416 = vector.load %arg7[%c80_639, %c8_640] : memref<128x9xf32, #tpu.memory_space<vmem>>, vector<8x1xf32>
    tpu.vector_store %arg7[%c80_639, %c8_640], %415 {strides = array<i32>} : memref<128x9xf32, #tpu.memory_space<vmem>>, vector<8x1xf32>,
    %c0_641 = arith.constant 0 : index
    %c118_642 = arith.constant 118 : index
    %c0_643 = arith.constant 0 : index
    %417 = vector.load %arg1[%c0_641, %c118_642, %c0_643] : memref<4x162x1xf32, #tpu.memory_space<vmem>>, vector<1x8x1xf32>
    %418 = vector.shape_cast %417 : vector<1x8x1xf32> to vector<8x1xf32>
    %c88_644 = arith.constant 88 : index
    %c8_645 = arith.constant 8 : index
    %419 = vector.load %arg7[%c88_644, %c8_645] : memref<128x9xf32, #tpu.memory_space<vmem>>, vector<8x1xf32>
    tpu.vector_store %arg7[%c88_644, %c8_645], %418 {strides = array<i32>} : memref<128x9xf32, #tpu.memory_space<vmem>>, vector<8x1xf32>,
    %c0_646 = arith.constant 0 : index
    %c127_647 = arith.constant 127 : index
    %c0_648 = arith.constant 0 : index
    %420 = vector.load %arg1[%c0_646, %c127_647, %c0_648] : memref<4x162x1xf32, #tpu.memory_space<vmem>>, vector<1x8x1xf32>
    %421 = vector.shape_cast %420 : vector<1x8x1xf32> to vector<8x1xf32>
    %c96_649 = arith.constant 96 : index
    %c8_650 = arith.constant 8 : index
    %422 = vector.load %arg7[%c96_649, %c8_650] : memref<128x9xf32, #tpu.memory_space<vmem>>, vector<8x1xf32>
    tpu.vector_store %arg7[%c96_649, %c8_650], %421 {strides = array<i32>} : memref<128x9xf32, #tpu.memory_space<vmem>>, vector<8x1xf32>,
    %c0_651 = arith.constant 0 : index
    %c136_652 = arith.constant 136 : index
    %c0_653 = arith.constant 0 : index
    %423 = vector.load %arg1[%c0_651, %c136_652, %c0_653] : memref<4x162x1xf32, #tpu.memory_space<vmem>>, vector<1x8x1xf32>
    %424 = vector.shape_cast %423 : vector<1x8x1xf32> to vector<8x1xf32>
    %c104_654 = arith.constant 104 : index
    %c8_655 = arith.constant 8 : index
    %425 = vector.load %arg7[%c104_654, %c8_655] : memref<128x9xf32, #tpu.memory_space<vmem>>, vector<8x1xf32>
    tpu.vector_store %arg7[%c104_654, %c8_655], %424 {strides = array<i32>} : memref<128x9xf32, #tpu.memory_space<vmem>>, vector<8x1xf32>,
    %c0_656 = arith.constant 0 : index
    %c145_657 = arith.constant 145 : index
    %c0_658 = arith.constant 0 : index
    %426 = vector.load %arg1[%c0_656, %c145_657, %c0_658] : memref<4x162x1xf32, #tpu.memory_space<vmem>>, vector<1x8x1xf32>
    %427 = vector.shape_cast %426 : vector<1x8x1xf32> to vector<8x1xf32>
    %c112_659 = arith.constant 112 : index
    %c8_660 = arith.constant 8 : index
    %428 = vector.load %arg7[%c112_659, %c8_660] : memref<128x9xf32, #tpu.memory_space<vmem>>, vector<8x1xf32>
    tpu.vector_store %arg7[%c112_659, %c8_660], %427 {strides = array<i32>} : memref<128x9xf32, #tpu.memory_space<vmem>>, vector<8x1xf32>,
    %c0_661 = arith.constant 0 : index
    %c154 = arith.constant 154 : index
    %c0_662 = arith.constant 0 : index
    %429 = vector.load %arg1[%c0_661, %c154, %c0_662] : memref<4x162x1xf32, #tpu.memory_space<vmem>>, vector<1x8x1xf32>
    %430 = vector.shape_cast %429 : vector<1x8x1xf32> to vector<8x1xf32>
    %c120_663 = arith.constant 120 : index
    %c8_664 = arith.constant 8 : index
    %431 = vector.load %arg7[%c120_663, %c8_664] : memref<128x9xf32, #tpu.memory_space<vmem>>, vector<8x1xf32>
    tpu.vector_store %arg7[%c120_663, %c8_664], %430 {strides = array<i32>} : memref<128x9xf32, #tpu.memory_space<vmem>>, vector<8x1xf32>,
    %cst = arith.constant 0.000000e+00 : f32
    %432 = vector.broadcast %cst : f32 to vector<128x32xf32>
    %c0_665 = arith.constant 0 : index
    %c0_666 = arith.constant 0 : index
    %433 = vector.load %arg7[%c0_665, %c0_666] : memref<128x9xf32, #tpu.memory_space<vmem>>, vector<128x1xf32>
    %c0_667 = arith.constant 0 : index
    %c0_668 = arith.constant 0 : index
    %434 = vector.load %arg2[%c0_667, %c0_668] : memref<9x32xf32, #tpu.memory_space<vmem>>, vector<1x32xf32>
    %435 = vector.broadcast %433 : vector<128x1xf32> to vector<128x32xf32>
    %436 = vector.broadcast %434 : vector<1x32xf32> to vector<128x32xf32>
    %437 = arith.mulf %435, %436 : vector<128x32xf32>
    %438 = arith.addf %432, %437 : vector<128x32xf32>
    %c0_669 = arith.constant 0 : index
    %c1_670 = arith.constant 1 : index
    %439 = vector.load %arg7[%c0_669, %c1_670] : memref<128x9xf32, #tpu.memory_space<vmem>>, vector<128x1xf32>
    %c1_671 = arith.constant 1 : index
    %c0_672 = arith.constant 0 : index
    %440 = vector.load %arg2[%c1_671, %c0_672] : memref<9x32xf32, #tpu.memory_space<vmem>>, vector<1x32xf32>
    %441 = vector.broadcast %439 : vector<128x1xf32> to vector<128x32xf32>
    %442 = vector.broadcast %440 : vector<1x32xf32> to vector<128x32xf32>
    %443 = arith.mulf %441, %442 : vector<128x32xf32>
    %444 = arith.addf %438, %443 : vector<128x32xf32>
    %c0_673 = arith.constant 0 : index
    %c2_674 = arith.constant 2 : index
    %445 = vector.load %arg7[%c0_673, %c2_674] : memref<128x9xf32, #tpu.memory_space<vmem>>, vector<128x1xf32>
    %c2_675 = arith.constant 2 : index
    %c0_676 = arith.constant 0 : index
    %446 = vector.load %arg2[%c2_675, %c0_676] : memref<9x32xf32, #tpu.memory_space<vmem>>, vector<1x32xf32>
    %447 = vector.broadcast %445 : vector<128x1xf32> to vector<128x32xf32>
    %448 = vector.broadcast %446 : vector<1x32xf32> to vector<128x32xf32>
    %449 = arith.mulf %447, %448 : vector<128x32xf32>
    %450 = arith.addf %444, %449 : vector<128x32xf32>
    %c0_677 = arith.constant 0 : index
    %c3_678 = arith.constant 3 : index
    %451 = vector.load %arg7[%c0_677, %c3_678] : memref<128x9xf32, #tpu.memory_space<vmem>>, vector<128x1xf32>
    %c3_679 = arith.constant 3 : index
    %c0_680 = arith.constant 0 : index
    %452 = vector.load %arg2[%c3_679, %c0_680] : memref<9x32xf32, #tpu.memory_space<vmem>>, vector<1x32xf32>
    %453 = vector.broadcast %451 : vector<128x1xf32> to vector<128x32xf32>
    %454 = vector.broadcast %452 : vector<1x32xf32> to vector<128x32xf32>
    %455 = arith.mulf %453, %454 : vector<128x32xf32>
    %456 = arith.addf %450, %455 : vector<128x32xf32>
    %c0_681 = arith.constant 0 : index
    %c4_682 = arith.constant 4 : index
    %457 = vector.load %arg7[%c0_681, %c4_682] : memref<128x9xf32, #tpu.memory_space<vmem>>, vector<128x1xf32>
    %c4_683 = arith.constant 4 : index
    %c0_684 = arith.constant 0 : index
    %458 = vector.load %arg2[%c4_683, %c0_684] : memref<9x32xf32, #tpu.memory_space<vmem>>, vector<1x32xf32>
    %459 = vector.broadcast %457 : vector<128x1xf32> to vector<128x32xf32>
    %460 = vector.broadcast %458 : vector<1x32xf32> to vector<128x32xf32>
    %461 = arith.mulf %459, %460 : vector<128x32xf32>
    %462 = arith.addf %456, %461 : vector<128x32xf32>
    %c0_685 = arith.constant 0 : index
    %c5_686 = arith.constant 5 : index
    %463 = vector.load %arg7[%c0_685, %c5_686] : memref<128x9xf32, #tpu.memory_space<vmem>>, vector<128x1xf32>
    %c5_687 = arith.constant 5 : index
    %c0_688 = arith.constant 0 : index
    %464 = vector.load %arg2[%c5_687, %c0_688] : memref<9x32xf32, #tpu.memory_space<vmem>>, vector<1x32xf32>
    %465 = vector.broadcast %463 : vector<128x1xf32> to vector<128x32xf32>
    %466 = vector.broadcast %464 : vector<1x32xf32> to vector<128x32xf32>
    %467 = arith.mulf %465, %466 : vector<128x32xf32>
    %468 = arith.addf %462, %467 : vector<128x32xf32>
    %c0_689 = arith.constant 0 : index
    %c6_690 = arith.constant 6 : index
    %469 = vector.load %arg7[%c0_689, %c6_690] : memref<128x9xf32, #tpu.memory_space<vmem>>, vector<128x1xf32>
    %c6_691 = arith.constant 6 : index
    %c0_692 = arith.constant 0 : index
    %470 = vector.load %arg2[%c6_691, %c0_692] : memref<9x32xf32, #tpu.memory_space<vmem>>, vector<1x32xf32>
    %471 = vector.broadcast %469 : vector<128x1xf32> to vector<128x32xf32>
    %472 = vector.broadcast %470 : vector<1x32xf32> to vector<128x32xf32>
    %473 = arith.mulf %471, %472 : vector<128x32xf32>
    %474 = arith.addf %468, %473 : vector<128x32xf32>
    %c0_693 = arith.constant 0 : index
    %c7_694 = arith.constant 7 : index
    %475 = vector.load %arg7[%c0_693, %c7_694] : memref<128x9xf32, #tpu.memory_space<vmem>>, vector<128x1xf32>
    %c7_695 = arith.constant 7 : index
    %c0_696 = arith.constant 0 : index
    %476 = vector.load %arg2[%c7_695, %c0_696] : memref<9x32xf32, #tpu.memory_space<vmem>>, vector<1x32xf32>
    %477 = vector.broadcast %475 : vector<128x1xf32> to vector<128x32xf32>
    %478 = vector.broadcast %476 : vector<1x32xf32> to vector<128x32xf32>
    %479 = arith.mulf %477, %478 : vector<128x32xf32>
    %480 = arith.addf %474, %479 : vector<128x32xf32>
    %c0_697 = arith.constant 0 : index
    %c8_698 = arith.constant 8 : index
    %481 = vector.load %arg7[%c0_697, %c8_698] : memref<128x9xf32, #tpu.memory_space<vmem>>, vector<128x1xf32>
    %c8_699 = arith.constant 8 : index
    %c0_700 = arith.constant 0 : index
    %482 = vector.load %arg2[%c8_699, %c0_700] : memref<9x32xf32, #tpu.memory_space<vmem>>, vector<1x32xf32>
    %483 = vector.broadcast %481 : vector<128x1xf32> to vector<128x32xf32>
    %484 = vector.broadcast %482 : vector<1x32xf32> to vector<128x32xf32>
    %485 = arith.mulf %483, %484 : vector<128x32xf32>
    %486 = arith.addf %480, %485 : vector<128x32xf32>
    %c0_701 = arith.constant 0 : index
    %c0_702 = arith.constant 0 : index
    %487 = vector.load %arg3[%c0_701, %c0_702] : memref<1x32xf32, #tpu.memory_space<vmem>>, vector<1x32xf32>
    %488 = vector.broadcast %487 : vector<1x32xf32> to vector<128x32xf32>
    %489 = arith.addf %486, %488 : vector<128x32xf32>
    %cst_703 = arith.constant 0.000000e+00 : f32
    %490 = vector.broadcast %cst_703 : f32 to vector<128x32xf32>
    %491 = arith.maximumf %489, %490 : vector<128x32xf32>
    %cst_704 = arith.constant dense<0.000000e+00> : vector<32xf32>
    %492 = vector.multi_reduction <add>, %491, %cst_704 [0] : vector<128x32xf32> to vector<32xf32>
    %493 = vector.shape_cast %492 : vector<32xf32> to vector<1x32xf32>
    %cst_705 = arith.constant 7.812500e-03 : f32
    %494 = vector.broadcast %cst_705 : f32 to vector<1x32xf32>
    %495 = arith.mulf %493, %494 : vector<1x32xf32>
    %496 = vector.broadcast %495 : vector<1x32xf32> to vector<128x32xf32>
    %497 = arith.subf %491, %496 : vector<128x32xf32>
    %498 = arith.mulf %497, %497 : vector<128x32xf32>
    %cst_706 = arith.constant dense<0.000000e+00> : vector<32xf32>
    %499 = vector.multi_reduction <add>, %498, %cst_706 [0] : vector<128x32xf32> to vector<32xf32>
    %500 = vector.shape_cast %499 : vector<32xf32> to vector<1x32xf32>
    %cst_707 = arith.constant 7.812500e-03 : f32
    %501 = vector.broadcast %cst_707 : f32 to vector<1x32xf32>
    %502 = arith.mulf %500, %501 : vector<1x32xf32>
    %c0_708 = arith.constant 0 : index
    %c0_709 = arith.constant 0 : index
    %503 = vector.load %arg4[%c0_708, %c0_709] : memref<1x32xf32, #tpu.memory_space<vmem>>, vector<1x32xf32>
    %cst_710 = arith.constant 9.99999974E-6 : f32
    %504 = vector.broadcast %cst_710 : f32 to vector<1x32xf32>
    %505 = arith.addf %502, %504 : vector<1x32xf32>
    %506 = math.rsqrt %505 : vector<1x32xf32>
    %507 = arith.mulf %503, %506 : vector<1x32xf32>
    %508 = vector.broadcast %507 : vector<1x32xf32> to vector<128x32xf32>
    %509 = arith.mulf %497, %508 : vector<128x32xf32>
    %c0_711 = arith.constant 0 : index
    %c0_712 = arith.constant 0 : index
    %510 = vector.load %arg5[%c0_711, %c0_712] : memref<1x32xf32, #tpu.memory_space<vmem>>, vector<1x32xf32>
    %511 = vector.broadcast %510 : vector<1x32xf32> to vector<128x32xf32>
    %512 = arith.addf %509, %511 : vector<128x32xf32>
    %c0_713 = arith.constant 0 : index
    %c0_714 = arith.constant 0 : index
    %513 = vector.load %arg6[%c0_713, %c0_714] : memref<128x32xf32, #tpu.memory_space<vmem>>, vector<128x32xf32>
    tpu.vector_store %arg6[%c0_713, %c0_714], %512 {strides = array<i32>} : memref<128x32xf32, #tpu.memory_space<vmem>>, vector<128x32xf32>,
    return
  }
  func.func @transform_0(%arg0: i32) -> (i32, i32, i32) {
    %c0_i32 = arith.constant 0 : i32
    %c0_i32_0 = arith.constant 0 : i32
    %c0_i32_1 = arith.constant 0 : i32
    %c0_i32_2 = arith.constant 0 : i32
    return %c0_i32, %c0_i32_0, %c0_i32_1 : i32, i32, i32
  }
  func.func @transform_1(%arg0: i32) -> (i32, i32) {
    %c0_i32 = arith.constant 0 : i32
    %c0_i32_0 = arith.constant 0 : i32
    %c0_i32_1 = arith.constant 0 : i32
    return %c0_i32, %c0_i32_0 : i32, i32
  }
  func.func @transform_2(%arg0: i32) -> (i32, i32) {
    %c0_i32 = arith.constant 0 : i32
    %c0_i32_0 = arith.constant 0 : i32
    %c0_i32_1 = arith.constant 0 : i32
    return %c0_i32, %c0_i32_0 : i32, i32
  }
  func.func @transform_3(%arg0: i32) -> (i32, i32) {
    %c0_i32 = arith.constant 0 : i32
    %c0_i32_0 = arith.constant 0 : i32
    %c0_i32_1 = arith.constant 0 : i32
    return %c0_i32, %c0_i32_0 : i32, i32
  }
  func.func @transform_4(%arg0: i32) -> (i32, i32) {
    %c0_i32 = arith.constant 0 : i32
    %c0_i32_0 = arith.constant 0 : i32
    %c0_i32_1 = arith.constant 0 : i32
    return %c0_i32, %c0_i32_0 : i32, i32
  }
  func.func @transform_5(%arg0: i32) -> (i32, i32) {
    %c0_i32 = arith.constant 0 : i32
    %c0_i32_0 = arith.constant 0 : i32
    %c0_i32_1 = arith.constant 0 : i32
    return %c0_i32, %c0_i32_0 : i32, i32
  }
}

module attributes {stable_mosaic.version = 11 : i64} {
  func.func @_conv_bn_kernel(%arg0: i32, %arg1: memref<4x50x32xbf16, #tpu.memory_space<vmem>>, %arg2: memref<288x64xbf16, #tpu.memory_space<vmem>>, %arg3: memref<1x64xf32, #tpu.memory_space<vmem>>, %arg4: memref<1x64xf32, #tpu.memory_space<vmem>>, %arg5: memref<1x64xf32, #tpu.memory_space<vmem>>, %arg6: memref<32x64xf32, #tpu.memory_space<vmem>>, %arg7: memref<32x288xbf16, #tpu.memory_space<vmem>>) attributes {dimension_semantics = [#tpu.dimension_semantics<arbitrary>], iteration_bounds = array<i64: 1>, scalar_prefetch = 0 : i64, scratch_operands = 1 : i64, tpu.core_type = #tpu.core_type<tc>, window_params = [{pipeline_mode = #tpu.pipeline_mode<synchronous>, transform_indices = @transform_0, window_bounds = array<i64: 4, 50, 32>}, {pipeline_mode = #tpu.pipeline_mode<synchronous>, transform_indices = @transform_1, window_bounds = array<i64: 288, 64>}, {pipeline_mode = #tpu.pipeline_mode<synchronous>, transform_indices = @transform_2, window_bounds = array<i64: 1, 64>}, {pipeline_mode = #tpu.pipeline_mode<synchronous>, transform_indices = @transform_3, window_bounds = array<i64: 1, 64>}, {pipeline_mode = #tpu.pipeline_mode<synchronous>, transform_indices = @transform_4, window_bounds = array<i64: 1, 64>}, {pipeline_mode = #tpu.pipeline_mode<synchronous>, transform_indices = @transform_5, window_bounds = array<i64: 32, 64>}]} {
    %c0 = arith.constant 0 : index
    %c0_0 = arith.constant 0 : index
    %c0_1 = arith.constant 0 : index
    %0 = vector.load %arg1[%c0, %c0_0, %c0_1] : memref<4x50x32xbf16, #tpu.memory_space<vmem>>, vector<1x4x32xbf16>
    %1 = vector.shape_cast %0 : vector<1x4x32xbf16> to vector<4x32xbf16>
    %c0_2 = arith.constant 0 : index
    %c0_3 = arith.constant 0 : index
    %2 = vector.load %arg7[%c0_2, %c0_3] : memref<32x288xbf16, #tpu.memory_space<vmem>>, vector<4x32xbf16>
    tpu.vector_store %arg7[%c0_2, %c0_3], %1 {strides = array<i32>} : memref<32x288xbf16, #tpu.memory_space<vmem>>, vector<4x32xbf16>,
    %c0_4 = arith.constant 0 : index
    %c5 = arith.constant 5 : index
    %c0_5 = arith.constant 0 : index
    %3 = vector.load %arg1[%c0_4, %c5, %c0_5] : memref<4x50x32xbf16, #tpu.memory_space<vmem>>, vector<1x4x32xbf16>
    %4 = vector.shape_cast %3 : vector<1x4x32xbf16> to vector<4x32xbf16>
    %c4 = arith.constant 4 : index
    %c0_6 = arith.constant 0 : index
    %5 = vector.load %arg7[%c4, %c0_6] : memref<32x288xbf16, #tpu.memory_space<vmem>>, vector<4x32xbf16>
    tpu.vector_store %arg7[%c4, %c0_6], %4 {strides = array<i32>} : memref<32x288xbf16, #tpu.memory_space<vmem>>, vector<4x32xbf16>,
    %c0_7 = arith.constant 0 : index
    %c10 = arith.constant 10 : index
    %c0_8 = arith.constant 0 : index
    %6 = vector.load %arg1[%c0_7, %c10, %c0_8] : memref<4x50x32xbf16, #tpu.memory_space<vmem>>, vector<1x4x32xbf16>
    %7 = vector.shape_cast %6 : vector<1x4x32xbf16> to vector<4x32xbf16>
    %c8 = arith.constant 8 : index
    %c0_9 = arith.constant 0 : index
    %8 = vector.load %arg7[%c8, %c0_9] : memref<32x288xbf16, #tpu.memory_space<vmem>>, vector<4x32xbf16>
    tpu.vector_store %arg7[%c8, %c0_9], %7 {strides = array<i32>} : memref<32x288xbf16, #tpu.memory_space<vmem>>, vector<4x32xbf16>,
    %c0_10 = arith.constant 0 : index
    %c15 = arith.constant 15 : index
    %c0_11 = arith.constant 0 : index
    %9 = vector.load %arg1[%c0_10, %c15, %c0_11] : memref<4x50x32xbf16, #tpu.memory_space<vmem>>, vector<1x4x32xbf16>
    %10 = vector.shape_cast %9 : vector<1x4x32xbf16> to vector<4x32xbf16>
    %c12 = arith.constant 12 : index
    %c0_12 = arith.constant 0 : index
    %11 = vector.load %arg7[%c12, %c0_12] : memref<32x288xbf16, #tpu.memory_space<vmem>>, vector<4x32xbf16>
    tpu.vector_store %arg7[%c12, %c0_12], %10 {strides = array<i32>} : memref<32x288xbf16, #tpu.memory_space<vmem>>, vector<4x32xbf16>,
    %c0_13 = arith.constant 0 : index
    %c25 = arith.constant 25 : index
    %c0_14 = arith.constant 0 : index
    %12 = vector.load %arg1[%c0_13, %c25, %c0_14] : memref<4x50x32xbf16, #tpu.memory_space<vmem>>, vector<1x4x32xbf16>
    %13 = vector.shape_cast %12 : vector<1x4x32xbf16> to vector<4x32xbf16>
    %c16 = arith.constant 16 : index
    %c0_15 = arith.constant 0 : index
    %14 = vector.load %arg7[%c16, %c0_15] : memref<32x288xbf16, #tpu.memory_space<vmem>>, vector<4x32xbf16>
    tpu.vector_store %arg7[%c16, %c0_15], %13 {strides = array<i32>} : memref<32x288xbf16, #tpu.memory_space<vmem>>, vector<4x32xbf16>,
    %c0_16 = arith.constant 0 : index
    %c30 = arith.constant 30 : index
    %c0_17 = arith.constant 0 : index
    %15 = vector.load %arg1[%c0_16, %c30, %c0_17] : memref<4x50x32xbf16, #tpu.memory_space<vmem>>, vector<1x4x32xbf16>
    %16 = vector.shape_cast %15 : vector<1x4x32xbf16> to vector<4x32xbf16>
    %c20 = arith.constant 20 : index
    %c0_18 = arith.constant 0 : index
    %17 = vector.load %arg7[%c20, %c0_18] : memref<32x288xbf16, #tpu.memory_space<vmem>>, vector<4x32xbf16>
    tpu.vector_store %arg7[%c20, %c0_18], %16 {strides = array<i32>} : memref<32x288xbf16, #tpu.memory_space<vmem>>, vector<4x32xbf16>,
    %c0_19 = arith.constant 0 : index
    %c35 = arith.constant 35 : index
    %c0_20 = arith.constant 0 : index
    %18 = vector.load %arg1[%c0_19, %c35, %c0_20] : memref<4x50x32xbf16, #tpu.memory_space<vmem>>, vector<1x4x32xbf16>
    %19 = vector.shape_cast %18 : vector<1x4x32xbf16> to vector<4x32xbf16>
    %c24 = arith.constant 24 : index
    %c0_21 = arith.constant 0 : index
    %20 = vector.load %arg7[%c24, %c0_21] : memref<32x288xbf16, #tpu.memory_space<vmem>>, vector<4x32xbf16>
    tpu.vector_store %arg7[%c24, %c0_21], %19 {strides = array<i32>} : memref<32x288xbf16, #tpu.memory_space<vmem>>, vector<4x32xbf16>,
    %c0_22 = arith.constant 0 : index
    %c40 = arith.constant 40 : index
    %c0_23 = arith.constant 0 : index
    %21 = vector.load %arg1[%c0_22, %c40, %c0_23] : memref<4x50x32xbf16, #tpu.memory_space<vmem>>, vector<1x4x32xbf16>
    %22 = vector.shape_cast %21 : vector<1x4x32xbf16> to vector<4x32xbf16>
    %c28 = arith.constant 28 : index
    %c0_24 = arith.constant 0 : index
    %23 = vector.load %arg7[%c28, %c0_24] : memref<32x288xbf16, #tpu.memory_space<vmem>>, vector<4x32xbf16>
    tpu.vector_store %arg7[%c28, %c0_24], %22 {strides = array<i32>} : memref<32x288xbf16, #tpu.memory_space<vmem>>, vector<4x32xbf16>,
    %c1 = arith.constant 1 : index
    %c0_25 = arith.constant 0 : index
    %c0_26 = arith.constant 0 : index
    %24 = vector.load %arg1[%c1, %c0_25, %c0_26] : memref<4x50x32xbf16, #tpu.memory_space<vmem>>, vector<1x4x32xbf16>
    %25 = vector.shape_cast %24 : vector<1x4x32xbf16> to vector<4x32xbf16>
    %c0_27 = arith.constant 0 : index
    %c32 = arith.constant 32 : index
    %26 = vector.load %arg7[%c0_27, %c32] : memref<32x288xbf16, #tpu.memory_space<vmem>>, vector<4x32xbf16>
    tpu.vector_store %arg7[%c0_27, %c32], %25 {strides = array<i32>} : memref<32x288xbf16, #tpu.memory_space<vmem>>, vector<4x32xbf16>,
    %c1_28 = arith.constant 1 : index
    %c5_29 = arith.constant 5 : index
    %c0_30 = arith.constant 0 : index
    %27 = vector.load %arg1[%c1_28, %c5_29, %c0_30] : memref<4x50x32xbf16, #tpu.memory_space<vmem>>, vector<1x4x32xbf16>
    %28 = vector.shape_cast %27 : vector<1x4x32xbf16> to vector<4x32xbf16>
    %c4_31 = arith.constant 4 : index
    %c32_32 = arith.constant 32 : index
    %29 = vector.load %arg7[%c4_31, %c32_32] : memref<32x288xbf16, #tpu.memory_space<vmem>>, vector<4x32xbf16>
    tpu.vector_store %arg7[%c4_31, %c32_32], %28 {strides = array<i32>} : memref<32x288xbf16, #tpu.memory_space<vmem>>, vector<4x32xbf16>,
    %c1_33 = arith.constant 1 : index
    %c10_34 = arith.constant 10 : index
    %c0_35 = arith.constant 0 : index
    %30 = vector.load %arg1[%c1_33, %c10_34, %c0_35] : memref<4x50x32xbf16, #tpu.memory_space<vmem>>, vector<1x4x32xbf16>
    %31 = vector.shape_cast %30 : vector<1x4x32xbf16> to vector<4x32xbf16>
    %c8_36 = arith.constant 8 : index
    %c32_37 = arith.constant 32 : index
    %32 = vector.load %arg7[%c8_36, %c32_37] : memref<32x288xbf16, #tpu.memory_space<vmem>>, vector<4x32xbf16>
    tpu.vector_store %arg7[%c8_36, %c32_37], %31 {strides = array<i32>} : memref<32x288xbf16, #tpu.memory_space<vmem>>, vector<4x32xbf16>,
    %c1_38 = arith.constant 1 : index
    %c15_39 = arith.constant 15 : index
    %c0_40 = arith.constant 0 : index
    %33 = vector.load %arg1[%c1_38, %c15_39, %c0_40] : memref<4x50x32xbf16, #tpu.memory_space<vmem>>, vector<1x4x32xbf16>
    %34 = vector.shape_cast %33 : vector<1x4x32xbf16> to vector<4x32xbf16>
    %c12_41 = arith.constant 12 : index
    %c32_42 = arith.constant 32 : index
    %35 = vector.load %arg7[%c12_41, %c32_42] : memref<32x288xbf16, #tpu.memory_space<vmem>>, vector<4x32xbf16>
    tpu.vector_store %arg7[%c12_41, %c32_42], %34 {strides = array<i32>} : memref<32x288xbf16, #tpu.memory_space<vmem>>, vector<4x32xbf16>,
    %c1_43 = arith.constant 1 : index
    %c25_44 = arith.constant 25 : index
    %c0_45 = arith.constant 0 : index
    %36 = vector.load %arg1[%c1_43, %c25_44, %c0_45] : memref<4x50x32xbf16, #tpu.memory_space<vmem>>, vector<1x4x32xbf16>
    %37 = vector.shape_cast %36 : vector<1x4x32xbf16> to vector<4x32xbf16>
    %c16_46 = arith.constant 16 : index
    %c32_47 = arith.constant 32 : index
    %38 = vector.load %arg7[%c16_46, %c32_47] : memref<32x288xbf16, #tpu.memory_space<vmem>>, vector<4x32xbf16>
    tpu.vector_store %arg7[%c16_46, %c32_47], %37 {strides = array<i32>} : memref<32x288xbf16, #tpu.memory_space<vmem>>, vector<4x32xbf16>,
    %c1_48 = arith.constant 1 : index
    %c30_49 = arith.constant 30 : index
    %c0_50 = arith.constant 0 : index
    %39 = vector.load %arg1[%c1_48, %c30_49, %c0_50] : memref<4x50x32xbf16, #tpu.memory_space<vmem>>, vector<1x4x32xbf16>
    %40 = vector.shape_cast %39 : vector<1x4x32xbf16> to vector<4x32xbf16>
    %c20_51 = arith.constant 20 : index
    %c32_52 = arith.constant 32 : index
    %41 = vector.load %arg7[%c20_51, %c32_52] : memref<32x288xbf16, #tpu.memory_space<vmem>>, vector<4x32xbf16>
    tpu.vector_store %arg7[%c20_51, %c32_52], %40 {strides = array<i32>} : memref<32x288xbf16, #tpu.memory_space<vmem>>, vector<4x32xbf16>,
    %c1_53 = arith.constant 1 : index
    %c35_54 = arith.constant 35 : index
    %c0_55 = arith.constant 0 : index
    %42 = vector.load %arg1[%c1_53, %c35_54, %c0_55] : memref<4x50x32xbf16, #tpu.memory_space<vmem>>, vector<1x4x32xbf16>
    %43 = vector.shape_cast %42 : vector<1x4x32xbf16> to vector<4x32xbf16>
    %c24_56 = arith.constant 24 : index
    %c32_57 = arith.constant 32 : index
    %44 = vector.load %arg7[%c24_56, %c32_57] : memref<32x288xbf16, #tpu.memory_space<vmem>>, vector<4x32xbf16>
    tpu.vector_store %arg7[%c24_56, %c32_57], %43 {strides = array<i32>} : memref<32x288xbf16, #tpu.memory_space<vmem>>, vector<4x32xbf16>,
    %c1_58 = arith.constant 1 : index
    %c40_59 = arith.constant 40 : index
    %c0_60 = arith.constant 0 : index
    %45 = vector.load %arg1[%c1_58, %c40_59, %c0_60] : memref<4x50x32xbf16, #tpu.memory_space<vmem>>, vector<1x4x32xbf16>
    %46 = vector.shape_cast %45 : vector<1x4x32xbf16> to vector<4x32xbf16>
    %c28_61 = arith.constant 28 : index
    %c32_62 = arith.constant 32 : index
    %47 = vector.load %arg7[%c28_61, %c32_62] : memref<32x288xbf16, #tpu.memory_space<vmem>>, vector<4x32xbf16>
    tpu.vector_store %arg7[%c28_61, %c32_62], %46 {strides = array<i32>} : memref<32x288xbf16, #tpu.memory_space<vmem>>, vector<4x32xbf16>,
    %c0_63 = arith.constant 0 : index
    %c1_64 = arith.constant 1 : index
    %c0_65 = arith.constant 0 : index
    %48 = vector.load %arg1[%c0_63, %c1_64, %c0_65] : memref<4x50x32xbf16, #tpu.memory_space<vmem>>, vector<1x4x32xbf16>
    %49 = vector.shape_cast %48 : vector<1x4x32xbf16> to vector<4x32xbf16>
    %c0_66 = arith.constant 0 : index
    %c64 = arith.constant 64 : index
    %50 = vector.load %arg7[%c0_66, %c64] : memref<32x288xbf16, #tpu.memory_space<vmem>>, vector<4x32xbf16>
    tpu.vector_store %arg7[%c0_66, %c64], %49 {strides = array<i32>} : memref<32x288xbf16, #tpu.memory_space<vmem>>, vector<4x32xbf16>,
    %c0_67 = arith.constant 0 : index
    %c6 = arith.constant 6 : index
    %c0_68 = arith.constant 0 : index
    %51 = vector.load %arg1[%c0_67, %c6, %c0_68] : memref<4x50x32xbf16, #tpu.memory_space<vmem>>, vector<1x4x32xbf16>
    %52 = vector.shape_cast %51 : vector<1x4x32xbf16> to vector<4x32xbf16>
    %c4_69 = arith.constant 4 : index
    %c64_70 = arith.constant 64 : index
    %53 = vector.load %arg7[%c4_69, %c64_70] : memref<32x288xbf16, #tpu.memory_space<vmem>>, vector<4x32xbf16>
    tpu.vector_store %arg7[%c4_69, %c64_70], %52 {strides = array<i32>} : memref<32x288xbf16, #tpu.memory_space<vmem>>, vector<4x32xbf16>,
    %c0_71 = arith.constant 0 : index
    %c11 = arith.constant 11 : index
    %c0_72 = arith.constant 0 : index
    %54 = vector.load %arg1[%c0_71, %c11, %c0_72] : memref<4x50x32xbf16, #tpu.memory_space<vmem>>, vector<1x4x32xbf16>
    %55 = vector.shape_cast %54 : vector<1x4x32xbf16> to vector<4x32xbf16>
    %c8_73 = arith.constant 8 : index
    %c64_74 = arith.constant 64 : index
    %56 = vector.load %arg7[%c8_73, %c64_74] : memref<32x288xbf16, #tpu.memory_space<vmem>>, vector<4x32xbf16>
    tpu.vector_store %arg7[%c8_73, %c64_74], %55 {strides = array<i32>} : memref<32x288xbf16, #tpu.memory_space<vmem>>, vector<4x32xbf16>,
    %c0_75 = arith.constant 0 : index
    %c16_76 = arith.constant 16 : index
    %c0_77 = arith.constant 0 : index
    %57 = vector.load %arg1[%c0_75, %c16_76, %c0_77] : memref<4x50x32xbf16, #tpu.memory_space<vmem>>, vector<1x4x32xbf16>
    %58 = vector.shape_cast %57 : vector<1x4x32xbf16> to vector<4x32xbf16>
    %c12_78 = arith.constant 12 : index
    %c64_79 = arith.constant 64 : index
    %59 = vector.load %arg7[%c12_78, %c64_79] : memref<32x288xbf16, #tpu.memory_space<vmem>>, vector<4x32xbf16>
    tpu.vector_store %arg7[%c12_78, %c64_79], %58 {strides = array<i32>} : memref<32x288xbf16, #tpu.memory_space<vmem>>, vector<4x32xbf16>,
    %c0_80 = arith.constant 0 : index
    %c26 = arith.constant 26 : index
    %c0_81 = arith.constant 0 : index
    %60 = vector.load %arg1[%c0_80, %c26, %c0_81] : memref<4x50x32xbf16, #tpu.memory_space<vmem>>, vector<1x4x32xbf16>
    %61 = vector.shape_cast %60 : vector<1x4x32xbf16> to vector<4x32xbf16>
    %c16_82 = arith.constant 16 : index
    %c64_83 = arith.constant 64 : index
    %62 = vector.load %arg7[%c16_82, %c64_83] : memref<32x288xbf16, #tpu.memory_space<vmem>>, vector<4x32xbf16>
    tpu.vector_store %arg7[%c16_82, %c64_83], %61 {strides = array<i32>} : memref<32x288xbf16, #tpu.memory_space<vmem>>, vector<4x32xbf16>,
    %c0_84 = arith.constant 0 : index
    %c31 = arith.constant 31 : index
    %c0_85 = arith.constant 0 : index
    %63 = vector.load %arg1[%c0_84, %c31, %c0_85] : memref<4x50x32xbf16, #tpu.memory_space<vmem>>, vector<1x4x32xbf16>
    %64 = vector.shape_cast %63 : vector<1x4x32xbf16> to vector<4x32xbf16>
    %c20_86 = arith.constant 20 : index
    %c64_87 = arith.constant 64 : index
    %65 = vector.load %arg7[%c20_86, %c64_87] : memref<32x288xbf16, #tpu.memory_space<vmem>>, vector<4x32xbf16>
    tpu.vector_store %arg7[%c20_86, %c64_87], %64 {strides = array<i32>} : memref<32x288xbf16, #tpu.memory_space<vmem>>, vector<4x32xbf16>,
    %c0_88 = arith.constant 0 : index
    %c36 = arith.constant 36 : index
    %c0_89 = arith.constant 0 : index
    %66 = vector.load %arg1[%c0_88, %c36, %c0_89] : memref<4x50x32xbf16, #tpu.memory_space<vmem>>, vector<1x4x32xbf16>
    %67 = vector.shape_cast %66 : vector<1x4x32xbf16> to vector<4x32xbf16>
    %c24_90 = arith.constant 24 : index
    %c64_91 = arith.constant 64 : index
    %68 = vector.load %arg7[%c24_90, %c64_91] : memref<32x288xbf16, #tpu.memory_space<vmem>>, vector<4x32xbf16>
    tpu.vector_store %arg7[%c24_90, %c64_91], %67 {strides = array<i32>} : memref<32x288xbf16, #tpu.memory_space<vmem>>, vector<4x32xbf16>,
    %c0_92 = arith.constant 0 : index
    %c41 = arith.constant 41 : index
    %c0_93 = arith.constant 0 : index
    %69 = vector.load %arg1[%c0_92, %c41, %c0_93] : memref<4x50x32xbf16, #tpu.memory_space<vmem>>, vector<1x4x32xbf16>
    %70 = vector.shape_cast %69 : vector<1x4x32xbf16> to vector<4x32xbf16>
    %c28_94 = arith.constant 28 : index
    %c64_95 = arith.constant 64 : index
    %71 = vector.load %arg7[%c28_94, %c64_95] : memref<32x288xbf16, #tpu.memory_space<vmem>>, vector<4x32xbf16>
    tpu.vector_store %arg7[%c28_94, %c64_95], %70 {strides = array<i32>} : memref<32x288xbf16, #tpu.memory_space<vmem>>, vector<4x32xbf16>,
    %c2 = arith.constant 2 : index
    %c0_96 = arith.constant 0 : index
    %c0_97 = arith.constant 0 : index
    %72 = vector.load %arg1[%c2, %c0_96, %c0_97] : memref<4x50x32xbf16, #tpu.memory_space<vmem>>, vector<1x4x32xbf16>
    %73 = vector.shape_cast %72 : vector<1x4x32xbf16> to vector<4x32xbf16>
    %c0_98 = arith.constant 0 : index
    %c96 = arith.constant 96 : index
    %74 = vector.load %arg7[%c0_98, %c96] : memref<32x288xbf16, #tpu.memory_space<vmem>>, vector<4x32xbf16>
    tpu.vector_store %arg7[%c0_98, %c96], %73 {strides = array<i32>} : memref<32x288xbf16, #tpu.memory_space<vmem>>, vector<4x32xbf16>,
    %c2_99 = arith.constant 2 : index
    %c5_100 = arith.constant 5 : index
    %c0_101 = arith.constant 0 : index
    %75 = vector.load %arg1[%c2_99, %c5_100, %c0_101] : memref<4x50x32xbf16, #tpu.memory_space<vmem>>, vector<1x4x32xbf16>
    %76 = vector.shape_cast %75 : vector<1x4x32xbf16> to vector<4x32xbf16>
    %c4_102 = arith.constant 4 : index
    %c96_103 = arith.constant 96 : index
    %77 = vector.load %arg7[%c4_102, %c96_103] : memref<32x288xbf16, #tpu.memory_space<vmem>>, vector<4x32xbf16>
    tpu.vector_store %arg7[%c4_102, %c96_103], %76 {strides = array<i32>} : memref<32x288xbf16, #tpu.memory_space<vmem>>, vector<4x32xbf16>,
    %c2_104 = arith.constant 2 : index
    %c10_105 = arith.constant 10 : index
    %c0_106 = arith.constant 0 : index
    %78 = vector.load %arg1[%c2_104, %c10_105, %c0_106] : memref<4x50x32xbf16, #tpu.memory_space<vmem>>, vector<1x4x32xbf16>
    %79 = vector.shape_cast %78 : vector<1x4x32xbf16> to vector<4x32xbf16>
    %c8_107 = arith.constant 8 : index
    %c96_108 = arith.constant 96 : index
    %80 = vector.load %arg7[%c8_107, %c96_108] : memref<32x288xbf16, #tpu.memory_space<vmem>>, vector<4x32xbf16>
    tpu.vector_store %arg7[%c8_107, %c96_108], %79 {strides = array<i32>} : memref<32x288xbf16, #tpu.memory_space<vmem>>, vector<4x32xbf16>,
    %c2_109 = arith.constant 2 : index
    %c15_110 = arith.constant 15 : index
    %c0_111 = arith.constant 0 : index
    %81 = vector.load %arg1[%c2_109, %c15_110, %c0_111] : memref<4x50x32xbf16, #tpu.memory_space<vmem>>, vector<1x4x32xbf16>
    %82 = vector.shape_cast %81 : vector<1x4x32xbf16> to vector<4x32xbf16>
    %c12_112 = arith.constant 12 : index
    %c96_113 = arith.constant 96 : index
    %83 = vector.load %arg7[%c12_112, %c96_113] : memref<32x288xbf16, #tpu.memory_space<vmem>>, vector<4x32xbf16>
    tpu.vector_store %arg7[%c12_112, %c96_113], %82 {strides = array<i32>} : memref<32x288xbf16, #tpu.memory_space<vmem>>, vector<4x32xbf16>,
    %c2_114 = arith.constant 2 : index
    %c25_115 = arith.constant 25 : index
    %c0_116 = arith.constant 0 : index
    %84 = vector.load %arg1[%c2_114, %c25_115, %c0_116] : memref<4x50x32xbf16, #tpu.memory_space<vmem>>, vector<1x4x32xbf16>
    %85 = vector.shape_cast %84 : vector<1x4x32xbf16> to vector<4x32xbf16>
    %c16_117 = arith.constant 16 : index
    %c96_118 = arith.constant 96 : index
    %86 = vector.load %arg7[%c16_117, %c96_118] : memref<32x288xbf16, #tpu.memory_space<vmem>>, vector<4x32xbf16>
    tpu.vector_store %arg7[%c16_117, %c96_118], %85 {strides = array<i32>} : memref<32x288xbf16, #tpu.memory_space<vmem>>, vector<4x32xbf16>,
    %c2_119 = arith.constant 2 : index
    %c30_120 = arith.constant 30 : index
    %c0_121 = arith.constant 0 : index
    %87 = vector.load %arg1[%c2_119, %c30_120, %c0_121] : memref<4x50x32xbf16, #tpu.memory_space<vmem>>, vector<1x4x32xbf16>
    %88 = vector.shape_cast %87 : vector<1x4x32xbf16> to vector<4x32xbf16>
    %c20_122 = arith.constant 20 : index
    %c96_123 = arith.constant 96 : index
    %89 = vector.load %arg7[%c20_122, %c96_123] : memref<32x288xbf16, #tpu.memory_space<vmem>>, vector<4x32xbf16>
    tpu.vector_store %arg7[%c20_122, %c96_123], %88 {strides = array<i32>} : memref<32x288xbf16, #tpu.memory_space<vmem>>, vector<4x32xbf16>,
    %c2_124 = arith.constant 2 : index
    %c35_125 = arith.constant 35 : index
    %c0_126 = arith.constant 0 : index
    %90 = vector.load %arg1[%c2_124, %c35_125, %c0_126] : memref<4x50x32xbf16, #tpu.memory_space<vmem>>, vector<1x4x32xbf16>
    %91 = vector.shape_cast %90 : vector<1x4x32xbf16> to vector<4x32xbf16>
    %c24_127 = arith.constant 24 : index
    %c96_128 = arith.constant 96 : index
    %92 = vector.load %arg7[%c24_127, %c96_128] : memref<32x288xbf16, #tpu.memory_space<vmem>>, vector<4x32xbf16>
    tpu.vector_store %arg7[%c24_127, %c96_128], %91 {strides = array<i32>} : memref<32x288xbf16, #tpu.memory_space<vmem>>, vector<4x32xbf16>,
    %c2_129 = arith.constant 2 : index
    %c40_130 = arith.constant 40 : index
    %c0_131 = arith.constant 0 : index
    %93 = vector.load %arg1[%c2_129, %c40_130, %c0_131] : memref<4x50x32xbf16, #tpu.memory_space<vmem>>, vector<1x4x32xbf16>
    %94 = vector.shape_cast %93 : vector<1x4x32xbf16> to vector<4x32xbf16>
    %c28_132 = arith.constant 28 : index
    %c96_133 = arith.constant 96 : index
    %95 = vector.load %arg7[%c28_132, %c96_133] : memref<32x288xbf16, #tpu.memory_space<vmem>>, vector<4x32xbf16>
    tpu.vector_store %arg7[%c28_132, %c96_133], %94 {strides = array<i32>} : memref<32x288xbf16, #tpu.memory_space<vmem>>, vector<4x32xbf16>,
    %c3 = arith.constant 3 : index
    %c0_134 = arith.constant 0 : index
    %c0_135 = arith.constant 0 : index
    %96 = vector.load %arg1[%c3, %c0_134, %c0_135] : memref<4x50x32xbf16, #tpu.memory_space<vmem>>, vector<1x4x32xbf16>
    %97 = vector.shape_cast %96 : vector<1x4x32xbf16> to vector<4x32xbf16>
    %c0_136 = arith.constant 0 : index
    %c128 = arith.constant 128 : index
    %98 = vector.load %arg7[%c0_136, %c128] : memref<32x288xbf16, #tpu.memory_space<vmem>>, vector<4x32xbf16>
    tpu.vector_store %arg7[%c0_136, %c128], %97 {strides = array<i32>} : memref<32x288xbf16, #tpu.memory_space<vmem>>, vector<4x32xbf16>,
    %c3_137 = arith.constant 3 : index
    %c5_138 = arith.constant 5 : index
    %c0_139 = arith.constant 0 : index
    %99 = vector.load %arg1[%c3_137, %c5_138, %c0_139] : memref<4x50x32xbf16, #tpu.memory_space<vmem>>, vector<1x4x32xbf16>
    %100 = vector.shape_cast %99 : vector<1x4x32xbf16> to vector<4x32xbf16>
    %c4_140 = arith.constant 4 : index
    %c128_141 = arith.constant 128 : index
    %101 = vector.load %arg7[%c4_140, %c128_141] : memref<32x288xbf16, #tpu.memory_space<vmem>>, vector<4x32xbf16>
    tpu.vector_store %arg7[%c4_140, %c128_141], %100 {strides = array<i32>} : memref<32x288xbf16, #tpu.memory_space<vmem>>, vector<4x32xbf16>,
    %c3_142 = arith.constant 3 : index
    %c10_143 = arith.constant 10 : index
    %c0_144 = arith.constant 0 : index
    %102 = vector.load %arg1[%c3_142, %c10_143, %c0_144] : memref<4x50x32xbf16, #tpu.memory_space<vmem>>, vector<1x4x32xbf16>
    %103 = vector.shape_cast %102 : vector<1x4x32xbf16> to vector<4x32xbf16>
    %c8_145 = arith.constant 8 : index
    %c128_146 = arith.constant 128 : index
    %104 = vector.load %arg7[%c8_145, %c128_146] : memref<32x288xbf16, #tpu.memory_space<vmem>>, vector<4x32xbf16>
    tpu.vector_store %arg7[%c8_145, %c128_146], %103 {strides = array<i32>} : memref<32x288xbf16, #tpu.memory_space<vmem>>, vector<4x32xbf16>,
    %c3_147 = arith.constant 3 : index
    %c15_148 = arith.constant 15 : index
    %c0_149 = arith.constant 0 : index
    %105 = vector.load %arg1[%c3_147, %c15_148, %c0_149] : memref<4x50x32xbf16, #tpu.memory_space<vmem>>, vector<1x4x32xbf16>
    %106 = vector.shape_cast %105 : vector<1x4x32xbf16> to vector<4x32xbf16>
    %c12_150 = arith.constant 12 : index
    %c128_151 = arith.constant 128 : index
    %107 = vector.load %arg7[%c12_150, %c128_151] : memref<32x288xbf16, #tpu.memory_space<vmem>>, vector<4x32xbf16>
    tpu.vector_store %arg7[%c12_150, %c128_151], %106 {strides = array<i32>} : memref<32x288xbf16, #tpu.memory_space<vmem>>, vector<4x32xbf16>,
    %c3_152 = arith.constant 3 : index
    %c25_153 = arith.constant 25 : index
    %c0_154 = arith.constant 0 : index
    %108 = vector.load %arg1[%c3_152, %c25_153, %c0_154] : memref<4x50x32xbf16, #tpu.memory_space<vmem>>, vector<1x4x32xbf16>
    %109 = vector.shape_cast %108 : vector<1x4x32xbf16> to vector<4x32xbf16>
    %c16_155 = arith.constant 16 : index
    %c128_156 = arith.constant 128 : index
    %110 = vector.load %arg7[%c16_155, %c128_156] : memref<32x288xbf16, #tpu.memory_space<vmem>>, vector<4x32xbf16>
    tpu.vector_store %arg7[%c16_155, %c128_156], %109 {strides = array<i32>} : memref<32x288xbf16, #tpu.memory_space<vmem>>, vector<4x32xbf16>,
    %c3_157 = arith.constant 3 : index
    %c30_158 = arith.constant 30 : index
    %c0_159 = arith.constant 0 : index
    %111 = vector.load %arg1[%c3_157, %c30_158, %c0_159] : memref<4x50x32xbf16, #tpu.memory_space<vmem>>, vector<1x4x32xbf16>
    %112 = vector.shape_cast %111 : vector<1x4x32xbf16> to vector<4x32xbf16>
    %c20_160 = arith.constant 20 : index
    %c128_161 = arith.constant 128 : index
    %113 = vector.load %arg7[%c20_160, %c128_161] : memref<32x288xbf16, #tpu.memory_space<vmem>>, vector<4x32xbf16>
    tpu.vector_store %arg7[%c20_160, %c128_161], %112 {strides = array<i32>} : memref<32x288xbf16, #tpu.memory_space<vmem>>, vector<4x32xbf16>,
    %c3_162 = arith.constant 3 : index
    %c35_163 = arith.constant 35 : index
    %c0_164 = arith.constant 0 : index
    %114 = vector.load %arg1[%c3_162, %c35_163, %c0_164] : memref<4x50x32xbf16, #tpu.memory_space<vmem>>, vector<1x4x32xbf16>
    %115 = vector.shape_cast %114 : vector<1x4x32xbf16> to vector<4x32xbf16>
    %c24_165 = arith.constant 24 : index
    %c128_166 = arith.constant 128 : index
    %116 = vector.load %arg7[%c24_165, %c128_166] : memref<32x288xbf16, #tpu.memory_space<vmem>>, vector<4x32xbf16>
    tpu.vector_store %arg7[%c24_165, %c128_166], %115 {strides = array<i32>} : memref<32x288xbf16, #tpu.memory_space<vmem>>, vector<4x32xbf16>,
    %c3_167 = arith.constant 3 : index
    %c40_168 = arith.constant 40 : index
    %c0_169 = arith.constant 0 : index
    %117 = vector.load %arg1[%c3_167, %c40_168, %c0_169] : memref<4x50x32xbf16, #tpu.memory_space<vmem>>, vector<1x4x32xbf16>
    %118 = vector.shape_cast %117 : vector<1x4x32xbf16> to vector<4x32xbf16>
    %c28_170 = arith.constant 28 : index
    %c128_171 = arith.constant 128 : index
    %119 = vector.load %arg7[%c28_170, %c128_171] : memref<32x288xbf16, #tpu.memory_space<vmem>>, vector<4x32xbf16>
    tpu.vector_store %arg7[%c28_170, %c128_171], %118 {strides = array<i32>} : memref<32x288xbf16, #tpu.memory_space<vmem>>, vector<4x32xbf16>,
    %c2_172 = arith.constant 2 : index
    %c1_173 = arith.constant 1 : index
    %c0_174 = arith.constant 0 : index
    %120 = vector.load %arg1[%c2_172, %c1_173, %c0_174] : memref<4x50x32xbf16, #tpu.memory_space<vmem>>, vector<1x4x32xbf16>
    %121 = vector.shape_cast %120 : vector<1x4x32xbf16> to vector<4x32xbf16>
    %c0_175 = arith.constant 0 : index
    %c160 = arith.constant 160 : index
    %122 = vector.load %arg7[%c0_175, %c160] : memref<32x288xbf16, #tpu.memory_space<vmem>>, vector<4x32xbf16>
    tpu.vector_store %arg7[%c0_175, %c160], %121 {strides = array<i32>} : memref<32x288xbf16, #tpu.memory_space<vmem>>, vector<4x32xbf16>,
    %c2_176 = arith.constant 2 : index
    %c6_177 = arith.constant 6 : index
    %c0_178 = arith.constant 0 : index
    %123 = vector.load %arg1[%c2_176, %c6_177, %c0_178] : memref<4x50x32xbf16, #tpu.memory_space<vmem>>, vector<1x4x32xbf16>
    %124 = vector.shape_cast %123 : vector<1x4x32xbf16> to vector<4x32xbf16>
    %c4_179 = arith.constant 4 : index
    %c160_180 = arith.constant 160 : index
    %125 = vector.load %arg7[%c4_179, %c160_180] : memref<32x288xbf16, #tpu.memory_space<vmem>>, vector<4x32xbf16>
    tpu.vector_store %arg7[%c4_179, %c160_180], %124 {strides = array<i32>} : memref<32x288xbf16, #tpu.memory_space<vmem>>, vector<4x32xbf16>,
    %c2_181 = arith.constant 2 : index
    %c11_182 = arith.constant 11 : index
    %c0_183 = arith.constant 0 : index
    %126 = vector.load %arg1[%c2_181, %c11_182, %c0_183] : memref<4x50x32xbf16, #tpu.memory_space<vmem>>, vector<1x4x32xbf16>
    %127 = vector.shape_cast %126 : vector<1x4x32xbf16> to vector<4x32xbf16>
    %c8_184 = arith.constant 8 : index
    %c160_185 = arith.constant 160 : index
    %128 = vector.load %arg7[%c8_184, %c160_185] : memref<32x288xbf16, #tpu.memory_space<vmem>>, vector<4x32xbf16>
    tpu.vector_store %arg7[%c8_184, %c160_185], %127 {strides = array<i32>} : memref<32x288xbf16, #tpu.memory_space<vmem>>, vector<4x32xbf16>,
    %c2_186 = arith.constant 2 : index
    %c16_187 = arith.constant 16 : index
    %c0_188 = arith.constant 0 : index
    %129 = vector.load %arg1[%c2_186, %c16_187, %c0_188] : memref<4x50x32xbf16, #tpu.memory_space<vmem>>, vector<1x4x32xbf16>
    %130 = vector.shape_cast %129 : vector<1x4x32xbf16> to vector<4x32xbf16>
    %c12_189 = arith.constant 12 : index
    %c160_190 = arith.constant 160 : index
    %131 = vector.load %arg7[%c12_189, %c160_190] : memref<32x288xbf16, #tpu.memory_space<vmem>>, vector<4x32xbf16>
    tpu.vector_store %arg7[%c12_189, %c160_190], %130 {strides = array<i32>} : memref<32x288xbf16, #tpu.memory_space<vmem>>, vector<4x32xbf16>,
    %c2_191 = arith.constant 2 : index
    %c26_192 = arith.constant 26 : index
    %c0_193 = arith.constant 0 : index
    %132 = vector.load %arg1[%c2_191, %c26_192, %c0_193] : memref<4x50x32xbf16, #tpu.memory_space<vmem>>, vector<1x4x32xbf16>
    %133 = vector.shape_cast %132 : vector<1x4x32xbf16> to vector<4x32xbf16>
    %c16_194 = arith.constant 16 : index
    %c160_195 = arith.constant 160 : index
    %134 = vector.load %arg7[%c16_194, %c160_195] : memref<32x288xbf16, #tpu.memory_space<vmem>>, vector<4x32xbf16>
    tpu.vector_store %arg7[%c16_194, %c160_195], %133 {strides = array<i32>} : memref<32x288xbf16, #tpu.memory_space<vmem>>, vector<4x32xbf16>,
    %c2_196 = arith.constant 2 : index
    %c31_197 = arith.constant 31 : index
    %c0_198 = arith.constant 0 : index
    %135 = vector.load %arg1[%c2_196, %c31_197, %c0_198] : memref<4x50x32xbf16, #tpu.memory_space<vmem>>, vector<1x4x32xbf16>
    %136 = vector.shape_cast %135 : vector<1x4x32xbf16> to vector<4x32xbf16>
    %c20_199 = arith.constant 20 : index
    %c160_200 = arith.constant 160 : index
    %137 = vector.load %arg7[%c20_199, %c160_200] : memref<32x288xbf16, #tpu.memory_space<vmem>>, vector<4x32xbf16>
    tpu.vector_store %arg7[%c20_199, %c160_200], %136 {strides = array<i32>} : memref<32x288xbf16, #tpu.memory_space<vmem>>, vector<4x32xbf16>,
    %c2_201 = arith.constant 2 : index
    %c36_202 = arith.constant 36 : index
    %c0_203 = arith.constant 0 : index
    %138 = vector.load %arg1[%c2_201, %c36_202, %c0_203] : memref<4x50x32xbf16, #tpu.memory_space<vmem>>, vector<1x4x32xbf16>
    %139 = vector.shape_cast %138 : vector<1x4x32xbf16> to vector<4x32xbf16>
    %c24_204 = arith.constant 24 : index
    %c160_205 = arith.constant 160 : index
    %140 = vector.load %arg7[%c24_204, %c160_205] : memref<32x288xbf16, #tpu.memory_space<vmem>>, vector<4x32xbf16>
    tpu.vector_store %arg7[%c24_204, %c160_205], %139 {strides = array<i32>} : memref<32x288xbf16, #tpu.memory_space<vmem>>, vector<4x32xbf16>,
    %c2_206 = arith.constant 2 : index
    %c41_207 = arith.constant 41 : index
    %c0_208 = arith.constant 0 : index
    %141 = vector.load %arg1[%c2_206, %c41_207, %c0_208] : memref<4x50x32xbf16, #tpu.memory_space<vmem>>, vector<1x4x32xbf16>
    %142 = vector.shape_cast %141 : vector<1x4x32xbf16> to vector<4x32xbf16>
    %c28_209 = arith.constant 28 : index
    %c160_210 = arith.constant 160 : index
    %143 = vector.load %arg7[%c28_209, %c160_210] : memref<32x288xbf16, #tpu.memory_space<vmem>>, vector<4x32xbf16>
    tpu.vector_store %arg7[%c28_209, %c160_210], %142 {strides = array<i32>} : memref<32x288xbf16, #tpu.memory_space<vmem>>, vector<4x32xbf16>,
    %c0_211 = arith.constant 0 : index
    %c5_212 = arith.constant 5 : index
    %c0_213 = arith.constant 0 : index
    %144 = vector.load %arg1[%c0_211, %c5_212, %c0_213] : memref<4x50x32xbf16, #tpu.memory_space<vmem>>, vector<1x4x32xbf16>
    %145 = vector.shape_cast %144 : vector<1x4x32xbf16> to vector<4x32xbf16>
    %c0_214 = arith.constant 0 : index
    %c192 = arith.constant 192 : index
    %146 = vector.load %arg7[%c0_214, %c192] : memref<32x288xbf16, #tpu.memory_space<vmem>>, vector<4x32xbf16>
    tpu.vector_store %arg7[%c0_214, %c192], %145 {strides = array<i32>} : memref<32x288xbf16, #tpu.memory_space<vmem>>, vector<4x32xbf16>,
    %c0_215 = arith.constant 0 : index
    %c10_216 = arith.constant 10 : index
    %c0_217 = arith.constant 0 : index
    %147 = vector.load %arg1[%c0_215, %c10_216, %c0_217] : memref<4x50x32xbf16, #tpu.memory_space<vmem>>, vector<1x4x32xbf16>
    %148 = vector.shape_cast %147 : vector<1x4x32xbf16> to vector<4x32xbf16>
    %c4_218 = arith.constant 4 : index
    %c192_219 = arith.constant 192 : index
    %149 = vector.load %arg7[%c4_218, %c192_219] : memref<32x288xbf16, #tpu.memory_space<vmem>>, vector<4x32xbf16>
    tpu.vector_store %arg7[%c4_218, %c192_219], %148 {strides = array<i32>} : memref<32x288xbf16, #tpu.memory_space<vmem>>, vector<4x32xbf16>,
    %c0_220 = arith.constant 0 : index
    %c15_221 = arith.constant 15 : index
    %c0_222 = arith.constant 0 : index
    %150 = vector.load %arg1[%c0_220, %c15_221, %c0_222] : memref<4x50x32xbf16, #tpu.memory_space<vmem>>, vector<1x4x32xbf16>
    %151 = vector.shape_cast %150 : vector<1x4x32xbf16> to vector<4x32xbf16>
    %c8_223 = arith.constant 8 : index
    %c192_224 = arith.constant 192 : index
    %152 = vector.load %arg7[%c8_223, %c192_224] : memref<32x288xbf16, #tpu.memory_space<vmem>>, vector<4x32xbf16>
    tpu.vector_store %arg7[%c8_223, %c192_224], %151 {strides = array<i32>} : memref<32x288xbf16, #tpu.memory_space<vmem>>, vector<4x32xbf16>,
    %c0_225 = arith.constant 0 : index
    %c20_226 = arith.constant 20 : index
    %c0_227 = arith.constant 0 : index
    %153 = vector.load %arg1[%c0_225, %c20_226, %c0_227] : memref<4x50x32xbf16, #tpu.memory_space<vmem>>, vector<1x4x32xbf16>
    %154 = vector.shape_cast %153 : vector<1x4x32xbf16> to vector<4x32xbf16>
    %c12_228 = arith.constant 12 : index
    %c192_229 = arith.constant 192 : index
    %155 = vector.load %arg7[%c12_228, %c192_229] : memref<32x288xbf16, #tpu.memory_space<vmem>>, vector<4x32xbf16>
    tpu.vector_store %arg7[%c12_228, %c192_229], %154 {strides = array<i32>} : memref<32x288xbf16, #tpu.memory_space<vmem>>, vector<4x32xbf16>,
    %c0_230 = arith.constant 0 : index
    %c30_231 = arith.constant 30 : index
    %c0_232 = arith.constant 0 : index
    %156 = vector.load %arg1[%c0_230, %c30_231, %c0_232] : memref<4x50x32xbf16, #tpu.memory_space<vmem>>, vector<1x4x32xbf16>
    %157 = vector.shape_cast %156 : vector<1x4x32xbf16> to vector<4x32xbf16>
    %c16_233 = arith.constant 16 : index
    %c192_234 = arith.constant 192 : index
    %158 = vector.load %arg7[%c16_233, %c192_234] : memref<32x288xbf16, #tpu.memory_space<vmem>>, vector<4x32xbf16>
    tpu.vector_store %arg7[%c16_233, %c192_234], %157 {strides = array<i32>} : memref<32x288xbf16, #tpu.memory_space<vmem>>, vector<4x32xbf16>,
    %c0_235 = arith.constant 0 : index
    %c35_236 = arith.constant 35 : index
    %c0_237 = arith.constant 0 : index
    %159 = vector.load %arg1[%c0_235, %c35_236, %c0_237] : memref<4x50x32xbf16, #tpu.memory_space<vmem>>, vector<1x4x32xbf16>
    %160 = vector.shape_cast %159 : vector<1x4x32xbf16> to vector<4x32xbf16>
    %c20_238 = arith.constant 20 : index
    %c192_239 = arith.constant 192 : index
    %161 = vector.load %arg7[%c20_238, %c192_239] : memref<32x288xbf16, #tpu.memory_space<vmem>>, vector<4x32xbf16>
    tpu.vector_store %arg7[%c20_238, %c192_239], %160 {strides = array<i32>} : memref<32x288xbf16, #tpu.memory_space<vmem>>, vector<4x32xbf16>,
    %c0_240 = arith.constant 0 : index
    %c40_241 = arith.constant 40 : index
    %c0_242 = arith.constant 0 : index
    %162 = vector.load %arg1[%c0_240, %c40_241, %c0_242] : memref<4x50x32xbf16, #tpu.memory_space<vmem>>, vector<1x4x32xbf16>
    %163 = vector.shape_cast %162 : vector<1x4x32xbf16> to vector<4x32xbf16>
    %c24_243 = arith.constant 24 : index
    %c192_244 = arith.constant 192 : index
    %164 = vector.load %arg7[%c24_243, %c192_244] : memref<32x288xbf16, #tpu.memory_space<vmem>>, vector<4x32xbf16>
    tpu.vector_store %arg7[%c24_243, %c192_244], %163 {strides = array<i32>} : memref<32x288xbf16, #tpu.memory_space<vmem>>, vector<4x32xbf16>,
    %c0_245 = arith.constant 0 : index
    %c45 = arith.constant 45 : index
    %c0_246 = arith.constant 0 : index
    %165 = vector.load %arg1[%c0_245, %c45, %c0_246] : memref<4x50x32xbf16, #tpu.memory_space<vmem>>, vector<1x4x32xbf16>
    %166 = vector.shape_cast %165 : vector<1x4x32xbf16> to vector<4x32xbf16>
    %c28_247 = arith.constant 28 : index
    %c192_248 = arith.constant 192 : index
    %167 = vector.load %arg7[%c28_247, %c192_248] : memref<32x288xbf16, #tpu.memory_space<vmem>>, vector<4x32xbf16>
    tpu.vector_store %arg7[%c28_247, %c192_248], %166 {strides = array<i32>} : memref<32x288xbf16, #tpu.memory_space<vmem>>, vector<4x32xbf16>,
    %c1_249 = arith.constant 1 : index
    %c5_250 = arith.constant 5 : index
    %c0_251 = arith.constant 0 : index
    %168 = vector.load %arg1[%c1_249, %c5_250, %c0_251] : memref<4x50x32xbf16, #tpu.memory_space<vmem>>, vector<1x4x32xbf16>
    %169 = vector.shape_cast %168 : vector<1x4x32xbf16> to vector<4x32xbf16>
    %c0_252 = arith.constant 0 : index
    %c224 = arith.constant 224 : index
    %170 = vector.load %arg7[%c0_252, %c224] : memref<32x288xbf16, #tpu.memory_space<vmem>>, vector<4x32xbf16>
    tpu.vector_store %arg7[%c0_252, %c224], %169 {strides = array<i32>} : memref<32x288xbf16, #tpu.memory_space<vmem>>, vector<4x32xbf16>,
    %c1_253 = arith.constant 1 : index
    %c10_254 = arith.constant 10 : index
    %c0_255 = arith.constant 0 : index
    %171 = vector.load %arg1[%c1_253, %c10_254, %c0_255] : memref<4x50x32xbf16, #tpu.memory_space<vmem>>, vector<1x4x32xbf16>
    %172 = vector.shape_cast %171 : vector<1x4x32xbf16> to vector<4x32xbf16>
    %c4_256 = arith.constant 4 : index
    %c224_257 = arith.constant 224 : index
    %173 = vector.load %arg7[%c4_256, %c224_257] : memref<32x288xbf16, #tpu.memory_space<vmem>>, vector<4x32xbf16>
    tpu.vector_store %arg7[%c4_256, %c224_257], %172 {strides = array<i32>} : memref<32x288xbf16, #tpu.memory_space<vmem>>, vector<4x32xbf16>,
    %c1_258 = arith.constant 1 : index
    %c15_259 = arith.constant 15 : index
    %c0_260 = arith.constant 0 : index
    %174 = vector.load %arg1[%c1_258, %c15_259, %c0_260] : memref<4x50x32xbf16, #tpu.memory_space<vmem>>, vector<1x4x32xbf16>
    %175 = vector.shape_cast %174 : vector<1x4x32xbf16> to vector<4x32xbf16>
    %c8_261 = arith.constant 8 : index
    %c224_262 = arith.constant 224 : index
    %176 = vector.load %arg7[%c8_261, %c224_262] : memref<32x288xbf16, #tpu.memory_space<vmem>>, vector<4x32xbf16>
    tpu.vector_store %arg7[%c8_261, %c224_262], %175 {strides = array<i32>} : memref<32x288xbf16, #tpu.memory_space<vmem>>, vector<4x32xbf16>,
    %c1_263 = arith.constant 1 : index
    %c20_264 = arith.constant 20 : index
    %c0_265 = arith.constant 0 : index
    %177 = vector.load %arg1[%c1_263, %c20_264, %c0_265] : memref<4x50x32xbf16, #tpu.memory_space<vmem>>, vector<1x4x32xbf16>
    %178 = vector.shape_cast %177 : vector<1x4x32xbf16> to vector<4x32xbf16>
    %c12_266 = arith.constant 12 : index
    %c224_267 = arith.constant 224 : index
    %179 = vector.load %arg7[%c12_266, %c224_267] : memref<32x288xbf16, #tpu.memory_space<vmem>>, vector<4x32xbf16>
    tpu.vector_store %arg7[%c12_266, %c224_267], %178 {strides = array<i32>} : memref<32x288xbf16, #tpu.memory_space<vmem>>, vector<4x32xbf16>,
    %c1_268 = arith.constant 1 : index
    %c30_269 = arith.constant 30 : index
    %c0_270 = arith.constant 0 : index
    %180 = vector.load %arg1[%c1_268, %c30_269, %c0_270] : memref<4x50x32xbf16, #tpu.memory_space<vmem>>, vector<1x4x32xbf16>
    %181 = vector.shape_cast %180 : vector<1x4x32xbf16> to vector<4x32xbf16>
    %c16_271 = arith.constant 16 : index
    %c224_272 = arith.constant 224 : index
    %182 = vector.load %arg7[%c16_271, %c224_272] : memref<32x288xbf16, #tpu.memory_space<vmem>>, vector<4x32xbf16>
    tpu.vector_store %arg7[%c16_271, %c224_272], %181 {strides = array<i32>} : memref<32x288xbf16, #tpu.memory_space<vmem>>, vector<4x32xbf16>,
    %c1_273 = arith.constant 1 : index
    %c35_274 = arith.constant 35 : index
    %c0_275 = arith.constant 0 : index
    %183 = vector.load %arg1[%c1_273, %c35_274, %c0_275] : memref<4x50x32xbf16, #tpu.memory_space<vmem>>, vector<1x4x32xbf16>
    %184 = vector.shape_cast %183 : vector<1x4x32xbf16> to vector<4x32xbf16>
    %c20_276 = arith.constant 20 : index
    %c224_277 = arith.constant 224 : index
    %185 = vector.load %arg7[%c20_276, %c224_277] : memref<32x288xbf16, #tpu.memory_space<vmem>>, vector<4x32xbf16>
    tpu.vector_store %arg7[%c20_276, %c224_277], %184 {strides = array<i32>} : memref<32x288xbf16, #tpu.memory_space<vmem>>, vector<4x32xbf16>,
    %c1_278 = arith.constant 1 : index
    %c40_279 = arith.constant 40 : index
    %c0_280 = arith.constant 0 : index
    %186 = vector.load %arg1[%c1_278, %c40_279, %c0_280] : memref<4x50x32xbf16, #tpu.memory_space<vmem>>, vector<1x4x32xbf16>
    %187 = vector.shape_cast %186 : vector<1x4x32xbf16> to vector<4x32xbf16>
    %c24_281 = arith.constant 24 : index
    %c224_282 = arith.constant 224 : index
    %188 = vector.load %arg7[%c24_281, %c224_282] : memref<32x288xbf16, #tpu.memory_space<vmem>>, vector<4x32xbf16>
    tpu.vector_store %arg7[%c24_281, %c224_282], %187 {strides = array<i32>} : memref<32x288xbf16, #tpu.memory_space<vmem>>, vector<4x32xbf16>,
    %c1_283 = arith.constant 1 : index
    %c45_284 = arith.constant 45 : index
    %c0_285 = arith.constant 0 : index
    %189 = vector.load %arg1[%c1_283, %c45_284, %c0_285] : memref<4x50x32xbf16, #tpu.memory_space<vmem>>, vector<1x4x32xbf16>
    %190 = vector.shape_cast %189 : vector<1x4x32xbf16> to vector<4x32xbf16>
    %c28_286 = arith.constant 28 : index
    %c224_287 = arith.constant 224 : index
    %191 = vector.load %arg7[%c28_286, %c224_287] : memref<32x288xbf16, #tpu.memory_space<vmem>>, vector<4x32xbf16>
    tpu.vector_store %arg7[%c28_286, %c224_287], %190 {strides = array<i32>} : memref<32x288xbf16, #tpu.memory_space<vmem>>, vector<4x32xbf16>,
    %c0_288 = arith.constant 0 : index
    %c6_289 = arith.constant 6 : index
    %c0_290 = arith.constant 0 : index
    %192 = vector.load %arg1[%c0_288, %c6_289, %c0_290] : memref<4x50x32xbf16, #tpu.memory_space<vmem>>, vector<1x4x32xbf16>
    %193 = vector.shape_cast %192 : vector<1x4x32xbf16> to vector<4x32xbf16>
    %c0_291 = arith.constant 0 : index
    %c256 = arith.constant 256 : index
    %194 = vector.load %arg7[%c0_291, %c256] : memref<32x288xbf16, #tpu.memory_space<vmem>>, vector<4x32xbf16>
    tpu.vector_store %arg7[%c0_291, %c256], %193 {strides = array<i32>} : memref<32x288xbf16, #tpu.memory_space<vmem>>, vector<4x32xbf16>,
    %c0_292 = arith.constant 0 : index
    %c11_293 = arith.constant 11 : index
    %c0_294 = arith.constant 0 : index
    %195 = vector.load %arg1[%c0_292, %c11_293, %c0_294] : memref<4x50x32xbf16, #tpu.memory_space<vmem>>, vector<1x4x32xbf16>
    %196 = vector.shape_cast %195 : vector<1x4x32xbf16> to vector<4x32xbf16>
    %c4_295 = arith.constant 4 : index
    %c256_296 = arith.constant 256 : index
    %197 = vector.load %arg7[%c4_295, %c256_296] : memref<32x288xbf16, #tpu.memory_space<vmem>>, vector<4x32xbf16>
    tpu.vector_store %arg7[%c4_295, %c256_296], %196 {strides = array<i32>} : memref<32x288xbf16, #tpu.memory_space<vmem>>, vector<4x32xbf16>,
    %c0_297 = arith.constant 0 : index
    %c16_298 = arith.constant 16 : index
    %c0_299 = arith.constant 0 : index
    %198 = vector.load %arg1[%c0_297, %c16_298, %c0_299] : memref<4x50x32xbf16, #tpu.memory_space<vmem>>, vector<1x4x32xbf16>
    %199 = vector.shape_cast %198 : vector<1x4x32xbf16> to vector<4x32xbf16>
    %c8_300 = arith.constant 8 : index
    %c256_301 = arith.constant 256 : index
    %200 = vector.load %arg7[%c8_300, %c256_301] : memref<32x288xbf16, #tpu.memory_space<vmem>>, vector<4x32xbf16>
    tpu.vector_store %arg7[%c8_300, %c256_301], %199 {strides = array<i32>} : memref<32x288xbf16, #tpu.memory_space<vmem>>, vector<4x32xbf16>,
    %c0_302 = arith.constant 0 : index
    %c21 = arith.constant 21 : index
    %c0_303 = arith.constant 0 : index
    %201 = vector.load %arg1[%c0_302, %c21, %c0_303] : memref<4x50x32xbf16, #tpu.memory_space<vmem>>, vector<1x4x32xbf16>
    %202 = vector.shape_cast %201 : vector<1x4x32xbf16> to vector<4x32xbf16>
    %c12_304 = arith.constant 12 : index
    %c256_305 = arith.constant 256 : index
    %203 = vector.load %arg7[%c12_304, %c256_305] : memref<32x288xbf16, #tpu.memory_space<vmem>>, vector<4x32xbf16>
    tpu.vector_store %arg7[%c12_304, %c256_305], %202 {strides = array<i32>} : memref<32x288xbf16, #tpu.memory_space<vmem>>, vector<4x32xbf16>,
    %c0_306 = arith.constant 0 : index
    %c31_307 = arith.constant 31 : index
    %c0_308 = arith.constant 0 : index
    %204 = vector.load %arg1[%c0_306, %c31_307, %c0_308] : memref<4x50x32xbf16, #tpu.memory_space<vmem>>, vector<1x4x32xbf16>
    %205 = vector.shape_cast %204 : vector<1x4x32xbf16> to vector<4x32xbf16>
    %c16_309 = arith.constant 16 : index
    %c256_310 = arith.constant 256 : index
    %206 = vector.load %arg7[%c16_309, %c256_310] : memref<32x288xbf16, #tpu.memory_space<vmem>>, vector<4x32xbf16>
    tpu.vector_store %arg7[%c16_309, %c256_310], %205 {strides = array<i32>} : memref<32x288xbf16, #tpu.memory_space<vmem>>, vector<4x32xbf16>,
    %c0_311 = arith.constant 0 : index
    %c36_312 = arith.constant 36 : index
    %c0_313 = arith.constant 0 : index
    %207 = vector.load %arg1[%c0_311, %c36_312, %c0_313] : memref<4x50x32xbf16, #tpu.memory_space<vmem>>, vector<1x4x32xbf16>
    %208 = vector.shape_cast %207 : vector<1x4x32xbf16> to vector<4x32xbf16>
    %c20_314 = arith.constant 20 : index
    %c256_315 = arith.constant 256 : index
    %209 = vector.load %arg7[%c20_314, %c256_315] : memref<32x288xbf16, #tpu.memory_space<vmem>>, vector<4x32xbf16>
    tpu.vector_store %arg7[%c20_314, %c256_315], %208 {strides = array<i32>} : memref<32x288xbf16, #tpu.memory_space<vmem>>, vector<4x32xbf16>,
    %c0_316 = arith.constant 0 : index
    %c41_317 = arith.constant 41 : index
    %c0_318 = arith.constant 0 : index
    %210 = vector.load %arg1[%c0_316, %c41_317, %c0_318] : memref<4x50x32xbf16, #tpu.memory_space<vmem>>, vector<1x4x32xbf16>
    %211 = vector.shape_cast %210 : vector<1x4x32xbf16> to vector<4x32xbf16>
    %c24_319 = arith.constant 24 : index
    %c256_320 = arith.constant 256 : index
    %212 = vector.load %arg7[%c24_319, %c256_320] : memref<32x288xbf16, #tpu.memory_space<vmem>>, vector<4x32xbf16>
    tpu.vector_store %arg7[%c24_319, %c256_320], %211 {strides = array<i32>} : memref<32x288xbf16, #tpu.memory_space<vmem>>, vector<4x32xbf16>,
    %c0_321 = arith.constant 0 : index
    %c46 = arith.constant 46 : index
    %c0_322 = arith.constant 0 : index
    %213 = vector.load %arg1[%c0_321, %c46, %c0_322] : memref<4x50x32xbf16, #tpu.memory_space<vmem>>, vector<1x4x32xbf16>
    %214 = vector.shape_cast %213 : vector<1x4x32xbf16> to vector<4x32xbf16>
    %c28_323 = arith.constant 28 : index
    %c256_324 = arith.constant 256 : index
    %215 = vector.load %arg7[%c28_323, %c256_324] : memref<32x288xbf16, #tpu.memory_space<vmem>>, vector<4x32xbf16>
    tpu.vector_store %arg7[%c28_323, %c256_324], %214 {strides = array<i32>} : memref<32x288xbf16, #tpu.memory_space<vmem>>, vector<4x32xbf16>,
    %c0_325 = arith.constant 0 : index
    %c0_326 = arith.constant 0 : index
    %216 = vector.load %arg7[%c0_325, %c0_326] : memref<32x288xbf16, #tpu.memory_space<vmem>>, vector<32x288xbf16>
    %c0_327 = arith.constant 0 : index
    %c0_328 = arith.constant 0 : index
    %217 = vector.load %arg2[%c0_327, %c0_328] : memref<288x64xbf16, #tpu.memory_space<vmem>>, vector<288x64xbf16>
    %cst = arith.constant dense<0.000000e+00> : vector<32x64xf32>
    %218 = tpu.matmul %216, %217, %cst {dimension_numbers = #tpu.dot_dimension_numbers<[1], [0], [0], [1], [0, 0, 1, 1], [], []>} : vector<32x288xbf16>, vector<288x64xbf16>, vector<32x64xf32> -> vector<32x64xf32>
    %c0_329 = arith.constant 0 : index
    %c0_330 = arith.constant 0 : index
    %219 = vector.load %arg3[%c0_329, %c0_330] : memref<1x64xf32, #tpu.memory_space<vmem>>, vector<1x64xf32>
    %220 = vector.broadcast %219 : vector<1x64xf32> to vector<32x64xf32>
    %221 = arith.addf %218, %220 : vector<32x64xf32>
    %cst_331 = arith.constant 0.000000e+00 : f32
    %222 = vector.broadcast %cst_331 : f32 to vector<32x64xf32>
    %223 = arith.maximumf %221, %222 : vector<32x64xf32>
    %cst_332 = arith.constant dense<0.000000e+00> : vector<64xf32>
    %224 = vector.multi_reduction <add>, %223, %cst_332 [0] : vector<32x64xf32> to vector<64xf32>
    %225 = vector.shape_cast %224 : vector<64xf32> to vector<1x64xf32>
    %cst_333 = arith.constant 3.125000e-02 : f32
    %226 = vector.broadcast %cst_333 : f32 to vector<1x64xf32>
    %227 = arith.mulf %225, %226 : vector<1x64xf32>
    %228 = vector.broadcast %227 : vector<1x64xf32> to vector<32x64xf32>
    %229 = arith.subf %223, %228 : vector<32x64xf32>
    %230 = arith.mulf %229, %229 : vector<32x64xf32>
    %cst_334 = arith.constant dense<0.000000e+00> : vector<64xf32>
    %231 = vector.multi_reduction <add>, %230, %cst_334 [0] : vector<32x64xf32> to vector<64xf32>
    %232 = vector.shape_cast %231 : vector<64xf32> to vector<1x64xf32>
    %cst_335 = arith.constant 3.125000e-02 : f32
    %233 = vector.broadcast %cst_335 : f32 to vector<1x64xf32>
    %234 = arith.mulf %232, %233 : vector<1x64xf32>
    %c0_336 = arith.constant 0 : index
    %c0_337 = arith.constant 0 : index
    %235 = vector.load %arg4[%c0_336, %c0_337] : memref<1x64xf32, #tpu.memory_space<vmem>>, vector<1x64xf32>
    %cst_338 = arith.constant 9.99999974E-6 : f32
    %236 = vector.broadcast %cst_338 : f32 to vector<1x64xf32>
    %237 = arith.addf %234, %236 : vector<1x64xf32>
    %238 = math.rsqrt %237 : vector<1x64xf32>
    %239 = arith.mulf %235, %238 : vector<1x64xf32>
    %240 = vector.broadcast %239 : vector<1x64xf32> to vector<32x64xf32>
    %241 = arith.mulf %229, %240 : vector<32x64xf32>
    %c0_339 = arith.constant 0 : index
    %c0_340 = arith.constant 0 : index
    %242 = vector.load %arg5[%c0_339, %c0_340] : memref<1x64xf32, #tpu.memory_space<vmem>>, vector<1x64xf32>
    %243 = vector.broadcast %242 : vector<1x64xf32> to vector<32x64xf32>
    %244 = arith.addf %241, %243 : vector<32x64xf32>
    %c0_341 = arith.constant 0 : index
    %c0_342 = arith.constant 0 : index
    %245 = vector.load %arg6[%c0_341, %c0_342] : memref<32x64xf32, #tpu.memory_space<vmem>>, vector<32x64xf32>
    tpu.vector_store %arg6[%c0_341, %c0_342], %244 {strides = array<i32>} : memref<32x64xf32, #tpu.memory_space<vmem>>, vector<32x64xf32>,
    return
  }
  func.func @transform_0(%arg0: i32) -> (i32, i32, i32) {
    %c0_i32 = arith.constant 0 : i32
    %c0_i32_0 = arith.constant 0 : i32
    %c0_i32_1 = arith.constant 0 : i32
    %c0_i32_2 = arith.constant 0 : i32
    return %c0_i32, %c0_i32_0, %c0_i32_1 : i32, i32, i32
  }
  func.func @transform_1(%arg0: i32) -> (i32, i32) {
    %c0_i32 = arith.constant 0 : i32
    %c0_i32_0 = arith.constant 0 : i32
    %c0_i32_1 = arith.constant 0 : i32
    return %c0_i32, %c0_i32_0 : i32, i32
  }
  func.func @transform_2(%arg0: i32) -> (i32, i32) {
    %c0_i32 = arith.constant 0 : i32
    %c0_i32_0 = arith.constant 0 : i32
    %c0_i32_1 = arith.constant 0 : i32
    return %c0_i32, %c0_i32_0 : i32, i32
  }
  func.func @transform_3(%arg0: i32) -> (i32, i32) {
    %c0_i32 = arith.constant 0 : i32
    %c0_i32_0 = arith.constant 0 : i32
    %c0_i32_1 = arith.constant 0 : i32
    return %c0_i32, %c0_i32_0 : i32, i32
  }
  func.func @transform_4(%arg0: i32) -> (i32, i32) {
    %c0_i32 = arith.constant 0 : i32
    %c0_i32_0 = arith.constant 0 : i32
    %c0_i32_1 = arith.constant 0 : i32
    return %c0_i32, %c0_i32_0 : i32, i32
  }
  func.func @transform_5(%arg0: i32) -> (i32, i32) {
    %c0_i32 = arith.constant 0 : i32
    %c0_i32_0 = arith.constant 0 : i32
    %c0_i32_1 = arith.constant 0 : i32
    return %c0_i32, %c0_i32_0 : i32, i32
  }
}

module attributes {stable_mosaic.version = 11 : i64} {
  func.func @_conv_bn_kernel(%arg0: i32, %arg1: memref<4x18x64xbf16, #tpu.memory_space<vmem>>, %arg2: memref<576x128xbf16, #tpu.memory_space<vmem>>, %arg3: memref<1x128xf32, #tpu.memory_space<vmem>>, %arg4: memref<1x128xf32, #tpu.memory_space<vmem>>, %arg5: memref<1x128xf32, #tpu.memory_space<vmem>>, %arg6: memref<8x128xf32, #tpu.memory_space<vmem>>, %arg7: memref<8x576xbf16, #tpu.memory_space<vmem>>) attributes {dimension_semantics = [#tpu.dimension_semantics<arbitrary>], iteration_bounds = array<i64: 1>, scalar_prefetch = 0 : i64, scratch_operands = 1 : i64, tpu.core_type = #tpu.core_type<tc>, window_params = [{pipeline_mode = #tpu.pipeline_mode<synchronous>, transform_indices = @transform_0, window_bounds = array<i64: 4, 18, 64>}, {pipeline_mode = #tpu.pipeline_mode<synchronous>, transform_indices = @transform_1, window_bounds = array<i64: 576, 128>}, {pipeline_mode = #tpu.pipeline_mode<synchronous>, transform_indices = @transform_2, window_bounds = array<i64: 1, 128>}, {pipeline_mode = #tpu.pipeline_mode<synchronous>, transform_indices = @transform_3, window_bounds = array<i64: 1, 128>}, {pipeline_mode = #tpu.pipeline_mode<synchronous>, transform_indices = @transform_4, window_bounds = array<i64: 1, 128>}, {pipeline_mode = #tpu.pipeline_mode<synchronous>, transform_indices = @transform_5, window_bounds = array<i64: 8, 128>}]} {
    %c0 = arith.constant 0 : index
    %c0_0 = arith.constant 0 : index
    %c0_1 = arith.constant 0 : index
    %0 = vector.load %arg1[%c0, %c0_0, %c0_1] : memref<4x18x64xbf16, #tpu.memory_space<vmem>>, vector<1x2x64xbf16>
    %1 = vector.shape_cast %0 : vector<1x2x64xbf16> to vector<2x64xbf16>
    %c0_2 = arith.constant 0 : index
    %c0_3 = arith.constant 0 : index
    %2 = vector.load %arg7[%c0_2, %c0_3] : memref<8x576xbf16, #tpu.memory_space<vmem>>, vector<2x64xbf16>
    tpu.vector_store %arg7[%c0_2, %c0_3], %1 {strides = array<i32>} : memref<8x576xbf16, #tpu.memory_space<vmem>>, vector<2x64xbf16>,
    %c0_4 = arith.constant 0 : index
    %c3 = arith.constant 3 : index
    %c0_5 = arith.constant 0 : index
    %3 = vector.load %arg1[%c0_4, %c3, %c0_5] : memref<4x18x64xbf16, #tpu.memory_space<vmem>>, vector<1x2x64xbf16>
    %4 = vector.shape_cast %3 : vector<1x2x64xbf16> to vector<2x64xbf16>
    %c2 = arith.constant 2 : index
    %c0_6 = arith.constant 0 : index
    %5 = vector.load %arg7[%c2, %c0_6] : memref<8x576xbf16, #tpu.memory_space<vmem>>, vector<2x64xbf16>
    tpu.vector_store %arg7[%c2, %c0_6], %4 {strides = array<i32>} : memref<8x576xbf16, #tpu.memory_space<vmem>>, vector<2x64xbf16>,
    %c0_7 = arith.constant 0 : index
    %c9 = arith.constant 9 : index
    %c0_8 = arith.constant 0 : index
    %6 = vector.load %arg1[%c0_7, %c9, %c0_8] : memref<4x18x64xbf16, #tpu.memory_space<vmem>>, vector<1x2x64xbf16>
    %7 = vector.shape_cast %6 : vector<1x2x64xbf16> to vector<2x64xbf16>
    %c4 = arith.constant 4 : index
    %c0_9 = arith.constant 0 : index
    %8 = vector.load %arg7[%c4, %c0_9] : memref<8x576xbf16, #tpu.memory_space<vmem>>, vector<2x64xbf16>
    tpu.vector_store %arg7[%c4, %c0_9], %7 {strides = array<i32>} : memref<8x576xbf16, #tpu.memory_space<vmem>>, vector<2x64xbf16>,
    %c0_10 = arith.constant 0 : index
    %c12 = arith.constant 12 : index
    %c0_11 = arith.constant 0 : index
    %9 = vector.load %arg1[%c0_10, %c12, %c0_11] : memref<4x18x64xbf16, #tpu.memory_space<vmem>>, vector<1x2x64xbf16>
    %10 = vector.shape_cast %9 : vector<1x2x64xbf16> to vector<2x64xbf16>
    %c6 = arith.constant 6 : index
    %c0_12 = arith.constant 0 : index
    %11 = vector.load %arg7[%c6, %c0_12] : memref<8x576xbf16, #tpu.memory_space<vmem>>, vector<2x64xbf16>
    tpu.vector_store %arg7[%c6, %c0_12], %10 {strides = array<i32>} : memref<8x576xbf16, #tpu.memory_space<vmem>>, vector<2x64xbf16>,
    %c1 = arith.constant 1 : index
    %c0_13 = arith.constant 0 : index
    %c0_14 = arith.constant 0 : index
    %12 = vector.load %arg1[%c1, %c0_13, %c0_14] : memref<4x18x64xbf16, #tpu.memory_space<vmem>>, vector<1x2x64xbf16>
    %13 = vector.shape_cast %12 : vector<1x2x64xbf16> to vector<2x64xbf16>
    %c0_15 = arith.constant 0 : index
    %c64 = arith.constant 64 : index
    %14 = vector.load %arg7[%c0_15, %c64] : memref<8x576xbf16, #tpu.memory_space<vmem>>, vector<2x64xbf16>
    tpu.vector_store %arg7[%c0_15, %c64], %13 {strides = array<i32>} : memref<8x576xbf16, #tpu.memory_space<vmem>>, vector<2x64xbf16>,
    %c1_16 = arith.constant 1 : index
    %c3_17 = arith.constant 3 : index
    %c0_18 = arith.constant 0 : index
    %15 = vector.load %arg1[%c1_16, %c3_17, %c0_18] : memref<4x18x64xbf16, #tpu.memory_space<vmem>>, vector<1x2x64xbf16>
    %16 = vector.shape_cast %15 : vector<1x2x64xbf16> to vector<2x64xbf16>
    %c2_19 = arith.constant 2 : index
    %c64_20 = arith.constant 64 : index
    %17 = vector.load %arg7[%c2_19, %c64_20] : memref<8x576xbf16, #tpu.memory_space<vmem>>, vector<2x64xbf16>
    tpu.vector_store %arg7[%c2_19, %c64_20], %16 {strides = array<i32>} : memref<8x576xbf16, #tpu.memory_space<vmem>>, vector<2x64xbf16>,
    %c1_21 = arith.constant 1 : index
    %c9_22 = arith.constant 9 : index
    %c0_23 = arith.constant 0 : index
    %18 = vector.load %arg1[%c1_21, %c9_22, %c0_23] : memref<4x18x64xbf16, #tpu.memory_space<vmem>>, vector<1x2x64xbf16>
    %19 = vector.shape_cast %18 : vector<1x2x64xbf16> to vector<2x64xbf16>
    %c4_24 = arith.constant 4 : index
    %c64_25 = arith.constant 64 : index
    %20 = vector.load %arg7[%c4_24, %c64_25] : memref<8x576xbf16, #tpu.memory_space<vmem>>, vector<2x64xbf16>
    tpu.vector_store %arg7[%c4_24, %c64_25], %19 {strides = array<i32>} : memref<8x576xbf16, #tpu.memory_space<vmem>>, vector<2x64xbf16>,
    %c1_26 = arith.constant 1 : index
    %c12_27 = arith.constant 12 : index
    %c0_28 = arith.constant 0 : index
    %21 = vector.load %arg1[%c1_26, %c12_27, %c0_28] : memref<4x18x64xbf16, #tpu.memory_space<vmem>>, vector<1x2x64xbf16>
    %22 = vector.shape_cast %21 : vector<1x2x64xbf16> to vector<2x64xbf16>
    %c6_29 = arith.constant 6 : index
    %c64_30 = arith.constant 64 : index
    %23 = vector.load %arg7[%c6_29, %c64_30] : memref<8x576xbf16, #tpu.memory_space<vmem>>, vector<2x64xbf16>
    tpu.vector_store %arg7[%c6_29, %c64_30], %22 {strides = array<i32>} : memref<8x576xbf16, #tpu.memory_space<vmem>>, vector<2x64xbf16>,
    %c0_31 = arith.constant 0 : index
    %c1_32 = arith.constant 1 : index
    %c0_33 = arith.constant 0 : index
    %24 = vector.load %arg1[%c0_31, %c1_32, %c0_33] : memref<4x18x64xbf16, #tpu.memory_space<vmem>>, vector<1x2x64xbf16>
    %25 = vector.shape_cast %24 : vector<1x2x64xbf16> to vector<2x64xbf16>
    %c0_34 = arith.constant 0 : index
    %c128 = arith.constant 128 : index
    %26 = vector.load %arg7[%c0_34, %c128] : memref<8x576xbf16, #tpu.memory_space<vmem>>, vector<2x64xbf16>
    tpu.vector_store %arg7[%c0_34, %c128], %25 {strides = array<i32>} : memref<8x576xbf16, #tpu.memory_space<vmem>>, vector<2x64xbf16>,
    %c0_35 = arith.constant 0 : index
    %c4_36 = arith.constant 4 : index
    %c0_37 = arith.constant 0 : index
    %27 = vector.load %arg1[%c0_35, %c4_36, %c0_37] : memref<4x18x64xbf16, #tpu.memory_space<vmem>>, vector<1x2x64xbf16>
    %28 = vector.shape_cast %27 : vector<1x2x64xbf16> to vector<2x64xbf16>
    %c2_38 = arith.constant 2 : index
    %c128_39 = arith.constant 128 : index
    %29 = vector.load %arg7[%c2_38, %c128_39] : memref<8x576xbf16, #tpu.memory_space<vmem>>, vector<2x64xbf16>
    tpu.vector_store %arg7[%c2_38, %c128_39], %28 {strides = array<i32>} : memref<8x576xbf16, #tpu.memory_space<vmem>>, vector<2x64xbf16>,
    %c0_40 = arith.constant 0 : index
    %c10 = arith.constant 10 : index
    %c0_41 = arith.constant 0 : index
    %30 = vector.load %arg1[%c0_40, %c10, %c0_41] : memref<4x18x64xbf16, #tpu.memory_space<vmem>>, vector<1x2x64xbf16>
    %31 = vector.shape_cast %30 : vector<1x2x64xbf16> to vector<2x64xbf16>
    %c4_42 = arith.constant 4 : index
    %c128_43 = arith.constant 128 : index
    %32 = vector.load %arg7[%c4_42, %c128_43] : memref<8x576xbf16, #tpu.memory_space<vmem>>, vector<2x64xbf16>
    tpu.vector_store %arg7[%c4_42, %c128_43], %31 {strides = array<i32>} : memref<8x576xbf16, #tpu.memory_space<vmem>>, vector<2x64xbf16>,
    %c0_44 = arith.constant 0 : index
    %c13 = arith.constant 13 : index
    %c0_45 = arith.constant 0 : index
    %33 = vector.load %arg1[%c0_44, %c13, %c0_45] : memref<4x18x64xbf16, #tpu.memory_space<vmem>>, vector<1x2x64xbf16>
    %34 = vector.shape_cast %33 : vector<1x2x64xbf16> to vector<2x64xbf16>
    %c6_46 = arith.constant 6 : index
    %c128_47 = arith.constant 128 : index
    %35 = vector.load %arg7[%c6_46, %c128_47] : memref<8x576xbf16, #tpu.memory_space<vmem>>, vector<2x64xbf16>
    tpu.vector_store %arg7[%c6_46, %c128_47], %34 {strides = array<i32>} : memref<8x576xbf16, #tpu.memory_space<vmem>>, vector<2x64xbf16>,
    %c2_48 = arith.constant 2 : index
    %c0_49 = arith.constant 0 : index
    %c0_50 = arith.constant 0 : index
    %36 = vector.load %arg1[%c2_48, %c0_49, %c0_50] : memref<4x18x64xbf16, #tpu.memory_space<vmem>>, vector<1x2x64xbf16>
    %37 = vector.shape_cast %36 : vector<1x2x64xbf16> to vector<2x64xbf16>
    %c0_51 = arith.constant 0 : index
    %c192 = arith.constant 192 : index
    %38 = vector.load %arg7[%c0_51, %c192] : memref<8x576xbf16, #tpu.memory_space<vmem>>, vector<2x64xbf16>
    tpu.vector_store %arg7[%c0_51, %c192], %37 {strides = array<i32>} : memref<8x576xbf16, #tpu.memory_space<vmem>>, vector<2x64xbf16>,
    %c2_52 = arith.constant 2 : index
    %c3_53 = arith.constant 3 : index
    %c0_54 = arith.constant 0 : index
    %39 = vector.load %arg1[%c2_52, %c3_53, %c0_54] : memref<4x18x64xbf16, #tpu.memory_space<vmem>>, vector<1x2x64xbf16>
    %40 = vector.shape_cast %39 : vector<1x2x64xbf16> to vector<2x64xbf16>
    %c2_55 = arith.constant 2 : index
    %c192_56 = arith.constant 192 : index
    %41 = vector.load %arg7[%c2_55, %c192_56] : memref<8x576xbf16, #tpu.memory_space<vmem>>, vector<2x64xbf16>
    tpu.vector_store %arg7[%c2_55, %c192_56], %40 {strides = array<i32>} : memref<8x576xbf16, #tpu.memory_space<vmem>>, vector<2x64xbf16>,
    %c2_57 = arith.constant 2 : index
    %c9_58 = arith.constant 9 : index
    %c0_59 = arith.constant 0 : index
    %42 = vector.load %arg1[%c2_57, %c9_58, %c0_59] : memref<4x18x64xbf16, #tpu.memory_space<vmem>>, vector<1x2x64xbf16>
    %43 = vector.shape_cast %42 : vector<1x2x64xbf16> to vector<2x64xbf16>
    %c4_60 = arith.constant 4 : index
    %c192_61 = arith.constant 192 : index
    %44 = vector.load %arg7[%c4_60, %c192_61] : memref<8x576xbf16, #tpu.memory_space<vmem>>, vector<2x64xbf16>
    tpu.vector_store %arg7[%c4_60, %c192_61], %43 {strides = array<i32>} : memref<8x576xbf16, #tpu.memory_space<vmem>>, vector<2x64xbf16>,
    %c2_62 = arith.constant 2 : index
    %c12_63 = arith.constant 12 : index
    %c0_64 = arith.constant 0 : index
    %45 = vector.load %arg1[%c2_62, %c12_63, %c0_64] : memref<4x18x64xbf16, #tpu.memory_space<vmem>>, vector<1x2x64xbf16>
    %46 = vector.shape_cast %45 : vector<1x2x64xbf16> to vector<2x64xbf16>
    %c6_65 = arith.constant 6 : index
    %c192_66 = arith.constant 192 : index
    %47 = vector.load %arg7[%c6_65, %c192_66] : memref<8x576xbf16, #tpu.memory_space<vmem>>, vector<2x64xbf16>
    tpu.vector_store %arg7[%c6_65, %c192_66], %46 {strides = array<i32>} : memref<8x576xbf16, #tpu.memory_space<vmem>>, vector<2x64xbf16>,
    %c3_67 = arith.constant 3 : index
    %c0_68 = arith.constant 0 : index
    %c0_69 = arith.constant 0 : index
    %48 = vector.load %arg1[%c3_67, %c0_68, %c0_69] : memref<4x18x64xbf16, #tpu.memory_space<vmem>>, vector<1x2x64xbf16>
    %49 = vector.shape_cast %48 : vector<1x2x64xbf16> to vector<2x64xbf16>
    %c0_70 = arith.constant 0 : index
    %c256 = arith.constant 256 : index
    %50 = vector.load %arg7[%c0_70, %c256] : memref<8x576xbf16, #tpu.memory_space<vmem>>, vector<2x64xbf16>
    tpu.vector_store %arg7[%c0_70, %c256], %49 {strides = array<i32>} : memref<8x576xbf16, #tpu.memory_space<vmem>>, vector<2x64xbf16>,
    %c3_71 = arith.constant 3 : index
    %c3_72 = arith.constant 3 : index
    %c0_73 = arith.constant 0 : index
    %51 = vector.load %arg1[%c3_71, %c3_72, %c0_73] : memref<4x18x64xbf16, #tpu.memory_space<vmem>>, vector<1x2x64xbf16>
    %52 = vector.shape_cast %51 : vector<1x2x64xbf16> to vector<2x64xbf16>
    %c2_74 = arith.constant 2 : index
    %c256_75 = arith.constant 256 : index
    %53 = vector.load %arg7[%c2_74, %c256_75] : memref<8x576xbf16, #tpu.memory_space<vmem>>, vector<2x64xbf16>
    tpu.vector_store %arg7[%c2_74, %c256_75], %52 {strides = array<i32>} : memref<8x576xbf16, #tpu.memory_space<vmem>>, vector<2x64xbf16>,
    %c3_76 = arith.constant 3 : index
    %c9_77 = arith.constant 9 : index
    %c0_78 = arith.constant 0 : index
    %54 = vector.load %arg1[%c3_76, %c9_77, %c0_78] : memref<4x18x64xbf16, #tpu.memory_space<vmem>>, vector<1x2x64xbf16>
    %55 = vector.shape_cast %54 : vector<1x2x64xbf16> to vector<2x64xbf16>
    %c4_79 = arith.constant 4 : index
    %c256_80 = arith.constant 256 : index
    %56 = vector.load %arg7[%c4_79, %c256_80] : memref<8x576xbf16, #tpu.memory_space<vmem>>, vector<2x64xbf16>
    tpu.vector_store %arg7[%c4_79, %c256_80], %55 {strides = array<i32>} : memref<8x576xbf16, #tpu.memory_space<vmem>>, vector<2x64xbf16>,
    %c3_81 = arith.constant 3 : index
    %c12_82 = arith.constant 12 : index
    %c0_83 = arith.constant 0 : index
    %57 = vector.load %arg1[%c3_81, %c12_82, %c0_83] : memref<4x18x64xbf16, #tpu.memory_space<vmem>>, vector<1x2x64xbf16>
    %58 = vector.shape_cast %57 : vector<1x2x64xbf16> to vector<2x64xbf16>
    %c6_84 = arith.constant 6 : index
    %c256_85 = arith.constant 256 : index
    %59 = vector.load %arg7[%c6_84, %c256_85] : memref<8x576xbf16, #tpu.memory_space<vmem>>, vector<2x64xbf16>
    tpu.vector_store %arg7[%c6_84, %c256_85], %58 {strides = array<i32>} : memref<8x576xbf16, #tpu.memory_space<vmem>>, vector<2x64xbf16>,
    %c2_86 = arith.constant 2 : index
    %c1_87 = arith.constant 1 : index
    %c0_88 = arith.constant 0 : index
    %60 = vector.load %arg1[%c2_86, %c1_87, %c0_88] : memref<4x18x64xbf16, #tpu.memory_space<vmem>>, vector<1x2x64xbf16>
    %61 = vector.shape_cast %60 : vector<1x2x64xbf16> to vector<2x64xbf16>
    %c0_89 = arith.constant 0 : index
    %c320 = arith.constant 320 : index
    %62 = vector.load %arg7[%c0_89, %c320] : memref<8x576xbf16, #tpu.memory_space<vmem>>, vector<2x64xbf16>
    tpu.vector_store %arg7[%c0_89, %c320], %61 {strides = array<i32>} : memref<8x576xbf16, #tpu.memory_space<vmem>>, vector<2x64xbf16>,
    %c2_90 = arith.constant 2 : index
    %c4_91 = arith.constant 4 : index
    %c0_92 = arith.constant 0 : index
    %63 = vector.load %arg1[%c2_90, %c4_91, %c0_92] : memref<4x18x64xbf16, #tpu.memory_space<vmem>>, vector<1x2x64xbf16>
    %64 = vector.shape_cast %63 : vector<1x2x64xbf16> to vector<2x64xbf16>
    %c2_93 = arith.constant 2 : index
    %c320_94 = arith.constant 320 : index
    %65 = vector.load %arg7[%c2_93, %c320_94] : memref<8x576xbf16, #tpu.memory_space<vmem>>, vector<2x64xbf16>
    tpu.vector_store %arg7[%c2_93, %c320_94], %64 {strides = array<i32>} : memref<8x576xbf16, #tpu.memory_space<vmem>>, vector<2x64xbf16>,
    %c2_95 = arith.constant 2 : index
    %c10_96 = arith.constant 10 : index
    %c0_97 = arith.constant 0 : index
    %66 = vector.load %arg1[%c2_95, %c10_96, %c0_97] : memref<4x18x64xbf16, #tpu.memory_space<vmem>>, vector<1x2x64xbf16>
    %67 = vector.shape_cast %66 : vector<1x2x64xbf16> to vector<2x64xbf16>
    %c4_98 = arith.constant 4 : index
    %c320_99 = arith.constant 320 : index
    %68 = vector.load %arg7[%c4_98, %c320_99] : memref<8x576xbf16, #tpu.memory_space<vmem>>, vector<2x64xbf16>
    tpu.vector_store %arg7[%c4_98, %c320_99], %67 {strides = array<i32>} : memref<8x576xbf16, #tpu.memory_space<vmem>>, vector<2x64xbf16>,
    %c2_100 = arith.constant 2 : index
    %c13_101 = arith.constant 13 : index
    %c0_102 = arith.constant 0 : index
    %69 = vector.load %arg1[%c2_100, %c13_101, %c0_102] : memref<4x18x64xbf16, #tpu.memory_space<vmem>>, vector<1x2x64xbf16>
    %70 = vector.shape_cast %69 : vector<1x2x64xbf16> to vector<2x64xbf16>
    %c6_103 = arith.constant 6 : index
    %c320_104 = arith.constant 320 : index
    %71 = vector.load %arg7[%c6_103, %c320_104] : memref<8x576xbf16, #tpu.memory_space<vmem>>, vector<2x64xbf16>
    tpu.vector_store %arg7[%c6_103, %c320_104], %70 {strides = array<i32>} : memref<8x576xbf16, #tpu.memory_space<vmem>>, vector<2x64xbf16>,
    %c0_105 = arith.constant 0 : index
    %c3_106 = arith.constant 3 : index
    %c0_107 = arith.constant 0 : index
    %72 = vector.load %arg1[%c0_105, %c3_106, %c0_107] : memref<4x18x64xbf16, #tpu.memory_space<vmem>>, vector<1x2x64xbf16>
    %73 = vector.shape_cast %72 : vector<1x2x64xbf16> to vector<2x64xbf16>
    %c0_108 = arith.constant 0 : index
    %c384 = arith.constant 384 : index
    %74 = vector.load %arg7[%c0_108, %c384] : memref<8x576xbf16, #tpu.memory_space<vmem>>, vector<2x64xbf16>
    tpu.vector_store %arg7[%c0_108, %c384], %73 {strides = array<i32>} : memref<8x576xbf16, #tpu.memory_space<vmem>>, vector<2x64xbf16>,
    %c0_109 = arith.constant 0 : index
    %c6_110 = arith.constant 6 : index
    %c0_111 = arith.constant 0 : index
    %75 = vector.load %arg1[%c0_109, %c6_110, %c0_111] : memref<4x18x64xbf16, #tpu.memory_space<vmem>>, vector<1x2x64xbf16>
    %76 = vector.shape_cast %75 : vector<1x2x64xbf16> to vector<2x64xbf16>
    %c2_112 = arith.constant 2 : index
    %c384_113 = arith.constant 384 : index
    %77 = vector.load %arg7[%c2_112, %c384_113] : memref<8x576xbf16, #tpu.memory_space<vmem>>, vector<2x64xbf16>
    tpu.vector_store %arg7[%c2_112, %c384_113], %76 {strides = array<i32>} : memref<8x576xbf16, #tpu.memory_space<vmem>>, vector<2x64xbf16>,
    %c0_114 = arith.constant 0 : index
    %c12_115 = arith.constant 12 : index
    %c0_116 = arith.constant 0 : index
    %78 = vector.load %arg1[%c0_114, %c12_115, %c0_116] : memref<4x18x64xbf16, #tpu.memory_space<vmem>>, vector<1x2x64xbf16>
    %79 = vector.shape_cast %78 : vector<1x2x64xbf16> to vector<2x64xbf16>
    %c4_117 = arith.constant 4 : index
    %c384_118 = arith.constant 384 : index
    %80 = vector.load %arg7[%c4_117, %c384_118] : memref<8x576xbf16, #tpu.memory_space<vmem>>, vector<2x64xbf16>
    tpu.vector_store %arg7[%c4_117, %c384_118], %79 {strides = array<i32>} : memref<8x576xbf16, #tpu.memory_space<vmem>>, vector<2x64xbf16>,
    %c0_119 = arith.constant 0 : index
    %c15 = arith.constant 15 : index
    %c0_120 = arith.constant 0 : index
    %81 = vector.load %arg1[%c0_119, %c15, %c0_120] : memref<4x18x64xbf16, #tpu.memory_space<vmem>>, vector<1x2x64xbf16>
    %82 = vector.shape_cast %81 : vector<1x2x64xbf16> to vector<2x64xbf16>
    %c6_121 = arith.constant 6 : index
    %c384_122 = arith.constant 384 : index
    %83 = vector.load %arg7[%c6_121, %c384_122] : memref<8x576xbf16, #tpu.memory_space<vmem>>, vector<2x64xbf16>
    tpu.vector_store %arg7[%c6_121, %c384_122], %82 {strides = array<i32>} : memref<8x576xbf16, #tpu.memory_space<vmem>>, vector<2x64xbf16>,
    %c1_123 = arith.constant 1 : index
    %c3_124 = arith.constant 3 : index
    %c0_125 = arith.constant 0 : index
    %84 = vector.load %arg1[%c1_123, %c3_124, %c0_125] : memref<4x18x64xbf16, #tpu.memory_space<vmem>>, vector<1x2x64xbf16>
    %85 = vector.shape_cast %84 : vector<1x2x64xbf16> to vector<2x64xbf16>
    %c0_126 = arith.constant 0 : index
    %c448 = arith.constant 448 : index
    %86 = vector.load %arg7[%c0_126, %c448] : memref<8x576xbf16, #tpu.memory_space<vmem>>, vector<2x64xbf16>
    tpu.vector_store %arg7[%c0_126, %c448], %85 {strides = array<i32>} : memref<8x576xbf16, #tpu.memory_space<vmem>>, vector<2x64xbf16>,
    %c1_127 = arith.constant 1 : index
    %c6_128 = arith.constant 6 : index
    %c0_129 = arith.constant 0 : index
    %87 = vector.load %arg1[%c1_127, %c6_128, %c0_129] : memref<4x18x64xbf16, #tpu.memory_space<vmem>>, vector<1x2x64xbf16>
    %88 = vector.shape_cast %87 : vector<1x2x64xbf16> to vector<2x64xbf16>
    %c2_130 = arith.constant 2 : index
    %c448_131 = arith.constant 448 : index
    %89 = vector.load %arg7[%c2_130, %c448_131] : memref<8x576xbf16, #tpu.memory_space<vmem>>, vector<2x64xbf16>
    tpu.vector_store %arg7[%c2_130, %c448_131], %88 {strides = array<i32>} : memref<8x576xbf16, #tpu.memory_space<vmem>>, vector<2x64xbf16>,
    %c1_132 = arith.constant 1 : index
    %c12_133 = arith.constant 12 : index
    %c0_134 = arith.constant 0 : index
    %90 = vector.load %arg1[%c1_132, %c12_133, %c0_134] : memref<4x18x64xbf16, #tpu.memory_space<vmem>>, vector<1x2x64xbf16>
    %91 = vector.shape_cast %90 : vector<1x2x64xbf16> to vector<2x64xbf16>
    %c4_135 = arith.constant 4 : index
    %c448_136 = arith.constant 448 : index
    %92 = vector.load %arg7[%c4_135, %c448_136] : memref<8x576xbf16, #tpu.memory_space<vmem>>, vector<2x64xbf16>
    tpu.vector_store %arg7[%c4_135, %c448_136], %91 {strides = array<i32>} : memref<8x576xbf16, #tpu.memory_space<vmem>>, vector<2x64xbf16>,
    %c1_137 = arith.constant 1 : index
    %c15_138 = arith.constant 15 : index
    %c0_139 = arith.constant 0 : index
    %93 = vector.load %arg1[%c1_137, %c15_138, %c0_139] : memref<4x18x64xbf16, #tpu.memory_space<vmem>>, vector<1x2x64xbf16>
    %94 = vector.shape_cast %93 : vector<1x2x64xbf16> to vector<2x64xbf16>
    %c6_140 = arith.constant 6 : index
    %c448_141 = arith.constant 448 : index
    %95 = vector.load %arg7[%c6_140, %c448_141] : memref<8x576xbf16, #tpu.memory_space<vmem>>, vector<2x64xbf16>
    tpu.vector_store %arg7[%c6_140, %c448_141], %94 {strides = array<i32>} : memref<8x576xbf16, #tpu.memory_space<vmem>>, vector<2x64xbf16>,
    %c0_142 = arith.constant 0 : index
    %c4_143 = arith.constant 4 : index
    %c0_144 = arith.constant 0 : index
    %96 = vector.load %arg1[%c0_142, %c4_143, %c0_144] : memref<4x18x64xbf16, #tpu.memory_space<vmem>>, vector<1x2x64xbf16>
    %97 = vector.shape_cast %96 : vector<1x2x64xbf16> to vector<2x64xbf16>
    %c0_145 = arith.constant 0 : index
    %c512 = arith.constant 512 : index
    %98 = vector.load %arg7[%c0_145, %c512] : memref<8x576xbf16, #tpu.memory_space<vmem>>, vector<2x64xbf16>
    tpu.vector_store %arg7[%c0_145, %c512], %97 {strides = array<i32>} : memref<8x576xbf16, #tpu.memory_space<vmem>>, vector<2x64xbf16>,
    %c0_146 = arith.constant 0 : index
    %c7 = arith.constant 7 : index
    %c0_147 = arith.constant 0 : index
    %99 = vector.load %arg1[%c0_146, %c7, %c0_147] : memref<4x18x64xbf16, #tpu.memory_space<vmem>>, vector<1x2x64xbf16>
    %100 = vector.shape_cast %99 : vector<1x2x64xbf16> to vector<2x64xbf16>
    %c2_148 = arith.constant 2 : index
    %c512_149 = arith.constant 512 : index
    %101 = vector.load %arg7[%c2_148, %c512_149] : memref<8x576xbf16, #tpu.memory_space<vmem>>, vector<2x64xbf16>
    tpu.vector_store %arg7[%c2_148, %c512_149], %100 {strides = array<i32>} : memref<8x576xbf16, #tpu.memory_space<vmem>>, vector<2x64xbf16>,
    %c0_150 = arith.constant 0 : index
    %c13_151 = arith.constant 13 : index
    %c0_152 = arith.constant 0 : index
    %102 = vector.load %arg1[%c0_150, %c13_151, %c0_152] : memref<4x18x64xbf16, #tpu.memory_space<vmem>>, vector<1x2x64xbf16>
    %103 = vector.shape_cast %102 : vector<1x2x64xbf16> to vector<2x64xbf16>
    %c4_153 = arith.constant 4 : index
    %c512_154 = arith.constant 512 : index
    %104 = vector.load %arg7[%c4_153, %c512_154] : memref<8x576xbf16, #tpu.memory_space<vmem>>, vector<2x64xbf16>
    tpu.vector_store %arg7[%c4_153, %c512_154], %103 {strides = array<i32>} : memref<8x576xbf16, #tpu.memory_space<vmem>>, vector<2x64xbf16>,
    %c0_155 = arith.constant 0 : index
    %c16 = arith.constant 16 : index
    %c0_156 = arith.constant 0 : index
    %105 = vector.load %arg1[%c0_155, %c16, %c0_156] : memref<4x18x64xbf16, #tpu.memory_space<vmem>>, vector<1x2x64xbf16>
    %106 = vector.shape_cast %105 : vector<1x2x64xbf16> to vector<2x64xbf16>
    %c6_157 = arith.constant 6 : index
    %c512_158 = arith.constant 512 : index
    %107 = vector.load %arg7[%c6_157, %c512_158] : memref<8x576xbf16, #tpu.memory_space<vmem>>, vector<2x64xbf16>
    tpu.vector_store %arg7[%c6_157, %c512_158], %106 {strides = array<i32>} : memref<8x576xbf16, #tpu.memory_space<vmem>>, vector<2x64xbf16>,
    %c0_159 = arith.constant 0 : index
    %c0_160 = arith.constant 0 : index
    %108 = vector.load %arg7[%c0_159, %c0_160] : memref<8x576xbf16, #tpu.memory_space<vmem>>, vector<8x576xbf16>
    %c0_161 = arith.constant 0 : index
    %c0_162 = arith.constant 0 : index
    %109 = vector.load %arg2[%c0_161, %c0_162] : memref<576x128xbf16, #tpu.memory_space<vmem>>, vector<576x128xbf16>
    %cst = arith.constant dense<0.000000e+00> : vector<8x128xf32>
    %110 = tpu.matmul %108, %109, %cst {dimension_numbers = #tpu.dot_dimension_numbers<[1], [0], [0], [1], [0, 0, 1, 1], [], []>} : vector<8x576xbf16>, vector<576x128xbf16>, vector<8x128xf32> -> vector<8x128xf32>
    %c0_163 = arith.constant 0 : index
    %c0_164 = arith.constant 0 : index
    %111 = vector.load %arg3[%c0_163, %c0_164] : memref<1x128xf32, #tpu.memory_space<vmem>>, vector<1x128xf32>
    %112 = vector.broadcast %111 : vector<1x128xf32> to vector<8x128xf32>
    %113 = arith.addf %110, %112 : vector<8x128xf32>
    %cst_165 = arith.constant 0.000000e+00 : f32
    %114 = vector.broadcast %cst_165 : f32 to vector<8x128xf32>
    %115 = arith.maximumf %113, %114 : vector<8x128xf32>
    %cst_166 = arith.constant dense<0.000000e+00> : vector<128xf32>
    %116 = vector.multi_reduction <add>, %115, %cst_166 [0] : vector<8x128xf32> to vector<128xf32>
    %117 = vector.shape_cast %116 : vector<128xf32> to vector<1x128xf32>
    %cst_167 = arith.constant 1.250000e-01 : f32
    %118 = vector.broadcast %cst_167 : f32 to vector<1x128xf32>
    %119 = arith.mulf %117, %118 : vector<1x128xf32>
    %120 = vector.broadcast %119 : vector<1x128xf32> to vector<8x128xf32>
    %121 = arith.subf %115, %120 : vector<8x128xf32>
    %122 = arith.mulf %121, %121 : vector<8x128xf32>
    %cst_168 = arith.constant dense<0.000000e+00> : vector<128xf32>
    %123 = vector.multi_reduction <add>, %122, %cst_168 [0] : vector<8x128xf32> to vector<128xf32>
    %124 = vector.shape_cast %123 : vector<128xf32> to vector<1x128xf32>
    %cst_169 = arith.constant 1.250000e-01 : f32
    %125 = vector.broadcast %cst_169 : f32 to vector<1x128xf32>
    %126 = arith.mulf %124, %125 : vector<1x128xf32>
    %c0_170 = arith.constant 0 : index
    %c0_171 = arith.constant 0 : index
    %127 = vector.load %arg4[%c0_170, %c0_171] : memref<1x128xf32, #tpu.memory_space<vmem>>, vector<1x128xf32>
    %cst_172 = arith.constant 9.99999974E-6 : f32
    %128 = vector.broadcast %cst_172 : f32 to vector<1x128xf32>
    %129 = arith.addf %126, %128 : vector<1x128xf32>
    %130 = math.rsqrt %129 : vector<1x128xf32>
    %131 = arith.mulf %127, %130 : vector<1x128xf32>
    %132 = vector.broadcast %131 : vector<1x128xf32> to vector<8x128xf32>
    %133 = arith.mulf %121, %132 : vector<8x128xf32>
    %c0_173 = arith.constant 0 : index
    %c0_174 = arith.constant 0 : index
    %134 = vector.load %arg5[%c0_173, %c0_174] : memref<1x128xf32, #tpu.memory_space<vmem>>, vector<1x128xf32>
    %135 = vector.broadcast %134 : vector<1x128xf32> to vector<8x128xf32>
    %136 = arith.addf %133, %135 : vector<8x128xf32>
    %c0_175 = arith.constant 0 : index
    %c0_176 = arith.constant 0 : index
    %137 = vector.load %arg6[%c0_175, %c0_176] : memref<8x128xf32, #tpu.memory_space<vmem>>, vector<8x128xf32>
    tpu.vector_store %arg6[%c0_175, %c0_176], %136 {strides = array<i32>} : memref<8x128xf32, #tpu.memory_space<vmem>>, vector<8x128xf32>,
    return
  }
  func.func @transform_0(%arg0: i32) -> (i32, i32, i32) {
    %c0_i32 = arith.constant 0 : i32
    %c0_i32_0 = arith.constant 0 : i32
    %c0_i32_1 = arith.constant 0 : i32
    %c0_i32_2 = arith.constant 0 : i32
    return %c0_i32, %c0_i32_0, %c0_i32_1 : i32, i32, i32
  }
  func.func @transform_1(%arg0: i32) -> (i32, i32) {
    %c0_i32 = arith.constant 0 : i32
    %c0_i32_0 = arith.constant 0 : i32
    %c0_i32_1 = arith.constant 0 : i32
    return %c0_i32, %c0_i32_0 : i32, i32
  }
  func.func @transform_2(%arg0: i32) -> (i32, i32) {
    %c0_i32 = arith.constant 0 : i32
    %c0_i32_0 = arith.constant 0 : i32
    %c0_i32_1 = arith.constant 0 : i32
    return %c0_i32, %c0_i32_0 : i32, i32
  }
  func.func @transform_3(%arg0: i32) -> (i32, i32) {
    %c0_i32 = arith.constant 0 : i32
    %c0_i32_0 = arith.constant 0 : i32
    %c0_i32_1 = arith.constant 0 : i32
    return %c0_i32, %c0_i32_0 : i32, i32
  }
  func.func @transform_4(%arg0: i32) -> (i32, i32) {
    %c0_i32 = arith.constant 0 : i32
    %c0_i32_0 = arith.constant 0 : i32
    %c0_i32_1 = arith.constant 0 : i32
    return %c0_i32, %c0_i32_0 : i32, i32
  }
  func.func @transform_5(%arg0: i32) -> (i32, i32) {
    %c0_i32 = arith.constant 0 : i32
    %c0_i32_0 = arith.constant 0 : i32
    %c0_i32_1 = arith.constant 0 : i32
    return %c0_i32, %c0_i32_0 : i32, i32
  }
}

</mosaic_0001>

<bundles_post_ra>
// kernel: encoder_forward.5
= control target key start
LH: loop header
LB: loop body
LE: loop exit
PB: predicated region body
PF: predicated region fallthrough
CT: control target
= control target key end

     0   :  { %s1063_s24 = smov 64   ;;  %vm269_vm0 = vsmask.f32 3328  ;;  %vm270_vm1 = vsmask.f32 7440  ;;  %vm54_vm2 = vcmask 519171   ;;  %s1401_s0 = inlined_call_operand.vmem [shape: bf16[4,18,64], index: 0, kind: input, shape index: {}]   ;;  %s1402_s1 = inlined_call_operand.vmem [shape: bf16[576,128], index: 1, kind: input, shape index: {}]   ;;  %s1403_s2 = inlined_call_operand.vmem [shape: f32[1,128], index: 2, kind: input, shape index: {}]   ;;  %s1404_s3 = inlined_call_operand.vmem [shape: f32[1,128], index: 3, kind: input, shape index: {}]   ;;  %s1405_s4 = inlined_call_operand.vmem [shape: f32[1,128], index: 4, kind: input, shape index: {}]   ;;  %s1406_s5 = inlined_call_operand.hbm [shape: f32[8,128], index: 5, kind: output, shape index: {}]  }
   0x1   :  { %v861_v0 = vld [vmem:[%s1401_s0 + $0x10] sm:$0x4]  ;;  %v858_v1 = vld [vmem:[%s1401_s0 + $0xc] sm:$0x1]  ;;  %v996_v2 = vld [vmem:[%s1402_s1 + $0x40] sm:$0xff]   ;;  %vm23_vm3 = vcmask 516096  }
   0x2   :  { %v95_v3 = vrot.slane %v861_v0, 7  ;;  %59 = vrot.lane.b32.xlu0 %v858_v1, %s1063_s24  ;;  %v860_v4 = vld [vmem:[%s1401_s0 + $0x10] sm:$0x3]  ;;  %v863_v5 = vld [vmem:[%s1401_s0 + $0x18] sm:$0x1]  ;;  %v997_v6 = vld [vmem:[%s1402_s1] sm:$0xff]   ;;  %931 = vmatprep.subr.bf16.mxu0 %v996_v2 }
   0x3   :  { %v81_v7 = vshrl.u32 %v860_v4, 16  ;;  %v84_v8 = vshll.u32 %v860_v4, 16  ;;  %v864_v9 = vld [vmem:[%s1401_s0 + $0x18] sm:$0x6]  ;;  %v859_v10 = vld [vmem:[%s1401_s0 + $0xc] sm:$0x6]  ;;  %932 = vmatpush3.bf16.msra.mxu0 %v997_v6  ;;  %vm1210_vm5 = vmor %vm269_vm0, %vm270_vm1 }
   0x4   :  { %96 = vrot.lane.b32.xlu1 %v95_v3, %s1063_s24  ;;  %v143_v11 = vshrl.u32 %v864_v9, 16  ;;  %v146_v12 = vshll.u32 %v864_v9, 16  ;;  %v66_v13 = vshrl.u32 %v859_v10, 16  ;;  %v69_v14 = vshll.u32 %v859_v10, 16  ;;  %v865_v17 = vld [vmem:[%s1401_s0 + $0x1c] sm:$0x3] }
   0x5   :  { %v83_v15 = vrot.slane %v81_v7, 6  ;;  %v86_v16 = vrot.slane %v84_v8, 7  ;;  %v998_v18 = vld [vmem:[%s1402_s1 + $0x48] sm:$0xff]   ;;  %v866_v23 = vld [vmem:[%s1401_s0 + $0x1c] sm:$0x4]  ;;  %v157_v25 = vshrl.u32 %v865_v17, 16 }
   0x6   :  { %137 = vrot.lane.b32.xlu0 %v863_v5, %s1063_s24  ;;  %v145_v19 = vrot.slane %v143_v11, 4  ;;  %v148_v20 = vrot.slane %v146_v12, 5  ;;  %v68_v21 = vrot.slane %v66_v13, 4  ;;  %v71_v22 = vrot.slane %v69_v14, 5  ;;  %v871_v27 = vld [vmem:[%s1401_s0 + $0x18] sm:$0x3]  ;;  %933 = vmatprep.subr.bf16.mxu0 %v998_v18 }
   0x7   :  { %v87_v24 = vor.u32 %v86_v16, %v83_v15  ;;  %v160_v26 = vshll.u32 %v865_v17, 16  ;;  %v999_v28 = vld [vmem:[%s1402_s1 + $0x8] sm:$0xff]   ;;  %v872_v31 = vld [vmem:[%s1401_s0 + $0x18] sm:$0x4]  ;;  %v208_v32 = vshrl.u32 %v871_v27, 16  ;;  %v211_v33 = vshll.u32 %v871_v27, 16 }
   0x8   :  { %v149_v29 = vor.u32 %v148_v20, %v145_v19  ;;  %v72_v30 = vor.u32 %v71_v22, %v68_v21  ;;  %v875_v34 = vld [vmem:[%s1401_s0 + $0x1c] sm:$0xc]  ;;  %v159_v35 = vrot.slane %v157_v25, 6  ;;  %v874_v38 = vld [vmem:[%s1401_s0 + $0x1c] sm:$0x2]  ;;  %934 = vmatpush3.bf16.msra.mxu0 %v999_v28  ;;  %v170_v44 = vrot.slane %v866_v23, 7 }
   0x9   :  { %88 = vrot.lane.b32.xlu1 %v87_v24, %s1063_s24  ;;  %v162_v36 = vrot.slane %v160_v26, 7  ;;  %v237_v37 = vshrl.u32 %v875_v34, 16  ;;  %v210_v41 = vrot.slane %v208_v32, 4  ;;  %v213_v42 = vrot.slane %v211_v33, 5  ;;  %v878_v43 = vld [vmem:[%s1401_s0 + $0xc] sm:$0x6] }
   0xa   :  { %v150_v39 = vrot.slane %v149_v29, 4  ;;  %v73_v40 = vrot.slane %v72_v30, 4  ;;  %v1155_v45 = vld [vmem:[%s1401_s0 + $0xc] sm:$0x8]  ;;  %v1000_v46 = vld [vmem:[%s1402_s1 + $0x50] sm:$0xff]   ;;  %v286_v49 = vshrl.u32 %v878_v43, 16 }
   0xb   :  { %v163_v47 = vor.u32 %v162_v36, %v159_v35  ;;  %v214_v48 = vor.u32 %v213_v42, %v210_v41  ;;  %v289_v50 = vshll.u32 %v878_v43, 16  ;;  %v1164_v51 = vld [vmem:[%s1401_s0 + $0x10] sm:$0x8]  ;;  %v883_v52 = vld [vmem:[%s1401_s0 + $0x14] sm:$0x1]  ;;  %v873_v53 = vrot.slane %v872_v31, 9  ;;  %935 = vmatprep.subr.bf16.mxu0 %v1000_v46 }
   0xc   :  { %74 = vrot.lane.b32.xlu0 %v73_v40, %s1063_s24  ;;  %v239_v54 = vrot.slane %v237_v37, 7  ;;  %v240_v55 = vshll.u32 %v875_v34, 16  ;;  %v230_v56 = vrot.slane %v874_v38, 7  ;;  %v880_v57 = vrot.slane %v1155_v45, 10  ;;  %v50_v1 = vld [vmem:[%s1401_s0 + $0x4] sm:$0x4] }
   0xd   :  { %151 = vrot.lane.b32.xlu1 %v150_v39, %s1063_s24  ;;  %v288_v58 = vrot.slane %v286_v49, 5  ;;  %v291_v59 = vrot.slane %v289_v50, 6  ;;  %v320_v60 = vshll.u32 %v883_v52, 16  ;;  %v215_v61 = vrot.slane %v214_v48, 4  ;;  %v328_v2 = vld [vmem:[%s1401_s0] sm:$0x4] }
   0xe   :  { %v315_v62 = vshrl.u32 %v1164_v51, 16  ;;  %v52_v3 = vrot.slane %v50_v1, 7  ;;  %v885_v4 = vrot.slane %v328_v2, 10  ;;  %v22_v5 = vld [vmem:[%s1401_s0] sm:$0x1]  ;;  %v242_v6 = vor.u32 %v240_v55, %v239_v54  ;;  %v1001_v8 = vld [vmem:[%s1402_s1 + $0x10] sm:$0xff]  }
   0xf   :  { %v292_v63 = vor.u32 %v291_v59, %v288_v58  ;;  %v322_v0 = vrot.slane %v320_v60, 5  ;;  %24 = vst.msk [vmem:[#allocation2] sm:$0x1] %vm23_vm3, %v22_v5  ;;  %v1002_v9 = vld [vmem:[%s1402_s1 + $0x58] sm:$0xff]   ;;  %vm48_vm4 = vcmask 518146   ;;  %936 = vmatpush3.bf16.msra.mxu0 %v1001_v8  ;;  %v1004_v17 = vld [vmem:[%s1402_s1 + $0x60] sm:$0xff]  }
  0x10   :  { %164 = vrot.lane.b32.xlu0 %v163_v47, %s1063_s24  ;;  %55 = vst.msk [vmem:[#allocation2] sm:$0x8] %vm54_vm2, %v52_v3  ;;  %v38_v10 = vld [vmem:[%s1401_s0 + $0x4] sm:$0x3]  ;;  %v101_v11 = vld [vmem:[%s1401_s0] sm:$0x3]  ;;  %937 = vmatprep.subr.bf16.mxu0 %v1002_v9 }
  0x11   :  { %171 = vrot.lane.b32.xlu1 %v170_v44, %s1063_s24  ;;  %v293_v7 = vrot.slane %v292_v63, 4  ;;  %333 = vst.msk [vmem:[#allocation2 + $0x10] sm:$0x1] %vm23_vm3, %v885_v4  ;;  %v40_v12 = vshrl.u32 %v38_v10, 16  ;;  %v43_v13 = vshll.u32 %v38_v10, 16  ;;  %v103_v14 = vshrl.u32 %v101_v11, 16 }
  0x12   :  { %v106_v15 = vshll.u32 %v101_v11, 16  ;;  %v1003_v16 = vld [vmem:[%s1402_s1 + $0x18] sm:$0xff]   ;;  %v881_v23 = vld [vmem:[%s1401_s0 + $0x10] sm:$0x4]  ;;  %v1005_v26 = vld [vmem:[%s1402_s1 + $0xc0] sm:$0xff]   ;;  %v323_v28 = vsel %vm1210_vm5, %v315_v62, %v322_v0  ;;  %vm36_vm6 = vcmask 517121  }
  0x13   :  { %v42_v19 = vrot.slane %v40_v12, 6  ;;  %v45_v20 = vrot.slane %v43_v13, 7  ;;  %v105_v21 = vrot.slane %v103_v14, 4  ;;  %938 = vmatpush3.bf16.msra.mxu0 %v1003_v16  ;;  %v113_v27 = vld [vmem:[%s1401_s0] sm:$0x4]  ;;  %953 = vmatprep.subr.bf16.mxu1 %v1005_v26  ;;  %v1008_v38 = vld [vmem:[%s1402_s1 + $0x68] sm:$0xff]  }
  0x14   :  { %216 = vrot.lane.b32.xlu0 %v215_v61, %s1063_s24  ;;  %v108_v22 = vrot.slane %v106_v15, 5  ;;  %939 = vmatprep.subr.bf16.mxu0 %v1004_v17  ;;  %v862_v29 = vrot.slane %v113_v27, 9  ;;  %v1006_v31 = vld [vmem:[%s1402_s1 + $0x20] sm:$0xff]   ;;  %v1009_v40 = vld [vmem:[%s1402_s1 + $0xc8] sm:$0xff]   ;;  %v1012_v50 = vld [vmem:[%s1402_s1 + $0x70] sm:$0xff]   ;;  %v1064_v12 = vmov 0.0  }
  0x15   :  { %224 = vrot.lane.b32.xlu1 %v873_v53, %s1063_s24  ;;  %v46_v24 = vor.u32 %v45_v20, %v42_v19  ;;  %v25_v32 = vld [vmem:[%s1401_s0] sm:$0x6]  ;;  %v124_v41 = vld [vmem:[%s1401_s0 + $0x4] sm:$0xc]  ;;  %v119_v42 = vld [vmem:[%s1401_s0 + $0x4] sm:$0x2] }
  0x16   :  { %v109_v25 = vor.u32 %v108_v22, %v105_v21  ;;  %118 = vst.msk [vmem:[#allocation2 + $0x4] sm:$0x2] %vm36_vm6, %v862_v29  ;;  %v27_v33 = vshrl.u32 %v25_v32, 16  ;;  %v30_v34 = vshll.u32 %v25_v32, 16  ;;  %v1007_v35 = vld [vmem:[%s1402_s1 + $0x80] sm:$0xff]   ;;  %v126_v43 = vshrl.u32 %v124_v41, 16 }
  0x17   :  { %49 = vst.msk [vmem:[#allocation2] sm:$0x4] %vm48_vm4, %v46_v24  ;;  %940 = vmatpush3.bf16.msra.mxu0 %v1006_v31  ;;  %954 = vmatpush3.bf16.msra.mxu1 %v1007_v35  ;;  %v129_v44 = vshll.u32 %v124_v41, 16  ;;  %v121_v45 = vrot.slane %v119_v42, 7  ;;  %v1010_v46 = vld [vmem:[%s1402_s1 + $0x28] sm:$0xff]   ;;  %v1013_v52 = vld [vmem:[%s1402_s1 + $0xd0] sm:$0xff]  }
  0x18   :  { %231 = vrot.lane.b32.xlu0 %v230_v56, %s1063_s24  ;;  %v110_v30 = vrot.slane %v109_v25, 4  ;;  %v29_v36 = vrot.slane %v27_v33, 4  ;;  %v32_v37 = vrot.slane %v30_v34, 5  ;;  %941 = vmatprep.subr.bf16.mxu0 %v1008_v38  ;;  %v1011_v48 = vld [vmem:[%s1402_s1 + $0x88] sm:$0xff]   ;;  %v128_v49 = vrot.slane %v126_v43, 7  ;;  %v1015_v60 = vld [vmem:[%s1402_s1 + $0x90] sm:$0xff]  }
  0x19   :  { %243 = vrot.lane.b32.xlu1 %v242_v6, %s1063_s24  ;;  %955 = vmatprep.subr.bf16.mxu1 %v1009_v40  ;;  %123 = vst.msk [vmem:[#allocation2 + $0x4] sm:$0x4] %vm48_vm4, %v121_v45  ;;  %v868_v53 = vld [vmem:[%s1401_s0 + $0x24] sm:$0x6]  ;;  %v867_v54 = vld [vmem:[%s1401_s0 + $0x24] sm:$0x1] }
  0x1a   :  { %112 = vst.msk [vmem:[#allocation2 + $0x4] sm:$0x1] %vm23_vm3, %v110_v30  ;;  %v33_v39 = vor.u32 %v32_v37, %v29_v36  ;;  %v131_v51 = vor.u32 %v129_v44, %v128_v49  ;;  %v180_v55 = vshrl.u32 %v868_v53, 16  ;;  %v183_v56 = vshll.u32 %v868_v53, 16  ;;  %177 = vst.msk [vmem:[#allocation2 + $0x8] sm:$0x1] %vm23_vm3, %v867_v54 }
  0x1b   :  { %942 = vmatpush3.bf16.msra.mxu0 %v1010_v46  ;;  %956 = vmatpush3.bf16.msra.mxu1 %v1011_v48  ;;  %v1016_v61 = vld [vmem:[%s1402_s1 + $0x78] sm:$0xff]   ;;  %v870_v0 = vld [vmem:[%s1401_s0 + $0x28] sm:$0x4]  ;;  %v869_v1 = vld [vmem:[%s1401_s0 + $0x28] sm:$0x3] }
  0x1c   :  { %294 = vrot.lane.b32.xlu0 %v293_v7, %s1063_s24  ;;  %v34_v47 = vrot.slane %v33_v39, 4  ;;  %943 = vmatprep.subr.bf16.mxu0 %v1012_v50  ;;  %133 = vst.msk [vmem:[#allocation2 + $0x4] sm:$0x8] %vm54_vm2, %v131_v51  ;;  %v182_v58 = vrot.slane %v180_v55, 4  ;;  %v185_v59 = vrot.slane %v183_v56, 5  ;;  %v1017_v63 = vld [vmem:[%s1402_s1 + $0xd8] sm:$0xff]  }
  0x1d   :  { %302 = vrot.lane.b32.xlu1 %v880_v57, %s1063_s24  ;;  %957 = vmatprep.subr.bf16.mxu1 %v1013_v52  ;;  %v1014_v57 = vld [vmem:[%s1402_s1 + $0x30] sm:$0xff]   ;;  %v203_v2 = vrot.slane %v870_v0, 7  ;;  %v192_v3 = vshrl.u32 %v869_v1, 16  ;;  %v195_v4 = vshll.u32 %v869_v1, 16  ;;  %v1018_v5 = vld [vmem:[%s1402_s1 + $0x38] sm:$0xff]   ;;  %v1022_v10 = vld [vmem:[%s1402_s1 + $0xe0] sm:$0xff]  }
  0x1e   :  { %37 = vst.msk [vmem:[#allocation2] sm:$0x2] %vm36_vm6, %v34_v47  ;;  %v186_v62 = vor.u32 %v185_v59, %v182_v58  ;;  %v1019_v7 = vld [vmem:[%s1402_s1 + $0x98] sm:$0xff]   ;;  %v259_v11 = vld [vmem:[%s1401_s0] sm:$0x8]  ;;  %v1025_v22 = vld [vmem:[%s1402_s1 + $0xe8] sm:$0xff]  }
  0x1f   :  { %944 = vmatpush3.bf16.msra.mxu0 %v1014_v57  ;;  %958 = vmatpush3.bf16.msra.mxu1 %v1015_v60  ;;  %205 = vst.msk [vmem:[#allocation2 + $0x8] sm:$0x8] %vm54_vm2, %v203_v2  ;;  %v194_v8 = vrot.slane %v192_v3, 6  ;;  %v197_v9 = vrot.slane %v195_v4, 7  ;;  %v876_v14 = vrot.slane %v259_v11, 10  ;;  %v1023_v16 = vld [vmem:[%s1402_s1 + $0xa0] sm:$0xff]  }
  0x20   :  { %308 = vrot.lane.b32.xlu0 %v881_v23, %s1063_s24  ;;  %945 = vmatprep.subr.bf16.mxu0 %v1016_v61  ;;  %v187_v6 = vrot.slane %v186_v62, 4  ;;  %v247_v15 = vld [vmem:[%s1401_s0] sm:$0x6]  ;;  %v1026_v23 = vld [vmem:[%s1402_s1 + $0xa8] sm:$0xff]   ;;  %v267_v24 = vld [vmem:[%s1401_s0 + $0x4] sm:$0x8] }
  0x21   :  { %324 = vrot.lane.b32.xlu1 %v323_v28, %s1063_s24  ;;  %959 = vmatprep.subr.bf16.mxu1 %v1017_v63  ;;  %v198_v13 = vor.u32 %v197_v9, %v194_v8  ;;  %v249_v17 = vshrl.u32 %v247_v15, 16  ;;  %v252_v19 = vshll.u32 %v247_v15, 16  ;;  %264 = vst.msk [vmem:[#allocation2 + $0xc] sm:$0x2] %vm36_vm6, %v876_v14  ;;  %v268_v25 = vld [vmem:[%s1401_s0 + $0x8] sm:$0x1] }
  0x22   :  { %189 = vst.msk [vmem:[#allocation2 + $0x8] sm:$0x2] %vm36_vm6, %v187_v6  ;;  %v265_v26 = vld [vmem:[%s1401_s0 + $0x4] sm:$0x4]  ;;  %v273_v28 = vshrl.u32 %v267_v24, 16  ;;  %v278_v29 = vshll.u32 %v268_v25, 16 }
  0x23   :  { %946 = vmatpush3.bf16.msra.mxu0 %v1018_v5  ;;  %960 = vmatpush3.bf16.msra.mxu1 %v1019_v7  ;;  %200 = vst.msk [vmem:[#allocation2 + $0x8] sm:$0x4] %vm48_vm4, %v198_v13  ;;  %v251_v20 = vrot.slane %v249_v17, 5  ;;  %v254_v21 = vrot.slane %v252_v19, 6  ;;  %266 = vst.msk [vmem:[#allocation2 + $0xc] sm:$0x4] %vm48_vm4, %v265_v26 }
  0x24   :  { %980 = vmatprep.subr.bf16.mxu0 %v1064_v12  ;;  %961 = vmatprep.subr.bf16.mxu1 %v1022_v10  ;;  %v280_v31 = vrot.slane %v278_v29, 5  ;;  %v1028_v32 = vld [vmem:[%s1402_s1 + $0xf0] sm:$0xff]   ;;  %v1031_v35 = vld [vmem:[%s1402_s1 + $0xf8] sm:$0xff]  }
  0x25   :  { %v255_v27 = vor.u32 %v254_v21, %v251_v20  ;;  %v1029_v34 = vld [vmem:[%s1402_s1 + $0xb0] sm:$0xff]   ;;  %v1032_v36 = vld [vmem:[%s1402_s1 + $0xb8] sm:$0xff]  }
  0x26   :  { %v281_v33 = vsel %vm1210_vm5, %v273_v28, %v280_v31 }
  0x27   :  { %962 = vmatpush3.bf16.msra.mxu1 %v1023_v16  ;;  %v256_v30 = vrot.slane %v255_v27, 4  ;;  %283 = vst.msk [vmem:[#allocation2 + $0xc] sm:$0x8] %vm54_vm2, %v281_v33 }
  0x28   :  { %963 = vmatprep.subr.bf16.mxu1 %v1025_v22 }
  0x29   :  { %258 = vst.msk [vmem:[#allocation2 + $0xc] sm:$0x1] %vm23_vm3, %v256_v30 }
  0x2b   :  { %964 = vmatpush3.bf16.msra.mxu1 %v1026_v23 }
  0x2c   :  { %965 = vmatprep.subr.bf16.mxu1 %v1028_v32 }
  0x2f   :  { %966 = vmatpush3.bf16.msra.mxu1 %v1029_v34 }
  0x30   :  { %967 = vmatprep.subr.bf16.mxu1 %v1031_v35 }
  0x31   :  { %10 = vsyncpa [#allocation4], 0  ;;  %vm62_vm7 = vcmask 1040896   ;;  %vm99_vm8 = vcmask 1043971   ;;  %vm91_vm9 = vcmask 1042946   ;;  %vm77_vm10 = vcmask 1041921  }
  0x32   :  { %v1024_v51 = vld [vmem:[%s1402_s1 + $0x100] sm:$0xff]   ;;  %v1027_v54 = vld [vmem:[%s1402_s1 + $0x108] sm:$0xff]   ;;  %vm1065_vm11 = vmmov 0   ;;  %v1030_v57 = vld [vmem:[%s1402_s1 + $0x110] sm:$0xff]   ;;  %vm683_vm12 = vcmask 523264   ;;  %s1066_s16 = smov [#allocation3]  }
  0x33   :  { %968 = vmatpush3.bf16.msra.mxu1 %v1032_v36  ;;  %v1035_v58 = vld [vmem:[%s1402_s1 + $0x118] sm:$0xff]   ;;  %v1036_v60 = vld [vmem:[#allocation2 + $0x10] ss:$0 sps:$4 sm:$0xff]   ;;  %v887_v4 = vld [vmem:[%s1403_s2] ss:$0 sm:$0xff]  ;;  %v829_v36 = vlaneseq  ;;  %s850_s17 = sshll.u32 %s1066_s16, 4  ;;  %s851_s17 = int_to_ptr.vmem [resolvable:$true] %s850_s17 }
  0x34   :  { %s1039_s18 = scalar_lea.vmem %s851_s17, 128  ;;  %p1044_p1 = scmp.lt.s32.totalorder %s851_s17, %s851_s17 }
  0x35   :  { %p1040_p0 = scmp.ne.s32.totalorder %s851_s17, %s1039_s18  ;;  %p1045_p2 = scmp.lt.s32.totalorder %s1039_s18, %s1039_s18 }
  0x37   :  { %p1046_p3 = por %p1045_p2, %p1044_p1 }
  0x39   :  { %p1047_p4 = pnand %p1046_p3, %p1040_p0 }
  0x74   :  { %v60_v18 = vpop.permute.xlu0 %59 }
  0x75   :  { %63 = vst.msk [vmem:[#allocation2] sm:$0x1] %vm62_vm7, %v60_v18  ;;  %v830_v18 = vshrl.u32 %v829_v36, 7 }
  0x76   :  { %v97_v37 = vpop.permute.xlu1 %96 }
  0x77   :  { %100 = vst.msk [vmem:[#allocation2] sm:$0x8] %vm99_vm8, %v97_v37  ;;  %v824_v37 = vld [vmem:[%s1404_s3] sm:$0x1] }
  0x78   :  { %v138_v38 = vpop.permute.xlu0 %137 }
  0x79   :  { %140 = vst.msk [vmem:[#allocation2 + $0x4] sm:$0x1] %vm62_vm7, %v138_v38  ;;  %v831_v38 = vsub.s32 0, %v830_v18 }
  0x7b   :  { %v89_v39 = vpop.permute.xlu1 %88 }
  0x7c   :  { %92 = vst.msk [vmem:[#allocation2] sm:$0x4] %vm91_vm9, %v89_v39 }
  0x7e   :  { %v75_v40 = vpop.permute.xlu0 %74 }
  0x7f   :  { %v152_v41 = vpop.permute.xlu1 %151  ;;  %78 = vst.msk [vmem:[#allocation2] sm:$0x2] %vm77_vm10, %v75_v40 }
  0x80   :  { %154 = vst.msk [vmem:[#allocation2 + $0x4] sm:$0x2] %vm77_vm10, %v152_v41 }
  0x82   :  { %v165_v42 = vpop.permute.xlu0 %164 }
  0x83   :  { %v172_v43 = vpop.permute.xlu1 %171  ;;  %167 = vst.msk [vmem:[#allocation2 + $0x4] sm:$0x4] %vm91_vm9, %v165_v42  ;;  %v930_v42 = vld [vmem:[%s1405_s4] ss:$0 sm:$0xff] }
  0x84   :  { %174 = vst.msk [vmem:[#allocation2 + $0x4] sm:$0x8] %vm99_vm8, %v172_v43 }
  0x86   :  { %v217_v44 = vpop.permute.xlu0 %216 }
  0x87   :  { %v225_v45 = vpop.permute.xlu1 %224  ;;  %219 = vst.msk [vmem:[#allocation2 + $0x8] sm:$0x1] %vm62_vm7, %v217_v44 }
  0x88   :  { %227 = vst.msk [vmem:[#allocation2 + $0x8] sm:$0x2] %vm77_vm10, %v225_v45 }
  0x8a   :  { %v232_v46 = vpop.permute.xlu0 %231 }
  0x8b   :  { %v244_v47 = vpop.permute.xlu1 %243  ;;  %234 = vst.msk [vmem:[#allocation2 + $0x8] sm:$0x4] %vm91_vm9, %v232_v46  ;;  %v368_v48 = vld [vmem:[#allocation2] sm:$0xff] }
  0x8c   :  { %246 = vst.msk [vmem:[#allocation2 + $0x8] sm:$0x8] %vm99_vm8, %v244_v47  ;;  %v888_v49 = vcombine.low %v368_v48, %v368_v48  ;;  %v889_v50 = vcombine.high %v368_v48, %v368_v48 }
  0x8e   :  { %719 = vmatprep.mubr.bf16.mxu0 %v889_v50  ;;  %v295_v52 = vpop.permute.xlu0 %294 }
  0x8f   :  { %v303_v53 = vpop.permute.xlu1 %302  ;;  %297 = vst.msk [vmem:[#allocation2 + $0xc] sm:$0x1] %vm62_vm7, %v295_v52  ;;  %720 = vmatmul.mubr.bf16.vlgmr.msra.gmra.mrb[0].mxu0 %v888_v49 }
  0x90   :  { %305 = vst.msk [vmem:[#allocation2 + $0xc] sm:$0x2] %vm77_vm10, %v303_v53  ;;  %981 = vmatpush3.bf16.msra.mxu0 %v1024_v51  ;;  %988 = vmatprep.mubr.msk.bf16.mxu0 %vm1065_vm11, %v1064_v12 }
  0x91   :  { %982 = vmatprep.subr.bf16.mxu0 %v1064_v12 }
  0x92   :  { %v309_v55 = vpop.permute.xlu0 %308 }
  0x93   :  { %v325_v56 = vpop.permute.xlu1 %324  ;;  %311 = vst.msk [vmem:[#allocation2 + $0xc] sm:$0x4] %vm91_vm9, %v309_v55 }
  0x94   :  { %327 = vst.msk [vmem:[#allocation2 + $0xc] sm:$0x8] %vm99_vm8, %v325_v56  ;;  %983 = vmatpush3.bf16.msra.mxu0 %v1027_v54 }
  0x95   :  { %984 = vmatprep.subr.bf16.mxu0 %v1064_v12 }
  0x98   :  { %985 = vmatpush3.bf16.msra.mxu0 %v1030_v57 }
  0x99   :  { %986 = vmatprep.subr.bf16.mxu0 %v1064_v12 }
  0x9b   :  { %v369_v59 = vld [vmem:[#allocation2 + $0x8] sm:$0xff] }
  0x9c   :  { %v890_v61 = vcombine.low %v369_v59, %v369_v59  ;;  %v891_v62 = vcombine.high %v369_v59, %v369_v59  ;;  %987 = vmatpush3.bf16.msra.mxu0 %v1035_v58 }
  0x9e   :  { %759 = vmatprep.mubr.bf16.mxu1 %v891_v62 }
  0x9f   :  { %760 = vmatmul.mubr.bf16.vlgmr.msra.gmra.mrb[0].mxu1 %v890_v61  ;;  %989 = vmatmul.mubr.msk.bf16.vlgmr.msra.gmra.mrb[4].mxu0 %vm683_vm12, %v1036_v60 }
 0x162   :  { %v947_v63 = vpop.f32.mrb[0].mxu0 }
 0x163   :  { %v948_v0 = vpop.f32.mrb[1].mxu0 }
 0x164   :  { %v949_v1 = vadd.f32 %v948_v0, %v947_v63  ;;  %v950_v2 = vpop.f32.mrb[2].mxu0 }
 0x165   :  { %v951_v3 = vpop.f32.mrb[3].mxu0 }
 0x166   :  { %v722_v9 = vadd.f32 %v949_v1, %v887_v4 }
 0x172   :  { %v969_v5 = vpop.f32.mrb[0].mxu1  ;;  %v801_v6 = vpop.f32.mrb[4].mxu0 }
 0x173   :  { %v970_v7 = vpop.f32.mrb[1].mxu1  ;;  %v990_v8 = vpop.f32.mrb[5].mxu0 }
 0x174   :  { %v971_v10 = vadd.f32 %v970_v7, %v969_v5  ;;  %v972_v11 = vpop.f32.mrb[2].mxu1  ;;  %v804_v12 = vpop.f32.mrb[6].mxu0 }
 0x175   :  { %v973_v13 = vpop.f32.mrb[3].mxu1  ;;  %v991_v14 = vpop.f32.mrb[7].mxu0 }
 0x176   :  { %v762_v15 = vadd.f32 %v971_v10, %v722_v9 }
 0x178   :  { %v802_v16 = vadd.f32 %v801_v6, %v762_v15 }
 0x17a   :  { %v807_v17 = vmax.f32 %v802_v16, 0.0 }
 0x17c   :  { %v808_v19 = vrot.slane %v807_v17, 4 }
 0x17e   :  { %v809_v20 = vadd.f32 %v808_v19, %v807_v17 }
 0x180   :  { %v810_v21 = vrot.slane %v809_v20, 2 }
 0x182   :  { %v811_v22 = vadd.f32 %v810_v21, %v809_v20 }
 0x184   :  { %v812_v23 = vrot.slane %v811_v22, 1 }
 0x186   :  { %v813_v24 = vadd.f32 %v812_v23, %v811_v22 }
 0x188   :  { %v814_v25 = vmul.f32 0.125, %v813_v24 }
 0x18a   :  { %v815_v26 = vsub.f32 %v807_v17, %v814_v25 }
 0x18c   :  { %v816_v27 = vmul.f32 %v815_v26, %v815_v26 }
 0x18e   :  { %v817_v28 = vrot.slane %v816_v27, 4 }
 0x190   :  { %v818_v29 = vadd.f32 %v817_v28, %v816_v27 }
 0x192   :  { %v819_v30 = vrot.slane %v818_v29, 2 }
 0x194   :  { %v820_v31 = vadd.f32 %v819_v30, %v818_v29 }
 0x196   :  { %v821_v32 = vrot.slane %v820_v31, 1 }
 0x198   :  { %v822_v33 = vadd.f32 %v821_v32, %v820_v31 }
 0x19a   :  { %v823_v34 = vmul.f32 0.125, %v822_v33 }
 0x19c   :  { %v825_v35 = vadd.f32 1e-05, %v823_v34 }
 0x19e   :  { %1037 = vrsqrt.f32 %v825_v35 }
 0x1a8   :  { %v1038_v39 = vpop.eup %1037 }
 0x1a9   :  { %v827_v40 = vmul.f32 %v1038_v39, %v824_v37 }
 0x1ab   :  { %v832_v41 = vrot.slane %v827_v40, %v831_v38 }
 0x1ad   :  { %v834_v43 = vmul.f32 %v832_v41, %v815_v26 }
 0x1af   :  { %v842_v44 = vadd.f32 %v930_v42, %v834_v43 }
 0x1b1   :  { %843 = vst [vmem:[#allocation3] sm:$0xff] %v842_v44 }
 0x1b2   :  { %1050 = shalt.err (!%p1047_p4)
}
 0x1b3   :  { %s1051_s20 = scalar_lea.hbm %s1406_s5, 128 }
 0x1b4   :  { %p1052_p5 = scmp.ne.s32.totalorder %s1406_s5, %s1051_s20  ;;  %p1055_p6 = scmp.lt.u32.totalorder %s1051_s20, %s1406_s5 }
 0x1b6   :  { %p1057_p7 = pnand %p1055_p6, %p1052_p5 }
 0x1b8   :  { %1060 = shalt.err (!%p1057_p7)
}
 0x1b9   :  { %853 = dma.vmem_to_hbm [thread:$0]  %s851_s17, 128, %s1406_s5, [#allocation4]  }
 0x1ba   :  { %1061 = dma.done.wait [#allocation4], 128  }
 0x1bb   :  { %1062 = vsyncadd [#allocation4], 4294967168 }
 0x1bc   :  { %857 = vsyncpa [#allocation4], 1 }

// kernel: encoder_forward.4
= control target key start
LH: loop header
LB: loop body
LE: loop exit
PB: predicated region body
PF: predicated region fallthrough
CT: control target
= control target key end

     0   :  { %s1553_s26 = smov 32   ;;  %s1554_s27 = smov 64   ;;  %vm65_vm0 = vcmask 261126   ;;  %vm39_vm1 = vcmask 257026   ;;  %vm47_vm2 = vcmask 259076   ;;  %vm22_vm3 = vcmask 254976   ;;  %s2088_s0 = inlined_call_operand.vmem [shape: bf16[4,50,32], index: 0, kind: input, shape index: {}]   ;;  %s2089_s1 = inlined_call_operand.vmem [shape: bf16[288,64], index: 1, kind: input, shape index: {}]   ;;  %s2090_s2 = inlined_call_operand.vmem [shape: f32[1,64], index: 2, kind: input, shape index: {}]   ;;  %s2091_s3 = inlined_call_operand.vmem [shape: f32[1,64], index: 3, kind: input, shape index: {}]   ;;  %s2092_s4 = inlined_call_operand.vmem [shape: f32[1,64], index: 4, kind: input, shape index: {}]   ;;  %s2093_s5 = inlined_call_operand.vmem [shape: f32[32,64], index: 5, kind: output, shape index: {}]  }
   0x1   :  { %v1464_v0 = vld [vmem:[%s2088_s0 + $0x40] ss:$0 sps:$4 sm:$0x33]   ;;  %v1465_v1 = vld [vmem:[%s2088_s0 + $0x38] sm:$0x18]   ;;  %s1555_s29 = smov 96  }
   0x2   :  { %v576_v2 = vrot.slane %v1464_v0, 2  ;;  %v1466_v3 = vld [vmem:[%s2088_s0 + $0x3c] ss:$0 sps:$4 sm:$0xee]   ;;  %v551_v4 = vrot.slane %v1465_v1, 1  ;;  %v1525_v26 = vld [vmem:[%s2089_s1 + $0x40] sm:$0xff]  }
   0x3   :  { %v1467_v5 = vld [vmem:[%s2088_s0 + $0x1c] ss:$0 sps:$4 sm:$0x33]   ;;  %v561_v6 = vshrl.u32 %v1466_v3, 16  ;;  %v564_v7 = vshll.u32 %v1466_v3, 16  ;;  %1421 = vmatprep.subr.bf16.mxu0 %v1525_v26  ;;  %v1526_v0 = vld [vmem:[%s2089_s1] sm:$0xff]  }
   0x4   :  { %577 = vrot.lane.b32.xlu1 %v576_v2, %s1553_s26  ;;  %552 = vrot.lane.b32.xlu0 %v551_v4, %s1553_s26  ;;  %v1468_v8 = vld [vmem:[%s2088_s0 + $0x1c] sm:$0x1c]   ;;  %v1469_v11 = vld [vmem:[%s2088_s0 + $0x38] ss:$0 sps:$4 sm:$0x77]   ;;  %vm1096_vm4 = vcmask 261120  }
   0x5   :  { %v563_v9 = vrot.slane %v561_v6, 5  ;;  %v566_v10 = vrot.slane %v564_v7, 6  ;;  %v129_v12 = vshrl.u32 %v1468_v8, 16  ;;  %v131_v13 = vshll.u32 %v1468_v8, 16  ;;  %v1470_v14 = vld [vmem:[%s2088_s0 + $0x20] sm:$0x38]   ;;  %1422 = vmatpush3.bf16.msra.mxu0 %v1526_v0 }
   0x6   :  { %v534_v16 = vshrl.u32 %v1469_v11, 16  ;;  %v536_v17 = vshll.u32 %v1469_v11, 16  ;;  %v158_v19 = vshrl.u32 %v1470_v14, 16  ;;  %v161_v20 = vshll.u32 %v1470_v14, 16  ;;  %v1473_v28 = vld [vmem:[%s2088_s0] sm:$0x1c]  }
   0x7   :  { %v567_v15 = vor.u32 %v566_v10, %v563_v9  ;;  %v133_v18 = vrot.slane %v131_v13, 1  ;;  %v1471_v21 = vld [vmem:[%s2088_s0 + $0x20] ss:$0 sps:$4 sm:$0x66]   ;;  %v642_v32 = vshrl.u32 %v1473_v28, 16  ;;  %v645_v33 = vshll.u32 %v1473_v28, 16 }
   0x8   :  { %116 = vrot.lane.b32.xlu0 %v1467_v5, %s1553_s26  ;;  %v538_v22 = vrot.slane %v536_v17, 1  ;;  %v160_v24 = vrot.slane %v158_v19, 5  ;;  %v163_v25 = vrot.slane %v161_v20, 6  ;;  %v144_v29 = vrot.slane %v1471_v21, 5  ;;  %v1475_v34 = vld [vmem:[%s2088_s0 + $0x4] sm:$0x38]  }
   0x9   :  { %568 = vrot.lane.b32.xlu1 %v567_v15, %s1553_s26  ;;  %v134_v23 = vor.u32 %v133_v18, %v129_v12  ;;  %v1472_v30 = vld [vmem:[%s2088_s0 + $0x4] ss:$0 sps:$4 sm:$0x66]   ;;  %v644_v35 = vrot.slane %v642_v32, 2  ;;  %v647_v36 = vrot.slane %v645_v33, 3  ;;  %v670_v37 = vshrl.u32 %v1475_v34, 16 }
   0xa   :  { %v539_v27 = vor.u32 %v538_v22, %v534_v16  ;;  %v164_v31 = vor.u32 %v163_v25, %v160_v24  ;;  %v1477_v38 = vld [vmem:[%s2088_s0] ss:$0 sps:$4 sm:$0x77]   ;;  %v657_v39 = vrot.slane %v1472_v30, 7  ;;  %v673_v42 = vshll.u32 %v1475_v34, 16  ;;  %v1527_v5 = vld [vmem:[%s2089_s1 + $0x48] sm:$0xff]  }
   0xb   :  { %v648_v40 = vor.u32 %v647_v36, %v644_v35  ;;  %v672_v41 = vrot.slane %v670_v37, 7  ;;  %v229_v43 = vshll.u32 %v1477_v38, 16  ;;  %v1479_v44 = vld [vmem:[%s2088_s0 + $0x4] ss:$0 sps:$4 sm:$0xee]   ;;  %v227_v47 = vshrl.u32 %v1477_v38, 16  ;;  %1423 = vmatprep.subr.bf16.mxu0 %v1527_v5 }
   0xc   :  { %540 = vrot.lane.b32.xlu0 %v539_v27, %s1553_s26  ;;  %v1474_v45 = vld [vmem:[%s2088_s0 + $0x8] ss:$0 sps:$4 sm:$0xcc]   ;;  %v1476_v46 = vld [vmem:[%s2088_s0] sm:$0x18]   ;;  %v256_v48 = vshrl.u32 %v1479_v44, 16 }
   0xd   :  { %135 = vrot.lane.b32.xlu1 %v134_v23, %s1553_s26  ;;  %v675_v49 = vor.u32 %v673_v42, %v672_v41  ;;  %v231_v50 = vrot.slane %v229_v43, 1  ;;  %v259_v51 = vshll.u32 %v1479_v44, 16  ;;  %v1481_v52 = vld [vmem:[%s2088_s0 + $0x1c] sm:$0x1c]   ;;  %v245_v53 = vrot.slane %v1476_v46, 1  ;;  %v1528_v9 = vld [vmem:[%s2089_s1 + $0x8] sm:$0xff]  }
   0xe   :  { %v1478_v54 = vld [vmem:[%s2088_s0 + $0x8] ss:$0 sps:$4 sm:$0x33]   ;;  %v258_v55 = vrot.slane %v256_v48, 5  ;;  %v750_v56 = vshrl.u32 %v1481_v52, 16  ;;  %v753_v59 = vshll.u32 %v1481_v52, 16  ;;  %1424 = vmatpush3.bf16.msra.mxu0 %v1528_v9 }
   0xf   :  { %v232_v57 = vor.u32 %v231_v50, %v227_v47  ;;  %v261_v58 = vrot.slane %v259_v51, 6  ;;  %v1483_v60 = vld [vmem:[%s2088_s0 + $0x20] sm:$0x38]   ;;  %v1480_v61 = vld [vmem:[%s2088_s0 + $0x20] ss:$0 sps:$4 sm:$0x66]  }
  0x10   :  { %145 = vrot.lane.b32.xlu0 %v144_v29, %s1553_s26  ;;  %v272_v62 = vrot.slane %v1478_v54, 2  ;;  %v752_v63 = vrot.slane %v750_v56, 2  ;;  %v755_v2 = vrot.slane %v753_v59, 3  ;;  %v778_v3 = vshrl.u32 %v1483_v60, 16  ;;  %v1484_v4 = vld [vmem:[%s2088_s0 + $0x38] sm:$0x1c]  }
  0x11   :  { %165 = vrot.lane.b32.xlu1 %v164_v31, %s1553_s26  ;;  %v262_v1 = vor.u32 %v261_v58, %v258_v55  ;;  %v765_v6 = vrot.slane %v1480_v61, 7  ;;  %v781_v7 = vshll.u32 %v1483_v60, 16  ;;  %v1486_v8 = vld [vmem:[%s2088_s0 + $0x3c] sm:$0x38]   ;;  %v351_v12 = vshll.u32 %v1484_v4, 16  ;;  %v1529_v14 = vld [vmem:[%s2089_s1 + $0x50] sm:$0xff]  }
  0x12   :  { %v756_v10 = vor.u32 %v755_v2, %v752_v63  ;;  %v780_v11 = vrot.slane %v778_v3, 7  ;;  %v1488_v13 = vld [vmem:[%s2088_s0 + $0x44] sm:$0x38]   ;;  %v1482_v15 = vld [vmem:[%s2088_s0 + $0x24] ss:$0 sps:$4 sm:$0xcc]   ;;  %1425 = vmatprep.subr.bf16.mxu0 %v1529_v14 }
  0x13   :  { %v349_v16 = vshrl.u32 %v1484_v4, 16  ;;  %v353_v18 = vrot.slane %v351_v12, 1  ;;  %v378_v19 = vshrl.u32 %v1486_v8, 16  ;;  %v381_v20 = vshll.u32 %v1486_v8, 16  ;;  %v1530_v22 = vld [vmem:[%s2089_s1 + $0x10] sm:$0xff]   ;;  %v1531_v33 = vld [vmem:[%s2089_s1 + $0x58] sm:$0xff]  }
  0x14   :  { %649 = vrot.lane.b32.xlu0 %v648_v40, %s1554_s27  ;;  %v783_v17 = vor.u32 %v781_v7, %v780_v11  ;;  %v1487_v21 = vld [vmem:[%s2088_s0 + $0x3c] ss:$0 sps:$4 sm:$0x66]   ;;  %v1485_v23 = vld [vmem:[%s2088_s0 + $0x38] ss:$0 sps:$4 sm:$0x33]   ;;  %1426 = vmatpush3.bf16.msra.mxu0 %v1530_v22 }
  0x15   :  { %658 = vrot.lane.b32.xlu1 %v657_v39, %s1554_s27  ;;  %v598_v24 = vshrl.u32 %v1488_v13, 16  ;;  %v1490_v25 = vld [vmem:[%s2088_s0 + $0x4c] ss:$0 sps:$4 sm:$0x77]   ;;  %v601_v26 = vshll.u32 %v1488_v13, 16  ;;  %v354_v28 = vor.u32 %v353_v18, %v349_v16  ;;  %v380_v29 = vrot.slane %v378_v19, 5  ;;  %1427 = vmatprep.subr.bf16.mxu0 %v1531_v33 }
  0x16   :  { %v1493_v27 = vld [vmem:[%s2088_s0 + $0x28] ss:$0 sps:$4 sm:$0x77]   ;;  %v383_v30 = vrot.slane %v381_v20, 6  ;;  %v364_v34 = vrot.slane %v1487_v21, 5  ;;  %v623_v39 = vshrl.u32 %v1490_v25, 16 }
  0x17   :  { %v1489_v31 = vld [vmem:[%s2088_s0 + $0x44] ss:$0 sps:$4 sm:$0x66]   ;;  %v1495_v32 = vld [vmem:[%s2088_s0 + $0x2c] ss:$0 sps:$4 sm:$0xee]  }
  0x18   :  { %676 = vrot.lane.b32.xlu0 %v675_v49, %s1554_s27  ;;  %v600_v35 = vrot.slane %v598_v24, 1  ;;  %v603_v36 = vrot.slane %v601_v26, 2  ;;  %v1491_v37 = vld [vmem:[%s2088_s0 + $0x48] ss:$0 sps:$4 sm:$0xcc]   ;;  %v384_v38 = vor.u32 %v383_v30, %v380_v29  ;;  %v626_v40 = vshll.u32 %v1490_v25, 16 }
  0x19   :  { %684 = vrot.lane.b32.xlu1 %v1474_v45, %s1554_s27  ;;  %v1492_v41 = vld [vmem:[%s2088_s0 + $0x28] sm:$0x18]   ;;  %v177_v42 = vshll.u32 %v1493_v27, 16  ;;  %v1725_v43 = vld [vmem:[%s2088_s0 + $0x30] ss:$0 sps:$4 sm:$0x33]  }
  0x1a   :  { %v585_v44 = vrot.slane %v1489_v31, 1  ;;  %v202_v45 = vshrl.u32 %v1495_v32, 16  ;;  %v205_v46 = vshll.u32 %v1495_v32, 16  ;;  %v1730_v47 = vld [vmem:[%s2088_s0 + $0x10] ss:$0 sps:$4 sm:$0xee]   ;;  %v604_v49 = vor.u32 %v603_v36, %v600_v35 }
  0x1b   :  { %v1532_v48 = vld [vmem:[%s2089_s1 + $0x18] sm:$0xff]   ;;  %v625_v50 = vrot.slane %v623_v39, 2  ;;  %v628_v51 = vrot.slane %v626_v40, 3  ;;  %v192_v54 = vrot.slane %v1492_v41, 1  ;;  %v175_v55 = vshrl.u32 %v1493_v27, 16  ;;  %v1533_v14 = vld [vmem:[%s2089_s1 + $0x60] sm:$0xff]  }
  0x1c   :  { %233 = vrot.lane.b32.xlu0 %v232_v57, %s1554_s27  ;;  %v1498_v52 = vld [vmem:[%s2088_s0 + $0x14] sm:$0x1c]   ;;  %v179_v56 = vrot.slane %v177_v42, 1  ;;  %1428 = vmatpush3.bf16.msra.mxu0 %v1532_v48  ;;  %v217_v57 = vrot.slane %v1725_v43, 2  ;;  %v204_v58 = vrot.slane %v202_v45, 5  ;;  %v207_v61 = vrot.slane %v205_v46, 6 }
  0x1d   :  { %246 = vrot.lane.b32.xlu1 %v245_v53, %s1554_s27  ;;  %v613_v53 = vrot.slane %v1491_v37, 6  ;;  %v1744_v59 = vld [vmem:[%s2088_s0 + $0xc] sm:$0x18]   ;;  %v629_v63 = vor.u32 %v628_v51, %v625_v50  ;;  %v731_v0 = vshrl.u32 %v1498_v52, 16  ;;  %v734_v3 = vshll.u32 %v1498_v52, 16  ;;  %1429 = vmatprep.subr.bf16.mxu0 %v1533_v14  ;;  %v1534_v21 = vld [vmem:[%s2089_s1 + $0x20] sm:$0xff]  }
  0x1e   :  { %v1500_v60 = vld [vmem:[%s2088_s0 + $0xc] sm:$0x38]   ;;  %v1502_v2 = vld [vmem:[%s2088_s0 + $0x14] ss:$0 sps:$4 sm:$0x77]   ;;  %v708_v7 = vshll.u32 %v1730_v47, 16  ;;  %v208_v26 = vor.u32 %v207_v61, %v204_v58 }
  0x1f   :  { %v1763_v4 = vld [vmem:[%s2088_s0 + $0x10] ss:$0 sps:$4 sm:$0xcc]   ;;  %v295_v5 = vshrl.u32 %v1500_v60, 16  ;;  %v298_v8 = vshll.u32 %v1500_v60, 16  ;;  %v695_v11 = vrot.slane %v1744_v59, 3 }
  0x20   :  { %263 = vrot.lane.b32.xlu0 %v262_v1, %s1554_s27  ;;  %v1755_v1 = vld [vmem:[%s2088_s0 + $0xc] ss:$0 sps:$4 sm:$0x66]   ;;  %v1506_v9 = vld [vmem:[%s2088_s0 + $0x30] sm:$0x1c]   ;;  %v320_v12 = vshrl.u32 %v1502_v2, 16  ;;  %1430 = vmatpush3.bf16.msra.mxu0 %v1534_v21 }
  0x21   :  { %273 = vrot.lane.b32.xlu1 %v272_v62, %s1554_s27  ;;  %v705_v62 = vshrl.u32 %v1730_v47, 16  ;;  %v323_v13 = vshll.u32 %v1502_v2, 16  ;;  %v1780_v16 = vrot.slane %v731_v0, 4  ;;  %v1784_v18 = vrot.slane %v295_v5, 1  ;;  %v1790_v20 = vld [vmem:[%s2088_s0 + $0x28] sm:$0x18]  }
  0x22   :  { %v282_v19 = vrot.slane %v1755_v1, 1  ;;  %v1795_v22 = vrot.slane %v298_v8, 2  ;;  %v839_v25 = vshrl.u32 %v1506_v9, 16  ;;  %v1801_v27 = vrot.slane %v320_v12, 2  ;;  %v1809_v31 = vld [vmem:[%s2088_s0 + $0x44] sm:$0x18]  }
  0x23   :  { %v842_v30 = vshll.u32 %v1506_v9, 16  ;;  %v803_v32 = vrot.slane %v1790_v20, 3  ;;  %v1815_v33 = vld [vmem:[%s2088_s0 + $0x44] ss:$0 sps:$4 sm:$0x77]   ;;  %v1535_v35 = vld [vmem:[%s2089_s1 + $0x68] sm:$0xff]  }
  0x24   :  { %757 = vrot.lane.b32.xlu0 %v756_v10, %s1555_s29  ;;  %v180_v10 = vor.u32 %v179_v56, %v175_v55  ;;  %v1825_v37 = vrot.slane %v839_v25, 4  ;;  %v412_v43 = vrot.slane %v1809_v31, 1  ;;  %v1514_v45 = vld [vmem:[%s2088_s0 + $0x58] sm:$0x38]   ;;  %1431 = vmatprep.subr.bf16.mxu0 %v1535_v35  ;;  %v1536_v46 = vld [vmem:[%s2089_s1 + $0x28] sm:$0xff]   ;;  %v1537_v55 = vld [vmem:[%s2089_s1 + $0x70] sm:$0xff]  }
  0x25   :  { %766 = vrot.lane.b32.xlu1 %v765_v6, %s1555_s29  ;;  %v1768_v6 = vld [vmem:[%s2088_s0 + $0x2c] ss:$0 sps:$4 sm:$0xee]   ;;  %v1832_v42 = vrot.slane %v842_v30, 5  ;;  %v913_v51 = vld [vmem:[%s2088_s0 + $0x10] sm:$0xc]  ;;  %1432 = vmatpush3.bf16.msra.mxu0 %v1536_v46 }
  0x26   :  { %v813_v24 = vshrl.u32 %v1768_v6, 16  ;;  %v816_v29 = vshll.u32 %v1768_v6, 16  ;;  %v1499_v47 = vld [vmem:[%s2088_s0 + $0x14] ss:$0 sps:$4 sm:$0x33]   ;;  %v476_v52 = vshrl.u32 %v1514_v45, 16  ;;  %1433 = vmatprep.subr.bf16.mxu0 %v1537_v55 }
  0x27   :  { %v1847_v48 = vld [vmem:[%s2088_s0 + $0x48] ss:$0 sps:$4 sm:$0xee]   ;;  %914 = vst.msk [vmem:[#allocation2 + $0x28] sm:$0xc] %vm39_vm1, %v913_v51  ;;  %v397_v58 = vshll.u32 %v1815_v33, 16 }
  0x28   :  { %784 = vrot.lane.b32.xlu0 %v783_v17, %s1555_s29  ;;  %v1782_v17 = vrot.slane %v734_v3, 5  ;;  %v1823_v36 = vrot.slane %v813_v24, 7  ;;  %v478_v60 = vrot.slane %v476_v52, 5  ;;  %v1516_v0 = vld [vmem:[%s2088_s0 + $0x54] sm:$0x1c]   ;;  %v422_v12 = vshrl.u32 %v1847_v48, 16 }
  0x29   :  { %792 = vrot.lane.b32.xlu1 %v1482_v15, %s1555_s29  ;;  %v707_v15 = vrot.slane %v705_v62, 7  ;;  %v1517_v2 = vld [vmem:[%s2088_s0 + $0x8] ss:$0 sps:$4 sm:$0x33]   ;;  %v1538_v3 = vld [vmem:[%s2089_s1 + $0x30] sm:$0xff]   ;;  %v453_v8 = vshrl.u32 %v1516_v0, 16 }
  0x2a   :  { %v737_v56 = vor.u32 %v1782_v17, %v1780_v16  ;;  %v455_v9 = vshll.u32 %v1516_v0, 16  ;;  %878 = vst.msk [vmem:[#allocation2 + $0x10] sm:$0x30] %vm47_vm2, %v1517_v2  ;;  %v1519_v16 = vld [vmem:[%s2088_s0 + $0x58] ss:$0 sps:$4 sm:$0x66]   ;;  %1434 = vmatpush3.bf16.msra.mxu0 %v1538_v3 }
  0x2b   :  { %v710_v39 = vor.u32 %v708_v7, %v707_v15  ;;  %v465_v24 = vrot.slane %v1519_v16, 5  ;;  %v1542_v25 = vld [vmem:[%s2089_s1 + $0x80] sm:$0xff]   ;;  %v1546_v51 = vld [vmem:[%s2089_s1 + $0x88] sm:$0xff]   ;;  %vm168_vm5 = vcmask 523526   ;;  %vm138_vm6 = vcmask 519426  }
  0x2c   :  { %336 = vrot.lane.b32.xlu0 %v1485_v23, %s1555_s29  ;;  %v310_v23 = vrot.slane %v1763_v4, 6  ;;  %v457_v15 = vrot.slane %v455_v9, 1  ;;  %v21_v1 = vld [vmem:[%s2088_s0] sm:$0x3]  ;;  %1453 = vmatprep.subr.bf16.mxu1 %v1542_v25  ;;  %vm119_vm7 = vcmask 517376   ;;  %vm148_vm8 = vcmask 521476  }
  0x2d   :  { %355 = vrot.lane.b32.xlu1 %v354_v28, %s1555_s29  ;;  %v1803_v28 = vrot.slane %v323_v13, 3  ;;  %v1518_v13 = vld [vmem:[%s2088_s0 + $0x14] ss:$0 sps:$4 sm:$0x77]   ;;  %467 = vst.msk [vmem:[#allocation2 + $0x8] sm:$0x30] %vm47_vm2, %v465_v24  ;;  %1454 = vmatpush3.bf16.msra.mxu1 %v1542_v25 }
  0x2e   :  { %v920_v17 = vshrl.u32 %v1518_v13, 16  ;;  %v923_v21 = vshll.u32 %v1518_v13, 16  ;;  %23 = vst.msk [vmem:[#allocation2] sm:$0x3] %vm22_vm3, %v21_v1  ;;  %1455 = vmatprep.subr.bf16.mxu1 %v1546_v51  ;;  %vm249_vm9 = vcmask 781826   ;;  %vm236_vm10 = vcmask 779776  }
  0x2f   :  { %v1507_v4 = vld [vmem:[%s2088_s0 + $0x30] ss:$0 sps:$4 sm:$0x33]   ;;  %v1544_v3 = vld [vmem:[%s2088_s0 + $0x68] ss:$0 sps:$4 sm:$0x33]  }
  0x30   :  { %365 = vrot.lane.b32.xlu0 %v364_v34, %s1555_s29  ;;  %v1512_v34 = vld [vmem:[%s2088_s0 + $0x8] sm:$0x1c]   ;;  %v922_v30 = vrot.slane %v920_v17, 4  ;;  %v1549_v17 = vld [vmem:[%s2088_s0 + $0x14] ss:$0 sps:$4 sm:$0x33]  }
  0x31   :  { %385 = vrot.lane.b32.xlu1 %v384_v38, %s1555_s29  ;;  %v1513_v38 = vld [vmem:[%s2088_s0 + $0x14] sm:$0x18]   ;;  %v887_v40 = vshrl.u32 %v1512_v34, 16  ;;  %v890_v41 = vshll.u32 %v1512_v34, 16  ;;  %v925_v34 = vrot.slane %v923_v21, 5  ;;  %1456 = vmatpush3.bf16.msra.mxu1 %v1546_v51  ;;  %v108_v25 = vrot.slane %v1549_v17, 2 }
  0x32   :  { %v1550_v24 = vld [vmem:[%s2088_s0 + $0x10] ss:$0 sps:$4 sm:$0xee]   ;;  %vm276_vm11 = vcmask 785926   ;;  %vm266_vm12 = vcmask 783876   ;;  %vm358_vm13 = vcmask 1044226  }
  0x33   :  { %v892_v50 = vrot.slane %v890_v41, 5  ;;  %v1328_v41 = vld [vmem:[%s2088_s0 + $0x54] sm:$0x3]  ;;  %110 = vst.msk [vmem:[#allocation2 + $0x18] sm:$0xc0] %vm65_vm0, %v108_v25  ;;  %vm339_vm14 = vcmask 1042176  }
  0x34   :  { %586 = vrot.lane.b32.xlu0 %v585_v44, %s1553_s26  ;;  %v936_v44 = vrot.slane %v1513_v38, 5  ;;  %v1521_v38 = vld [vmem:[%s2088_s0 + $0xc] sm:$0x38]   ;;  %444 = vst.msk [vmem:[#allocation2 + $0x8] sm:$0x3] %vm22_vm3, %v1328_v41  ;;  %vm388_vm15 = vcmask 1048326  }
  0x35   :  { %605 = vrot.lane.b32.xlu1 %v604_v49, %s1553_s26  ;;  %v889_v49 = vrot.slane %v887_v40, 4  ;;  %v1522_v40 = vld [vmem:[%s2088_s0] sm:$0x1c]  }
  0x36   :  { %938 = vst.msk [vmem:[#allocation2 + $0x28] sm:$0xc0] %vm65_vm0, %v936_v44  ;;  %v818_v44 = vor.u32 %v816_v29, %v1823_v36  ;;  %v1524_v36 = vld [vmem:[%s2088_s0 + $0x4] ss:$0 sps:$4 sm:$0x66]  }
  0x37   :  { %v893_v59 = vor.u32 %v892_v50, %v889_v49  ;;  %v32_v49 = vshrl.u32 %v1522_v40, 16  ;;  %v34_v50 = vshll.u32 %v1522_v40, 16 }
  0x38   :  { %614 = vrot.lane.b32.xlu0 %v613_v53, %s1553_s26  ;;  %v479_v53 = vshll.u32 %v1514_v45, 16  ;;  %v1523_v45 = vld [vmem:[%s2088_s0 + $0x4] sm:$0x38]  }
  0x39   :  { %630 = vrot.lane.b32.xlu1 %v629_v63, %s1553_s26  ;;  %895 = vst.msk [vmem:[#allocation2 + $0x10] sm:$0xc0] %vm65_vm0, %v893_v59  ;;  %v57_v6 = vshrl.u32 %v1523_v45, 16  ;;  %v60_v29 = vshll.u32 %v1523_v45, 16  ;;  %v45_v59 = vrot.slane %v1524_v36, 5 }
  0x3a   :  { %v481_v61 = vrot.slane %v479_v53, 6  ;;  %v36_v53 = vrot.slane %v34_v50, 1 }
  0x3b   :  { %v59_v55 = vrot.slane %v57_v6, 5  ;;  %48 = vst.msk [vmem:[#allocation2] sm:$0x30] %vm47_vm2, %v45_v59 }
  0x3c   :  { %181 = vrot.lane.b32.xlu0 %v180_v10, %s1553_s26  ;;  %v482_v5 = vor.u32 %v481_v61, %v478_v60  ;;  %v1541_v10 = vld [vmem:[%s2089_s1 + $0x78] sm:$0xff]   ;;  %v845_v60 = vor.u32 %v1832_v42, %v1825_v37  ;;  %v37_v61 = vor.u32 %v36_v53, %v32_v49 }
  0x3d   :  { %193 = vrot.lane.b32.xlu1 %v192_v54, %s1553_s26  ;;  %v1515_v54 = vld [vmem:[%s2088_s0 + $0x4] ss:$0 sps:$4 sm:$0xee]   ;;  %1435 = vmatprep.subr.bf16.mxu0 %v1541_v10 }
  0x3e   :  { %v865_v62 = vshrl.u32 %v1515_v54, 16  ;;  %v868_v63 = vshll.u32 %v1515_v54, 16  ;;  %484 = vst.msk [vmem:[#allocation2 + $0x8] sm:$0xc0] %vm65_vm0, %v482_v5  ;;  %v425_v54 = vshll.u32 %v1847_v48, 16 }
  0x3f   :  { %40 = vst.msk [vmem:[#allocation2] sm:$0xc] %vm39_vm1, %v37_v61 }
  0x40   :  { %209 = vrot.lane.b32.xlu0 %v208_v26, %s1553_s26  ;;  %v867_v7 = vrot.slane %v865_v62, 7  ;;  %v326_v26 = vor.u32 %v1803_v28, %v1801_v27  ;;  %v904_v27 = vshrl.u32 %v1521_v38, 16  ;;  %v907_v28 = vshll.u32 %v1521_v38, 16 }
  0x41   :  { %218 = vrot.lane.b32.xlu1 %v217_v57, %s1553_s26  ;;  %v395_v57 = vshrl.u32 %v1815_v33, 16  ;;  %v1539_v33 = vld [vmem:[%s2088_s0 + $0x60] sm:$0x18]  }
  0x42   :  { %v870_v14 = vor.u32 %v868_v63, %v867_v7  ;;  %v906_v46 = vrot.slane %v904_v27, 3  ;;  %v1510_v63 = vld [vmem:[%s2088_s0 + $0x4c] ss:$0 sps:$4 sm:$0x33]   ;;  %v505_v31 = vrot.slane %v1539_v33, 1 }
  0x43   :  { %v437_v42 = vrot.slane %v1510_v63, 2  ;;  %v1545_v7 = vld [vmem:[%s2088_s0 + $0x64] ss:$0 sps:$4 sm:$0xee]  }
  0x44   :  { %696 = vrot.lane.b32.xlu0 %v695_v11, %s1554_s27  ;;  %v301_v11 = vor.u32 %v1795_v22, %v1784_v18  ;;  %v1520_v18 = vld [vmem:[%s2088_s0] sm:$0x18]   ;;  %872 = vst.msk [vmem:[#allocation2 + $0x10] sm:$0xc] %vm39_vm1, %v870_v14  ;;  %v458_v22 = vor.u32 %v457_v15, %v453_v8  ;;  %507 = vst.msk [vmem:[#allocation2 + $0x20] sm:$0xc] %vm39_vm1, %v505_v31 }
  0x45   :  { %711 = vrot.lane.b32.xlu1 %v710_v39, %s1554_s27  ;;  %v857_v35 = vrot.slane %v1520_v18, 3  ;;  %v1543_v39 = vld [vmem:[%s2089_s1 + $0x38] sm:$0xff]   ;;  %v526_v8 = vrot.slane %v1544_v3, 2  ;;  %v513_v10 = vshrl.u32 %v1545_v7, 16 }
  0x46   :  { %460 = vst.msk [vmem:[#allocation2 + $0x8] sm:$0xc] %vm39_vm1, %v458_v22  ;;  %1436 = vmatpush3.bf16.msra.mxu0 %v1543_v39  ;;  %v1548_v15 = vld [vmem:[%s2088_s0 + $0xc] ss:$0 sps:$4 sm:$0x77]  }
  0x47   :  { %859 = vst.msk [vmem:[#allocation2 + $0x10] sm:$0x3] %vm22_vm3, %v857_v35  ;;  %v515_v13 = vrot.slane %v513_v10, 5  ;;  %v72_v18 = vshrl.u32 %v1548_v15, 16  ;;  %v74_v22 = vshll.u32 %v1548_v15, 16 }
  0x48   :  { %719 = vrot.lane.b32.xlu0 %v1499_v47, %s1554_s27  ;;  %v909_v47 = vrot.slane %v907_v28, 4  ;;  %528 = vst.msk [vmem:[#allocation2 + $0x20] sm:$0xc0] %vm65_vm0, %v526_v8 }
  0x49   :  { %738 = vrot.lane.b32.xlu1 %v737_v56, %s1554_s27  ;;  %v62_v56 = vrot.slane %v60_v29, 6 }
  0x4a   :  { %v910_v52 = vor.u32 %v909_v47, %v906_v46 }
  0x4b   :  { %v63_v62 = vor.u32 %v62_v56, %v59_v55 }
  0x4c   :  { %283 = vrot.lane.b32.xlu0 %v282_v19, %s1554_s27  ;;  %v926_v19 = vor.u32 %v925_v34, %v922_v30  ;;  %912 = vst.msk [vmem:[#allocation2 + $0x28] sm:$0x3] %vm22_vm3, %v910_v52  ;;  %v95_v30 = vshrl.u32 %v1550_v24, 16  ;;  %v98_v34 = vshll.u32 %v1550_v24, 16 }
  0x4d   :  { %302 = vrot.lane.b32.xlu1 %v301_v11, %s1554_s27  ;;  %66 = vst.msk [vmem:[#allocation2] sm:$0xc0] %vm65_vm0, %v63_v62  ;;  %v516_v11 = vshll.u32 %v1545_v7, 16  ;;  %vm368_vm0 = vcmask 1046276  }
  0x4e   :  { %928 = vst.msk [vmem:[#allocation2 + $0x28] sm:$0x30] %vm47_vm2, %v926_v19  ;;  %v941_v37 = vld [vmem:[#allocation2 + $0x10] sm:$0xff]  ;;  %v97_v38 = vrot.slane %v95_v30, 5  ;;  %v100_v39 = vrot.slane %v98_v34, 6 }
  0x4f   :  { %1457 = vmatprep.mubr.msk.bf16.mxu1 %vm1096_vm4, %v941_v37  ;;  %v518_v14 = vrot.slane %v516_v11, 6  ;;  %v1399_v30 = vld [vmem:[%s2090_s2] ss:$0 sm:$0xff] }
  0x50   :  { %311 = vrot.lane.b32.xlu0 %v310_v23, %s1554_s27  ;;  %v399_v23 = vrot.slane %v397_v58, 1  ;;  %v424_v58 = vrot.slane %v422_v12, 5  ;;  %v1547_v12 = vld [vmem:[%s2088_s0 + $0xc] sm:$0x18]   ;;  %v101_v1 = vor.u32 %v100_v39, %v97_v38 }
  0x51   :  { %327 = vrot.lane.b32.xlu1 %v326_v26, %s1554_s27  ;;  %v87_v16 = vrot.slane %v1547_v12, 1  ;;  %v519_v21 = vor.u32 %v518_v14, %v515_v13  ;;  %v76_v26 = vrot.slane %v74_v22, 1 }
  0x52   :  { %v400_v20 = vor.u32 %v399_v23, %v395_v57  ;;  %v1540_v57 = vld [vmem:[%s2088_s0 + $0x60] ss:$0 sps:$4 sm:$0x77]   ;;  %103 = vst.msk [vmem:[#allocation2 + $0x18] sm:$0x30] %vm47_vm2, %v101_v1 }
  0x53   :  { %v492_v2 = vshll.u32 %v1540_v57, 16  ;;  %89 = vst.msk [vmem:[#allocation2 + $0x18] sm:$0xc] %vm39_vm1, %v87_v16  ;;  %v77_v35 = vor.u32 %v76_v26, %v72_v18  ;;  %vm1205_vm1 = vcmask 523264  }
  0x54   :  { %804 = vrot.lane.b32.xlu0 %v803_v32, %s1555_s29  ;;  %v427_v32 = vrot.slane %v425_v54, 6  ;;  %521 = vst.msk [vmem:[#allocation2 + $0x20] sm:$0x30] %vm47_vm2, %v519_v21 }
  0x55   :  { %819 = vrot.lane.b32.xlu1 %v818_v44, %s1555_s29  ;;  %v944_v0 = vld [vmem:[#allocation2 + $0x28] sm:$0xff]  ;;  %v494_v5 = vrot.slane %v492_v2, 1  ;;  %79 = vst.msk [vmem:[#allocation2 + $0x18] sm:$0x3] %vm22_vm3, %v77_v35 }
  0x56   :  { %v428_v48 = vor.u32 %v427_v32, %v424_v58  ;;  %1458 = vmatmul.mubr.msk.bf16.vlgmr.msra.gmra.mrb[0].mxu1 %vm1096_vm4, %v944_v0 }
  0x58   :  { %827 = vrot.lane.b32.xlu0 %v1507_v4, %s1555_s29 }
  0x59   :  { %846 = vrot.lane.b32.xlu1 %v845_v60, %s1555_s29 }
  0x5c   :  { %401 = vrot.lane.b32.xlu0 %v400_v20, %s1555_s29 }
  0x5d   :  { %413 = vrot.lane.b32.xlu1 %v412_v43, %s1555_s29  ;;  %v490_v43 = vshrl.u32 %v1540_v57, 16 }
  0x5f   :  { %v495_v9 = vor.u32 %v494_v5, %v490_v43 }
  0x60   :  { %429 = vrot.lane.b32.xlu0 %v428_v48, %s1555_s29 }
  0x61   :  { %438 = vrot.lane.b32.xlu1 %v437_v42, %s1555_s29  ;;  %497 = vst.msk [vmem:[#allocation2 + $0x20] sm:$0x3] %vm22_vm3, %v495_v9 }
  0x76   :  { %v578_v19 = vpop.permute.xlu1 %577  ;;  %v553_v27 = vpop.permute.xlu0 %552 }
  0x77   :  { %580 = vst.msk [vmem:[#allocation2 + $0x8] sm:$0xc0] %vm168_vm5, %v578_v19 }
  0x78   :  { %555 = vst.msk [vmem:[#allocation2 + $0x8] sm:$0xc] %vm138_vm6, %v553_v27 }
  0x7a   :  { %v117_v28 = vpop.permute.xlu0 %116 }
  0x7b   :  { %v569_v40 = vpop.permute.xlu1 %568  ;;  %120 = vst.msk [vmem:[#allocation2] sm:$0x3] %vm119_vm7, %v117_v28 }
  0x7c   :  { %571 = vst.msk [vmem:[#allocation2 + $0x8] sm:$0x30] %vm148_vm8, %v569_v40 }
  0x7e   :  { %v541_v44 = vpop.permute.xlu0 %540 }
  0x7f   :  { %v136_v41 = vpop.permute.xlu1 %135  ;;  %543 = vst.msk [vmem:[#allocation2 + $0x8] sm:$0x3] %vm119_vm7, %v541_v44 }
  0x80   :  { %139 = vst.msk [vmem:[#allocation2] sm:$0xc] %vm138_vm6, %v136_v41 }
  0x82   :  { %v146_v46 = vpop.permute.xlu0 %145 }
  0x83   :  { %v166_v45 = vpop.permute.xlu1 %165  ;;  %149 = vst.msk [vmem:[#allocation2] sm:$0x30] %vm148_vm8, %v146_v46 }
  0x84   :  { %169 = vst.msk [vmem:[#allocation2] sm:$0xc0] %vm168_vm5, %v166_v45 }
  0x86   :  { %v650_v49 = vpop.permute.xlu0 %649 }
  0x87   :  { %v659_v47 = vpop.permute.xlu1 %658  ;;  %652 = vst.msk [vmem:[#allocation2 + $0x8] sm:$0x3] %vm236_vm10, %v650_v49 }
  0x88   :  { %661 = vst.msk [vmem:[#allocation2 + $0x8] sm:$0xc] %vm249_vm9, %v659_v47 }
  0x8a   :  { %v677_v6 = vpop.permute.xlu0 %676 }
  0x8b   :  { %v685_v50 = vpop.permute.xlu1 %684  ;;  %679 = vst.msk [vmem:[#allocation2 + $0x8] sm:$0x30] %vm266_vm12, %v677_v6 }
  0x8c   :  { %687 = vst.msk [vmem:[#allocation2 + $0x8] sm:$0xc0] %vm276_vm11, %v685_v50 }
  0x8e   :  { %v234_v36 = vpop.permute.xlu0 %233 }
  0x8f   :  { %v247_v29 = vpop.permute.xlu1 %246  ;;  %237 = vst.msk [vmem:[#allocation2] sm:$0x3] %vm236_vm10, %v234_v36 }
  0x90   :  { %250 = vst.msk [vmem:[#allocation2] sm:$0xc] %vm249_vm9, %v247_v29 }
  0x92   :  { %v264_v4 = vpop.permute.xlu0 %263 }
  0x93   :  { %v274_v51 = vpop.permute.xlu1 %273  ;;  %267 = vst.msk [vmem:[#allocation2] sm:$0x30] %vm266_vm12, %v264_v4 }
  0x94   :  { %277 = vst.msk [vmem:[#allocation2] sm:$0xc0] %vm276_vm11, %v274_v51 }
  0x96   :  { %v758_v52 = vpop.permute.xlu0 %757 }
  0x97   :  { %v767_v23 = vpop.permute.xlu1 %766  ;;  %760 = vst.msk [vmem:[#allocation2 + $0x8] sm:$0x3] %vm339_vm14, %v758_v52 }
  0x98   :  { %769 = vst.msk [vmem:[#allocation2 + $0x8] sm:$0xc] %vm358_vm13, %v767_v23 }
  0x9a   :  { %v785_v54 = vpop.permute.xlu0 %784 }
  0x9b   :  { %v793_v53 = vpop.permute.xlu1 %792  ;;  %787 = vst.msk [vmem:[#allocation2 + $0x8] sm:$0x30] %vm368_vm0, %v785_v54 }
  0x9c   :  { %795 = vst.msk [vmem:[#allocation2 + $0x8] sm:$0xc0] %vm388_vm15, %v793_v53 }
  0x9e   :  { %v337_v56 = vpop.permute.xlu0 %336 }
  0x9f   :  { %v356_v55 = vpop.permute.xlu1 %355  ;;  %340 = vst.msk [vmem:[#allocation2] sm:$0x3] %vm339_vm14, %v337_v56 }
  0xa0   :  { %359 = vst.msk [vmem:[#allocation2] sm:$0xc] %vm358_vm13, %v356_v55 }
  0xa2   :  { %v366_v60 = vpop.permute.xlu0 %365 }
  0xa3   :  { %v386_v59 = vpop.permute.xlu1 %385  ;;  %v940_v58 = vld [vmem:[#allocation2 + $0x8] sm:$0xff]  ;;  %369 = vst.msk [vmem:[#allocation2] sm:$0x30] %vm368_vm0, %v366_v60 }
  0xa4   :  { %389 = vst.msk [vmem:[#allocation2] sm:$0xc0] %vm388_vm15, %v386_v59  ;;  %1135 = vmatprep.mubr.bf16.mxu0 %v940_v58 }
  0xa6   :  { %v587_v62 = vpop.permute.xlu0 %586 }
  0xa7   :  { %v606_v61 = vpop.permute.xlu1 %605  ;;  %589 = vst.msk [vmem:[#allocation2 + $0x20] sm:$0x3] %vm119_vm7, %v587_v62 }
  0xa8   :  { %608 = vst.msk [vmem:[#allocation2 + $0x20] sm:$0xc] %vm138_vm6, %v606_v61 }
  0xaa   :  { %v615_v20 = vpop.permute.xlu0 %614 }
  0xab   :  { %v631_v63 = vpop.permute.xlu1 %630  ;;  %v939_v32 = vld [vmem:[#allocation2] sm:$0xff]  ;;  %617 = vst.msk [vmem:[#allocation2 + $0x20] sm:$0x30] %vm148_vm8, %v615_v20 }
  0xac   :  { %633 = vst.msk [vmem:[#allocation2 + $0x20] sm:$0xc0] %vm168_vm5, %v631_v63  ;;  %1136 = vmatmul.mubr.bf16.vlgmr.msra.gmra.mrb[0].mxu0 %v939_v32 }
  0xae   :  { %v182_v42 = vpop.permute.xlu0 %181 }
  0xaf   :  { %v194_v37 = vpop.permute.xlu1 %193  ;;  %184 = vst.msk [vmem:[#allocation2 + $0x18] sm:$0x3] %vm119_vm7, %v182_v42 }
  0xb0   :  { %196 = vst.msk [vmem:[#allocation2 + $0x18] sm:$0xc] %vm138_vm6, %v194_v37 }
  0xb2   :  { %v210_v0 = vpop.permute.xlu0 %209 }
  0xb3   :  { %v219_v48 = vpop.permute.xlu1 %218  ;;  %212 = vst.msk [vmem:[#allocation2 + $0x18] sm:$0x30] %vm148_vm8, %v210_v0 }
  0xb4   :  { %221 = vst.msk [vmem:[#allocation2 + $0x18] sm:$0xc0] %vm168_vm5, %v219_v48 }
  0xb6   :  { %v697_v57 = vpop.permute.xlu0 %696 }
  0xb7   :  { %v712_v33 = vpop.permute.xlu1 %711  ;;  %699 = vst.msk [vmem:[#allocation2 + $0x20] sm:$0x3] %vm236_vm10, %v697_v57 }
  0xb8   :  { %714 = vst.msk [vmem:[#allocation2 + $0x20] sm:$0xc] %vm249_vm9, %v712_v33 }
  0xba   :  { %v720_v43 = vpop.permute.xlu0 %719 }
  0xbb   :  { %v739_v31 = vpop.permute.xlu1 %738  ;;  %722 = vst.msk [vmem:[#allocation2 + $0x20] sm:$0x30] %vm266_vm12, %v720_v43 }
  0xbc   :  { %741 = vst.msk [vmem:[#allocation2 + $0x20] sm:$0xc0] %vm276_vm11, %v739_v31 }
  0xbe   :  { %v284_v3 = vpop.permute.xlu0 %283 }
  0xbf   :  { %v303_v2 = vpop.permute.xlu1 %302  ;;  %286 = vst.msk [vmem:[#allocation2 + $0x18] sm:$0x3] %vm236_vm10, %v284_v3 }
  0xc0   :  { %305 = vst.msk [vmem:[#allocation2 + $0x18] sm:$0xc] %vm249_vm9, %v303_v2 }
  0xc2   :  { %v312_v7 = vpop.permute.xlu0 %311 }
  0xc3   :  { %v328_v5 = vpop.permute.xlu1 %327  ;;  %314 = vst.msk [vmem:[#allocation2 + $0x18] sm:$0x30] %vm266_vm12, %v312_v7 }
  0xc4   :  { %330 = vst.msk [vmem:[#allocation2 + $0x18] sm:$0xc0] %vm276_vm11, %v328_v5 }
  0xc6   :  { %v805_v9 = vpop.permute.xlu0 %804 }
  0xc7   :  { %v820_v8 = vpop.permute.xlu1 %819  ;;  %807 = vst.msk [vmem:[#allocation2 + $0x20] sm:$0x3] %vm339_vm14, %v805_v9 }
  0xc8   :  { %822 = vst.msk [vmem:[#allocation2 + $0x20] sm:$0xc] %vm358_vm13, %v820_v8 }
  0xca   :  { %v828_v11 = vpop.permute.xlu0 %827 }
  0xcb   :  { %v847_v10 = vpop.permute.xlu1 %846  ;;  %830 = vst.msk [vmem:[#allocation2 + $0x20] sm:$0x30] %vm368_vm0, %v828_v11 }
  0xcc   :  { %849 = vst.msk [vmem:[#allocation2 + $0x20] sm:$0xc0] %vm388_vm15, %v847_v10 }
  0xce   :  { %v402_v13 = vpop.permute.xlu0 %401 }
  0xcf   :  { %v414_v12 = vpop.permute.xlu1 %413  ;;  %404 = vst.msk [vmem:[#allocation2 + $0x18] sm:$0x3] %vm339_vm14, %v402_v13 }
  0xd0   :  { %416 = vst.msk [vmem:[#allocation2 + $0x18] sm:$0xc] %vm358_vm13, %v414_v12 }
  0xd2   :  { %v430_v15 = vpop.permute.xlu0 %429 }
  0xd3   :  { %v439_v14 = vpop.permute.xlu1 %438  ;;  %v943_v16 = vld [vmem:[#allocation2 + $0x20] sm:$0xff]  ;;  %432 = vst.msk [vmem:[#allocation2 + $0x18] sm:$0x30] %vm368_vm0, %v430_v15 }
  0xd4   :  { %441 = vst.msk [vmem:[#allocation2 + $0x18] sm:$0xc0] %vm388_vm15, %v439_v14  ;;  %1143 = vmatprep.mubr.bf16.mxu0 %v943_v16 }
  0xdb   :  { %v942_v17 = vld [vmem:[#allocation2 + $0x18] sm:$0xff] }
  0xdc   :  { %1144 = vmatmul.mubr.bf16.gmra.mrb[4].mxu0 %v942_v17 }
 0x129   :  { %v1459_v21 = vpop.f32.mrb[0].mxu1 }
 0x12a   :  { %v1186_v18 = vpop.f32.mrb[1].mxu1 }
 0x12b   :  { %v1460_v22 = vpop.f32.mrb[2].mxu1 }
 0x12c   :  { %v1189_v24 = vpop.f32.mrb[3].mxu1 }
 0x17f   :  { %v1437_v25 = vpop.f32.mrb[0].mxu0 }
 0x180   :  { %v1438_v26 = vpop.f32.mrb[1].mxu0 }
 0x181   :  { %v1439_v34 = vadd.f32 %v1438_v26, %v1437_v25  ;;  %v1440_v35 = vpop.f32.mrb[2].mxu0  ;;  %v1242_v25 = vld [vmem:[%s2091_s3] sm:$0x1] }
 0x182   :  { %v1441_v38 = vpop.f32.mrb[3].mxu0 }
 0x183   :  { %v1442_v39 = vadd.f32 %v1441_v38, %v1440_v35  ;;  %v1138_v1 = vadd.f32 %v1439_v34, %v1399_v30  ;;  %v1420_v38 = vld [vmem:[%s2092_s4] ss:$0 sm:$0xff] }
 0x185   :  { %v1187_v19 = vadd.f32 %v1186_v18, %v1138_v1  ;;  %v1141_v27 = vadd.f32 %v1442_v39, %v1399_v30 }
 0x187   :  { %v1201_v28 = vmax.f32 %v1187_v19, 0.0  ;;  %v1190_v40 = vadd.f32 %v1189_v24, %v1141_v27 }
 0x189   :  { %v1202_v41 = vmax.f32 %v1190_v40, 0.0  ;;  %v1206_v44 = vsel %vm1205_vm1, %v1201_v28, 0.0 }
 0x18b   :  { %v1207_v45 = vsel %vm1205_vm1, %v1202_v41, 0.0 }
 0x18c   :  { %v1208_v46 = vadd.f32 %v1207_v45, %v1206_v44 }
 0x1af   :  { %v1443_v47 = vpop.f32.mrb[4].mxu0 }
 0x1b0   :  { %v1444_v49 = vpop.f32.mrb[5].mxu0 }
 0x1b1   :  { %v1445_v50 = vadd.f32 %v1444_v49, %v1443_v47  ;;  %v1446_v6 = vpop.f32.mrb[6].mxu0 }
 0x1b2   :  { %v1447_v29 = vpop.f32.mrb[7].mxu0 }
 0x1b3   :  { %v1146_v36 = vadd.f32 %v1445_v50, %v1399_v30  ;;  %v1448_v51 = vadd.f32 %v1447_v29, %v1446_v6 }
 0x1b5   :  { %v1195_v4 = vadd.f32 %v1459_v21, %v1146_v36  ;;  %v1149_v23 = vadd.f32 %v1448_v51, %v1399_v30 }
 0x1b7   :  { %v1203_v52 = vmax.f32 %v1195_v4, 0.0  ;;  %v1198_v53 = vadd.f32 %v1460_v22, %v1149_v23  ;;  %v1247_v22 = vlaneseq }
 0x1b9   :  { %v1209_v54 = vsel %vm1205_vm1, %v1203_v52, 0.0  ;;  %v1204_v55 = vmax.f32 %v1198_v53, 0.0  ;;  %v1248_v24 = vshrl.u32 %v1247_v22, 7 }
 0x1ba   :  { %v1210_v56 = vadd.f32 %v1209_v54, %v1208_v46 }
 0x1bb   :  { %v1211_v59 = vsel %vm1205_vm1, %v1204_v55, 0.0  ;;  %v1249_v26 = vsub.s32 0, %v1248_v24 }
 0x1bc   :  { %v1212_v60 = vadd.f32 %v1211_v59, %v1210_v56 }
 0x1be   :  { %v1213_v58 = vrot.slane %v1212_v60, 4 }
 0x1c0   :  { %v1214_v61 = vadd.f32 %v1213_v58, %v1212_v60 }
 0x1c2   :  { %v1215_v62 = vrot.slane %v1214_v61, 2 }
 0x1c4   :  { %v1216_v63 = vadd.f32 %v1215_v62, %v1214_v61 }
 0x1c6   :  { %v1217_v20 = vrot.slane %v1216_v63, 1 }
 0x1c8   :  { %v1218_v32 = vadd.f32 %v1217_v20, %v1216_v63 }
 0x1ca   :  { %v1219_v37 = vmul.f32 0.03125, %v1218_v32 }
 0x1cc   :  { %v1220_v42 = vsub.f32 %v1201_v28, %v1219_v37  ;;  %v1221_v48 = vsub.f32 %v1202_v41, %v1219_v37  ;;  %v1222_v0 = vsub.f32 %v1203_v52, %v1219_v37  ;;  %v1223_v33 = vsub.f32 %v1204_v55, %v1219_v37 }
 0x1ce   :  { %v1224_v57 = vmul.f32 %v1220_v42, %v1220_v42  ;;  %v1225_v31 = vmul.f32 %v1221_v48, %v1221_v48  ;;  %v1226_v43 = vmul.f32 %v1222_v0, %v1222_v0  ;;  %v1227_v2 = vmul.f32 %v1223_v33, %v1223_v33 }
 0x1d0   :  { %v1228_v3 = vsel %vm1205_vm1, %v1224_v57, 0.0  ;;  %v1229_v5 = vsel %vm1205_vm1, %v1225_v31, 0.0  ;;  %v1231_v8 = vsel %vm1205_vm1, %v1226_v43, 0.0  ;;  %v1233_v10 = vsel %vm1205_vm1, %v1227_v2, 0.0 }
 0x1d1   :  { %v1230_v7 = vadd.f32 %v1229_v5, %v1228_v3 }
 0x1d3   :  { %v1232_v9 = vadd.f32 %v1231_v8, %v1230_v7 }
 0x1d5   :  { %v1234_v11 = vadd.f32 %v1233_v10, %v1232_v9 }
 0x1d7   :  { %v1235_v12 = vrot.slane %v1234_v11, 4 }
 0x1d9   :  { %v1236_v13 = vadd.f32 %v1235_v12, %v1234_v11 }
 0x1db   :  { %v1237_v14 = vrot.slane %v1236_v13, 2 }
 0x1dd   :  { %v1238_v15 = vadd.f32 %v1237_v14, %v1236_v13 }
 0x1df   :  { %v1239_v16 = vrot.slane %v1238_v15, 1 }
 0x1e1   :  { %v1240_v17 = vadd.f32 %v1239_v16, %v1238_v15 }
 0x1e3   :  { %v1241_v21 = vmul.f32 0.03125, %v1240_v17 }
 0x1e5   :  { %v1243_v18 = vadd.f32 1e-05, %v1241_v21 }
 0x1e7   :  { %1551 = vrsqrt.f32 %v1243_v18 }
 0x1f1   :  { %v1552_v30 = vpop.eup %1551 }
 0x1f2   :  { %v1245_v34 = vmul.f32 %v1552_v30, %v1242_v25 }
 0x1f4   :  { %v1250_v35 = vrot.slane %v1245_v34, %v1249_v26 }
 0x1f6   :  { %v1252_v39 = vmul.f32 %v1250_v35, %v1220_v42  ;;  %v1253_v1 = vmul.f32 %v1250_v35, %v1221_v48  ;;  %v1254_v19 = vmul.f32 %v1250_v35, %v1222_v0  ;;  %v1255_v27 = vmul.f32 %v1250_v35, %v1223_v33 }
 0x1f8   :  { %v1263_v28 = vadd.f32 %v1420_v38, %v1252_v39  ;;  %v1264_v40 = vadd.f32 %v1420_v38, %v1253_v1  ;;  %v1265_v41 = vadd.f32 %v1420_v38, %v1254_v19  ;;  %v1266_v44 = vadd.f32 %v1420_v38, %v1255_v27 }
 0x1fa   :  { %1267 = vst.msk [vmem:[%s2093_s5] sm:$0xff] %vm1205_vm1, %v1263_v28  ;;  %1268 = vst.msk [vmem:[%s2093_s5 + $0x8] sm:$0xff] %vm1205_vm1, %v1264_v40 }
 0x1fb   :  { %1269 = vst.msk [vmem:[%s2093_s5 + $0x10] sm:$0xff] %vm1205_vm1, %v1265_v41  ;;  %1270 = vst.msk [vmem:[%s2093_s5 + $0x18] sm:$0xff] %vm1205_vm1, %v1266_v44 }

// kernel: encoder_forward.3
= control target key start
LH: loop header
LB: loop body
LE: loop exit
PB: predicated region body
PF: predicated region fallthrough
CT: control target
= control target key end

     0   :  { %s2144_s22 = smov 1   ;;  %vm21_vm0 = vcmask 7168   ;;  %s2145_s13 = smov 2   ;;  %vm59_vm1 = vcmask 15368   ;;  %vm156_vm2 = vcmask 23568   ;;  %vm254_vm3 = vcmask 31768   ;;  %s3859_s0 = inlined_call_operand.vmem [shape: f32[4,162,1], index: 0, kind: input, shape index: {}]   ;;  %s3860_s1 = inlined_call_operand.vmem [shape: f32[9,32], index: 1, kind: input, shape index: {}]   ;;  %s3861_s2 = inlined_call_operand.vmem [shape: f32[1,32], index: 2, kind: input, shape index: {}]   ;;  %s3862_s3 = inlined_call_operand.vmem [shape: f32[1,32], index: 3, kind: input, shape index: {}]   ;;  %s3863_s4 = inlined_call_operand.vmem [shape: f32[1,32], index: 4, kind: input, shape index: {}]   ;;  %s3864_s5 = inlined_call_operand.vmem [shape: f32[128,32], index: 5, kind: output, shape index: {}]  }
   0x1   :  { %v2194_v0 = vld [vmem:[%s3859_s0 + $0xba] sm:$0xff]  ;;  %v1990_v1 = vld [vmem:[%s3859_s0 + $0xa8] sm:$0xff]  ;;  %v2210_v3 = vld [vmem:[%s3859_s0 + $0xb1] sm:$0xff]  ;;  %s2146_s23 = smov 3   ;;  %s2147_s6 = smov 4   ;;  %vm352_vm4 = vcmask 39968  }
   0x2   :  { %69 = vrot.lane.b32.xlu1 %v2194_v0, %s2144_s22  ;;  %56 = vrot.lane.b32.xlu0 %v1990_v1, %s2144_s22  ;;  %v2205_v2 = vld [vmem:[%s3859_s0 + $0xc3] sm:$0xff]  ;;  %v2219_v4 = vld [vmem:[%s3859_s0 + $0xd5] sm:$0xff]  ;;  %s2148_s14 = smov 5   ;;  %s2149_s18 = smov 6   ;;  %vm449_vm5 = vcmask 48168   ;;  %vm546_vm6 = vcmask 56368  }
   0x3   :  { %v2224_v5 = vld [vmem:[%s3859_s0 + $0xcc] sm:$0xff]  ;;  %v2238_v7 = vld [vmem:[%s3859_s0 + $0xde] sm:$0xff]  ;;  %v2258_v10 = vld [vmem:[%s3859_s0 + $0x114] sm:$0xff]  ;;  %s2150_s24 = smov 7   ;;  %s2152_s28 = smov 8   ;;  %vm643_vm7 = vcmask 64568  }
   0x4   :  { %v2233_v6 = vld [vmem:[%s3859_s0 + $0xe7] sm:$0xff]  ;;  %v1998_v9 = vld [vmem:[%s3859_s0 + $0xf9] sm:$0xff]  ;;  %v2335_v22 = vld [vmem:[%s3859_s0 + $0x12f] sm:$0xff]  ;;  %vm740_vm8 = vcmask 72768   ;;  %vm1812_vm9 = vcmask 261120  }
   0x5   :  { %v2247_v8 = vld [vmem:[%s3859_s0 + $0x102] sm:$0xff]  ;;  %v2263_v11 = vld [vmem:[%s3859_s0 + $0x10b] sm:$0xff]  ;;  %v2330_v21 = vld [vmem:[%s3859_s0 + $0x138] sm:$0xff] }
   0x6   :  { %75 = vrot.lane.b32.xlu1 %v2205_v2, %s2144_s22  ;;  %63 = vrot.lane.b32.xlu0 %v2210_v3, %s2144_s22  ;;  %v2272_v12 = vld [vmem:[%s3859_s0 + $0x12] sm:$0xff]  ;;  %v20_v13 = vld [vmem:[%s3859_s0] sm:$0xff] }
   0x7   :  { %v2280_v14 = vld [vmem:[%s3859_s0 + $0x126] sm:$0xff]  ;;  %v2285_v15 = vld [vmem:[%s3859_s0 + $0x11d] sm:$0xff]  ;;  %26 = vst.msk [vmem:[#allocation2 + $0x10] sm:$0xff] %vm21_vm0, %v2272_v12  ;;  %22 = vst.msk [vmem:[#allocation2] sm:$0xff] %vm21_vm0, %v20_v13 }
   0x8   :  { %v2293_v16 = vld [vmem:[%s3859_s0 + $0x1b] sm:$0xff]  ;;  %v2300_v17 = vld [vmem:[%s3859_s0 + $0x9] sm:$0xff]  ;;  %v37_v25 = vld [vmem:[%s3859_s0 + $0x51] sm:$0xff] }
   0x9   :  { %28 = vst.msk [vmem:[#allocation2 + $0x18] sm:$0xff] %vm21_vm0, %v2293_v16  ;;  %24 = vst.msk [vmem:[#allocation2 + $0x8] sm:$0xff] %vm21_vm0, %v2300_v17  ;;  %v2307_v18 = vld [vmem:[%s3859_s0 + $0x2d] sm:$0xff]  ;;  %v2312_v19 = vld [vmem:[%s3859_s0 + $0x24] sm:$0xff] }
   0xa   :  { %87 = vrot.lane.b32.xlu1 %v2219_v4, %s2144_s22  ;;  %81 = vrot.lane.b32.xlu0 %v2224_v5, %s2144_s22  ;;  %32 = vst.msk [vmem:[#allocation2 + $0x28] sm:$0xff] %vm21_vm0, %v2307_v18  ;;  %30 = vst.msk [vmem:[#allocation2 + $0x20] sm:$0xff] %vm21_vm0, %v2312_v19  ;;  %v2325_v20 = vld [vmem:[%s3859_s0 + $0x3f] sm:$0xff]  ;;  %v2342_v23 = vld [vmem:[%s3859_s0 + $0x36] sm:$0xff] }
   0xb   :  { %36 = vst.msk [vmem:[#allocation2 + $0x38] sm:$0xff] %vm21_vm0, %v2325_v20  ;;  %34 = vst.msk [vmem:[#allocation2 + $0x30] sm:$0xff] %vm21_vm0, %v2342_v23  ;;  %v2349_v24 = vld [vmem:[%s3859_s0 + $0x5a] sm:$0xff]  ;;  %v2360_v26 = vld [vmem:[%s3859_s0 + $0x6c] sm:$0xff] }
   0xc   :  { %40 = vst.msk [vmem:[#allocation2 + $0x48] sm:$0xff] %vm21_vm0, %v2349_v24  ;;  %38 = vst.msk [vmem:[#allocation2 + $0x40] sm:$0xff] %vm21_vm0, %v37_v25  ;;  %v2365_v27 = vld [vmem:[%s3859_s0 + $0x63] sm:$0xff]  ;;  %v2391_v31 = vld [vmem:[%s3859_s0 + $0x75] sm:$0xff] }
   0xd   :  { %v2374_v28 = vld [vmem:[%s3859_s0 + $0xa] sm:$0xff]  ;;  %44 = vst.msk [vmem:[#allocation2 + $0x58] sm:$0xff] %vm21_vm0, %v2360_v26  ;;  %42 = vst.msk [vmem:[#allocation2 + $0x50] sm:$0xff] %vm21_vm0, %v2365_v27  ;;  %v151_v29 = vld [vmem:[%s3859_s0 + $0x1] sm:$0xff] }
   0xe   :  { %99 = vrot.lane.b32.xlu1 %v2233_v6, %s2144_s22  ;;  %93 = vrot.lane.b32.xlu0 %v2238_v7, %s2144_s22  ;;  %v2386_v30 = vld [vmem:[%s3859_s0 + $0x7e] sm:$0xff]  ;;  %46 = vst.msk [vmem:[#allocation2 + $0x60] sm:$0xff] %vm21_vm0, %v2391_v31  ;;  %v2400_v32 = vld [vmem:[%s3859_s0 + $0x90] sm:$0xff] }
   0xf   :  { %48 = vst.msk [vmem:[#allocation2 + $0x68] sm:$0xff] %vm21_vm0, %v2386_v30  ;;  %v2405_v33 = vld [vmem:[%s3859_s0 + $0x87] sm:$0xff]  ;;  %52 = vst.msk [vmem:[#allocation2 + $0x78] sm:$0xff] %vm21_vm0, %v2400_v32  ;;  %v2415_v34 = vld [vmem:[%s3859_s0 + $0x1c] sm:$0xff] }
  0x10   :  { %50 = vst.msk [vmem:[#allocation2 + $0x70] sm:$0xff] %vm21_vm0, %v2405_v33  ;;  %v2420_v35 = vld [vmem:[%s3859_s0 + $0x13] sm:$0xff]  ;;  %v2432_v37 = vld [vmem:[%s3859_s0 + $0x25] sm:$0xff]  ;;  %v2451_v40 = vld [vmem:[%s3859_s0 + $0x5b] sm:$0xff] }
  0x11   :  { %v2427_v36 = vld [vmem:[%s3859_s0 + $0x2e] sm:$0xff]  ;;  %v2439_v38 = vld [vmem:[%s3859_s0 + $0x40] sm:$0xff]  ;;  %v2444_v39 = vld [vmem:[%s3859_s0 + $0x37] sm:$0xff] }
  0x12   :  { %111 = vrot.lane.b32.xlu1 %v2247_v8, %s2144_s22  ;;  %105 = vrot.lane.b32.xlu0 %v1998_v9, %s2144_s22  ;;  %v200_v41 = vld [vmem:[%s3859_s0 + $0x52] sm:$0xff]  ;;  %v2465_v43 = vld [vmem:[%s3859_s0 + $0x64] sm:$0xff] }
  0x13   :  { %v2460_v42 = vld [vmem:[%s3859_s0 + $0x6d] sm:$0xff]  ;;  %v2472_v44 = vld [vmem:[%s3859_s0 + $0x7f] sm:$0xff]  ;;  %v2477_v45 = vld [vmem:[%s3859_s0 + $0x76] sm:$0xff] }
  0x14   :  { %v2484_v46 = vld [vmem:[%s3859_s0 + $0x91] sm:$0xff]  ;;  %v2489_v47 = vld [vmem:[%s3859_s0 + $0x88] sm:$0xff]  ;;  %v2007_v48 = vld [vmem:[%s3859_s0 + $0x159] sm:$0xff] }
  0x15   :  { %v2006_v49 = vld [vmem:[%s3859_s0 + $0x150] sm:$0xff]  ;;  %v2008_v51 = vld [vmem:[%s3859_s0 + $0x162] sm:$0xff]  ;;  %v2022_v9 = vld [vmem:[%s3859_s0 + $0x1f8] sm:$0xff] }
  0x16   :  { %123 = vrot.lane.b32.xlu1 %v2258_v10, %s2144_s22  ;;  %117 = vrot.lane.b32.xlu0 %v2263_v11, %s2144_s22  ;;  %v2009_v50 = vld [vmem:[%s3859_s0 + $0x16b] sm:$0xff]  ;;  %v2011_v52 = vld [vmem:[%s3859_s0 + $0x17d] sm:$0xff] }
  0x17   :  { %v2010_v53 = vld [vmem:[%s3859_s0 + $0x174] sm:$0xff]  ;;  %v2012_v55 = vld [vmem:[%s3859_s0 + $0x186] sm:$0xff]  ;;  %v2017_v58 = vld [vmem:[%s3859_s0 + $0x1bc] sm:$0xff] }
  0x18   :  { %v2013_v54 = vld [vmem:[%s3859_s0 + $0x18f] sm:$0xff]  ;;  %v2014_v57 = vld [vmem:[%s3859_s0 + $0x1a1] sm:$0xff]  ;;  %v2020_v63 = vld [vmem:[%s3859_s0 + $0x1d7] sm:$0xff] }
  0x19   :  { %v2015_v56 = vld [vmem:[%s3859_s0 + $0x1aa] sm:$0xff]  ;;  %v2016_v59 = vld [vmem:[%s3859_s0 + $0x1b3] sm:$0xff]  ;;  %v2021_v62 = vld [vmem:[%s3859_s0 + $0x1e0] sm:$0xff] }
  0x1a   :  { %135 = vrot.lane.b32.xlu1 %v2280_v14, %s2144_s22  ;;  %129 = vrot.lane.b32.xlu0 %v2285_v15, %s2144_s22  ;;  %v2019_v60 = vld [vmem:[%s3859_s0 + $0x1ce] sm:$0xff]  ;;  %v2018_v61 = vld [vmem:[%s3859_s0 + $0x1c5] sm:$0xff] }
  0x1b   :  { %v2023_v1 = vld [vmem:[%s3859_s0 + $0x201] sm:$0xff]  ;;  %v2025_v13 = vld [vmem:[%s3859_s0 + $0x213] sm:$0xff]  ;;  %v2024_v25 = vld [vmem:[%s3859_s0 + $0x20a] sm:$0xff] }
  0x1e   :  { %147 = vrot.lane.b32.xlu1 %v2330_v21, %s2144_s22  ;;  %141 = vrot.lane.b32.xlu0 %v2335_v22, %s2144_s22 }
  0x22   :  { %160 = vrot.lane.b32.xlu1 %v2374_v28, %s2145_s13  ;;  %153 = vrot.lane.b32.xlu0 %v151_v29, %s2145_s13  ;;  %v2027_v29 = vld [vmem:[%s3859_s0 + $0x225] sm:$0xff] }
  0x26   :  { %172 = vrot.lane.b32.xlu1 %v2415_v34, %s2145_s13  ;;  %166 = vrot.lane.b32.xlu0 %v2420_v35, %s2145_s13 }
  0x2a   :  { %184 = vrot.lane.b32.xlu1 %v2427_v36, %s2145_s13  ;;  %178 = vrot.lane.b32.xlu0 %v2432_v37, %s2145_s13 }
  0x2e   :  { %196 = vrot.lane.b32.xlu1 %v2439_v38, %s2145_s13  ;;  %190 = vrot.lane.b32.xlu0 %v2444_v39, %s2145_s13 }
  0x32   :  { %208 = vrot.lane.b32.xlu1 %v2451_v40, %s2145_s13  ;;  %202 = vrot.lane.b32.xlu0 %v200_v41, %s2145_s13  ;;  %v2026_v41 = vld [vmem:[%s3859_s0 + $0x21c] sm:$0xff] }
  0x36   :  { %220 = vrot.lane.b32.xlu1 %v2460_v42, %s2145_s13  ;;  %214 = vrot.lane.b32.xlu0 %v2465_v43, %s2145_s13 }
  0x3a   :  { %232 = vrot.lane.b32.xlu1 %v2472_v44, %s2145_s13  ;;  %226 = vrot.lane.b32.xlu0 %v2477_v45, %s2145_s13 }
  0x3e   :  { %244 = vrot.lane.b32.xlu1 %v2484_v46, %s2145_s13  ;;  %238 = vrot.lane.b32.xlu0 %v2489_v47, %s2145_s13 }
  0x42   :  { %258 = vrot.lane.b32.xlu1 %v2007_v48, %s2146_s23  ;;  %251 = vrot.lane.b32.xlu0 %v2006_v49, %s2146_s23  ;;  %v2029_v48 = vld [vmem:[%s3859_s0 + $0x237] sm:$0xff]  ;;  %v2028_v49 = vld [vmem:[%s3859_s0 + $0x22e] sm:$0xff] }
  0x46   :  { %270 = vrot.lane.b32.xlu1 %v2009_v50, %s2146_s23  ;;  %264 = vrot.lane.b32.xlu0 %v2008_v51, %s2146_s23  ;;  %v2031_v50 = vld [vmem:[%s3859_s0 + $0x252] sm:$0xff]  ;;  %v2030_v51 = vld [vmem:[%s3859_s0 + $0x249] sm:$0xff] }
  0x4a   :  { %282 = vrot.lane.b32.xlu1 %v2011_v52, %s2146_s23  ;;  %276 = vrot.lane.b32.xlu0 %v2010_v53, %s2146_s23  ;;  %v2033_v52 = vld [vmem:[%s3859_s0 + $0x264] sm:$0xff]  ;;  %v2032_v53 = vld [vmem:[%s3859_s0 + $0x25b] sm:$0xff] }
  0x4e   :  { %294 = vrot.lane.b32.xlu1 %v2013_v54, %s2146_s23  ;;  %288 = vrot.lane.b32.xlu0 %v2012_v55, %s2146_s23 }
  0x52   :  { %306 = vrot.lane.b32.xlu1 %v2015_v56, %s2146_s23  ;;  %300 = vrot.lane.b32.xlu0 %v2014_v57, %s2146_s23  ;;  %v2035_v56 = vld [vmem:[%s3859_s0 + $0x276] sm:$0xff]  ;;  %v2034_v57 = vld [vmem:[%s3859_s0 + $0x26d] sm:$0xff] }
  0x56   :  { %318 = vrot.lane.b32.xlu1 %v2017_v58, %s2146_s23  ;;  %312 = vrot.lane.b32.xlu0 %v2016_v59, %s2146_s23 }
  0x5a   :  { %330 = vrot.lane.b32.xlu1 %v2019_v60, %s2146_s23  ;;  %324 = vrot.lane.b32.xlu0 %v2018_v61, %s2146_s23  ;;  %v2037_v60 = vld [vmem:[%s3859_s0 + $0x288] sm:$0xff]  ;;  %v2036_v61 = vld [vmem:[%s3859_s0 + $0x27f] sm:$0xff] }
  0x5e   :  { %342 = vrot.lane.b32.xlu1 %v2021_v62, %s2146_s23  ;;  %336 = vrot.lane.b32.xlu0 %v2020_v63, %s2146_s23 }
  0x62   :  { %356 = vrot.lane.b32.xlu1 %v2023_v1, %s2147_s6  ;;  %349 = vrot.lane.b32.xlu0 %v2022_v9, %s2147_s6  ;;  %v2039_v1 = vld [vmem:[%s3859_s0 + $0x15a] sm:$0xff]  ;;  %v2038_v9 = vld [vmem:[%s3859_s0 + $0x151] sm:$0xff] }
  0x66   :  { %368 = vrot.lane.b32.xlu1 %v2025_v13, %s2147_s6  ;;  %362 = vrot.lane.b32.xlu0 %v2024_v25, %s2147_s6 }
  0x6a   :  { %380 = vrot.lane.b32.xlu1 %v2027_v29, %s2147_s6  ;;  %374 = vrot.lane.b32.xlu0 %v2026_v41, %s2147_s6  ;;  %v2041_v29 = vld [vmem:[%s3859_s0 + $0x16c] sm:$0xff]  ;;  %v2040_v41 = vld [vmem:[%s3859_s0 + $0x163] sm:$0xff] }
  0x6e   :  { %392 = vrot.lane.b32.xlu1 %v2029_v48, %s2147_s6  ;;  %386 = vrot.lane.b32.xlu0 %v2028_v49, %s2147_s6 }
  0x72   :  { %404 = vrot.lane.b32.xlu1 %v2031_v50, %s2147_s6  ;;  %398 = vrot.lane.b32.xlu0 %v2030_v51, %s2147_s6  ;;  %v2043_v50 = vld [vmem:[%s3859_s0 + $0x17e] sm:$0xff]  ;;  %v2042_v51 = vld [vmem:[%s3859_s0 + $0x175] sm:$0xff] }
  0x74   :  { %v70_v54 = vpop.permute.xlu1 %69  ;;  %v57_v55 = vpop.permute.xlu0 %56 }
  0x75   :  { %72 = vst.msk [vmem:[#allocation2 + $0x10] sm:$0xff] %vm59_vm1, %v70_v54  ;;  %60 = vst.msk [vmem:[#allocation2] sm:$0xff] %vm59_vm1, %v57_v55  ;;  %v2045_v54 = vld [vmem:[%s3859_s0 + $0x190] sm:$0xff]  ;;  %v2044_v55 = vld [vmem:[%s3859_s0 + $0x187] sm:$0xff] }
  0x76   :  { %416 = vrot.lane.b32.xlu1 %v2033_v52, %s2147_s6  ;;  %410 = vrot.lane.b32.xlu0 %v2032_v53, %s2147_s6 }
  0x78   :  { %v76_v58 = vpop.permute.xlu1 %75  ;;  %v64_v59 = vpop.permute.xlu0 %63 }
  0x79   :  { %78 = vst.msk [vmem:[#allocation2 + $0x18] sm:$0xff] %vm59_vm1, %v76_v58  ;;  %66 = vst.msk [vmem:[#allocation2 + $0x8] sm:$0xff] %vm59_vm1, %v64_v59  ;;  %v2047_v58 = vld [vmem:[%s3859_s0 + $0x1ab] sm:$0xff]  ;;  %v2046_v59 = vld [vmem:[%s3859_s0 + $0x1a2] sm:$0xff] }
  0x7a   :  { %428 = vrot.lane.b32.xlu1 %v2035_v56, %s2147_s6  ;;  %422 = vrot.lane.b32.xlu0 %v2034_v57, %s2147_s6 }
  0x7c   :  { %v88_v62 = vpop.permute.xlu1 %87  ;;  %v82_v63 = vpop.permute.xlu0 %81 }
  0x7d   :  { %90 = vst.msk [vmem:[#allocation2 + $0x28] sm:$0xff] %vm59_vm1, %v88_v62  ;;  %84 = vst.msk [vmem:[#allocation2 + $0x20] sm:$0xff] %vm59_vm1, %v82_v63  ;;  %v2049_v62 = vld [vmem:[%s3859_s0 + $0x1bd] sm:$0xff]  ;;  %v2048_v63 = vld [vmem:[%s3859_s0 + $0x1b4] sm:$0xff] }
  0x7e   :  { %440 = vrot.lane.b32.xlu1 %v2037_v60, %s2147_s6  ;;  %434 = vrot.lane.b32.xlu0 %v2036_v61, %s2147_s6 }
  0x80   :  { %v100_v13 = vpop.permute.xlu1 %99  ;;  %v94_v25 = vpop.permute.xlu0 %93 }
  0x81   :  { %102 = vst.msk [vmem:[#allocation2 + $0x38] sm:$0xff] %vm59_vm1, %v100_v13  ;;  %96 = vst.msk [vmem:[#allocation2 + $0x30] sm:$0xff] %vm59_vm1, %v94_v25  ;;  %v2051_v13 = vld [vmem:[%s3859_s0 + $0x1cf] sm:$0xff]  ;;  %v2050_v25 = vld [vmem:[%s3859_s0 + $0x1c6] sm:$0xff] }
  0x82   :  { %453 = vrot.lane.b32.xlu1 %v2039_v1, %s2148_s14  ;;  %446 = vrot.lane.b32.xlu0 %v2038_v9, %s2148_s14 }
  0x84   :  { %v112_v48 = vpop.permute.xlu1 %111  ;;  %v106_v49 = vpop.permute.xlu0 %105 }
  0x85   :  { %114 = vst.msk [vmem:[#allocation2 + $0x48] sm:$0xff] %vm59_vm1, %v112_v48  ;;  %108 = vst.msk [vmem:[#allocation2 + $0x40] sm:$0xff] %vm59_vm1, %v106_v49  ;;  %v2053_v48 = vld [vmem:[%s3859_s0 + $0x1e1] sm:$0xff]  ;;  %v2052_v49 = vld [vmem:[%s3859_s0 + $0x1d8] sm:$0xff] }
  0x86   :  { %465 = vrot.lane.b32.xlu1 %v2041_v29, %s2148_s14  ;;  %459 = vrot.lane.b32.xlu0 %v2040_v41, %s2148_s14 }
  0x88   :  { %v124_v52 = vpop.permute.xlu1 %123  ;;  %v118_v53 = vpop.permute.xlu0 %117 }
  0x89   :  { %126 = vst.msk [vmem:[#allocation2 + $0x58] sm:$0xff] %vm59_vm1, %v124_v52  ;;  %120 = vst.msk [vmem:[#allocation2 + $0x50] sm:$0xff] %vm59_vm1, %v118_v53 }
  0x8a   :  { %477 = vrot.lane.b32.xlu1 %v2043_v50, %s2148_s14  ;;  %471 = vrot.lane.b32.xlu0 %v2042_v51, %s2148_s14 }
  0x8c   :  { %v136_v56 = vpop.permute.xlu1 %135  ;;  %v130_v57 = vpop.permute.xlu0 %129 }
  0x8d   :  { %138 = vst.msk [vmem:[#allocation2 + $0x68] sm:$0xff] %vm59_vm1, %v136_v56  ;;  %132 = vst.msk [vmem:[#allocation2 + $0x60] sm:$0xff] %vm59_vm1, %v130_v57 }
  0x8e   :  { %489 = vrot.lane.b32.xlu1 %v2045_v54, %s2148_s14  ;;  %483 = vrot.lane.b32.xlu0 %v2044_v55, %s2148_s14 }
  0x90   :  { %v148_v60 = vpop.permute.xlu1 %147  ;;  %v142_v61 = vpop.permute.xlu0 %141 }
  0x91   :  { %150 = vst.msk [vmem:[#allocation2 + $0x78] sm:$0xff] %vm59_vm1, %v148_v60  ;;  %144 = vst.msk [vmem:[#allocation2 + $0x70] sm:$0xff] %vm59_vm1, %v142_v61 }
  0x92   :  { %501 = vrot.lane.b32.xlu1 %v2047_v58, %s2148_s14  ;;  %495 = vrot.lane.b32.xlu0 %v2046_v59, %s2148_s14 }
  0x94   :  { %v161_v1 = vpop.permute.xlu1 %160  ;;  %v154_v9 = vpop.permute.xlu0 %153 }
  0x95   :  { %163 = vst.msk [vmem:[#allocation2 + $0x8] sm:$0xff] %vm156_vm2, %v161_v1  ;;  %157 = vst.msk [vmem:[#allocation2] sm:$0xff] %vm156_vm2, %v154_v9 }
  0x96   :  { %513 = vrot.lane.b32.xlu1 %v2049_v62, %s2148_s14  ;;  %507 = vrot.lane.b32.xlu0 %v2048_v63, %s2148_s14 }
  0x98   :  { %v173_v29 = vpop.permute.xlu1 %172  ;;  %v167_v41 = vpop.permute.xlu0 %166 }
  0x99   :  { %175 = vst.msk [vmem:[#allocation2 + $0x18] sm:$0xff] %vm156_vm2, %v173_v29  ;;  %169 = vst.msk [vmem:[#allocation2 + $0x10] sm:$0xff] %vm156_vm2, %v167_v41 }
  0x9a   :  { %525 = vrot.lane.b32.xlu1 %v2051_v13, %s2148_s14  ;;  %519 = vrot.lane.b32.xlu0 %v2050_v25, %s2148_s14 }
  0x9c   :  { %v185_v50 = vpop.permute.xlu1 %184  ;;  %v179_v51 = vpop.permute.xlu0 %178 }
  0x9d   :  { %187 = vst.msk [vmem:[#allocation2 + $0x28] sm:$0xff] %vm156_vm2, %v185_v50  ;;  %181 = vst.msk [vmem:[#allocation2 + $0x20] sm:$0xff] %vm156_vm2, %v179_v51 }
  0x9e   :  { %537 = vrot.lane.b32.xlu1 %v2053_v48, %s2148_s14  ;;  %531 = vrot.lane.b32.xlu0 %v2052_v49, %s2148_s14 }
  0xa0   :  { %v197_v52 = vpop.permute.xlu1 %196  ;;  %v191_v53 = vpop.permute.xlu0 %190 }
  0xa1   :  { %199 = vst.msk [vmem:[#allocation2 + $0x38] sm:$0xff] %vm156_vm2, %v197_v52  ;;  %193 = vst.msk [vmem:[#allocation2 + $0x30] sm:$0xff] %vm156_vm2, %v191_v53 }
  0xa2   :  { %550 = vrot.lane.b32.xlu1 %v2272_v12, %s2149_s18  ;;  %543 = vrot.lane.b32.xlu0 %v2300_v17, %s2149_s18  ;;  %v584_v12 = vld [vmem:[%s3859_s0 + $0x48] sm:$0xff] }
  0xa4   :  { %v209_v54 = vpop.permute.xlu1 %208  ;;  %v203_v55 = vpop.permute.xlu0 %202 }
  0xa5   :  { %211 = vst.msk [vmem:[#allocation2 + $0x48] sm:$0xff] %vm156_vm2, %v209_v54  ;;  %205 = vst.msk [vmem:[#allocation2 + $0x40] sm:$0xff] %vm156_vm2, %v203_v55 }
  0xa6   :  { %562 = vrot.lane.b32.xlu1 %v2312_v19, %s2149_s18  ;;  %556 = vrot.lane.b32.xlu0 %v2293_v16, %s2149_s18 }
  0xa8   :  { %v221_v56 = vpop.permute.xlu1 %220  ;;  %v215_v57 = vpop.permute.xlu0 %214 }
  0xa9   :  { %223 = vst.msk [vmem:[#allocation2 + $0x58] sm:$0xff] %vm156_vm2, %v221_v56  ;;  %217 = vst.msk [vmem:[#allocation2 + $0x50] sm:$0xff] %vm156_vm2, %v215_v57 }
  0xaa   :  { %574 = vrot.lane.b32.xlu1 %v2342_v23, %s2149_s18  ;;  %568 = vrot.lane.b32.xlu0 %v2307_v18, %s2149_s18 }
  0xac   :  { %v233_v17 = vpop.permute.xlu1 %232  ;;  %v227_v19 = vpop.permute.xlu0 %226 }
  0xad   :  { %235 = vst.msk [vmem:[#allocation2 + $0x68] sm:$0xff] %vm156_vm2, %v233_v17  ;;  %229 = vst.msk [vmem:[#allocation2 + $0x60] sm:$0xff] %vm156_vm2, %v227_v19 }
  0xae   :  { %586 = vrot.lane.b32.xlu1 %v584_v12, %s2149_s18  ;;  %580 = vrot.lane.b32.xlu0 %v2325_v20, %s2149_s18 }
  0xb0   :  { %v245_v16 = vpop.permute.xlu1 %244  ;;  %v239_v23 = vpop.permute.xlu0 %238 }
  0xb1   :  { %247 = vst.msk [vmem:[#allocation2 + $0x78] sm:$0xff] %vm156_vm2, %v245_v16  ;;  %241 = vst.msk [vmem:[#allocation2 + $0x70] sm:$0xff] %vm156_vm2, %v239_v23 }
  0xb2   :  { %598 = vrot.lane.b32.xlu1 %v2365_v27, %s2149_s18  ;;  %592 = vrot.lane.b32.xlu0 %v2349_v24, %s2149_s18  ;;  %v632_v24 = vld [vmem:[%s3859_s0 + $0x99] sm:$0xff] }
  0xb4   :  { %v259_v18 = vpop.permute.xlu1 %258  ;;  %v252_v58 = vpop.permute.xlu0 %251 }
  0xb5   :  { %261 = vst.msk [vmem:[#allocation2 + $0x8] sm:$0xff] %vm254_vm3, %v259_v18  ;;  %255 = vst.msk [vmem:[#allocation2] sm:$0xff] %vm254_vm3, %v252_v58 }
  0xb6   :  { %610 = vrot.lane.b32.xlu1 %v2391_v31, %s2149_s18  ;;  %604 = vrot.lane.b32.xlu0 %v2360_v26, %s2149_s18 }
  0xb8   :  { %v271_v20 = vpop.permute.xlu1 %270  ;;  %v265_v59 = vpop.permute.xlu0 %264 }
  0xb9   :  { %273 = vst.msk [vmem:[#allocation2 + $0x18] sm:$0xff] %vm254_vm3, %v271_v20  ;;  %267 = vst.msk [vmem:[#allocation2 + $0x10] sm:$0xff] %vm254_vm3, %v265_v59 }
  0xba   :  { %622 = vrot.lane.b32.xlu1 %v2405_v33, %s2149_s18  ;;  %616 = vrot.lane.b32.xlu0 %v2386_v30, %s2149_s18 }
  0xbc   :  { %v283_v27 = vpop.permute.xlu1 %282  ;;  %v277_v31 = vpop.permute.xlu0 %276 }
  0xbd   :  { %285 = vst.msk [vmem:[#allocation2 + $0x28] sm:$0xff] %vm254_vm3, %v283_v27  ;;  %279 = vst.msk [vmem:[#allocation2 + $0x20] sm:$0xff] %vm254_vm3, %v277_v31 }
  0xbe   :  { %634 = vrot.lane.b32.xlu1 %v632_v24, %s2149_s18  ;;  %628 = vrot.lane.b32.xlu0 %v2400_v32, %s2149_s18 }
  0xc0   :  { %v295_v26 = vpop.permute.xlu1 %294  ;;  %v289_v33 = vpop.permute.xlu0 %288 }
  0xc1   :  { %297 = vst.msk [vmem:[#allocation2 + $0x38] sm:$0xff] %vm254_vm3, %v295_v26  ;;  %291 = vst.msk [vmem:[#allocation2 + $0x30] sm:$0xff] %vm254_vm3, %v289_v33 }
  0xc2   :  { %647 = vrot.lane.b32.xlu1 %v2194_v0, %s2150_s24  ;;  %640 = vrot.lane.b32.xlu0 %v2210_v3, %s2150_s24  ;;  %v2061_v0 = vld [vmem:[%s3859_s0 + $0xf0] sm:$0xff] }
  0xc4   :  { %v307_v30 = vpop.permute.xlu1 %306  ;;  %v301_v60 = vpop.permute.xlu0 %300 }
  0xc5   :  { %309 = vst.msk [vmem:[#allocation2 + $0x48] sm:$0xff] %vm254_vm3, %v307_v30  ;;  %303 = vst.msk [vmem:[#allocation2 + $0x40] sm:$0xff] %vm254_vm3, %v301_v60 }
  0xc6   :  { %659 = vrot.lane.b32.xlu1 %v2224_v5, %s2150_s24  ;;  %653 = vrot.lane.b32.xlu0 %v2205_v2, %s2150_s24 }
  0xc8   :  { %v319_v32 = vpop.permute.xlu1 %318  ;;  %v313_v61 = vpop.permute.xlu0 %312 }
  0xc9   :  { %321 = vst.msk [vmem:[#allocation2 + $0x58] sm:$0xff] %vm254_vm3, %v319_v32  ;;  %315 = vst.msk [vmem:[#allocation2 + $0x50] sm:$0xff] %vm254_vm3, %v313_v61 }
  0xca   :  { %671 = vrot.lane.b32.xlu1 %v2238_v7, %s2150_s24  ;;  %665 = vrot.lane.b32.xlu0 %v2219_v4, %s2150_s24 }
  0xcc   :  { %v331_v3 = vpop.permute.xlu1 %330  ;;  %v325_v5 = vpop.permute.xlu0 %324 }
  0xcd   :  { %333 = vst.msk [vmem:[#allocation2 + $0x68] sm:$0xff] %vm254_vm3, %v331_v3  ;;  %327 = vst.msk [vmem:[#allocation2 + $0x60] sm:$0xff] %vm254_vm3, %v325_v5 }
  0xce   :  { %683 = vrot.lane.b32.xlu1 %v2061_v0, %s2150_s24  ;;  %677 = vrot.lane.b32.xlu0 %v2233_v6, %s2150_s24 }
  0xd0   :  { %v343_v2 = vpop.permute.xlu1 %342  ;;  %v337_v7 = vpop.permute.xlu0 %336 }
  0xd1   :  { %345 = vst.msk [vmem:[#allocation2 + $0x78] sm:$0xff] %vm254_vm3, %v343_v2  ;;  %339 = vst.msk [vmem:[#allocation2 + $0x70] sm:$0xff] %vm254_vm3, %v337_v7 }
  0xd2   :  { %695 = vrot.lane.b32.xlu1 %v2263_v11, %s2150_s24  ;;  %689 = vrot.lane.b32.xlu0 %v2247_v8, %s2150_s24  ;;  %v2069_v8 = vld [vmem:[%s3859_s0 + $0x141] sm:$0xff]  ;;  %v2151_v11 = vmov 0  }
  0xd3   :  { %2099 = vset.pattern.permute.xlu1 %v2151_v11  ;;  %2098 = vset.pattern.permute.xlu0 %v2151_v11 }
  0xd4   :  { %v357_v4 = vpop.permute.xlu1 %356  ;;  %v350_v62 = vpop.permute.xlu0 %349 }
  0xd5   :  { %359 = vst.msk [vmem:[#allocation2 + $0x8] sm:$0xff] %vm352_vm4, %v357_v4  ;;  %353 = vst.msk [vmem:[#allocation2] sm:$0xff] %vm352_vm4, %v350_v62 }
  0xd6   :  { %707 = vrot.lane.b32.xlu1 %v2285_v15, %s2150_s24  ;;  %701 = vrot.lane.b32.xlu0 %v2258_v10, %s2150_s24 }
  0xd8   :  { %v369_v6 = vpop.permute.xlu1 %368  ;;  %v363_v63 = vpop.permute.xlu0 %362 }
  0xd9   :  { %371 = vst.msk [vmem:[#allocation2 + $0x18] sm:$0xff] %vm352_vm4, %v369_v6  ;;  %365 = vst.msk [vmem:[#allocation2 + $0x10] sm:$0xff] %vm352_vm4, %v363_v63 }
  0xda   :  { %719 = vrot.lane.b32.xlu1 %v2335_v22, %s2150_s24  ;;  %713 = vrot.lane.b32.xlu0 %v2280_v14, %s2150_s24 }
  0xdc   :  { %v381_v10 = vpop.permute.xlu1 %380  ;;  %v375_v15 = vpop.permute.xlu0 %374 }
  0xdd   :  { %383 = vst.msk [vmem:[#allocation2 + $0x28] sm:$0xff] %vm352_vm4, %v381_v10  ;;  %377 = vst.msk [vmem:[#allocation2 + $0x20] sm:$0xff] %vm352_vm4, %v375_v15 }
  0xde   :  { %731 = vrot.lane.b32.xlu1 %v2069_v8, %s2150_s24  ;;  %725 = vrot.lane.b32.xlu0 %v2330_v21, %s2150_s24 }
  0xe0   :  { %v393_v22 = vpop.permute.xlu1 %392  ;;  %v387_v14 = vpop.permute.xlu0 %386 }
  0xe1   :  { %395 = vst.msk [vmem:[#allocation2 + $0x38] sm:$0xff] %vm352_vm4, %v393_v22  ;;  %389 = vst.msk [vmem:[#allocation2 + $0x30] sm:$0xff] %vm352_vm4, %v387_v14 }
  0xe2   :  { %744 = vrot.lane.b32.xlu1 %v2420_v35, %s2152_s28  ;;  %737 = vrot.lane.b32.xlu0 %v2374_v28, %s2152_s28  ;;  %v778_v28 = vld [vmem:[%s3859_s0 + $0x49] sm:$0xff] }
  0xe4   :  { %v405_v1 = vpop.permute.xlu1 %404  ;;  %v399_v9 = vpop.permute.xlu0 %398 }
  0xe5   :  { %407 = vst.msk [vmem:[#allocation2 + $0x48] sm:$0xff] %vm352_vm4, %v405_v1  ;;  %401 = vst.msk [vmem:[#allocation2 + $0x40] sm:$0xff] %vm352_vm4, %v399_v9 }
  0xe6   :  { %756 = vrot.lane.b32.xlu1 %v2432_v37, %s2152_s28  ;;  %750 = vrot.lane.b32.xlu0 %v2415_v34, %s2152_s28 }
  0xe8   :  { %v417_v21 = vpop.permute.xlu1 %416  ;;  %v411_v13 = vpop.permute.xlu0 %410 }
  0xe9   :  { %419 = vst.msk [vmem:[#allocation2 + $0x58] sm:$0xff] %vm352_vm4, %v417_v21  ;;  %413 = vst.msk [vmem:[#allocation2 + $0x50] sm:$0xff] %vm352_vm4, %v411_v13 }
  0xea   :  { %768 = vrot.lane.b32.xlu1 %v2444_v39, %s2152_s28  ;;  %762 = vrot.lane.b32.xlu0 %v2427_v36, %s2152_s28 }
  0xec   :  { %v429_v35 = vpop.permute.xlu1 %428  ;;  %v423_v37 = vpop.permute.xlu0 %422 }
  0xed   :  { %431 = vst.msk [vmem:[#allocation2 + $0x68] sm:$0xff] %vm352_vm4, %v429_v35  ;;  %425 = vst.msk [vmem:[#allocation2 + $0x60] sm:$0xff] %vm352_vm4, %v423_v37 }
  0xee   :  { %780 = vrot.lane.b32.xlu1 %v778_v28, %s2152_s28  ;;  %774 = vrot.lane.b32.xlu0 %v2439_v38, %s2152_s28 }
  0xf0   :  { %v441_v34 = vpop.permute.xlu1 %440  ;;  %v435_v39 = vpop.permute.xlu0 %434 }
  0xf1   :  { %443 = vst.msk [vmem:[#allocation2 + $0x78] sm:$0xff] %vm352_vm4, %v441_v34  ;;  %437 = vst.msk [vmem:[#allocation2 + $0x70] sm:$0xff] %vm352_vm4, %v435_v39 }
  0xf2   :  { %792 = vrot.lane.b32.xlu1 %v2465_v43, %s2152_s28  ;;  %786 = vrot.lane.b32.xlu0 %v2451_v40, %s2152_s28  ;;  %v826_v40 = vld [vmem:[%s3859_s0 + $0x9a] sm:$0xff] }
  0xf4   :  { %v454_v36 = vpop.permute.xlu1 %453  ;;  %v447_v25 = vpop.permute.xlu0 %446 }
  0xf5   :  { %456 = vst.msk [vmem:[#allocation2 + $0x8] sm:$0xff] %vm449_vm5, %v454_v36  ;;  %450 = vst.msk [vmem:[#allocation2] sm:$0xff] %vm449_vm5, %v447_v25 }
  0xf6   :  { %804 = vrot.lane.b32.xlu1 %v2477_v45, %s2152_s28  ;;  %798 = vrot.lane.b32.xlu0 %v2460_v42, %s2152_s28 }
  0xf8   :  { %v466_v38 = vpop.permute.xlu1 %465  ;;  %v460_v29 = vpop.permute.xlu0 %459 }
  0xf9   :  { %468 = vst.msk [vmem:[#allocation2 + $0x18] sm:$0xff] %vm449_vm5, %v466_v38  ;;  %462 = vst.msk [vmem:[#allocation2 + $0x10] sm:$0xff] %vm449_vm5, %v460_v29 }
  0xfa   :  { %816 = vrot.lane.b32.xlu1 %v2489_v47, %s2152_s28  ;;  %810 = vrot.lane.b32.xlu0 %v2472_v44, %s2152_s28 }
  0xfc   :  { %v478_v43 = vpop.permute.xlu1 %477  ;;  %v472_v45 = vpop.permute.xlu0 %471 }
  0xfd   :  { %480 = vst.msk [vmem:[#allocation2 + $0x28] sm:$0xff] %vm449_vm5, %v478_v43  ;;  %474 = vst.msk [vmem:[#allocation2 + $0x20] sm:$0xff] %vm449_vm5, %v472_v45 }
  0xfe   :  { %828 = vrot.lane.b32.xlu1 %v826_v40, %s2152_s28  ;;  %822 = vrot.lane.b32.xlu0 %v2484_v46, %s2152_s28 }
 0x100   :  { %v490_v42 = vpop.permute.xlu1 %489  ;;  %v484_v47 = vpop.permute.xlu0 %483 }
 0x101   :  { %492 = vst.msk [vmem:[#allocation2 + $0x38] sm:$0xff] %vm449_vm5, %v490_v42  ;;  %486 = vst.msk [vmem:[#allocation2 + $0x30] sm:$0xff] %vm449_vm5, %v484_v47 }
 0x104   :  { %v502_v44 = vpop.permute.xlu1 %501  ;;  %v496_v41 = vpop.permute.xlu0 %495 }
 0x105   :  { %504 = vst.msk [vmem:[#allocation2 + $0x48] sm:$0xff] %vm449_vm5, %v502_v44  ;;  %498 = vst.msk [vmem:[#allocation2 + $0x40] sm:$0xff] %vm449_vm5, %v496_v41 }
 0x108   :  { %v514_v48 = vpop.permute.xlu1 %513  ;;  %v508_v49 = vpop.permute.xlu0 %507 }
 0x109   :  { %516 = vst.msk [vmem:[#allocation2 + $0x58] sm:$0xff] %vm449_vm5, %v514_v48  ;;  %510 = vst.msk [vmem:[#allocation2 + $0x50] sm:$0xff] %vm449_vm5, %v508_v49 }
 0x10c   :  { %v526_v50 = vpop.permute.xlu1 %525  ;;  %v520_v46 = vpop.permute.xlu0 %519 }
 0x10d   :  { %528 = vst.msk [vmem:[#allocation2 + $0x68] sm:$0xff] %vm449_vm5, %v526_v50  ;;  %522 = vst.msk [vmem:[#allocation2 + $0x60] sm:$0xff] %vm449_vm5, %v520_v46 }
 0x110   :  { %v538_v51 = vpop.permute.xlu1 %537  ;;  %v532_v52 = vpop.permute.xlu0 %531 }
 0x111   :  { %540 = vst.msk [vmem:[#allocation2 + $0x78] sm:$0xff] %vm449_vm5, %v538_v51  ;;  %534 = vst.msk [vmem:[#allocation2 + $0x70] sm:$0xff] %vm449_vm5, %v532_v52 }
 0x114   :  { %v551_v53 = vpop.permute.xlu1 %550  ;;  %v544_v54 = vpop.permute.xlu0 %543 }
 0x115   :  { %553 = vst.msk [vmem:[#allocation2 + $0x8] sm:$0xff] %vm546_vm6, %v551_v53  ;;  %547 = vst.msk [vmem:[#allocation2] sm:$0xff] %vm546_vm6, %v544_v54  ;;  %v2153_v53 = vmov 1   ;;  %v2154_v54 = vmov 2  }
 0x118   :  { %v563_v55 = vpop.permute.xlu1 %562  ;;  %v557_v56 = vpop.permute.xlu0 %556 }
 0x119   :  { %565 = vst.msk [vmem:[#allocation2 + $0x18] sm:$0xff] %vm546_vm6, %v563_v55  ;;  %559 = vst.msk [vmem:[#allocation2 + $0x10] sm:$0xff] %vm546_vm6, %v557_v56  ;;  %v2155_v55 = vmov 3   ;;  %v2156_v56 = vmov 4  }
 0x11c   :  { %v575_v57 = vpop.permute.xlu1 %574  ;;  %v569_v12 = vpop.permute.xlu0 %568 }
 0x11d   :  { %577 = vst.msk [vmem:[#allocation2 + $0x28] sm:$0xff] %vm546_vm6, %v575_v57  ;;  %571 = vst.msk [vmem:[#allocation2 + $0x20] sm:$0xff] %vm546_vm6, %v569_v12 }
 0x120   :  { %v587_v17 = vpop.permute.xlu1 %586  ;;  %v581_v19 = vpop.permute.xlu0 %580 }
 0x121   :  { %589 = vst.msk [vmem:[#allocation2 + $0x38] sm:$0xff] %vm546_vm6, %v587_v17  ;;  %583 = vst.msk [vmem:[#allocation2 + $0x30] sm:$0xff] %vm546_vm6, %v581_v19 }
 0x124   :  { %v599_v16 = vpop.permute.xlu1 %598  ;;  %v593_v23 = vpop.permute.xlu0 %592 }
 0x125   :  { %601 = vst.msk [vmem:[#allocation2 + $0x48] sm:$0xff] %vm546_vm6, %v599_v16  ;;  %595 = vst.msk [vmem:[#allocation2 + $0x40] sm:$0xff] %vm546_vm6, %v593_v23 }
 0x128   :  { %v611_v18 = vpop.permute.xlu1 %610  ;;  %v605_v58 = vpop.permute.xlu0 %604 }
 0x129   :  { %613 = vst.msk [vmem:[#allocation2 + $0x58] sm:$0xff] %vm546_vm6, %v611_v18  ;;  %607 = vst.msk [vmem:[#allocation2 + $0x50] sm:$0xff] %vm546_vm6, %v605_v58 }
 0x12c   :  { %v623_v20 = vpop.permute.xlu1 %622  ;;  %v617_v59 = vpop.permute.xlu0 %616 }
 0x12d   :  { %625 = vst.msk [vmem:[#allocation2 + $0x68] sm:$0xff] %vm546_vm6, %v623_v20  ;;  %619 = vst.msk [vmem:[#allocation2 + $0x60] sm:$0xff] %vm546_vm6, %v617_v59 }
 0x130   :  { %v635_v24 = vpop.permute.xlu1 %634  ;;  %v629_v27 = vpop.permute.xlu0 %628 }
 0x131   :  { %637 = vst.msk [vmem:[#allocation2 + $0x78] sm:$0xff] %vm546_vm6, %v635_v24  ;;  %631 = vst.msk [vmem:[#allocation2 + $0x70] sm:$0xff] %vm546_vm6, %v629_v27 }
 0x134   :  { %v648_v31 = vpop.permute.xlu1 %647  ;;  %v641_v26 = vpop.permute.xlu0 %640 }
 0x135   :  { %650 = vst.msk [vmem:[#allocation2 + $0x8] sm:$0xff] %vm643_vm7, %v648_v31  ;;  %644 = vst.msk [vmem:[#allocation2] sm:$0xff] %vm643_vm7, %v641_v26 }
 0x138   :  { %v660_v33 = vpop.permute.xlu1 %659  ;;  %v654_v30 = vpop.permute.xlu0 %653 }
 0x139   :  { %662 = vst.msk [vmem:[#allocation2 + $0x18] sm:$0xff] %vm643_vm7, %v660_v33  ;;  %656 = vst.msk [vmem:[#allocation2 + $0x10] sm:$0xff] %vm643_vm7, %v654_v30 }
 0x13c   :  { %v672_v60 = vpop.permute.xlu1 %671  ;;  %v666_v32 = vpop.permute.xlu0 %665 }
 0x13d   :  { %674 = vst.msk [vmem:[#allocation2 + $0x28] sm:$0xff] %vm643_vm7, %v672_v60  ;;  %668 = vst.msk [vmem:[#allocation2 + $0x20] sm:$0xff] %vm643_vm7, %v666_v32  ;;  %v2157_v60 = vmov 5  }
 0x140   :  { %v684_v61 = vpop.permute.xlu1 %683  ;;  %v678_v0 = vpop.permute.xlu0 %677 }
 0x141   :  { %686 = vst.msk [vmem:[#allocation2 + $0x38] sm:$0xff] %vm643_vm7, %v684_v61  ;;  %680 = vst.msk [vmem:[#allocation2 + $0x30] sm:$0xff] %vm643_vm7, %v678_v0 }
 0x144   :  { %v696_v3 = vpop.permute.xlu1 %695  ;;  %v690_v5 = vpop.permute.xlu0 %689 }
 0x145   :  { %698 = vst.msk [vmem:[#allocation2 + $0x48] sm:$0xff] %vm643_vm7, %v696_v3  ;;  %692 = vst.msk [vmem:[#allocation2 + $0x40] sm:$0xff] %vm643_vm7, %v690_v5 }
 0x148   :  { %v708_v2 = vpop.permute.xlu1 %707  ;;  %v702_v7 = vpop.permute.xlu0 %701 }
 0x149   :  { %710 = vst.msk [vmem:[#allocation2 + $0x58] sm:$0xff] %vm643_vm7, %v708_v2  ;;  %704 = vst.msk [vmem:[#allocation2 + $0x50] sm:$0xff] %vm643_vm7, %v702_v7 }
 0x14c   :  { %v720_v4 = vpop.permute.xlu1 %719  ;;  %v714_v62 = vpop.permute.xlu0 %713 }
 0x14d   :  { %722 = vst.msk [vmem:[#allocation2 + $0x68] sm:$0xff] %vm643_vm7, %v720_v4  ;;  %716 = vst.msk [vmem:[#allocation2 + $0x60] sm:$0xff] %vm643_vm7, %v714_v62 }
 0x150   :  { %v732_v6 = vpop.permute.xlu1 %731  ;;  %v726_v63 = vpop.permute.xlu0 %725 }
 0x151   :  { %734 = vst.msk [vmem:[#allocation2 + $0x78] sm:$0xff] %vm643_vm7, %v732_v6  ;;  %728 = vst.msk [vmem:[#allocation2 + $0x70] sm:$0xff] %vm643_vm7, %v726_v63 }
 0x154   :  { %v745_v8 = vpop.permute.xlu1 %744  ;;  %v738_v11 = vpop.permute.xlu0 %737 }
 0x155   :  { %747 = vst.msk [vmem:[#allocation2 + $0x8] sm:$0xff] %vm740_vm8, %v745_v8  ;;  %741 = vst.msk [vmem:[#allocation2] sm:$0xff] %vm740_vm8, %v738_v11 }
 0x158   :  { %v757_v10 = vpop.permute.xlu1 %756  ;;  %v751_v15 = vpop.permute.xlu0 %750 }
 0x159   :  { %759 = vst.msk [vmem:[#allocation2 + $0x18] sm:$0xff] %vm740_vm8, %v757_v10  ;;  %753 = vst.msk [vmem:[#allocation2 + $0x10] sm:$0xff] %vm740_vm8, %v751_v15  ;;  %v3865_v15 = vmov 8  }
 0x15c   :  { %v769_v22 = vpop.permute.xlu1 %768  ;;  %v763_v14 = vpop.permute.xlu0 %762  ;;  %v2893_v1 = vld [vmem:[#allocation2 + $0x8] sm:$0xff]  ;;  %v2895_v9 = vld [vmem:[#allocation2] sm:$0xff] }
 0x15d   :  { %771 = vst.msk [vmem:[#allocation2 + $0x28] sm:$0xff] %vm740_vm8, %v769_v22  ;;  %765 = vst.msk [vmem:[#allocation2 + $0x20] sm:$0xff] %vm740_vm8, %v763_v14  ;;  %856 = vperm.xlu1 %2099, %v2893_v1   ;;  %851 = vperm.xlu0 %2098, %v2895_v9  }
 0x160   :  { %v781_v21 = vpop.permute.xlu1 %780  ;;  %v775_v13 = vpop.permute.xlu0 %774  ;;  %v2901_v28 = vld [vmem:[#allocation2 + $0x10] sm:$0xff]  ;;  %v2903_v35 = vld [vmem:[#allocation2 + $0x18] sm:$0xff] }
 0x161   :  { %783 = vst.msk [vmem:[#allocation2 + $0x38] sm:$0xff] %vm740_vm8, %v781_v21  ;;  %777 = vst.msk [vmem:[#allocation2 + $0x30] sm:$0xff] %vm740_vm8, %v775_v13  ;;  %861 = vperm.xlu1 %2099, %v2901_v28   ;;  %866 = vperm.xlu0 %2098, %v2903_v35  }
 0x164   :  { %v793_v37 = vpop.permute.xlu1 %792  ;;  %v787_v34 = vpop.permute.xlu0 %786  ;;  %v2909_v39 = vld [vmem:[#allocation2 + $0x20] sm:$0xff]  ;;  %v2911_v36 = vld [vmem:[#allocation2 + $0x28] sm:$0xff] }
 0x165   :  { %795 = vst.msk [vmem:[#allocation2 + $0x48] sm:$0xff] %vm740_vm8, %v793_v37  ;;  %789 = vst.msk [vmem:[#allocation2 + $0x40] sm:$0xff] %vm740_vm8, %v787_v34  ;;  %871 = vperm.xlu1 %2099, %v2909_v39   ;;  %876 = vperm.xlu0 %2098, %v2911_v36  }
 0x168   :  { %v805_v25 = vpop.permute.xlu1 %804  ;;  %v799_v38 = vpop.permute.xlu0 %798  ;;  %v2917_v29 = vld [vmem:[#allocation2 + $0x30] sm:$0xff]  ;;  %v2919_v40 = vld [vmem:[#allocation2 + $0x38] sm:$0xff] }
 0x169   :  { %807 = vst.msk [vmem:[#allocation2 + $0x58] sm:$0xff] %vm740_vm8, %v805_v25  ;;  %801 = vst.msk [vmem:[#allocation2 + $0x50] sm:$0xff] %vm740_vm8, %v799_v38  ;;  %881 = vperm.xlu1 %2099, %v2917_v29   ;;  %886 = vperm.xlu0 %2098, %v2919_v40  }
 0x16c   :  { %v817_v43 = vpop.permute.xlu1 %816  ;;  %v811_v45 = vpop.permute.xlu0 %810  ;;  %v2925_v42 = vld [vmem:[#allocation2 + $0x40] sm:$0xff]  ;;  %v2927_v47 = vld [vmem:[#allocation2 + $0x48] sm:$0xff] }
 0x16d   :  { %3881 = vst [vmem:[#allocation3_spill] sm:$0xff] %v2925_v42  ;;  %3882 = vst [vmem:[#allocation4_spill] sm:$0xff] %v2927_v47  ;;  %891 = vperm.xlu1 %2099, %v2925_v42   ;;  %896 = vperm.xlu0 %2098, %v2927_v47  }
 0x16e   :  { %819 = vst.msk [vmem:[#allocation2 + $0x68] sm:$0xff] %vm740_vm8, %v817_v43  ;;  %813 = vst.msk [vmem:[#allocation2 + $0x60] sm:$0xff] %vm740_vm8, %v811_v45  ;;  %v3867_v43 = vmov 6  }
 0x170   :  { %v829_v44 = vpop.permute.xlu1 %828  ;;  %v823_v41 = vpop.permute.xlu0 %822  ;;  %v2933_v48 = vld [vmem:[#allocation2 + $0x50] sm:$0xff]  ;;  %v2935_v49 = vld [vmem:[#allocation2 + $0x58] sm:$0xff] }
 0x171   :  { %3883 = vst [vmem:[#allocation5_spill] sm:$0xff] %v2933_v48  ;;  %831 = vst.msk [vmem:[#allocation2 + $0x78] sm:$0xff] %vm740_vm8, %v829_v44  ;;  %901 = vperm.xlu1 %2099, %v2933_v48   ;;  %906 = vperm.xlu0 %2098, %v2935_v49  }
 0x172   :  { %825 = vst.msk [vmem:[#allocation2 + $0x70] sm:$0xff] %vm740_vm8, %v823_v41 }
 0x175   :  { %v2941_v50 = vld [vmem:[#allocation2 + $0x60] sm:$0xff]  ;;  %v2943_v46 = vld [vmem:[#allocation2 + $0x68] sm:$0xff] }
 0x176   :  { %3884 = vst [vmem:[#allocation6_spill] sm:$0xff] %v2943_v46  ;;  %911 = vperm.xlu1 %2099, %v2941_v50   ;;  %916 = vperm.xlu0 %2098, %v2943_v46  }
 0x178   :  { %v2949_v52 = vld [vmem:[#allocation2 + $0x78] sm:$0xff] }
 0x179   :  { %v2947_v51 = vld [vmem:[#allocation2 + $0x70] sm:$0xff]  ;;  %3885 = vst [vmem:[#allocation7_spill] sm:$0xff] %v2949_v52 }
 0x17a   :  { %921 = vperm.xlu1 %2099, %v2947_v51   ;;  %926 = vperm.xlu0 %2098, %v2949_v52  }
 0x17e   :  { %2100 = vset.pattern.permute.xlu1 %v2153_v53  ;;  %2101 = vset.pattern.permute.xlu0 %v2153_v53 }
 0x17f   :  { %967 = vperm.xlu1 %2100, %v2895_v9   ;;  %971 = vperm.xlu0 %2101, %v2893_v1  }
 0x183   :  { %975 = vperm.xlu1 %2100, %v2901_v28   ;;  %983 = vperm.xlu0 %2101, %v2909_v39  }
 0x187   :  { %979 = vperm.xlu1 %2100, %v2903_v35   ;;  %991 = vperm.xlu0 %2101, %v2917_v29  }
 0x18b   :  { %987 = vperm.xlu1 %2100, %v2911_v36   ;;  %999 = vperm.xlu0 %2101, %v2925_v42  }
 0x18f   :  { %995 = vperm.xlu1 %2100, %v2919_v40   ;;  %1007 = vperm.xlu0 %2101, %v2933_v48  }
 0x193   :  { %1003 = vperm.xlu1 %2100, %v2927_v47   ;;  %1015 = vperm.xlu0 %2101, %v2941_v50  }
 0x197   :  { %1011 = vperm.xlu1 %2100, %v2935_v49   ;;  %1023 = vperm.xlu0 %2101, %v2947_v51  }
 0x19b   :  { %1019 = vperm.xlu1 %2100, %v2943_v46   ;;  %2102 = vset.pattern.permute.xlu0 %v2154_v54 }
 0x19c   :  { %1068 = vperm.xlu0 %2102, %v2895_v9  }
 0x19f   :  { %1027 = vperm.xlu1 %2100, %v2949_v52  }
 0x1a0   :  { %1080 = vperm.xlu0 %2102, %v2903_v35  }
 0x1a3   :  { %2103 = vset.pattern.permute.xlu1 %v2154_v54 }
 0x1a4   :  { %1072 = vperm.xlu1 %2103, %v2893_v1   ;;  %1088 = vperm.xlu0 %2102, %v2911_v36  }
 0x1a8   :  { %1076 = vperm.xlu1 %2103, %v2901_v28   ;;  %1096 = vperm.xlu0 %2102, %v2919_v40  }
 0x1ac   :  { %1084 = vperm.xlu1 %2103, %v2909_v39   ;;  %1104 = vperm.xlu0 %2102, %v2927_v47  }
 0x1b0   :  { %1092 = vperm.xlu1 %2103, %v2917_v29   ;;  %1112 = vperm.xlu0 %2102, %v2935_v49  }
 0x1b4   :  { %1100 = vperm.xlu1 %2103, %v2925_v42   ;;  %1120 = vperm.xlu0 %2102, %v2943_v46  }
 0x1b8   :  { %1108 = vperm.xlu1 %2103, %v2933_v48   ;;  %1128 = vperm.xlu0 %2102, %v2949_v52  }
 0x1bc   :  { %1116 = vperm.xlu1 %2103, %v2941_v50   ;;  %2105 = vset.pattern.permute.xlu0 %v2155_v55 }
 0x1bd   :  { %1173 = vperm.xlu0 %2105, %v2893_v1  }
 0x1c0   :  { %1124 = vperm.xlu1 %2103, %v2947_v51  }
 0x1c1   :  { %1185 = vperm.xlu0 %2105, %v2909_v39  }
 0x1c4   :  { %2104 = vset.pattern.permute.xlu1 %v2155_v55 }
 0x1c5   :  { %1169 = vperm.xlu1 %2104, %v2895_v9   ;;  %1193 = vperm.xlu0 %2105, %v2917_v29  }
 0x1c9   :  { %1177 = vperm.xlu1 %2104, %v2901_v28   ;;  %1201 = vperm.xlu0 %2105, %v2925_v42  }
 0x1cd   :  { %1181 = vperm.xlu1 %2104, %v2903_v35   ;;  %1209 = vperm.xlu0 %2105, %v2933_v48  }
 0x1d1   :  { %1189 = vperm.xlu1 %2104, %v2911_v36   ;;  %1217 = vperm.xlu0 %2105, %v2941_v50  }
 0x1d5   :  { %1197 = vperm.xlu1 %2104, %v2919_v40   ;;  %1225 = vperm.xlu0 %2105, %v2947_v51  }
 0x1d9   :  { %1205 = vperm.xlu1 %2104, %v2927_v47   ;;  %2106 = vset.pattern.permute.xlu0 %v2156_v56 }
 0x1da   :  { %1270 = vperm.xlu0 %2106, %v2895_v9  }
 0x1dc   :  { %v2999_v57 = vpop.permute.xlu1 %856  ;;  %v3002_v12 = vpop.permute.xlu0 %851 }
 0x1dd   :  { %1213 = vperm.xlu1 %2104, %v2935_v49  }
 0x1de   :  { %1282 = vperm.xlu0 %2106, %v2903_v35  }
 0x1e0   :  { %v3005_v17 = vpop.permute.xlu1 %861  ;;  %v3008_v19 = vpop.permute.xlu0 %866 }
 0x1e1   :  { %3886 = vst [vmem:[#allocation8_spill] sm:$0xff] %v3005_v17  ;;  %1221 = vperm.xlu1 %2104, %v2943_v46  }
 0x1e2   :  { %1290 = vperm.xlu0 %2106, %v2911_v36  }
 0x1e4   :  { %v3011_v16 = vpop.permute.xlu1 %871  ;;  %v3014_v23 = vpop.permute.xlu0 %876 }
 0x1e5   :  { %1229 = vperm.xlu1 %2104, %v2949_v52  }
 0x1e6   :  { %1298 = vperm.xlu0 %2106, %v2919_v40  }
 0x1e8   :  { %v3017_v18 = vpop.permute.xlu1 %881  ;;  %v3019_v58 = vpop.permute.xlu0 %886 }
 0x1e9   :  { %2107 = vset.pattern.permute.xlu1 %v2156_v56 }
 0x1ea   :  { %1274 = vperm.xlu1 %2107, %v2893_v1   ;;  %1306 = vperm.xlu0 %2106, %v2927_v47  }
 0x1ec   :  { %v3023_v20 = vpop.permute.xlu1 %891  ;;  %v3025_v59 = vpop.permute.xlu0 %896 }
 0x1ed   :  { %3887 = vst [vmem:[#allocation9_spill] sm:$0xff] %v3023_v20 }
 0x1ee   :  { %1278 = vperm.xlu1 %2107, %v2901_v28   ;;  %1314 = vperm.xlu0 %2106, %v2935_v49  }
 0x1f0   :  { %v3029_v24 = vpop.permute.xlu1 %901  ;;  %v3031_v27 = vpop.permute.xlu0 %906 }
 0x1f1   :  { %3888 = vst [vmem:[#allocation10_spill] sm:$0xff] %v3029_v24 }
 0x1f2   :  { %1286 = vperm.xlu1 %2107, %v2909_v39   ;;  %1322 = vperm.xlu0 %2106, %v2943_v46  }
 0x1f5   :  { %v3035_v31 = vpop.permute.xlu1 %911  ;;  %v3037_v26 = vpop.permute.xlu0 %916 }
 0x1f6   :  { %3889 = vst [vmem:[#allocation11_spill] sm:$0xff] %v3035_v31  ;;  %1294 = vperm.xlu1 %2107, %v2917_v29   ;;  %1330 = vperm.xlu0 %2106, %v2949_v52  }
 0x1f9   :  { %v3041_v33 = vpop.permute.xlu1 %921  ;;  %v3043_v30 = vpop.permute.xlu0 %926 }
 0x1fa   :  { %3890 = vst [vmem:[#allocation12_spill] sm:$0xff] %v3041_v33  ;;  %1302 = vperm.xlu1 %2107, %v2925_v42   ;;  %2109 = vset.pattern.permute.xlu0 %v2157_v60  ;;  %v3901_v33 = vmov 8  }
 0x1fb   :  { %1375 = vperm.xlu0 %2109, %v2893_v1  }
 0x1fe   :  { %1310 = vperm.xlu1 %2107, %v2933_v48   ;;  %v3048_v32 = vpop.permute.xlu1 %967  ;;  %v3050_v61 = vpop.permute.xlu0 %971 }
 0x1ff   :  { %1387 = vperm.xlu0 %2109, %v2909_v39  }
 0x202   :  { %1318 = vperm.xlu1 %2107, %v2941_v50   ;;  %v3054_v0 = vpop.permute.xlu1 %975  ;;  %v3056_v3 = vpop.permute.xlu0 %983 }
 0x203   :  { %3891 = vst [vmem:[#allocation13_spill] sm:$0xff] %v3054_v0  ;;  %1395 = vperm.xlu0 %2109, %v2917_v29  }
 0x206   :  { %1326 = vperm.xlu1 %2107, %v2947_v51   ;;  %v3060_v5 = vpop.permute.xlu1 %979  ;;  %v3062_v2 = vpop.permute.xlu0 %991 }
 0x207   :  { %1403 = vperm.xlu0 %2109, %v2925_v42  }
 0x20a   :  { %2108 = vset.pattern.permute.xlu1 %v2157_v60  ;;  %v3065_v7 = vpop.permute.xlu1 %987  ;;  %v3067_v4 = vpop.permute.xlu0 %999 }
 0x20b   :  { %1371 = vperm.xlu1 %2108, %v2895_v9   ;;  %1411 = vperm.xlu0 %2109, %v2933_v48  }
 0x20e   :  { %v3071_v62 = vpop.permute.xlu1 %995  ;;  %v3073_v6 = vpop.permute.xlu0 %1007 }
 0x20f   :  { %3892 = vst [vmem:[#allocation14_spill] sm:$0xff] %v3073_v6  ;;  %1379 = vperm.xlu1 %2108, %v2901_v28   ;;  %1419 = vperm.xlu0 %2109, %v2941_v50  }
 0x212   :  { %v3077_v63 = vpop.permute.xlu1 %1003  ;;  %v3079_v8 = vpop.permute.xlu0 %1015 }
 0x213   :  { %3893 = vst [vmem:[#allocation15_spill] sm:$0xff] %v3079_v8  ;;  %1383 = vperm.xlu1 %2108, %v2903_v35   ;;  %1427 = vperm.xlu0 %2109, %v2947_v51  }
 0x216   :  { %v3083_v11 = vpop.permute.xlu1 %1011  ;;  %v3085_v10 = vpop.permute.xlu0 %1023 }
 0x217   :  { %3894 = vst [vmem:[#allocation16_spill] sm:$0xff] %v3085_v10  ;;  %1391 = vperm.xlu1 %2108, %v2911_v36   ;;  %2114 = vset.pattern.permute.xlu0 %v3865_v15  ;;  %v3873_v15 = vmov 7   ;;  %v3905_v10 = vmov 7  }
 0x218   :  { %1678 = vperm.xlu0 %2114, %v2893_v1  }
 0x21a   :  { %v3090_v22 = vpop.permute.xlu1 %1019 }
 0x21b   :  { %1399 = vperm.xlu1 %2108, %v2919_v40   ;;  %v3093_v14 = vpop.permute.xlu0 %1068 }
 0x21c   :  { %1682 = vperm.xlu0 %2114, %v2901_v28  }
 0x21e   :  { %v3096_v21 = vpop.permute.xlu1 %1027 }
 0x21f   :  { %1407 = vperm.xlu1 %2108, %v2927_v47   ;;  %v3099_v13 = vpop.permute.xlu0 %1080 }
 0x220   :  { %1698 = vperm.xlu0 %2114, %v2917_v29  }
 0x223   :  { %1415 = vperm.xlu1 %2108, %v2935_v49   ;;  %v3103_v37 = vpop.permute.xlu1 %1072  ;;  %v3105_v34 = vpop.permute.xlu0 %1088 }
 0x224   :  { %1702 = vperm.xlu0 %2114, %v2919_v40  }
 0x227   :  { %1423 = vperm.xlu1 %2108, %v2943_v46   ;;  %v3109_v25 = vpop.permute.xlu1 %1076  ;;  %v3111_v38 = vpop.permute.xlu0 %1096 }
 0x228   :  { %3895 = vst [vmem:[#allocation17_spill] sm:$0xff] %v3109_v25  ;;  %2126 = vset.pattern.permute.xlu0 %v3867_v43  ;;  %v3899_v25 = vmov 6  }
 0x229   :  { %1472 = vperm.xlu0 %2126, %v2895_v9  }
 0x22b   :  { %1431 = vperm.xlu1 %2108, %v2949_v52   ;;  %v3116_v45 = vpop.permute.xlu1 %1084  ;;  %v3118_v44 = vpop.permute.xlu0 %1104 }
 0x22d   :  { %1500 = vperm.xlu0 %2126, %v2919_v40  }
 0x22f   :  { %2110 = vset.pattern.permute.xlu1 %v3867_v43  ;;  %v3122_v41 = vpop.permute.xlu1 %1092  ;;  %v3124_v53 = vpop.permute.xlu0 %1112 }
 0x230   :  { %1476 = vperm.xlu1 %2110, %v2893_v1  }
 0x231   :  { %1504 = vperm.xlu0 %2126, %v2925_v42   ;;  %v3181_v42 = vld [vmem:[%s3860_s1] ss:$0 sm:$0xff] }
 0x233   :  { %v3128_v54 = vpop.permute.xlu1 %1100  ;;  %v3130_v55 = vpop.permute.xlu0 %1120 }
 0x234   :  { %3896 = vst [vmem:[#allocation18_spill] sm:$0xff] %v3128_v54  ;;  %1480 = vperm.xlu1 %2110, %v2901_v28  }
 0x235   :  { %1520 = vperm.xlu0 %2126, %v2941_v50  }
 0x237   :  { %v3134_v56 = vpop.permute.xlu1 %1108  ;;  %v3136_v60 = vpop.permute.xlu0 %1128 }
 0x238   :  { %3897 = vst [vmem:[#allocation19_spill] sm:$0xff] %v3134_v56  ;;  %2111 = vset.pattern.permute.xlu1 %v3873_v15 }
 0x239   :  { %1577 = vperm.xlu1 %2111, %v2893_v1   ;;  %1524 = vperm.xlu0 %2126, %v2943_v46  }
 0x23b   :  { %v3141_v43 = vpop.permute.xlu1 %1116 }
 0x23c   :  { %3898 = vst [vmem:[#allocation20_spill] sm:$0xff] %v3141_v43  ;;  %v3143_v52 = vpop.permute.xlu0 %1173 }
 0x23d   :  { %2112 = vset.pattern.permute.xlu1 %v3899_v25  ;;  %2133 = vset.pattern.permute.xlu0 %v3873_v15 }
 0x23e   :  { %1484 = vperm.xlu1 %2112, %v2903_v35   ;;  %1573 = vperm.xlu0 %2133, %v2895_v9  }
 0x23f   :  { %v3149_v17 = vpop.permute.xlu1 %1124 }
 0x240   :  { %3900 = vst [vmem:[#allocation21_spill] sm:$0xff] %v3149_v17  ;;  %v3151_v0 = vpop.permute.xlu0 %1185 }
 0x242   :  { %2113 = vset.pattern.permute.xlu1 %v3901_v33  ;;  %1581 = vperm.xlu0 %2133, %v2901_v28  }
 0x243   :  { %1674 = vperm.xlu1 %2113, %v2895_v9   ;;  %v3174_v9 = vld [vmem:[%s3860_s1 + $0x1] ss:$0 sm:$0xff] }
 0x244   :  { %v1170_v1 = vpop.permute.xlu1 %1169  ;;  %v3156_v46 = vpop.permute.xlu0 %1193  ;;  %v1034_v8 = vmul.f32 %v3174_v9, %v3048_v32  ;;  %v3206_v32 = vld [vmem:[%s3860_s1 + $0x3] ss:$0 sm:$0xff] }
 0x245   :  { %3902 = vst [vmem:[#allocation22_spill] sm:$0xff] %v3156_v46 }
 0x246   :  { %1589 = vperm.xlu0 %2133, %v2909_v39  }
 0x247   :  { %2115 = vset.pattern.permute.xlu1 %v3899_v25 }
 0x248   :  { %1488 = vperm.xlu1 %2115, %v2909_v39   ;;  %v3161_v15 = vpop.permute.xlu1 %1177  ;;  %v3163_v17 = vpop.permute.xlu0 %1201 }
 0x249   :  { %3903 = vst [vmem:[#allocation23_spill] sm:$0xff] %v3161_v15  ;;  %3904 = vst [vmem:[#allocation24_spill] sm:$0xff] %v3163_v17 }
 0x24a   :  { %1593 = vperm.xlu0 %2133, %v2911_v36  }
 0x24c   :  { %2116 = vset.pattern.permute.xlu1 %v3905_v10  ;;  %v1182_v28 = vpop.permute.xlu1 %1181  ;;  %v3167_v43 = vpop.permute.xlu0 %1209 }
 0x24d   :  { %3906 = vst [vmem:[#allocation25_spill] sm:$0xff] %v3167_v43  ;;  %1585 = vperm.xlu1 %2116, %v2903_v35   ;;  %v3186_v43 = vld [vmem:[%s3860_s1 + $0x2] ss:$0 sm:$0xff] }
 0x24e   :  { %1609 = vperm.xlu0 %2133, %v2927_v47   ;;  %v1135_v56 = vmul.f32 %v3186_v43, %v3093_v14  ;;  %v936_v47 = vmul.f32 %v3181_v42, %v3008_v19  ;;  %v944_v14 = vmul.f32 %v3181_v42, %v3031_v27  ;;  %v1045_v19 = vmul.f32 %v3174_v9, %v3083_v11 }
 0x24f   :  { %v940_v27 = vmul.f32 %v3181_v42, %v3019_v58  ;;  %v1146_v11 = vmul.f32 %v3186_v43, %v3124_v53  ;;  %v1047_v58 = vmul.f32 %v3174_v9, %v3090_v22  ;;  %v1148_v22 = vmul.f32 %v3186_v43, %v3130_v55 }
 0x250   :  { %v1190_v31 = vpop.permute.xlu1 %1189  ;;  %v3176_v15 = vpop.permute.xlu0 %1217  ;;  %v1061_v46 = vadd.f32 %v1045_v19, %v944_v14  ;;  %v1035_v55 = vmul.f32 %v3174_v9, %v3050_v61 }
 0x251   :  { %3907 = vst [vmem:[#allocation26_spill] sm:$0xff] %v3176_v15  ;;  %2117 = vset.pattern.permute.xlu1 %v3899_v25  ;;  %v933_v15 = vmul.f32 %v3181_v42, %v3002_v12  ;;  %v1236_v12 = vmul.f32 %v3206_v32, %v1170_v1  ;;  %v1241_v19 = vmul.f32 %v3206_v32, %v1190_v31 }
 0x252   :  { %1492 = vperm.xlu1 %2117, %v2911_v36   ;;  %1613 = vperm.xlu0 %2133, %v2933_v48   ;;  %v1037_v48 = vmul.f32 %v3174_v9, %v3060_v5  ;;  %v1142_v31 = vmul.f32 %v3186_v43, %v3111_v38 }
 0x253   :  { %v1050_v6 = vadd.f32 %v1034_v8, %v933_v15  ;;  %v3221_v8 = vld [vmem:[%s3860_s1 + $0x4] ss:$0 sm:$0xff]  ;;  %v1138_v15 = vmul.f32 %v3186_v43, %v3099_v13 }
 0x254   :  { %v3197_v24 = vpop.permute.xlu1 %1197  ;;  %v3199_v17 = vpop.permute.xlu0 %1225  ;;  %v1053_v20 = vadd.f32 %v1037_v48, %v936_v47  ;;  %v942_v47 = vmul.f32 %v3181_v42, %v3025_v59  ;;  %v1041_v59 = vmul.f32 %v3174_v9, %v3071_v62 }
 0x255   :  { %3908 = vst [vmem:[#allocation27_spill] sm:$0xff] %v3199_v17  ;;  %v1151_v5 = vadd.f32 %v1135_v56, %v1050_v6  ;;  %v938_v17 = vmul.f32 %v3181_v42, %v3014_v23  ;;  %v1239_v56 = vmul.f32 %v3206_v32, %v1182_v28  ;;  %v946_v23 = vmul.f32 %v3181_v42, %v3037_v26 }
 0x256   :  { %2118 = vset.pattern.permute.xlu1 %v3901_v33  ;;  %1629 = vperm.xlu0 %2133, %v2947_v51   ;;  %v1154_v48 = vadd.f32 %v1138_v15, %v1053_v20  ;;  %v1162_v28 = vadd.f32 %v1146_v11, %v1061_v46  ;;  %v1049_v46 = vmul.f32 %v3174_v9, %v3096_v21 }
 0x257   :  { %1686 = vperm.xlu1 %2118, %v2903_v35   ;;  %v1039_v35 = vmul.f32 %v3174_v9, %v3065_v7  ;;  %v1252_v6 = vadd.f32 %v1236_v12, %v1151_v5  ;;  %v1140_v7 = vmul.f32 %v3186_v43, %v3105_v34  ;;  %v948_v5 = vmul.f32 %v3181_v42, %v3043_v30 }
 0x258   :  { %v3225_v1 = vpop.permute.xlu1 %1205  ;;  %v1255_v20 = vadd.f32 %v1239_v56, %v1154_v48  ;;  %v1063_v15 = vadd.f32 %v1047_v58, %v946_v23  ;;  %v1043_v11 = vmul.f32 %v3174_v9, %v3077_v63  ;;  %v1243_v38 = vmul.f32 %v3206_v32, %v3197_v24 }
 0x259   :  { %v1271_v54 = vpop.permute.xlu0 %1270  ;;  %v934_v48 = vmul.f32 %v3181_v42, %v2999_v57  ;;  %v1065_v63 = vadd.f32 %v1049_v46, %v948_v5  ;;  %v1038_v5 = vmul.f32 %v3174_v9, %v3056_v3 }
 0x25a   :  { %v1337_v13 = vmul.f32 %v3221_v8, %v1271_v54  ;;  %2138 = vset.pattern.permute.xlu0 %v3901_v33  ;;  %v1055_v54 = vadd.f32 %v1039_v35, %v938_v17  ;;  %v1164_v21 = vadd.f32 %v1148_v22, %v1063_v15 }
 0x25b   :  { %2119 = vset.pattern.permute.xlu1 %v3899_v25  ;;  %1718 = vperm.xlu0 %2138, %v2935_v49   ;;  %v1051_v24 = vadd.f32 %v1035_v55, %v934_v48 }
 0x25c   :  { %v3248_v53 = vadd.f32 %v1337_v13, %v1252_v6  ;;  %1496 = vperm.xlu1 %2119, %v2917_v29   ;;  %v1214_v26 = vpop.permute.xlu1 %1213  ;;  %v1156_v62 = vadd.f32 %v1140_v7, %v1055_v54  ;;  %v1150_v6 = vmul.f32 %v3186_v43, %v3136_v60  ;;  %v1057_v13 = vadd.f32 %v1041_v59, %v940_v27 }
 0x25d   :  { %v1247_v12 = vmul.f32 %v3206_v32, %v1214_v26  ;;  %v1283_v14 = vpop.permute.xlu0 %1282  ;;  %v1136_v60 = vmul.f32 %v3186_v43, %v3103_v37  ;;  %v1245_v37 = vmul.f32 %v3206_v32, %v3225_v1 }
 0x25e   :  { %v1340_v34 = vmul.f32 %v3221_v8, %v1283_v14  ;;  %v1257_v23 = vadd.f32 %v1241_v19, %v1156_v62  ;;  %v1158_v26 = vadd.f32 %v1142_v31, %v1057_v13  ;;  %v1166_v22 = vadd.f32 %v1150_v6, %v1065_v63  ;;  %v3909_v63 = vld [vmem:[#allocation22_spill] sm:$0xff] }
 0x25f   :  { %v3262_v17 = vadd.f32 %v1247_v12, %v1162_v28  ;;  %1722 = vperm.xlu0 %2138, %v2941_v50   ;;  %v1059_v28 = vadd.f32 %v1043_v11, %v942_v47  ;;  %v1237_v14 = vmul.f32 %v3206_v32, %v3143_v52  ;;  %v1152_v19 = vadd.f32 %v1136_v60, %v1051_v24 }
 0x260   :  { %v3269_v35 = vadd.f32 %v1340_v34, %v1255_v20  ;;  %2120 = vset.pattern.permute.xlu1 %v3901_v33  ;;  %v1222_v30 = vpop.permute.xlu1 %1221  ;;  %v1259_v59 = vadd.f32 %v1243_v38, %v1158_v26  ;;  %v1139_v31 = vmul.f32 %v3186_v43, %v3116_v45  ;;  %v1040_v11 = vmul.f32 %v3174_v9, %v3062_v2 }
 0x261   :  { %v1249_v56 = vmul.f32 %v3206_v32, %v1222_v30  ;;  %1690 = vperm.xlu1 %2120, %v2909_v39   ;;  %v1291_v61 = vpop.permute.xlu0 %1290  ;;  %v1144_v39 = vmul.f32 %v3186_v43, %v3118_v44  ;;  %v1253_v55 = vadd.f32 %v1237_v14, %v1152_v19  ;;  %v1141_v13 = vmul.f32 %v3186_v43, %v3122_v41  ;;  %v3910_v41 = vld [vmem:[#allocation9_spill] sm:$0xff] }
 0x262   :  { %v1342_v58 = vmul.f32 %v3221_v8, %v1291_v61  ;;  %v1240_v61 = vmul.f32 %v3206_v32, %v3151_v0  ;;  %v1042_v0 = vmul.f32 %v3174_v9, %v3067_v4 }
 0x263   :  { %v1265_v7 = vadd.f32 %v1249_v56, %v1164_v21  ;;  %1730 = vperm.xlu0 %2138, %v2947_v51   ;;  %v1160_v47 = vadd.f32 %v1144_v39, %v1059_v28 }
 0x264   :  { %v3288_v27 = vadd.f32 %v1342_v58, %v1257_v23  ;;  %v1230_v54 = vpop.permute.xlu1 %1229 }
 0x265   :  { %v1251_v12 = vmul.f32 %v3206_v32, %v1230_v54  ;;  %2121 = vset.pattern.permute.xlu1 %v3905_v10  ;;  %v1299_v57 = vpop.permute.xlu0 %1298  ;;  %v1261_v52 = vadd.f32 %v1245_v37, %v1160_v47  ;;  %v3911_v54 = vld [vmem:[#allocation18_spill] sm:$0xff] }
 0x266   :  { %v1344_v44 = vmul.f32 %v3221_v8, %v1299_v57  ;;  %1597 = vperm.xlu1 %2121, %v2917_v29   ;;  %v937_v29 = vmul.f32 %v3181_v42, %v3011_v16  ;;  %v939_v16 = vmul.f32 %v3181_v42, %v3017_v18  ;;  %v1242_v18 = vmul.f32 %v3206_v32, %v3909_v63  ;;  %v3913_v57 = vld [vmem:[#allocation4_spill] sm:$0xff] }
 0x267   :  { %v1267_v20 = vadd.f32 %v1251_v12, %v1166_v22  ;;  %v3912_v22 = vld [vmem:[#allocation14_spill] sm:$0xff] }
 0x268   :  { %v3298_v34 = vadd.f32 %v1344_v44, %v1259_v59  ;;  %v1054_v56 = vadd.f32 %v1038_v5, %v937_v29  ;;  %v1056_v23 = vadd.f32 %v1040_v11, %v939_v16  ;;  %v1044_v12 = vmul.f32 %v3174_v9, %v3912_v22  ;;  %v3914_v44 = vld [vmem:[#allocation24_spill] sm:$0xff]  ;;  %v3357_v29 = vld [vmem:[%s3860_s1 + $0x5] ss:$0 sm:$0xff] }
 0x269   :  { %v1275_v15 = vpop.permute.xlu1 %1274  ;;  %v1307_v46 = vpop.permute.xlu0 %1306  ;;  %v1244_v19 = vmul.f32 %v3206_v32, %v3914_v44 }
 0x26a   :  { %v1338_v62 = vmul.f32 %v3221_v8, %v1275_v15  ;;  %v1346_v1 = vmul.f32 %v3221_v8, %v1307_v46  ;;  %2122 = vset.pattern.permute.xlu1 %v3901_v33  ;;  %v1155_v45 = vadd.f32 %v1139_v31, %v1054_v56  ;;  %v1157_v39 = vadd.f32 %v1141_v13, %v1056_v23  ;;  %v3917_v31 = vld [vmem:[#allocation15_spill] sm:$0xff] }
 0x26b   :  { %1694 = vperm.xlu1 %2122, %v2911_v36   ;;  %v1046_v11 = vmul.f32 %v3174_v9, %v3917_v31  ;;  %v3920_v23 = vld [vmem:[#allocation11_spill] sm:$0xff] }
 0x26c   :  { %v1354_v30 = vadd.f32 %v1338_v62, %v1253_v55  ;;  %v3310_v3 = vadd.f32 %v1346_v1, %v1261_v52  ;;  %v1256_v48 = vadd.f32 %v1240_v61, %v1155_v45  ;;  %v1258_v37 = vadd.f32 %v1242_v18, %v1157_v39  ;;  %v3916_v55 = vld [vmem:[#allocation19_spill] sm:$0xff] }
 0x26d   :  { %v3314_v21 = vpop.permute.xlu1 %1278  ;;  %v1315_v6 = vpop.permute.xlu0 %1314  ;;  %v1145_v52 = vmul.f32 %v3186_v43, %v3916_v55 }
 0x26e   :  { %v1348_v36 = vmul.f32 %v3221_v8, %v1315_v6 }
 0x26f   :  { %2123 = vset.pattern.permute.xlu1 %v3905_v10 }
 0x270   :  { %v3325_v2 = vadd.f32 %v1348_v36, %v3262_v17  ;;  %1601 = vperm.xlu1 %2123, %v2919_v40   ;;  %v941_v17 = vmul.f32 %v3181_v42, %v3910_v41  ;;  %v1143_v40 = vmul.f32 %v3186_v43, %v3911_v54  ;;  %v3918_v36 = vld [vmem:[#allocation25_spill] sm:$0xff] }
 0x271   :  { %v1287_v38 = vpop.permute.xlu1 %1286  ;;  %v1323_v58 = vpop.permute.xlu0 %1322  ;;  %v1246_v16 = vmul.f32 %v3206_v32, %v3918_v36 }
 0x272   :  { %v1341_v60 = vmul.f32 %v3221_v8, %v1287_v38  ;;  %v1350_v26 = vmul.f32 %v3221_v8, %v1323_v58  ;;  %v1058_v4 = vadd.f32 %v1042_v0, %v941_v17  ;;  %v945_v0 = vmul.f32 %v3181_v42, %v3920_v23  ;;  %v3922_v17 = vld [vmem:[#allocation16_spill] sm:$0xff] }
 0x273   :  { %v1048_v39 = vmul.f32 %v3174_v9, %v3922_v17 }
 0x274   :  { %v1357_v24 = vadd.f32 %v1341_v60, %v1256_v48  ;;  %v3338_v28 = vadd.f32 %v1350_v26, %v1265_v7  ;;  %2124 = vset.pattern.permute.xlu1 %v3899_v25  ;;  %v3915_v7 = vld [vmem:[#allocation10_spill] sm:$0xff]  ;;  %v1159_v46 = vadd.f32 %v1143_v40, %v1058_v4  ;;  %v3921_v48 = vld [vmem:[#allocation20_spill] sm:$0xff]  ;;  %v1062_v60 = vadd.f32 %v1046_v11, %v945_v0 }
 0x275   :  { %1508 = vperm.xlu1 %2124, %v3913_v57   ;;  %v1295_v14 = vpop.permute.xlu1 %1294  ;;  %v1331_v59 = vpop.permute.xlu0 %1330  ;;  %v943_v15 = vmul.f32 %v3181_v42, %v3915_v7  ;;  %v1147_v63 = vmul.f32 %v3186_v43, %v3921_v48  ;;  %v3923_v40 = vld [vmem:[#allocation26_spill] sm:$0xff] }
 0x276   :  { %v1343_v47 = vmul.f32 %v3221_v8, %v1295_v14  ;;  %v1352_v5 = vmul.f32 %v3221_v8, %v1331_v59  ;;  %v1260_v61 = vadd.f32 %v1244_v19, %v1159_v46  ;;  %v1248_v4 = vmul.f32 %v3206_v32, %v3923_v40  ;;  %v3924_v59 = vld [vmem:[#allocation5_spill] sm:$0xff] }
 0x277   :  { %v1060_v56 = vadd.f32 %v1044_v12, %v943_v15  ;;  %v1163_v44 = vadd.f32 %v1147_v63, %v1062_v60  ;;  %v3926_v19 = vld [vmem:[#allocation21_spill] sm:$0xff] }
 0x278   :  { %v1359_v62 = vadd.f32 %v1343_v47, %v1258_v37  ;;  %v3352_v1 = vadd.f32 %v1352_v5, %v1267_v20  ;;  %v3919_v20 = vld [vmem:[#allocation3_spill] sm:$0xff]  ;;  %v3925_v37 = vld [vmem:[#allocation12_spill] sm:$0xff]  ;;  %v1149_v47 = vmul.f32 %v3186_v43, %v3926_v19  ;;  %v3930_v63 = vld [vmem:[#allocation17_spill] sm:$0xff] }
 0x279   :  { %2125 = vset.pattern.permute.xlu1 %v3905_v10  ;;  %v1303_v6 = vpop.permute.xlu1 %1302  ;;  %v1161_v58 = vadd.f32 %v1145_v52, %v1060_v56  ;;  %v1264_v55 = vadd.f32 %v1248_v4, %v1163_v44  ;;  %v3927_v52 = vld [vmem:[#allocation27_spill] sm:$0xff]  ;;  %v1137_v60 = vmul.f32 %v3186_v43, %v3930_v63 }
 0x27a   :  { %v1345_v45 = vmul.f32 %v3221_v8, %v1303_v6  ;;  %1605 = vperm.xlu1 %2125, %v3919_v20   ;;  %v1376_v13 = vpop.permute.xlu0 %1375  ;;  %v1250_v31 = vmul.f32 %v3206_v32, %v3927_v52 }
 0x27b   :  { %v1439_v38 = vmul.f32 %v3357_v29, %v1376_v13  ;;  %v1262_v54 = vadd.f32 %v1246_v16, %v1161_v58  ;;  %v3928_v16 = vld [vmem:[#allocation13_spill] sm:$0xff]  ;;  %v3929_v58 = vld [vmem:[#allocation8_spill] sm:$0xff] }
 0x27c   :  { %v1361_v18 = vadd.f32 %v1345_v45, %v1260_v61  ;;  %v935_v48 = vmul.f32 %v3181_v42, %v3929_v58 }
 0x27d   :  { %v3371_v26 = vadd.f32 %v1439_v38, %v1354_v30  ;;  %v1311_v41 = vpop.permute.xlu1 %1310  ;;  %v947_v30 = vmul.f32 %v3181_v42, %v3925_v37  ;;  %v1339_v42 = vmul.f32 %v3221_v8, %v3314_v21 }
 0x27e   :  { %v1347_v22 = vmul.f32 %v3221_v8, %v1311_v41  ;;  %2127 = vset.pattern.permute.xlu1 %v3899_v25  ;;  %v1388_v12 = vpop.permute.xlu0 %1387 }
 0x27f   :  { %v1442_v14 = vmul.f32 %v3357_v29, %v1388_v12  ;;  %1512 = vperm.xlu1 %2127, %v3924_v59   ;;  %v1064_v46 = vadd.f32 %v1048_v39, %v947_v30 }
 0x280   :  { %v1363_v5 = vadd.f32 %v1347_v22, %v1262_v54 }
 0x281   :  { %v3385_v7 = vadd.f32 %v1442_v14, %v1357_v24  ;;  %v1319_v15 = vpop.permute.xlu1 %1318  ;;  %v1165_v61 = vadd.f32 %v1149_v47, %v1064_v46  ;;  %v1036_v24 = vmul.f32 %v3174_v9, %v3928_v16  ;;  %v3931_v9 = vld [vmem:[#allocation23_spill] sm:$0xff] }
 0x282   :  { %v1349_v11 = vmul.f32 %v3221_v8, %v1319_v15  ;;  %v1396_v6 = vpop.permute.xlu0 %1395 }
 0x283   :  { %v1444_v56 = vmul.f32 %v3357_v29, %v1396_v6  ;;  %2128 = vset.pattern.permute.xlu1 %v3901_v33  ;;  %v1266_v23 = vadd.f32 %v1250_v31, %v1165_v61 }
 0x284   :  { %v1365_v36 = vadd.f32 %v1349_v11, %v1264_v55  ;;  %1706 = vperm.xlu1 %2128, %v3919_v20   ;;  %v1052_v20 = vadd.f32 %v1036_v24, %v935_v48  ;;  %v3933_v48 = vld [vmem:[#allocation7_spill] sm:$0xff] }
 0x285   :  { %v3395_v45 = vadd.f32 %v1444_v56, %v1359_v62  ;;  %v1327_v13 = vpop.permute.xlu1 %1326  ;;  %v1238_v62 = vmul.f32 %v3206_v32, %v3931_v9 }
 0x286   :  { %v1351_v0 = vmul.f32 %v3221_v8, %v1327_v13  ;;  %v1404_v38 = vpop.permute.xlu0 %1403  ;;  %v1153_v4 = vadd.f32 %v1137_v60, %v1052_v20  ;;  %v3478_v60 = vld [vmem:[%s3860_s1 + $0x6] ss:$0 sm:$0xff] }
 0x287   :  { %v1446_v41 = vmul.f32 %v3357_v29, %v1404_v38 }
 0x288   :  { %v1367_v17 = vadd.f32 %v1351_v0, %v1266_v23  ;;  %2129 = vset.pattern.permute.xlu1 %v3899_v25  ;;  %v1254_v12 = vadd.f32 %v1238_v62, %v1153_v4  ;;  %v3932_v0 = vld [vmem:[#allocation6_spill] sm:$0xff]  ;;  %v3494_v62 = vld [vmem:[%s3860_s1 + $0x7] ss:$0 sm:$0xff]  ;;  %v3502_v4 = vld [vmem:[%s3860_s1 + $0x8] ss:$0 sm:$0xff] }
 0x289   :  { %v3406_v39 = vadd.f32 %v1446_v41, %v1361_v18  ;;  %1516 = vperm.xlu1 %2129, %v2935_v49  }
 0x28a   :  { %v1372_v54 = vpop.permute.xlu1 %1371  ;;  %v1412_v40 = vpop.permute.xlu0 %1411  ;;  %v1355_v30 = vadd.f32 %v1339_v42, %v1254_v12 }
 0x28b   :  { %v1438_v43 = vmul.f32 %v3357_v29, %v1372_v54  ;;  %v1448_v22 = vmul.f32 %v3357_v29, %v1412_v40 }
 0x28d   :  { %v3414_v14 = vadd.f32 %v1438_v43, %v3248_v53  ;;  %v3416_v37 = vadd.f32 %v1448_v22, %v1363_v5  ;;  %2130 = vset.pattern.permute.xlu1 %v3901_v33 }
 0x28e   :  { %1710 = vperm.xlu1 %2130, %v3913_v57   ;;  %v1380_v32 = vpop.permute.xlu1 %1379  ;;  %v1420_v18 = vpop.permute.xlu0 %1419 }
 0x28f   :  { %v1440_v44 = vmul.f32 %v3357_v29, %v1380_v32  ;;  %v1450_v8 = vmul.f32 %v3357_v29, %v1420_v18 }
 0x291   :  { %v1456_v21 = vadd.f32 %v1440_v44, %v1355_v30  ;;  %v3422_v19 = vadd.f32 %v1450_v8, %v1365_v36  ;;  %v3513_v44 = vld [vmem:[%s3861_s2] ss:$0 sm:$0xff] }
 0x292   :  { %2131 = vset.pattern.permute.xlu1 %v3905_v10  ;;  %v1384_v53 = vpop.permute.xlu1 %1383  ;;  %v1428_v47 = vpop.permute.xlu0 %1427 }
 0x293   :  { %v1441_v5 = vmul.f32 %v3357_v29, %v1384_v53  ;;  %v1452_v15 = vmul.f32 %v3357_v29, %v1428_v47  ;;  %1617 = vperm.xlu1 %2131, %v2935_v49  }
 0x295   :  { %v3429_v57 = vadd.f32 %v1441_v5, %v3269_v35  ;;  %v3431_v46 = vadd.f32 %v1452_v15, %v1367_v17 }
 0x296   :  { %v1392_v55 = vpop.permute.xlu1 %1391 }
 0x297   :  { %v1443_v52 = vmul.f32 %v3357_v29, %v1392_v55  ;;  %2132 = vset.pattern.permute.xlu1 %v3901_v33  ;;  %v1679_v31 = vpop.permute.xlu0 %1678 }
 0x298   :  { %1714 = vperm.xlu1 %2132, %v3924_v59   ;;  %v1742_v42 = vmul.f32 %v3502_v4, %v1679_v31 }
 0x299   :  { %v3437_v11 = vadd.f32 %v1443_v52, %v3288_v27 }
 0x29a   :  { %v1400_v6 = vpop.permute.xlu1 %1399 }
 0x29b   :  { %v1445_v56 = vmul.f32 %v3357_v29, %v1400_v6  ;;  %v3440_v49 = vpop.permute.xlu0 %1682 }
 0x29c   :  { %2134 = vset.pattern.permute.xlu1 %v3905_v10  ;;  %v1743_v52 = vmul.f32 %v3502_v4, %v3440_v49 }
 0x29d   :  { %v3444_v35 = vadd.f32 %v1445_v56, %v3298_v34  ;;  %1621 = vperm.xlu1 %2134, %v2941_v50  }
 0x29e   :  { %v1408_v61 = vpop.permute.xlu1 %1407 }
 0x29f   :  { %v1447_v36 = vmul.f32 %v3357_v29, %v1408_v61  ;;  %v3448_v16 = vpop.permute.xlu0 %1698 }
 0x2a1   :  { %v3451_v27 = vadd.f32 %v1447_v36, %v3310_v3  ;;  %2135 = vset.pattern.permute.xlu1 %v3899_v25 }
 0x2a2   :  { %1528 = vperm.xlu1 %2135, %v2947_v51   ;;  %v1416_v59 = vpop.permute.xlu1 %1415 }
 0x2a3   :  { %v1449_v24 = vmul.f32 %v3357_v29, %v1416_v59  ;;  %v3456_v13 = vpop.permute.xlu0 %1702 }
 0x2a5   :  { %v3459_v34 = vadd.f32 %v1449_v24, %v3325_v2 }
 0x2a6   :  { %2136 = vset.pattern.permute.xlu1 %v3905_v10  ;;  %v1424_v50 = vpop.permute.xlu1 %1423 }
 0x2a7   :  { %v1451_v23 = vmul.f32 %v3357_v29, %v1424_v50  ;;  %1625 = vperm.xlu1 %2136, %v3932_v0  }
 0x2a8   :  { %v1473_v3 = vpop.permute.xlu0 %1472 }
 0x2a9   :  { %v3465_v38 = vadd.f32 %v1451_v23, %v3338_v28  ;;  %v1539_v43 = vmul.f32 %v3478_v60, %v1473_v3 }
 0x2aa   :  { %v1432_v51 = vpop.permute.xlu1 %1431 }
 0x2ab   :  { %v1453_v58 = vmul.f32 %v3357_v29, %v1432_v51  ;;  %2137 = vset.pattern.permute.xlu1 %v3899_v25  ;;  %v1555_v8 = vadd.f32 %v1539_v43, %v3414_v14 }
 0x2ac   :  { %1532 = vperm.xlu1 %2137, %v3933_v48   ;;  %v3470_v2 = vpop.permute.xlu0 %1500 }
 0x2ad   :  { %v3473_v63 = vadd.f32 %v1453_v58, %v3352_v1 }
 0x2af   :  { %v1477_v41 = vpop.permute.xlu1 %1476 }
 0x2b0   :  { %v1540_v28 = vmul.f32 %v3478_v60, %v1477_v41  ;;  %2139 = vset.pattern.permute.xlu1 %v3901_v33  ;;  %v3482_v29 = vpop.permute.xlu0 %1504 }
 0x2b1   :  { %1726 = vperm.xlu1 %2139, %v3932_v0  }
 0x2b2   :  { %v1556_v25 = vadd.f32 %v1540_v28, %v3371_v26 }
 0x2b3   :  { %v1481_v17 = vpop.permute.xlu1 %1480 }
 0x2b4   :  { %v1541_v1 = vmul.f32 %v3478_v60, %v1481_v17  ;;  %v3487_v20 = vpop.permute.xlu0 %1520 }
 0x2b5   :  { %2140 = vset.pattern.permute.xlu1 %v3905_v10 }
 0x2b6   :  { %v1557_v9 = vadd.f32 %v1541_v1, %v1456_v21  ;;  %1633 = vperm.xlu1 %2140, %v3933_v48  }
 0x2b8   :  { %v1578_v54 = vpop.permute.xlu1 %1577  ;;  %v3496_v40 = vpop.permute.xlu0 %1524 }
 0x2b9   :  { %v1641_v26 = vmul.f32 %v3494_v62, %v1578_v54 }
 0x2ba   :  { %2141 = vset.pattern.permute.xlu1 %v3901_v33 }
 0x2bb   :  { %v1657_v10 = vadd.f32 %v1641_v26, %v1556_v25  ;;  %1734 = vperm.xlu1 %2141, %v3933_v48  }
 0x2bd   :  { %v1485_v22 = vpop.permute.xlu1 %1484  ;;  %v1574_v12 = vpop.permute.xlu0 %1573  ;;  %v1758_v18 = vadd.f32 %v1742_v42, %v1657_v10 }
 0x2be   :  { %v1542_v32 = vmul.f32 %v3478_v60, %v1485_v22  ;;  %v1640_v30 = vmul.f32 %v3494_v62, %v1574_v12 }
 0x2bf   :  { %v3519_v5 = vadd.f32 %v3513_v44, %v1758_v18 }
 0x2c0   :  { %v1558_v33 = vadd.f32 %v1542_v32, %v3429_v57  ;;  %v1656_v15 = vadd.f32 %v1640_v30, %v1555_v8 }
 0x2c1   :  { %v1582_v21 = vpop.permute.xlu0 %1581  ;;  %v1797_v57 = vmax.f32 %v3519_v5, 0.0 }
 0x2c2   :  { %v1642_v53 = vmul.f32 %v3494_v62, %v1582_v21  ;;  %v1675_v47 = vpop.permute.xlu1 %1674 }
 0x2c3   :  { %v1741_v55 = vmul.f32 %v3502_v4, %v1675_v47  ;;  %v1814_v0 = vsel %vm1812_vm9, %v1797_v57, 0.0 }
 0x2c4   :  { %v1658_v31 = vadd.f32 %v1642_v53, %v1557_v9 }
 0x2c5   :  { %v1757_v6 = vadd.f32 %v1741_v55, %v1656_v15  ;;  %v1590_v26 = vpop.permute.xlu0 %1589 }
 0x2c6   :  { %v1759_v56 = vadd.f32 %v1743_v52, %v1658_v31  ;;  %v1644_v42 = vmul.f32 %v3494_v62, %v1590_v26 }
 0x2c7   :  { %v3526_v14 = vadd.f32 %v3513_v44, %v1757_v6  ;;  %v1489_v61 = vpop.permute.xlu1 %1488  ;;  %v1747_v6 = vmul.f32 %v3502_v4, %v3448_v16 }
 0x2c8   :  { %v3529_v36 = vadd.f32 %v3513_v44, %v1759_v56  ;;  %v1543_v59 = vmul.f32 %v3478_v60, %v1489_v61 }
 0x2c9   :  { %v1796_v24 = vmax.f32 %v3526_v14, 0.0  ;;  %v1594_v47 = vpop.permute.xlu0 %1593 }
 0x2ca   :  { %v1798_v50 = vmax.f32 %v3529_v36, 0.0  ;;  %v1559_v49 = vadd.f32 %v1543_v59, %v3385_v7  ;;  %v1645_v61 = vmul.f32 %v3494_v62, %v1594_v47 }
 0x2cb   :  { %v1813_v23 = vsel %vm1812_vm9, %v1796_v24, 0.0 }
 0x2cc   :  { %v1816_v3 = vsel %vm1812_vm9, %v1798_v50, 0.0  ;;  %v1815_v51 = vadd.f32 %v1814_v0, %v1813_v23  ;;  %v1586_v58 = vpop.permute.xlu1 %1585  ;;  %v1660_v32 = vadd.f32 %v1644_v42, %v1559_v49 }
 0x2cd   :  { %v1643_v28 = vmul.f32 %v3494_v62, %v1586_v58 }
 0x2ce   :  { %v1817_v48 = vadd.f32 %v1816_v3, %v1815_v51 }
 0x2cf   :  { %v1659_v7 = vadd.f32 %v1643_v28, %v1558_v33 }
 0x2d1   :  { %v1493_v41 = vpop.permute.xlu1 %1492 }
 0x2d2   :  { %v1544_v33 = vmul.f32 %v3478_v60, %v1493_v41 }
 0x2d4   :  { %v1560_v52 = vadd.f32 %v1544_v33, %v3437_v11  ;;  %v1546_v11 = vmul.f32 %v3478_v60, %v3470_v2 }
 0x2d6   :  { %v1687_v25 = vpop.permute.xlu1 %1686  ;;  %v1562_v41 = vadd.f32 %v1546_v11, %v3444_v35 }
 0x2d7   :  { %v1744_v17 = vmul.f32 %v3502_v4, %v1687_v25 }
 0x2d9   :  { %v1760_v1 = vadd.f32 %v1744_v17, %v1659_v7  ;;  %v1748_v17 = vmul.f32 %v3502_v4, %v3456_v13 }
 0x2db   :  { %v3547_v9 = vadd.f32 %v3513_v44, %v1760_v1  ;;  %v1497_v54 = vpop.permute.xlu1 %1496 }
 0x2dc   :  { %v1545_v30 = vmul.f32 %v3478_v60, %v1497_v54 }
 0x2dd   :  { %v1799_v10 = vmax.f32 %v3547_v9, 0.0 }
 0x2de   :  { %v1561_v15 = vadd.f32 %v1545_v30, %v3395_v45  ;;  %v1661_v45 = vadd.f32 %v1645_v61, %v1560_v52  ;;  %v1547_v30 = vmul.f32 %v3478_v60, %v3482_v29 }
 0x2df   :  { %v1818_v43 = vsel %vm1812_vm9, %v1799_v10, 0.0 }
 0x2e0   :  { %v1819_v22 = vadd.f32 %v1818_v43, %v1817_v48  ;;  %v1691_v12 = vpop.permute.xlu1 %1690  ;;  %v1563_v47 = vadd.f32 %v1547_v30, %v3406_v39 }
 0x2e1   :  { %v1745_v18 = vmul.f32 %v3502_v4, %v1691_v12 }
 0x2e3   :  { %v1761_v8 = vadd.f32 %v1745_v18, %v1660_v32 }
 0x2e5   :  { %v3558_v21 = vadd.f32 %v3513_v44, %v1761_v8  ;;  %v1598_v53 = vpop.permute.xlu1 %1597  ;;  %v1610_v8 = vpop.permute.xlu0 %1609 }
 0x2e6   :  { %v1646_v55 = vmul.f32 %v3494_v62, %v1598_v53 }
 0x2e7   :  { %v1800_v31 = vmax.f32 %v3558_v21, 0.0 }
 0x2e8   :  { %v1662_v56 = vadd.f32 %v1646_v55, %v1561_v15 }
 0x2e9   :  { %v1820_v59 = vsel %vm1812_vm9, %v1800_v31, 0.0 }
 0x2ea   :  { %v1821_v49 = vadd.f32 %v1820_v59, %v1819_v22  ;;  %v1763_v23 = vadd.f32 %v1747_v6, %v1662_v56  ;;  %v1695_v0 = vpop.permute.xlu1 %1694  ;;  %v1614_v6 = vpop.permute.xlu0 %1613 }
 0x2eb   :  { %v1746_v3 = vmul.f32 %v3502_v4, %v1695_v0  ;;  %v1649_v0 = vmul.f32 %v3494_v62, %v1610_v8 }
 0x2ec   :  { %v3574_v51 = vadd.f32 %v3513_v44, %v1763_v23 }
 0x2ed   :  { %v1762_v16 = vadd.f32 %v1746_v3, %v1661_v45 }
 0x2ee   :  { %v1802_v25 = vmax.f32 %v3574_v51, 0.0  ;;  %v1630_v45 = vpop.permute.xlu0 %1629 }
 0x2ef   :  { %v3577_v58 = vadd.f32 %v3513_v44, %v1762_v16  ;;  %v1602_v48 = vpop.permute.xlu1 %1601 }
 0x2f0   :  { %v1647_v28 = vmul.f32 %v3494_v62, %v1602_v48  ;;  %v1824_v35 = vsel %vm1812_vm9, %v1802_v25, 0.0 }
 0x2f1   :  { %v1801_v7 = vmax.f32 %v3577_v58, 0.0 }
 0x2f2   :  { %v1663_v2 = vadd.f32 %v1647_v28, %v1562_v41 }
 0x2f3   :  { %v1822_v1 = vsel %vm1812_vm9, %v1801_v7, 0.0 }
 0x2f4   :  { %v1823_v54 = vadd.f32 %v1822_v1, %v1821_v49  ;;  %v1764_v26 = vadd.f32 %v1748_v17, %v1663_v2  ;;  %v1509_v42 = vpop.permute.xlu1 %1508 }
 0x2f5   :  { %v1548_v56 = vmul.f32 %v3478_v60, %v1509_v42 }
 0x2f6   :  { %v1825_v43 = vadd.f32 %v1824_v35, %v1823_v54  ;;  %v3592_v22 = vadd.f32 %v3513_v44, %v1764_v26 }
 0x2f7   :  { %v1564_v29 = vadd.f32 %v1548_v56, %v3451_v27  ;;  %v1719_v27 = vpop.permute.xlu0 %1718 }
 0x2f8   :  { %v1803_v12 = vmax.f32 %v3592_v22, 0.0 }
 0x2f9   :  { %v1606_v32 = vpop.permute.xlu1 %1605  ;;  %v1665_v16 = vadd.f32 %v1649_v0, %v1564_v29 }
 0x2fa   :  { %v1826_v13 = vsel %vm1812_vm9, %v1803_v12, 0.0  ;;  %v1648_v53 = vmul.f32 %v3494_v62, %v1606_v32 }
 0x2fb   :  { %v1827_v18 = vadd.f32 %v1826_v13, %v1825_v43  ;;  %v1752_v43 = vmul.f32 %v3502_v4, %v1719_v27  ;;  %v1650_v13 = vmul.f32 %v3494_v62, %v1614_v6 }
 0x2fc   :  { %v1664_v55 = vadd.f32 %v1648_v53, %v1563_v47 }
 0x2fe   :  { %v1513_v33 = vpop.permute.xlu1 %1512 }
 0x2ff   :  { %v1549_v28 = vmul.f32 %v3478_v60, %v1513_v33 }
 0x301   :  { %v1565_v42 = vadd.f32 %v1549_v28, %v3416_v37  ;;  %v1551_v37 = vmul.f32 %v3478_v60, %v3487_v20 }
 0x303   :  { %v1707_v15 = vpop.permute.xlu1 %1706  ;;  %v1666_v53 = vadd.f32 %v1650_v13, %v1565_v42  ;;  %v1567_v56 = vadd.f32 %v1551_v37, %v3422_v19  ;;  %v1654_v42 = vmul.f32 %v3494_v62, %v1630_v45 }
 0x304   :  { %v1749_v52 = vmul.f32 %v3502_v4, %v1707_v15 }
 0x306   :  { %v1765_v61 = vadd.f32 %v1749_v52, %v1664_v55  ;;  %v1723_v55 = vpop.permute.xlu0 %1722 }
 0x307   :  { %v1753_v0 = vmul.f32 %v3502_v4, %v1723_v55 }
 0x308   :  { %v3605_v59 = vadd.f32 %v3513_v44, %v1765_v61  ;;  %v1517_v49 = vpop.permute.xlu1 %1516 }
 0x309   :  { %v1550_v41 = vmul.f32 %v3478_v60, %v1517_v49 }
 0x30a   :  { %v1804_v23 = vmax.f32 %v3605_v59, 0.0 }
 0x30b   :  { %v1566_v54 = vadd.f32 %v1550_v41, %v3459_v34 }
 0x30c   :  { %v1828_v39 = vsel %vm1812_vm9, %v1804_v23, 0.0 }
 0x30d   :  { %v1829_v3 = vadd.f32 %v1828_v39, %v1827_v18  ;;  %v1711_v11 = vpop.permute.xlu1 %1710 }
 0x30e   :  { %v1750_v48 = vmul.f32 %v3502_v4, %v1711_v11 }
 0x310   :  { %v1766_v17 = vadd.f32 %v1750_v48, %v1665_v16 }
 0x312   :  { %v3617_v2 = vadd.f32 %v3513_v44, %v1766_v17  ;;  %v1618_v1 = vpop.permute.xlu1 %1617 }
 0x313   :  { %v1651_v26 = vmul.f32 %v3494_v62, %v1618_v1 }
 0x314   :  { %v1805_v35 = vmax.f32 %v3617_v2, 0.0 }
 0x315   :  { %v1667_v32 = vadd.f32 %v1651_v26, %v1566_v54 }
 0x316   :  { %v1830_v18 = vsel %vm1812_vm9, %v1805_v35, 0.0 }
 0x317   :  { %v1831_v30 = vadd.f32 %v1830_v18, %v1829_v3  ;;  %v1768_v33 = vadd.f32 %v1752_v43, %v1667_v32  ;;  %v1715_v8 = vpop.permute.xlu1 %1714  ;;  %v1731_v43 = vpop.permute.xlu0 %1730  ;;  %v1552_v32 = vmul.f32 %v3478_v60, %v3496_v40 }
 0x318   :  { %v1751_v34 = vmul.f32 %v3502_v4, %v1715_v8 }
 0x319   :  { %v3632_v47 = vadd.f32 %v3513_v44, %v1768_v33  ;;  %v1568_v8 = vadd.f32 %v1552_v32, %v3465_v38 }
 0x31a   :  { %v1767_v15 = vadd.f32 %v1751_v34, %v1666_v53 }
 0x31b   :  { %v1807_v49 = vmax.f32 %v3632_v47, 0.0 }
 0x31c   :  { %v3635_v52 = vadd.f32 %v3513_v44, %v1767_v15  ;;  %v1622_v6 = vpop.permute.xlu1 %1621 }
 0x31d   :  { %v1652_v61 = vmul.f32 %v3494_v62, %v1622_v6  ;;  %v1834_v19 = vsel %vm1812_vm9, %v1807_v49, 0.0 }
 0x31e   :  { %v1806_v29 = vmax.f32 %v3635_v52, 0.0 }
 0x31f   :  { %v1668_v20 = vadd.f32 %v1652_v61, %v1567_v56 }
 0x320   :  { %v1832_v39 = vsel %vm1812_vm9, %v1806_v29, 0.0 }
 0x321   :  { %v1833_v3 = vadd.f32 %v1832_v39, %v1831_v30  ;;  %v1769_v11 = vadd.f32 %v1753_v0, %v1668_v20  ;;  %v1529_v16 = vpop.permute.xlu1 %1528  ;;  %v1755_v30 = vmul.f32 %v3502_v4, %v1731_v43 }
 0x322   :  { %v1553_v28 = vmul.f32 %v3478_v60, %v1529_v16 }
 0x323   :  { %v1835_v48 = vadd.f32 %v1834_v19, %v1833_v3  ;;  %v1792_v41 = vadd.f32 %v3513_v44, %v1769_v11 }
 0x324   :  { %v1569_v54 = vadd.f32 %v1553_v28, %v3431_v46 }
 0x325   :  { %v1808_v17 = vmax.f32 %v1792_v41, 0.0 }
 0x326   :  { %v1626_v27 = vpop.permute.xlu1 %1625  ;;  %v1670_v13 = vadd.f32 %v1654_v42, %v1569_v54 }
 0x327   :  { %v1836_v1 = vsel %vm1812_vm9, %v1808_v17, 0.0  ;;  %v1653_v33 = vmul.f32 %v3494_v62, %v1626_v27 }
 0x328   :  { %v1837_v26 = vadd.f32 %v1836_v1, %v1835_v48  ;;  %v1771_v53 = vadd.f32 %v1755_v30, %v1670_v13 }
 0x329   :  { %v1669_v37 = vadd.f32 %v1653_v33, %v1568_v8 }
 0x32a   :  { %v1794_v15 = vadd.f32 %v3513_v44, %v1771_v53 }
 0x32b   :  { %v1533_v18 = vpop.permute.xlu1 %1532 }
 0x32c   :  { %v1554_v55 = vmul.f32 %v3478_v60, %v1533_v18  ;;  %v1810_v56 = vmax.f32 %v1794_v15, 0.0 }
 0x32e   :  { %v1570_v20 = vadd.f32 %v1554_v55, %v3473_v63  ;;  %v1840_v19 = vsel %vm1812_vm9, %v1810_v56, 0.0 }
 0x330   :  { %v1727_v34 = vpop.permute.xlu1 %1726 }
 0x331   :  { %v1754_v46 = vmul.f32 %v3502_v4, %v1727_v34 }
 0x333   :  { %v1770_v45 = vadd.f32 %v1754_v46, %v1669_v37 }
 0x335   :  { %v1793_v40 = vadd.f32 %v3513_v44, %v1770_v45  ;;  %v1634_v6 = vpop.permute.xlu1 %1633 }
 0x336   :  { %v1655_v0 = vmul.f32 %v3494_v62, %v1634_v6 }
 0x337   :  { %v1809_v61 = vmax.f32 %v1793_v40, 0.0 }
 0x338   :  { %v1671_v11 = vadd.f32 %v1655_v0, %v1570_v20 }
 0x339   :  { %v1838_v38 = vsel %vm1812_vm9, %v1809_v61, 0.0 }
 0x33a   :  { %v1839_v39 = vadd.f32 %v1838_v38, %v1837_v26  ;;  %v1735_v3 = vpop.permute.xlu1 %1734 }
 0x33b   :  { %v1756_v16 = vmul.f32 %v3502_v4, %v1735_v3 }
 0x33c   :  { %v1841_v48 = vadd.f32 %v1840_v19, %v1839_v39 }
 0x33d   :  { %v1772_v60 = vadd.f32 %v1756_v16, %v1671_v11 }
 0x33f   :  { %v1795_v41 = vadd.f32 %v3513_v44, %v1772_v60 }
 0x341   :  { %v1811_v28 = vmax.f32 %v1795_v41, 0.0 }
 0x343   :  { %v1842_v27 = vsel %vm1812_vm9, %v1811_v28, 0.0 }
 0x344   :  { %v1843_v1 = vadd.f32 %v1842_v27, %v1841_v48 }
 0x346   :  { %v1844_v62 = vrot.slane %v1843_v1, 4 }
 0x348   :  { %v1845_v54 = vadd.f32 %v1844_v62, %v1843_v1 }
 0x34a   :  { %v1846_v63 = vrot.slane %v1845_v54, 2 }
 0x34c   :  { %v1847_v42 = vadd.f32 %v1846_v63, %v1845_v54 }
 0x34e   :  { %v1848_v43 = vrot.slane %v1847_v42, 1 }
 0x350   :  { %v1849_v26 = vadd.f32 %v1848_v43, %v1847_v42 }
 0x352   :  { %v1850_v32 = vmul.f32 0.0078125, %v1849_v26 }
 0x354   :  { %v3671_v4 = vsub.f32 %v1796_v24, %v1850_v32  ;;  %v3675_v13 = vsub.f32 %v1797_v57, %v1850_v32  ;;  %v3679_v44 = vsub.f32 %v1798_v50, %v1850_v32  ;;  %v3683_v18 = vsub.f32 %v1799_v10, %v1850_v32 }
 0x355   :  { %v3687_v30 = vsub.f32 %v1800_v31, %v1850_v32  ;;  %v3691_v14 = vsub.f32 %v1801_v7, %v1850_v32  ;;  %v3695_v5 = vsub.f32 %v1802_v25, %v1850_v32  ;;  %v3699_v57 = vsub.f32 %v1803_v12, %v1850_v32 }
 0x356   :  { %v3703_v36 = vsub.f32 %v1804_v23, %v1850_v32  ;;  %v3707_v24 = vsub.f32 %v1805_v35, %v1850_v32  ;;  %v3711_v50 = vsub.f32 %v1806_v29, %v1850_v32  ;;  %v3715_v9 = vsub.f32 %v1807_v49, %v1850_v32 }
 0x357   :  { %v3717_v10 = vsub.f32 %v1808_v17, %v1850_v32  ;;  %v3719_v21 = vsub.f32 %v1809_v61, %v1850_v32  ;;  %v3721_v31 = vsub.f32 %v1810_v56, %v1850_v32  ;;  %v3723_v51 = vsub.f32 %v1811_v28, %v1850_v32 }
 0x358   :  { %v1867_v58 = vmul.f32 %v3671_v4, %v3671_v4  ;;  %v1868_v25 = vmul.f32 %v3675_v13, %v3675_v13  ;;  %v1869_v7 = vmul.f32 %v3679_v44, %v3679_v44  ;;  %v1870_v22 = vmul.f32 %v3683_v18, %v3683_v18 }
 0x359   :  { %v1871_v2 = vmul.f32 %v3687_v30, %v3687_v30  ;;  %v1872_v52 = vmul.f32 %v3691_v14, %v3691_v14  ;;  %v1873_v17 = vmul.f32 %v3695_v5, %v3695_v5  ;;  %v1874_v53 = vmul.f32 %v3699_v57, %v3699_v57 }
 0x35a   :  { %v1883_v12 = vsel %vm1812_vm9, %v1867_v58, 0.0  ;;  %v1884_v59 = vsel %vm1812_vm9, %v1868_v25, 0.0  ;;  %v1886_v35 = vsel %vm1812_vm9, %v1869_v7, 0.0  ;;  %v1888_v49 = vsel %vm1812_vm9, %v1870_v22, 0.0 }
 0x35b   :  { %v1885_v23 = vadd.f32 %v1884_v59, %v1883_v12  ;;  %v1890_v33 = vsel %vm1812_vm9, %v1871_v2, 0.0  ;;  %v1892_v34 = vsel %vm1812_vm9, %v1872_v52, 0.0  ;;  %v1875_v46 = vmul.f32 %v3703_v36, %v3703_v36 }
 0x35c   :  { %v1894_v15 = vsel %vm1812_vm9, %v1873_v17, 0.0  ;;  %v1876_v55 = vmul.f32 %v3707_v24, %v3707_v24  ;;  %v1896_v40 = vsel %vm1812_vm9, %v1874_v53, 0.0  ;;  %v1877_v56 = vmul.f32 %v3711_v50, %v3711_v50 }
 0x35d   :  { %v1887_v47 = vadd.f32 %v1886_v35, %v1885_v23  ;;  %v1898_v61 = vsel %vm1812_vm9, %v1875_v46, 0.0  ;;  %v1878_v20 = vmul.f32 %v3715_v9, %v3715_v9  ;;  %v1879_v3 = vmul.f32 %v3717_v10, %v3717_v10 }
 0x35e   :  { %v1900_v38 = vsel %vm1812_vm9, %v1876_v55, 0.0  ;;  %v1902_v11 = vsel %vm1812_vm9, %v1877_v56, 0.0  ;;  %v1880_v19 = vmul.f32 %v3719_v21, %v3719_v21  ;;  %v1881_v41 = vmul.f32 %v3721_v31, %v3721_v31 }
 0x35f   :  { %v1889_v29 = vadd.f32 %v1888_v49, %v1887_v47  ;;  %v1904_v48 = vsel %vm1812_vm9, %v1878_v20, 0.0  ;;  %v1906_v28 = vsel %vm1812_vm9, %v1879_v3, 0.0  ;;  %v1882_v1 = vmul.f32 %v3723_v51, %v3723_v51  ;;  %v1921_v47 = vld [vmem:[%s3862_s3] sm:$0x1] }
 0x360   :  { %v1908_v62 = vsel %vm1812_vm9, %v1880_v19, 0.0  ;;  %v1910_v63 = vsel %vm1812_vm9, %v1881_v41, 0.0  ;;  %v1926_v2 = vlaneseq }
 0x361   :  { %v1891_v8 = vadd.f32 %v1890_v33, %v1889_v29  ;;  %v1912_v43 = vsel %vm1812_vm9, %v1882_v1, 0.0 }
 0x362   :  { %v1927_v35 = vshrl.u32 %v1926_v2, 7 }
 0x363   :  { %v1893_v37 = vadd.f32 %v1892_v34, %v1891_v8 }
 0x364   :  { %v1928_v52 = vsub.s32 0, %v1927_v35 }
 0x365   :  { %v1895_v45 = vadd.f32 %v1894_v15, %v1893_v37  ;;  %v2080_v37 = vld [vmem:[%s3863_s4] ss:$0 sm:$0xff] }
 0x367   :  { %v1897_v6 = vadd.f32 %v1896_v40, %v1895_v45 }
 0x369   :  { %v1899_v0 = vadd.f32 %v1898_v61, %v1897_v6 }
 0x36b   :  { %v1901_v39 = vadd.f32 %v1900_v38, %v1899_v0 }
 0x36d   :  { %v1903_v16 = vadd.f32 %v1902_v11, %v1901_v39 }
 0x36f   :  { %v1905_v60 = vadd.f32 %v1904_v48, %v1903_v16 }
 0x371   :  { %v1907_v27 = vadd.f32 %v1906_v28, %v1905_v60 }
 0x373   :  { %v1909_v54 = vadd.f32 %v1908_v62, %v1907_v27 }
 0x375   :  { %v1911_v42 = vadd.f32 %v1910_v63, %v1909_v54 }
 0x377   :  { %v1913_v26 = vadd.f32 %v1912_v43, %v1911_v42 }
 0x379   :  { %v1914_v32 = vrot.slane %v1913_v26, 4 }
 0x37b   :  { %v1915_v58 = vadd.f32 %v1914_v32, %v1913_v26 }
 0x37d   :  { %v1916_v25 = vrot.slane %v1915_v58, 2 }
 0x37f   :  { %v1917_v7 = vadd.f32 %v1916_v25, %v1915_v58 }
 0x381   :  { %v1918_v22 = vrot.slane %v1917_v7, 1 }
 0x383   :  { %v1919_v12 = vadd.f32 %v1918_v22, %v1917_v7 }
 0x385   :  { %v1920_v59 = vmul.f32 0.0078125, %v1919_v12 }
 0x387   :  { %v1922_v23 = vadd.f32 1e-05, %v1920_v59 }
 0x389   :  { %2142 = vrsqrt.f32 %v1922_v23 }
 0x393   :  { %v2143_v49 = vpop.eup %2142 }
 0x394   :  { %v1924_v29 = vmul.f32 %v2143_v49, %v1921_v47 }
 0x396   :  { %v1929_v17 = vrot.slane %v1924_v29, %v1928_v52 }
 0x398   :  { %v1931_v33 = vmul.f32 %v1929_v17, %v3671_v4  ;;  %v1932_v8 = vmul.f32 %v1929_v17, %v3675_v13  ;;  %v1933_v53 = vmul.f32 %v1929_v17, %v3679_v44  ;;  %v1934_v34 = vmul.f32 %v1929_v17, %v3683_v18 }
 0x399   :  { %v1935_v46 = vmul.f32 %v1929_v17, %v3687_v30  ;;  %v1936_v15 = vmul.f32 %v1929_v17, %v3691_v14  ;;  %v1937_v45 = vmul.f32 %v1929_v17, %v3695_v5  ;;  %v1938_v55 = vmul.f32 %v1929_v17, %v3699_v57 }
 0x39a   :  { %v1939_v4 = vmul.f32 %v1929_v17, %v3703_v36  ;;  %v1940_v13 = vmul.f32 %v1929_v17, %v3707_v24  ;;  %v1941_v44 = vmul.f32 %v1929_v17, %v3711_v50  ;;  %v1942_v18 = vmul.f32 %v1929_v17, %v3715_v9 }
 0x39b   :  { %v1943_v40 = vmul.f32 %v1929_v17, %v3717_v10  ;;  %v1944_v6 = vmul.f32 %v1929_v17, %v3719_v21  ;;  %v1945_v30 = vmul.f32 %v1929_v17, %v3721_v31  ;;  %v1946_v14 = vmul.f32 %v1929_v17, %v3723_v51 }
 0x39c   :  { %v1954_v56 = vadd.f32 %v2080_v37, %v1931_v33  ;;  %v1955_v5 = vadd.f32 %v2080_v37, %v1932_v8  ;;  %v1956_v61 = vadd.f32 %v2080_v37, %v1933_v53  ;;  %v1957_v57 = vadd.f32 %v2080_v37, %v1934_v34 }
 0x39d   :  { %v1958_v0 = vadd.f32 %v2080_v37, %v1935_v46  ;;  %v1959_v36 = vadd.f32 %v2080_v37, %v1936_v15  ;;  %v1960_v20 = vadd.f32 %v2080_v37, %v1937_v45  ;;  %v1961_v24 = vadd.f32 %v2080_v37, %v1938_v55 }
 0x39e   :  { %v1962_v38 = vadd.f32 %v2080_v37, %v1939_v4  ;;  %v1963_v50 = vadd.f32 %v2080_v37, %v1940_v13  ;;  %v1964_v39 = vadd.f32 %v2080_v37, %v1941_v44  ;;  %v1965_v9 = vadd.f32 %v2080_v37, %v1942_v18  ;;  %1970 = vst.msk [vmem:[%s3864_s5] sm:$0xff] %vm1812_vm9, %v1954_v56 }
 0x39f   :  { %1971 = vst.msk [vmem:[%s3864_s5 + $0x8] sm:$0xff] %vm1812_vm9, %v1955_v5  ;;  %1972 = vst.msk [vmem:[%s3864_s5 + $0x10] sm:$0xff] %vm1812_vm9, %v1956_v61  ;;  %v1966_v10 = vadd.f32 %v2080_v37, %v1943_v40  ;;  %v1967_v21 = vadd.f32 %v2080_v37, %v1944_v6  ;;  %v1968_v31 = vadd.f32 %v2080_v37, %v1945_v30 }
 0x3a0   :  { %1973 = vst.msk [vmem:[%s3864_s5 + $0x18] sm:$0xff] %vm1812_vm9, %v1957_v57  ;;  %v1969_v51 = vadd.f32 %v2080_v37, %v1946_v14  ;;  %1974 = vst.msk [vmem:[%s3864_s5 + $0x20] sm:$0xff] %vm1812_vm9, %v1958_v0 }
 0x3a1   :  { %1975 = vst.msk [vmem:[%s3864_s5 + $0x28] sm:$0xff] %vm1812_vm9, %v1959_v36  ;;  %1976 = vst.msk [vmem:[%s3864_s5 + $0x30] sm:$0xff] %vm1812_vm9, %v1960_v20 }
 0x3a2   :  { %1977 = vst.msk [vmem:[%s3864_s5 + $0x38] sm:$0xff] %vm1812_vm9, %v1961_v24  ;;  %1978 = vst.msk [vmem:[%s3864_s5 + $0x40] sm:$0xff] %vm1812_vm9, %v1962_v38 }
 0x3a3   :  { %1979 = vst.msk [vmem:[%s3864_s5 + $0x48] sm:$0xff] %vm1812_vm9, %v1963_v50  ;;  %1980 = vst.msk [vmem:[%s3864_s5 + $0x50] sm:$0xff] %vm1812_vm9, %v1964_v39 }
 0x3a4   :  { %1981 = vst.msk [vmem:[%s3864_s5 + $0x58] sm:$0xff] %vm1812_vm9, %v1965_v9  ;;  %1982 = vst.msk [vmem:[%s3864_s5 + $0x60] sm:$0xff] %vm1812_vm9, %v1966_v10 }
 0x3a5   :  { %1983 = vst.msk [vmem:[%s3864_s5 + $0x68] sm:$0xff] %vm1812_vm9, %v1967_v21  ;;  %1984 = vst.msk [vmem:[%s3864_s5 + $0x70] sm:$0xff] %vm1812_vm9, %v1968_v31 }
 0x3a6   :  { %1985 = vst.msk [vmem:[%s3864_s5 + $0x78] sm:$0xff] %vm1812_vm9, %v1969_v51 }

</bundles_post_ra>
